<compile_context>
chip_gen: v7x
topology: tpu7x:2x2x1
jax: 0.10.0
libtpu: 0.0.40
codegen_flags: <defaults>
</compile_context>

<pallas_src>
import functools

import jax
import jax.numpy as jnp
import numpy as np
from jax.experimental import pallas as pl
from jax.experimental.pallas import tpu as pltpu

_EPS = 1e-5
_LANE = 128
_VMEM_LIMIT = 64 * 1024 * 1024      # sized against v7x's 64 MiB physical VMEM
_TARGET_TILE_ROWS = 512             # ~512 output pixels per grid step


def _round_up(x, m):
    return (x + m - 1) // m * m


def _pick_tile_rows(ho, wo):
    """Largest divisor th of ho with th*wo <= _TARGET_TILE_ROWS (>= 1)."""
    best = 1
    for th in range(1, ho + 1):
        if ho % th == 0 and th * wo <= _TARGET_TILE_ROWS:
            best = th
    return best


# ----------------------------- Pallas kernels ------------------------------ #

def _conv3x3_taps(x_ref, w_ref, *, th, wo, stride):
    """3x3 conv of one halo'd row-tile.

    x_ref block: (1, 1, rows, Wp, Cin) with rows = (th-1)*stride + 3,
    w_ref: (9, Cin, Coutp).  Returns fp32 (th*wo, Coutp).
    """
    v = x_ref[0, 0]                              # (rows, Wp, Cin)
    cin = v.shape[-1]
    coutp = w_ref.shape[-1]
    acc = jnp.zeros((th * wo, coutp), jnp.float32)
    for di in range(3):
        for dj in range(3):
            patch = v[di:di + (th - 1) * stride + 1:stride,
                      dj:dj + (wo - 1) * stride + 1:stride, :]
            patch = patch.reshape(th * wo, cin)
            acc = acc + jnp.dot(patch, w_ref[di * 3 + dj],
                                preferred_element_type=jnp.float32)
    return acc


def _accumulate_stats(y, sum_ref, ssq_ref, is_first):
    # Running fp32 sum / sum-of-squares across all grid steps of phase 0.
    prev_s = jnp.where(is_first, 0.0, sum_ref[...])
    prev_q = jnp.where(is_first, 0.0, ssq_ref[...])
    sum_ref[...] = prev_s + jnp.sum(y, axis=0, keepdims=True)
    ssq_ref[...] = prev_q + jnp.sum(y * y, axis=0, keepdims=True)


def _normalize(y, sum_ref, ssq_ref, sb_ref, *, m_total, eps):
    mean = sum_ref[...] * (1.0 / m_total)
    var = jnp.maximum(ssq_ref[...] * (1.0 / m_total) - mean * mean, 0.0)
    return (y - mean) * jax.lax.rsqrt(var + eps) * sb_ref[0:1, :] + sb_ref[1:2, :]


def _conv_bn_kernel(x_ref, w_ref, sb_ref, o_ref, sum_ref, ssq_ref, *,
                    th, wo, stride, m_total, eps, relu):
    phase = pl.program_id(0)
    is_first = (pl.program_id(1) == 0) & (pl.program_id(2) == 0)

    y = _conv3x3_taps(x_ref, w_ref, th=th, wo=wo, stride=stride)

    @pl.when(phase == 0)
    def _():
        _accumulate_stats(y, sum_ref, ssq_ref, is_first)

    @pl.when(phase == 1)
    def _():
        out = _normalize(y, sum_ref, ssq_ref, sb_ref, m_total=m_total, eps=eps)
        if relu:
            out = jnp.maximum(out, 0.0)
        o_ref[...] = out.reshape(o_ref.shape)


def _conv_bn_add_proj_kernel(x_ref, xs_ref, w_ref, wsc_ref, sb_ref, sbsc_ref,
                             o_ref, sum_ref, ssq_ref, ssum_ref, sssq_ref, *,
                             th, wo, m_total, eps):
    """conv2 + BN2, fused 1x1-projection shortcut + BN_sc, add, ReLU."""
    phase = pl.program_id(0)
    is_first = (pl.program_id(1) == 0) & (pl.program_id(2) == 0)

    # main branch: conv2 (always stride 1, pad 1)
    y = _conv3x3_taps(x_ref, w_ref, th=th, wo=wo, stride=1)
    # fused shortcut: 1x1 projection
    xs = xs_ref[0].reshape(th * wo, xs_ref.shape[-1])
    ysc = jnp.dot(xs, wsc_ref[...], preferred_element_type=jnp.float32)

    @pl.when(phase == 0)
    def _():
        _accumulate_stats(y, sum_ref, ssq_ref, is_first)
        _accumulate_stats(ysc, ssum_ref, sssq_ref, is_first)

    @pl.when(phase == 1)
    def _():
        out = _normalize(y, sum_ref, ssq_ref, sb_ref, m_total=m_total, eps=eps)
        sc = _normalize(ysc, ssum_ref, sssq_ref, sbsc_ref,
                        m_total=m_total, eps=eps)
        o_ref[...] = jnp.maximum(out + sc, 0.0).reshape(o_ref.shape)


def _conv_bn_add_identity_kernel(x_ref, xs_ref, w_ref, sb_ref, o_ref,
                                 sum_ref, ssq_ref, *, th, wo, m_total, eps):
    """conv2 + BN2, identity shortcut (direct add, no matmul), add, ReLU."""
    phase = pl.program_id(0)
    is_first = (pl.program_id(1) == 0) & (pl.program_id(2) == 0)

    y = _conv3x3_taps(x_ref, w_ref, th=th, wo=wo, stride=1)

    @pl.when(phase == 0)
    def _():
        _accumulate_stats(y, sum_ref, ssq_ref, is_first)

    @pl.when(phase == 1)
    def _():
        out = _normalize(y, sum_ref, ssq_ref, sb_ref, m_total=m_total, eps=eps)
        sc = xs_ref[0].reshape(th * wo, xs_ref.shape[-1]).astype(jnp.float32)
        o_ref[...] = jnp.maximum(out + sc, 0.0).reshape(o_ref.shape)


# ----------------------------- pallas wrappers ------------------------------ #

def _halo_row_tiles(x_pad, th, stride, n_ht, rows):
    """(N, Hp, Wp, C) -> (N, n_ht, rows, Wp, C) overlapping row tiles."""
    starts = jnp.arange(n_ht, dtype=jnp.int32) * (th * stride)
    idx = starts[:, None] + jnp.arange(rows, dtype=jnp.int32)[None, :]
    return x_pad[:, idx]


def _compiler_params():
    return pltpu.CompilerParams(
        dimension_semantics=("arbitrary", "arbitrary", "arbitrary"),
        vmem_limit_bytes=_VMEM_LIMIT)


def conv3x3_bn(x, w9, sb, *, stride, relu):
    """x: (N,H,W,Cin) f32; w9: (9,Cin,Coutp); sb: (2,Coutp) -> (N,Ho,Wo,Coutp)."""
    n, h, wdt, cin = x.shape
    coutp = w9.shape[-1]
    ho = (h - 1) // stride + 1
    wo = (wdt - 1) // stride + 1
    th = _pick_tile_rows(ho, wo)
    n_ht = ho // th
    rows = (th - 1) * stride + 3

    xp = jnp.pad(x, ((0, 0), (1, 1), (1, 1), (0, 0)))
    xh = _halo_row_tiles(xp, th, stride, n_ht, rows)    # (N, n_ht, rows, W+2, Cin)

    kern = functools.partial(_conv_bn_kernel, th=th, wo=wo, stride=stride,
                             m_total=float(n * ho * wo), eps=_EPS, relu=relu)
    return pl.pallas_call(
        kern,
        grid_spec=pltpu.PrefetchScalarGridSpec(
            num_scalar_prefetch=0,
            grid=(2, n, n_ht),                           # (phase, batch, row-tile)
            in_specs=[
                pl.BlockSpec((1, 1, rows, wdt + 2, cin),
                             lambda p, b, t: (b, t, 0, 0, 0)),
                pl.BlockSpec((9, cin, coutp), lambda p, b, t: (0, 0, 0)),
                pl.BlockSpec((2, coutp), lambda p, b, t: (0, 0)),
            ],
            # Collapse to block 0 during phase 0 so the never-written garbage
            # block is never flushed to HBM (halves output write traffic).
            out_specs=pl.BlockSpec((1, th, wo, coutp),
                                   lambda p, b, t: (b * p, t * p, 0, 0)),
            scratch_shapes=[pltpu.VMEM((1, coutp), jnp.float32),
                            pltpu.VMEM((1, coutp), jnp.float32)],
        ),
        out_shape=jax.ShapeDtypeStruct((n, ho, wo, coutp), jnp.float32),
        compiler_params=_compiler_params(),
    )(xh, w9, sb)


def conv3x3_bn_add_relu(x1, xs, w9, sb, *, wsc=None, sbsc=None):
    """Second conv (stride 1) + BN, fused shortcut (+BN), residual add, ReLU.

    x1: (N,Ho,Wo,Cmidp) conv2 input.
    xs: shortcut input; (N,Ho,Wo,Cin_sc) with projection, (N,Ho,Wo,Coutp)
        (already lane-padded) for the identity path.
    w9: (9,Cmidp,Coutp); wsc: (Cin_sc,Coutp) or None.  Returns (N,Ho,Wo,Coutp).
    """
    n, ho, wo, cmid = x1.shape
    coutp = w9.shape[-1]
    has_proj = wsc is not None
    cin_sc = xs.shape[-1]
    th = _pick_tile_rows(ho, wo)
    n_ht = ho // th
    rows = th + 2
    m_total = float(n * ho * wo)

    xp = jnp.pad(x1, ((0, 0), (1, 1), (1, 1), (0, 0)))
    xh = _halo_row_tiles(xp, th, 1, n_ht, rows)          # (N, n_ht, rows, Wo+2, Cmidp)

    x_spec = pl.BlockSpec((1, 1, rows, wo + 2, cmid),
                          lambda p, b, t: (b, t, 0, 0, 0))
    w_spec = pl.BlockSpec((9, cmid, coutp), lambda p, b, t: (0, 0, 0))
    sb_spec = pl.BlockSpec((2, coutp), lambda p, b, t: (0, 0))
    out_spec = pl.BlockSpec((1, th, wo, coutp),
                            lambda p, b, t: (b * p, t * p, 0, 0))

    if has_proj:
        kern = functools.partial(_conv_bn_add_proj_kernel, th=th, wo=wo,
                                 m_total=m_total, eps=_EPS)
        in_specs = [
            x_spec,
            pl.BlockSpec((1, th, wo, cin_sc), lambda p, b, t: (b, t, 0, 0)),
            w_spec,
            pl.BlockSpec((cin_sc, coutp), lambda p, b, t: (0, 0)),
            sb_spec,
            sb_spec,
        ]
        args = (xh, xs, w9, wsc, sb, sbsc)
        scratch = [pltpu.VMEM((1, coutp), jnp.float32) for _ in range(4)]
    else:
        kern = functools.partial(_conv_bn_add_identity_kernel, th=th, wo=wo,
                                 m_total=m_total, eps=_EPS)
        in_specs = [
            x_spec,
            # identity shortcut only consumed in phase 1 -> gate its DMA too.
            pl.BlockSpec((1, th, wo, coutp), lambda p, b, t: (b * p, t * p, 0, 0)),
            w_spec,
            sb_spec,
        ]
        args = (xh, xs, w9, sb)
        scratch = [pltpu.VMEM((1, coutp), jnp.float32) for _ in range(2)]

    return pl.pallas_call(
        kern,
        grid_spec=pltpu.PrefetchScalarGridSpec(
            num_scalar_prefetch=0,
            grid=(2, n, n_ht),                           # (phase, batch, row-tile)
            in_specs=in_specs,
            out_specs=out_spec,
            scratch_shapes=scratch,
        ),
        out_shape=jax.ShapeDtypeStruct((n, ho, wo, coutp), jnp.float32),
        compiler_params=_compiler_params(),
    )(*args)


# ------------------------------- params / forward --------------------------- #

def init_params(key, inp, outp, stride):
    ks = jax.random.split(key, 9)

    def w_init(k, shape):  # (kh, kw, Cin, Cout)
        fan_in = shape[0] * shape[1] * shape[2]
        return jax.random.normal(k, shape, jnp.float32) / jnp.sqrt(float(fan_in))

    params = {
        "w1": w_init(ks[0], (3, 3, inp, outp)),
        "g1": 1.0 + 0.1 * jax.random.normal(ks[1], (outp,), jnp.float32),
        "b1": 0.1 * jax.random.normal(ks[2], (outp,), jnp.float32),
        "w2": w_init(ks[3], (3, 3, outp, outp)),
        "g2": 1.0 + 0.1 * jax.random.normal(ks[4], (outp,), jnp.float32),
        "b2": 0.1 * jax.random.normal(ks[5], (outp,), jnp.float32),
        "wsc": None, "gsc": None, "bsc": None,
    }
    if stride != 1 or inp != outp:
        params["wsc"] = w_init(ks[6], (1, 1, inp, outp))
        params["gsc"] = 1.0 + 0.1 * jax.random.normal(ks[7], (outp,), jnp.float32)
        params["bsc"] = 0.1 * jax.random.normal(ks[8], (outp,), jnp.float32)
    return params


def _pad_vec(v, to):
    return jnp.pad(v, (0, to - v.shape[0]))


def residual_block_forward(x_nchw, params, stride=1):
    x = jnp.transpose(x_nchw, (0, 2, 3, 1)).astype(jnp.float32)   # NCHW -> NHWC
    n, h, w, cin = x.shape
    cmid = params["w1"].shape[-1]
    cout = params["w2"].shape[-1]
    cmidp = _round_up(cmid, _LANE)
    coutp = _round_up(cout, _LANE)

    # conv1 + BN1 + ReLU  (channels padded to cmidp; padded lanes stay 0)
    w1 = jnp.pad(params["w1"].reshape(9, cin, cmid),
                 ((0, 0), (0, 0), (0, cmidp - cmid)))
    sb1 = jnp.stack([_pad_vec(params["g1"], cmidp), _pad_vec(params["b1"], cmidp)])
    out1 = conv3x3_bn(x, w1, sb1, stride=stride, relu=True)        # (N,Ho,Wo,Cmidp)

    # conv2 weights / BN2 params (padded to coutp)
    w2 = jnp.pad(params["w2"].reshape(9, cmid, cout),
                 ((0, 0), (0, cmidp - cmid), (0, coutp - cout)))
    sb2 = jnp.stack([_pad_vec(params["g2"], coutp), _pad_vec(params["b2"], coutp)])

    # shortcut branch (fused into the second kernel)
    xs = x[:, ::stride, ::stride, :]
    if params["wsc"] is not None:
        wsc = jnp.pad(params["wsc"].reshape(cin, cout), ((0, 0), (0, coutp - cout)))
        sbsc = jnp.stack([_pad_vec(params["gsc"], coutp),
                          _pad_vec(params["bsc"], coutp)])
        out = conv3x3_bn_add_relu(out1, xs, w2, sb2, wsc=wsc, sbsc=sbsc)
    else:
        # identity shortcut: lane-pad and add directly (no matmul, no BN).
        xs_p = jnp.pad(xs, ((0, 0), (0, 0), (0, 0), (0, coutp - cin)))
        out = conv3x3_bn_add_relu(out1, xs_p, w2, sb2)

    out = out[:, :, :, :cout]                                      # drop lane padding
    return jnp.transpose(out, (0, 3, 1, 2))                        # back to NCHW


# --------------------------- pure-JAX reference ----------------------------- #

def ref_forward(x_nchw, params, stride=1):
    x = jnp.transpose(x_nchw, (0, 2, 3, 1)).astype(jnp.float32)

    def conv(a, w, s, pad):
        return jax.lax.conv_general_dilated(
            a, w, (s, s), [(pad, pad), (pad, pad)],
            dimension_numbers=("NHWC", "HWIO", "NHWC"))

    def bn(y, g, b):
        mean = jnp.mean(y, axis=(0, 1, 2), keepdims=True)
        var = jnp.mean(jnp.square(y - mean), axis=(0, 1, 2), keepdims=True)
        return (y - mean) * jax.lax.rsqrt(var + _EPS) * g + b

    left = jnp.maximum(bn(conv(x, params["w1"], stride, 1),
                          params["g1"], params["b1"]), 0.0)
    left = bn(conv(left, params["w2"], 1, 1), params["g2"], params["b2"])
    if params["wsc"] is not None:
        sc = bn(conv(x, params["wsc"], stride, 0), params["gsc"], params["bsc"])
    else:
        sc = x
    out = jnp.maximum(left + sc, 0.0)
    return jnp.transpose(out, (0, 3, 1, 2))


# ---------------------------------- main ------------------------------------ #

if __name__ == "__main__":
    key = jax.random.PRNGKey(0)
    k1, k2, k3, k4 = jax.random.split(key, 4)

    fwd = jax.jit(functools.partial(residual_block_forward, stride=1))

    # Config A: inp != outp -> 1x1 conv + BN projection shortcut (fused).
    xA = jax.random.normal(k1, (2, 4, 16, 16), jnp.float32)        # NCHW
    pA = init_params(k2, 4, 8, 1)
    outA = jax.block_until_ready(fwd(xA, pA))
    assert outA.shape == (2, 8, 16, 16)
    np.testing.assert_allclose(np.asarray(outA), np.asarray(ref_forward(xA, pA, 1)),
                               atol=1e-3, rtol=1e-3)

    # Config B: inp == outp, stride == 1 -> identity shortcut path.
    xB = jax.random.normal(k3, (2, 8, 16, 16), jnp.float32)
    pB = init_params(k4, 8, 8, 1)
    outB = jax.block_until_ready(fwd(xB, pB))
    assert outB.shape == (2, 8, 16, 16)
    np.testing.assert_allclose(np.asarray(outB), np.asarray(ref_forward(xB, pB, 1)),
                               atol=1e-3, rtol=1e-3)

    print("KERNEL_OK")
</pallas_src>

<mosaic_0001>
module attributes {stable_mosaic.version = 11 : i64} {
  func.func @_conv_bn_kernel(%arg0: i32, %arg1: i32, %arg2: i32, %arg3: memref<1x1x18x18x4xf32, #tpu.memory_space<vmem>>, %arg4: memref<9x4x128xf32, #tpu.memory_space<vmem>>, %arg5: memref<2x128xf32, #tpu.memory_space<vmem>>, %arg6: memref<1x16x16x128xf32, #tpu.memory_space<vmem>>, %arg7: memref<1x128xf32, #tpu.memory_space<vmem>>, %arg8: memref<1x128xf32, #tpu.memory_space<vmem>>) attributes {dimension_semantics = [#tpu.dimension_semantics<arbitrary>, #tpu.dimension_semantics<arbitrary>, #tpu.dimension_semantics<arbitrary>], iteration_bounds = array<i64: 2, 2, 1>, scalar_prefetch = 0 : i64, scratch_operands = 2 : i64, tpu.core_type = #tpu.core_type<tc>, window_params = [{transform_indices = @transform_0, window_bounds = array<i64: 1, 1, 18, 18, 4>}, {pipeline_mode = #tpu.pipeline_mode<synchronous>, transform_indices = @transform_1, window_bounds = array<i64: 9, 4, 128>}, {pipeline_mode = #tpu.pipeline_mode<synchronous>, transform_indices = @transform_2, window_bounds = array<i64: 2, 128>}, {transform_indices = @transform_3, window_bounds = array<i64: 1, 16, 16, 128>}]} {
    %c0_i32 = arith.constant 0 : i32
    %0 = arith.cmpi eq, %arg1, %c0_i32 : i32
    %c0_i32_0 = arith.constant 0 : i32
    %1 = arith.cmpi eq, %arg2, %c0_i32_0 : i32
    %2 = arith.andi %0, %1 : i1
    %c0 = arith.constant 0 : index
    %c0_1 = arith.constant 0 : index
    %c0_2 = arith.constant 0 : index
    %c0_3 = arith.constant 0 : index
    %c0_4 = arith.constant 0 : index
    %3 = vector.load %arg3[%c0, %c0_1, %c0_2, %c0_3, %c0_4] : memref<1x1x18x18x4xf32, #tpu.memory_space<vmem>>, vector<1x1x18x18x4xf32>
    %4 = vector.shape_cast %3 : vector<1x1x18x18x4xf32> to vector<18x18x4xf32>
    %cst = arith.constant 0.000000e+00 : f32
    %5 = vector.broadcast %cst : f32 to vector<256x128xf32>
    %6 = vector.extract_strided_slice %4 {offsets = [0, 0, 0], sizes = [16, 16, 4], strides = [1, 1, 1]} : vector<18x18x4xf32> to vector<16x16x4xf32>
    %7 = vector.shape_cast %6 : vector<16x16x4xf32> to vector<256x4xf32>
    %c0_5 = arith.constant 0 : index
    %c0_6 = arith.constant 0 : index
    %c0_7 = arith.constant 0 : index
    %8 = vector.load %arg4[%c0_5, %c0_6, %c0_7] : memref<9x4x128xf32, #tpu.memory_space<vmem>>, vector<1x4x128xf32>
    %9 = vector.shape_cast %8 : vector<1x4x128xf32> to vector<4x128xf32>
    %cst_8 = arith.constant dense<0.000000e+00> : vector<256x128xf32>
    %10 = tpu.matmul %7, %9, %cst_8 {dimension_numbers = #tpu.dot_dimension_numbers<[1], [0], [0], [1], [0, 0, 1, 1], [], []>} : vector<256x4xf32>, vector<4x128xf32>, vector<256x128xf32> -> vector<256x128xf32>
    %11 = arith.addf %5, %10 : vector<256x128xf32>
    %12 = vector.extract_strided_slice %4 {offsets = [0, 1, 0], sizes = [16, 16, 4], strides = [1, 1, 1]} : vector<18x18x4xf32> to vector<16x16x4xf32>
    %13 = vector.shape_cast %12 : vector<16x16x4xf32> to vector<256x4xf32>
    %c1 = arith.constant 1 : index
    %c0_9 = arith.constant 0 : index
    %c0_10 = arith.constant 0 : index
    %14 = vector.load %arg4[%c1, %c0_9, %c0_10] : memref<9x4x128xf32, #tpu.memory_space<vmem>>, vector<1x4x128xf32>
    %15 = vector.shape_cast %14 : vector<1x4x128xf32> to vector<4x128xf32>
    %cst_11 = arith.constant dense<0.000000e+00> : vector<256x128xf32>
    %16 = tpu.matmul %13, %15, %cst_11 {dimension_numbers = #tpu.dot_dimension_numbers<[1], [0], [0], [1], [0, 0, 1, 1], [], []>} : vector<256x4xf32>, vector<4x128xf32>, vector<256x128xf32> -> vector<256x128xf32>
    %17 = arith.addf %11, %16 : vector<256x128xf32>
    %18 = vector.extract_strided_slice %4 {offsets = [0, 2, 0], sizes = [16, 16, 4], strides = [1, 1, 1]} : vector<18x18x4xf32> to vector<16x16x4xf32>
    %19 = vector.shape_cast %18 : vector<16x16x4xf32> to vector<256x4xf32>
    %c2 = arith.constant 2 : index
    %c0_12 = arith.constant 0 : index
    %c0_13 = arith.constant 0 : index
    %20 = vector.load %arg4[%c2, %c0_12, %c0_13] : memref<9x4x128xf32, #tpu.memory_space<vmem>>, vector<1x4x128xf32>
    %21 = vector.shape_cast %20 : vector<1x4x128xf32> to vector<4x128xf32>
    %cst_14 = arith.constant dense<0.000000e+00> : vector<256x128xf32>
    %22 = tpu.matmul %19, %21, %cst_14 {dimension_numbers = #tpu.dot_dimension_numbers<[1], [0], [0], [1], [0, 0, 1, 1], [], []>} : vector<256x4xf32>, vector<4x128xf32>, vector<256x128xf32> -> vector<256x128xf32>
    %23 = arith.addf %17, %22 : vector<256x128xf32>
    %24 = vector.extract_strided_slice %4 {offsets = [1, 0, 0], sizes = [16, 16, 4], strides = [1, 1, 1]} : vector<18x18x4xf32> to vector<16x16x4xf32>
    %25 = vector.shape_cast %24 : vector<16x16x4xf32> to vector<256x4xf32>
    %c3 = arith.constant 3 : index
    %c0_15 = arith.constant 0 : index
    %c0_16 = arith.constant 0 : index
    %26 = vector.load %arg4[%c3, %c0_15, %c0_16] : memref<9x4x128xf32, #tpu.memory_space<vmem>>, vector<1x4x128xf32>
    %27 = vector.shape_cast %26 : vector<1x4x128xf32> to vector<4x128xf32>
    %cst_17 = arith.constant dense<0.000000e+00> : vector<256x128xf32>
    %28 = tpu.matmul %25, %27, %cst_17 {dimension_numbers = #tpu.dot_dimension_numbers<[1], [0], [0], [1], [0, 0, 1, 1], [], []>} : vector<256x4xf32>, vector<4x128xf32>, vector<256x128xf32> -> vector<256x128xf32>
    %29 = arith.addf %23, %28 : vector<256x128xf32>
    %30 = vector.extract_strided_slice %4 {offsets = [1, 1, 0], sizes = [16, 16, 4], strides = [1, 1, 1]} : vector<18x18x4xf32> to vector<16x16x4xf32>
    %31 = vector.shape_cast %30 : vector<16x16x4xf32> to vector<256x4xf32>
    %c4 = arith.constant 4 : index
    %c0_18 = arith.constant 0 : index
    %c0_19 = arith.constant 0 : index
    %32 = vector.load %arg4[%c4, %c0_18, %c0_19] : memref<9x4x128xf32, #tpu.memory_space<vmem>>, vector<1x4x128xf32>
    %33 = vector.shape_cast %32 : vector<1x4x128xf32> to vector<4x128xf32>
    %cst_20 = arith.constant dense<0.000000e+00> : vector<256x128xf32>
    %34 = tpu.matmul %31, %33, %cst_20 {dimension_numbers = #tpu.dot_dimension_numbers<[1], [0], [0], [1], [0, 0, 1, 1], [], []>} : vector<256x4xf32>, vector<4x128xf32>, vector<256x128xf32> -> vector<256x128xf32>
    %35 = arith.addf %29, %34 : vector<256x128xf32>
    %36 = vector.extract_strided_slice %4 {offsets = [1, 2, 0], sizes = [16, 16, 4], strides = [1, 1, 1]} : vector<18x18x4xf32> to vector<16x16x4xf32>
    %37 = vector.shape_cast %36 : vector<16x16x4xf32> to vector<256x4xf32>
    %c5 = arith.constant 5 : index
    %c0_21 = arith.constant 0 : index
    %c0_22 = arith.constant 0 : index
    %38 = vector.load %arg4[%c5, %c0_21, %c0_22] : memref<9x4x128xf32, #tpu.memory_space<vmem>>, vector<1x4x128xf32>
    %39 = vector.shape_cast %38 : vector<1x4x128xf32> to vector<4x128xf32>
    %cst_23 = arith.constant dense<0.000000e+00> : vector<256x128xf32>
    %40 = tpu.matmul %37, %39, %cst_23 {dimension_numbers = #tpu.dot_dimension_numbers<[1], [0], [0], [1], [0, 0, 1, 1], [], []>} : vector<256x4xf32>, vector<4x128xf32>, vector<256x128xf32> -> vector<256x128xf32>
    %41 = arith.addf %35, %40 : vector<256x128xf32>
    %42 = vector.extract_strided_slice %4 {offsets = [2, 0, 0], sizes = [16, 16, 4], strides = [1, 1, 1]} : vector<18x18x4xf32> to vector<16x16x4xf32>
    %43 = vector.shape_cast %42 : vector<16x16x4xf32> to vector<256x4xf32>
    %c6 = arith.constant 6 : index
    %c0_24 = arith.constant 0 : index
    %c0_25 = arith.constant 0 : index
    %44 = vector.load %arg4[%c6, %c0_24, %c0_25] : memref<9x4x128xf32, #tpu.memory_space<vmem>>, vector<1x4x128xf32>
    %45 = vector.shape_cast %44 : vector<1x4x128xf32> to vector<4x128xf32>
    %cst_26 = arith.constant dense<0.000000e+00> : vector<256x128xf32>
    %46 = tpu.matmul %43, %45, %cst_26 {dimension_numbers = #tpu.dot_dimension_numbers<[1], [0], [0], [1], [0, 0, 1, 1], [], []>} : vector<256x4xf32>, vector<4x128xf32>, vector<256x128xf32> -> vector<256x128xf32>
    %47 = arith.addf %41, %46 : vector<256x128xf32>
    %48 = vector.extract_strided_slice %4 {offsets = [2, 1, 0], sizes = [16, 16, 4], strides = [1, 1, 1]} : vector<18x18x4xf32> to vector<16x16x4xf32>
    %49 = vector.shape_cast %48 : vector<16x16x4xf32> to vector<256x4xf32>
    %c7 = arith.constant 7 : index
    %c0_27 = arith.constant 0 : index
    %c0_28 = arith.constant 0 : index
    %50 = vector.load %arg4[%c7, %c0_27, %c0_28] : memref<9x4x128xf32, #tpu.memory_space<vmem>>, vector<1x4x128xf32>
    %51 = vector.shape_cast %50 : vector<1x4x128xf32> to vector<4x128xf32>
    %cst_29 = arith.constant dense<0.000000e+00> : vector<256x128xf32>
    %52 = tpu.matmul %49, %51, %cst_29 {dimension_numbers = #tpu.dot_dimension_numbers<[1], [0], [0], [1], [0, 0, 1, 1], [], []>} : vector<256x4xf32>, vector<4x128xf32>, vector<256x128xf32> -> vector<256x128xf32>
    %53 = arith.addf %47, %52 : vector<256x128xf32>
    %54 = vector.extract_strided_slice %4 {offsets = [2, 2, 0], sizes = [16, 16, 4], strides = [1, 1, 1]} : vector<18x18x4xf32> to vector<16x16x4xf32>
    %55 = vector.shape_cast %54 : vector<16x16x4xf32> to vector<256x4xf32>
    %c8 = arith.constant 8 : index
    %c0_30 = arith.constant 0 : index
    %c0_31 = arith.constant 0 : index
    %56 = vector.load %arg4[%c8, %c0_30, %c0_31] : memref<9x4x128xf32, #tpu.memory_space<vmem>>, vector<1x4x128xf32>
    %57 = vector.shape_cast %56 : vector<1x4x128xf32> to vector<4x128xf32>
    %cst_32 = arith.constant dense<0.000000e+00> : vector<256x128xf32>
    %58 = tpu.matmul %55, %57, %cst_32 {dimension_numbers = #tpu.dot_dimension_numbers<[1], [0], [0], [1], [0, 0, 1, 1], [], []>} : vector<256x4xf32>, vector<4x128xf32>, vector<256x128xf32> -> vector<256x128xf32>
    %59 = arith.addf %53, %58 : vector<256x128xf32>
    %c0_i32_33 = arith.constant 0 : i32
    %60 = arith.cmpi eq, %arg0, %c0_i32_33 : i32
    %61 = arith.extui %60 : i1 to i32
    %c0_i32_34 = arith.constant 0 : i32
    %62 = arith.cmpi ne, %61, %c0_i32_34 : i32
    scf.if %62 {
      %c0_36 = arith.constant 0 : index
      %c0_37 = arith.constant 0 : index
      %66 = vector.load %arg7[%c0_36, %c0_37] : memref<1x128xf32, #tpu.memory_space<vmem>>, vector<1x128xf32>
      %cst_38 = arith.constant 0.000000e+00 : f32
      %67 = vector.broadcast %cst_38 : f32 to vector<1x128xf32>
      %68 = arith.select %2, %67, %66 : vector<1x128xf32>
      %c0_39 = arith.constant 0 : index
      %c0_40 = arith.constant 0 : index
      %69 = vector.load %arg8[%c0_39, %c0_40] : memref<1x128xf32, #tpu.memory_space<vmem>>, vector<1x128xf32>
      %cst_41 = arith.constant 0.000000e+00 : f32
      %70 = vector.broadcast %cst_41 : f32 to vector<1x128xf32>
      %71 = arith.select %2, %70, %69 : vector<1x128xf32>
      %cst_42 = arith.constant dense<0.000000e+00> : vector<128xf32>
      %72 = vector.multi_reduction <add>, %59, %cst_42 [0] : vector<256x128xf32> to vector<128xf32>
      %73 = vector.shape_cast %72 : vector<128xf32> to vector<1x128xf32>
      %74 = arith.addf %68, %73 : vector<1x128xf32>
      %c0_43 = arith.constant 0 : index
      %c0_44 = arith.constant 0 : index
      %75 = vector.load %arg7[%c0_43, %c0_44] : memref<1x128xf32, #tpu.memory_space<vmem>>, vector<1x128xf32>
      tpu.vector_store %arg7[%c0_43, %c0_44], %74 {strides = array<i32>} : memref<1x128xf32, #tpu.memory_space<vmem>>, vector<1x128xf32>,
      %76 = arith.mulf %59, %59 : vector<256x128xf32>
      %cst_45 = arith.constant dense<0.000000e+00> : vector<128xf32>
      %77 = vector.multi_reduction <add>, %76, %cst_45 [0] : vector<256x128xf32> to vector<128xf32>
      %78 = vector.shape_cast %77 : vector<128xf32> to vector<1x128xf32>
      %79 = arith.addf %71, %78 : vector<1x128xf32>
      %c0_46 = arith.constant 0 : index
      %c0_47 = arith.constant 0 : index
      %80 = vector.load %arg8[%c0_46, %c0_47] : memref<1x128xf32, #tpu.memory_space<vmem>>, vector<1x128xf32>
      tpu.vector_store %arg8[%c0_46, %c0_47], %79 {strides = array<i32>} : memref<1x128xf32, #tpu.memory_space<vmem>>, vector<1x128xf32>,
    } else {
    }
    %c1_i32 = arith.constant 1 : i32
    %63 = arith.cmpi eq, %arg0, %c1_i32 : i32
    %64 = arith.extui %63 : i1 to i32
    %c0_i32_35 = arith.constant 0 : i32
    %65 = arith.cmpi ne, %64, %c0_i32_35 : i32
    scf.if %65 {
      %c0_36 = arith.constant 0 : index
      %c0_37 = arith.constant 0 : index
      %66 = vector.load %arg7[%c0_36, %c0_37] : memref<1x128xf32, #tpu.memory_space<vmem>>, vector<1x128xf32>
      %cst_38 = arith.constant 0.001953125 : f32
      %67 = vector.broadcast %cst_38 : f32 to vector<1x128xf32>
      %68 = arith.mulf %66, %67 : vector<1x128xf32>
      %c0_39 = arith.constant 0 : index
      %c0_40 = arith.constant 0 : index
      %69 = vector.load %arg8[%c0_39, %c0_40] : memref<1x128xf32, #tpu.memory_space<vmem>>, vector<1x128xf32>
      %cst_41 = arith.constant 0.001953125 : f32
      %70 = vector.broadcast %cst_41 : f32 to vector<1x128xf32>
      %71 = arith.mulf %69, %70 : vector<1x128xf32>
      %72 = arith.mulf %68, %68 : vector<1x128xf32>
      %73 = arith.subf %71, %72 : vector<1x128xf32>
      %cst_42 = arith.constant 0.000000e+00 : f32
      %74 = vector.broadcast %cst_42 : f32 to vector<1x128xf32>
      %75 = arith.maximumf %73, %74 : vector<1x128xf32>
      %76 = vector.broadcast %68 : vector<1x128xf32> to vector<256x128xf32>
      %77 = arith.subf %59, %76 : vector<256x128xf32>
      %cst_43 = arith.constant 9.99999974E-6 : f32
      %78 = vector.broadcast %cst_43 : f32 to vector<1x128xf32>
      %79 = arith.addf %75, %78 : vector<1x128xf32>
      %80 = math.rsqrt %79 : vector<1x128xf32>
      %81 = vector.broadcast %80 : vector<1x128xf32> to vector<256x128xf32>
      %82 = arith.mulf %77, %81 : vector<256x128xf32>
      %c0_44 = arith.constant 0 : index
      %c0_45 = arith.constant 0 : index
      %83 = vector.load %arg5[%c0_44, %c0_45] : memref<2x128xf32, #tpu.memory_space<vmem>>, vector<1x128xf32>
      %84 = vector.broadcast %83 : vector<1x128xf32> to vector<256x128xf32>
      %85 = arith.mulf %82, %84 : vector<256x128xf32>
      %c1_46 = arith.constant 1 : index
      %c0_47 = arith.constant 0 : index
      %86 = vector.load %arg5[%c1_46, %c0_47] : memref<2x128xf32, #tpu.memory_space<vmem>>, vector<1x128xf32>
      %87 = vector.broadcast %86 : vector<1x128xf32> to vector<256x128xf32>
      %88 = arith.addf %85, %87 : vector<256x128xf32>
      %cst_48 = arith.constant 0.000000e+00 : f32
      %89 = vector.broadcast %cst_48 : f32 to vector<256x128xf32>
      %90 = arith.maximumf %88, %89 : vector<256x128xf32>
      %91 = vector.shape_cast %90 : vector<256x128xf32> to vector<1x16x16x128xf32>
      %c0_49 = arith.constant 0 : index
      %c0_50 = arith.constant 0 : index
      %c0_51 = arith.constant 0 : index
      %c0_52 = arith.constant 0 : index
      %92 = vector.load %arg6[%c0_49, %c0_50, %c0_51, %c0_52] : memref<1x16x16x128xf32, #tpu.memory_space<vmem>>, vector<1x16x16x128xf32>
      tpu.vector_store %arg6[%c0_49, %c0_50, %c0_51, %c0_52], %91 {strides = array<i32>} : memref<1x16x16x128xf32, #tpu.memory_space<vmem>>, vector<1x16x16x128xf32>,
    } else {
    }
    return
  }
  func.func @transform_0(%arg0: i32, %arg1: i32, %arg2: i32) -> (i32, i32, i32, i32, i32) {
    %c0_i32 = arith.constant 0 : i32
    %c0_i32_0 = arith.constant 0 : i32
    %c0_i32_1 = arith.constant 0 : i32
    %c0_i32_2 = arith.constant 0 : i32
    return %arg1, %arg2, %c0_i32, %c0_i32_0, %c0_i32_1 : i32, i32, i32, i32, i32
  }
  func.func @transform_1(%arg0: i32, %arg1: i32, %arg2: i32) -> (i32, i32, i32) {
    %c0_i32 = arith.constant 0 : i32
    %c0_i32_0 = arith.constant 0 : i32
    %c0_i32_1 = arith.constant 0 : i32
    %c0_i32_2 = arith.constant 0 : i32
    return %c0_i32, %c0_i32_0, %c0_i32_1 : i32, i32, i32
  }
  func.func @transform_2(%arg0: i32, %arg1: i32, %arg2: i32) -> (i32, i32) {
    %c0_i32 = arith.constant 0 : i32
    %c0_i32_0 = arith.constant 0 : i32
    %c0_i32_1 = arith.constant 0 : i32
    return %c0_i32, %c0_i32_0 : i32, i32
  }
  func.func @transform_3(%arg0: i32, %arg1: i32, %arg2: i32) -> (i32, i32, i32, i32) {
    %0 = arith.muli %arg1, %arg0 : i32
    %1 = arith.muli %arg2, %arg0 : i32
    %c0_i32 = arith.constant 0 : i32
    %c0_i32_0 = arith.constant 0 : i32
    %c0_i32_1 = arith.constant 0 : i32
    return %0, %1, %c0_i32, %c0_i32_0 : i32, i32, i32, i32
  }
}

module attributes {stable_mosaic.version = 11 : i64} {
  func.func @_conv_bn_add_proj_kernel(%arg0: i32, %arg1: i32, %arg2: i32, %arg3: memref<1x1x18x18x128xf32, #tpu.memory_space<vmem>>, %arg4: memref<1x16x16x4xf32, #tpu.memory_space<vmem>>, %arg5: memref<9x128x128xf32, #tpu.memory_space<vmem>>, %arg6: memref<4x128xf32, #tpu.memory_space<vmem>>, %arg7: memref<2x128xf32, #tpu.memory_space<vmem>>, %arg8: memref<2x128xf32, #tpu.memory_space<vmem>>, %arg9: memref<1x16x16x128xf32, #tpu.memory_space<vmem>>, %arg10: memref<1x128xf32, #tpu.memory_space<vmem>>, %arg11: memref<1x128xf32, #tpu.memory_space<vmem>>, %arg12: memref<1x128xf32, #tpu.memory_space<vmem>>, %arg13: memref<1x128xf32, #tpu.memory_space<vmem>>) attributes {dimension_semantics = [#tpu.dimension_semantics<arbitrary>, #tpu.dimension_semantics<arbitrary>, #tpu.dimension_semantics<arbitrary>], iteration_bounds = array<i64: 2, 2, 1>, scalar_prefetch = 0 : i64, scratch_operands = 4 : i64, tpu.core_type = #tpu.core_type<tc>, window_params = [{transform_indices = @transform_0, window_bounds = array<i64: 1, 1, 18, 18, 128>}, {transform_indices = @transform_1, window_bounds = array<i64: 1, 16, 16, 4>}, {pipeline_mode = #tpu.pipeline_mode<synchronous>, transform_indices = @transform_2, window_bounds = array<i64: 9, 128, 128>}, {pipeline_mode = #tpu.pipeline_mode<synchronous>, transform_indices = @transform_3, window_bounds = array<i64: 4, 128>}, {pipeline_mode = #tpu.pipeline_mode<synchronous>, transform_indices = @transform_4, window_bounds = array<i64: 2, 128>}, {pipeline_mode = #tpu.pipeline_mode<synchronous>, transform_indices = @transform_5, window_bounds = array<i64: 2, 128>}, {transform_indices = @transform_6, window_bounds = array<i64: 1, 16, 16, 128>}]} {
    %c0_i32 = arith.constant 0 : i32
    %0 = arith.cmpi eq, %arg1, %c0_i32 : i32
    %c0_i32_0 = arith.constant 0 : i32
    %1 = arith.cmpi eq, %arg2, %c0_i32_0 : i32
    %2 = arith.andi %0, %1 : i1
    %c0 = arith.constant 0 : index
    %c0_1 = arith.constant 0 : index
    %c0_2 = arith.constant 0 : index
    %c0_3 = arith.constant 0 : index
    %c0_4 = arith.constant 0 : index
    %3 = vector.load %arg3[%c0, %c0_1, %c0_2, %c0_3, %c0_4] : memref<1x1x18x18x128xf32, #tpu.memory_space<vmem>>, vector<1x1x18x18x128xf32>
    %4 = vector.shape_cast %3 : vector<1x1x18x18x128xf32> to vector<18x18x128xf32>
    %cst = arith.constant 0.000000e+00 : f32
    %5 = vector.broadcast %cst : f32 to vector<256x128xf32>
    %6 = vector.extract_strided_slice %4 {offsets = [0, 0, 0], sizes = [16, 16, 128], strides = [1, 1, 1]} : vector<18x18x128xf32> to vector<16x16x128xf32>
    %7 = vector.shape_cast %6 : vector<16x16x128xf32> to vector<256x128xf32>
    %c0_5 = arith.constant 0 : index
    %c0_6 = arith.constant 0 : index
    %c0_7 = arith.constant 0 : index
    %8 = vector.load %arg5[%c0_5, %c0_6, %c0_7] : memref<9x128x128xf32, #tpu.memory_space<vmem>>, vector<1x128x128xf32>
    %9 = vector.shape_cast %8 : vector<1x128x128xf32> to vector<128x128xf32>
    %cst_8 = arith.constant dense<0.000000e+00> : vector<256x128xf32>
    %10 = tpu.matmul %7, %9, %cst_8 {dimension_numbers = #tpu.dot_dimension_numbers<[1], [0], [0], [1], [0, 0, 1, 1], [], []>} : vector<256x128xf32>, vector<128x128xf32>, vector<256x128xf32> -> vector<256x128xf32>
    %11 = arith.addf %5, %10 : vector<256x128xf32>
    %12 = vector.extract_strided_slice %4 {offsets = [0, 1, 0], sizes = [16, 16, 128], strides = [1, 1, 1]} : vector<18x18x128xf32> to vector<16x16x128xf32>
    %13 = vector.shape_cast %12 : vector<16x16x128xf32> to vector<256x128xf32>
    %c1 = arith.constant 1 : index
    %c0_9 = arith.constant 0 : index
    %c0_10 = arith.constant 0 : index
    %14 = vector.load %arg5[%c1, %c0_9, %c0_10] : memref<9x128x128xf32, #tpu.memory_space<vmem>>, vector<1x128x128xf32>
    %15 = vector.shape_cast %14 : vector<1x128x128xf32> to vector<128x128xf32>
    %cst_11 = arith.constant dense<0.000000e+00> : vector<256x128xf32>
    %16 = tpu.matmul %13, %15, %cst_11 {dimension_numbers = #tpu.dot_dimension_numbers<[1], [0], [0], [1], [0, 0, 1, 1], [], []>} : vector<256x128xf32>, vector<128x128xf32>, vector<256x128xf32> -> vector<256x128xf32>
    %17 = arith.addf %11, %16 : vector<256x128xf32>
    %18 = vector.extract_strided_slice %4 {offsets = [0, 2, 0], sizes = [16, 16, 128], strides = [1, 1, 1]} : vector<18x18x128xf32> to vector<16x16x128xf32>
    %19 = vector.shape_cast %18 : vector<16x16x128xf32> to vector<256x128xf32>
    %c2 = arith.constant 2 : index
    %c0_12 = arith.constant 0 : index
    %c0_13 = arith.constant 0 : index
    %20 = vector.load %arg5[%c2, %c0_12, %c0_13] : memref<9x128x128xf32, #tpu.memory_space<vmem>>, vector<1x128x128xf32>
    %21 = vector.shape_cast %20 : vector<1x128x128xf32> to vector<128x128xf32>
    %cst_14 = arith.constant dense<0.000000e+00> : vector<256x128xf32>
    %22 = tpu.matmul %19, %21, %cst_14 {dimension_numbers = #tpu.dot_dimension_numbers<[1], [0], [0], [1], [0, 0, 1, 1], [], []>} : vector<256x128xf32>, vector<128x128xf32>, vector<256x128xf32> -> vector<256x128xf32>
    %23 = arith.addf %17, %22 : vector<256x128xf32>
    %24 = vector.extract_strided_slice %4 {offsets = [1, 0, 0], sizes = [16, 16, 128], strides = [1, 1, 1]} : vector<18x18x128xf32> to vector<16x16x128xf32>
    %25 = vector.shape_cast %24 : vector<16x16x128xf32> to vector<256x128xf32>
    %c3 = arith.constant 3 : index
    %c0_15 = arith.constant 0 : index
    %c0_16 = arith.constant 0 : index
    %26 = vector.load %arg5[%c3, %c0_15, %c0_16] : memref<9x128x128xf32, #tpu.memory_space<vmem>>, vector<1x128x128xf32>
    %27 = vector.shape_cast %26 : vector<1x128x128xf32> to vector<128x128xf32>
    %cst_17 = arith.constant dense<0.000000e+00> : vector<256x128xf32>
    %28 = tpu.matmul %25, %27, %cst_17 {dimension_numbers = #tpu.dot_dimension_numbers<[1], [0], [0], [1], [0, 0, 1, 1], [], []>} : vector<256x128xf32>, vector<128x128xf32>, vector<256x128xf32> -> vector<256x128xf32>
    %29 = arith.addf %23, %28 : vector<256x128xf32>
    %30 = vector.extract_strided_slice %4 {offsets = [1, 1, 0], sizes = [16, 16, 128], strides = [1, 1, 1]} : vector<18x18x128xf32> to vector<16x16x128xf32>
    %31 = vector.shape_cast %30 : vector<16x16x128xf32> to vector<256x128xf32>
    %c4 = arith.constant 4 : index
    %c0_18 = arith.constant 0 : index
    %c0_19 = arith.constant 0 : index
    %32 = vector.load %arg5[%c4, %c0_18, %c0_19] : memref<9x128x128xf32, #tpu.memory_space<vmem>>, vector<1x128x128xf32>
    %33 = vector.shape_cast %32 : vector<1x128x128xf32> to vector<128x128xf32>
    %cst_20 = arith.constant dense<0.000000e+00> : vector<256x128xf32>
    %34 = tpu.matmul %31, %33, %cst_20 {dimension_numbers = #tpu.dot_dimension_numbers<[1], [0], [0], [1], [0, 0, 1, 1], [], []>} : vector<256x128xf32>, vector<128x128xf32>, vector<256x128xf32> -> vector<256x128xf32>
    %35 = arith.addf %29, %34 : vector<256x128xf32>
    %36 = vector.extract_strided_slice %4 {offsets = [1, 2, 0], sizes = [16, 16, 128], strides = [1, 1, 1]} : vector<18x18x128xf32> to vector<16x16x128xf32>
    %37 = vector.shape_cast %36 : vector<16x16x128xf32> to vector<256x128xf32>
    %c5 = arith.constant 5 : index
    %c0_21 = arith.constant 0 : index
    %c0_22 = arith.constant 0 : index
    %38 = vector.load %arg5[%c5, %c0_21, %c0_22] : memref<9x128x128xf32, #tpu.memory_space<vmem>>, vector<1x128x128xf32>
    %39 = vector.shape_cast %38 : vector<1x128x128xf32> to vector<128x128xf32>
    %cst_23 = arith.constant dense<0.000000e+00> : vector<256x128xf32>
    %40 = tpu.matmul %37, %39, %cst_23 {dimension_numbers = #tpu.dot_dimension_numbers<[1], [0], [0], [1], [0, 0, 1, 1], [], []>} : vector<256x128xf32>, vector<128x128xf32>, vector<256x128xf32> -> vector<256x128xf32>
    %41 = arith.addf %35, %40 : vector<256x128xf32>
    %42 = vector.extract_strided_slice %4 {offsets = [2, 0, 0], sizes = [16, 16, 128], strides = [1, 1, 1]} : vector<18x18x128xf32> to vector<16x16x128xf32>
    %43 = vector.shape_cast %42 : vector<16x16x128xf32> to vector<256x128xf32>
    %c6 = arith.constant 6 : index
    %c0_24 = arith.constant 0 : index
    %c0_25 = arith.constant 0 : index
    %44 = vector.load %arg5[%c6, %c0_24, %c0_25] : memref<9x128x128xf32, #tpu.memory_space<vmem>>, vector<1x128x128xf32>
    %45 = vector.shape_cast %44 : vector<1x128x128xf32> to vector<128x128xf32>
    %cst_26 = arith.constant dense<0.000000e+00> : vector<256x128xf32>
    %46 = tpu.matmul %43, %45, %cst_26 {dimension_numbers = #tpu.dot_dimension_numbers<[1], [0], [0], [1], [0, 0, 1, 1], [], []>} : vector<256x128xf32>, vector<128x128xf32>, vector<256x128xf32> -> vector<256x128xf32>
    %47 = arith.addf %41, %46 : vector<256x128xf32>
    %48 = vector.extract_strided_slice %4 {offsets = [2, 1, 0], sizes = [16, 16, 128], strides = [1, 1, 1]} : vector<18x18x128xf32> to vector<16x16x128xf32>
    %49 = vector.shape_cast %48 : vector<16x16x128xf32> to vector<256x128xf32>
    %c7 = arith.constant 7 : index
    %c0_27 = arith.constant 0 : index
    %c0_28 = arith.constant 0 : index
    %50 = vector.load %arg5[%c7, %c0_27, %c0_28] : memref<9x128x128xf32, #tpu.memory_space<vmem>>, vector<1x128x128xf32>
    %51 = vector.shape_cast %50 : vector<1x128x128xf32> to vector<128x128xf32>
    %cst_29 = arith.constant dense<0.000000e+00> : vector<256x128xf32>
    %52 = tpu.matmul %49, %51, %cst_29 {dimension_numbers = #tpu.dot_dimension_numbers<[1], [0], [0], [1], [0, 0, 1, 1], [], []>} : vector<256x128xf32>, vector<128x128xf32>, vector<256x128xf32> -> vector<256x128xf32>
    %53 = arith.addf %47, %52 : vector<256x128xf32>
    %54 = vector.extract_strided_slice %4 {offsets = [2, 2, 0], sizes = [16, 16, 128], strides = [1, 1, 1]} : vector<18x18x128xf32> to vector<16x16x128xf32>
    %55 = vector.shape_cast %54 : vector<16x16x128xf32> to vector<256x128xf32>
    %c8 = arith.constant 8 : index
    %c0_30 = arith.constant 0 : index
    %c0_31 = arith.constant 0 : index
    %56 = vector.load %arg5[%c8, %c0_30, %c0_31] : memref<9x128x128xf32, #tpu.memory_space<vmem>>, vector<1x128x128xf32>
    %57 = vector.shape_cast %56 : vector<1x128x128xf32> to vector<128x128xf32>
    %cst_32 = arith.constant dense<0.000000e+00> : vector<256x128xf32>
    %58 = tpu.matmul %55, %57, %cst_32 {dimension_numbers = #tpu.dot_dimension_numbers<[1], [0], [0], [1], [0, 0, 1, 1], [], []>} : vector<256x128xf32>, vector<128x128xf32>, vector<256x128xf32> -> vector<256x128xf32>
    %59 = arith.addf %53, %58 : vector<256x128xf32>
    %c0_33 = arith.constant 0 : index
    %c0_34 = arith.constant 0 : index
    %c0_35 = arith.constant 0 : index
    %c0_36 = arith.constant 0 : index
    %60 = vector.load %arg4[%c0_33, %c0_34, %c0_35, %c0_36] : memref<1x16x16x4xf32, #tpu.memory_space<vmem>>, vector<1x16x16x4xf32>
    %61 = vector.shape_cast %60 : vector<1x16x16x4xf32> to vector<16x16x4xf32>
    %62 = vector.shape_cast %61 : vector<16x16x4xf32> to vector<256x4xf32>
    %c0_37 = arith.constant 0 : index
    %c0_38 = arith.constant 0 : index
    %63 = vector.load %arg6[%c0_37, %c0_38] : memref<4x128xf32, #tpu.memory_space<vmem>>, vector<4x128xf32>
    %cst_39 = arith.constant dense<0.000000e+00> : vector<256x128xf32>
    %64 = tpu.matmul %62, %63, %cst_39 {dimension_numbers = #tpu.dot_dimension_numbers<[1], [0], [0], [1], [0, 0, 1, 1], [], []>} : vector<256x4xf32>, vector<4x128xf32>, vector<256x128xf32> -> vector<256x128xf32>
    %c0_i32_40 = arith.constant 0 : i32
    %65 = arith.cmpi eq, %arg0, %c0_i32_40 : i32
    %66 = arith.extui %65 : i1 to i32
    %c0_i32_41 = arith.constant 0 : i32
    %67 = arith.cmpi ne, %66, %c0_i32_41 : i32
    scf.if %67 {
      %c0_43 = arith.constant 0 : index
      %c0_44 = arith.constant 0 : index
      %71 = vector.load %arg10[%c0_43, %c0_44] : memref<1x128xf32, #tpu.memory_space<vmem>>, vector<1x128xf32>
      %cst_45 = arith.constant 0.000000e+00 : f32
      %72 = vector.broadcast %cst_45 : f32 to vector<1x128xf32>
      %73 = arith.select %2, %72, %71 : vector<1x128xf32>
      %c0_46 = arith.constant 0 : index
      %c0_47 = arith.constant 0 : index
      %74 = vector.load %arg11[%c0_46, %c0_47] : memref<1x128xf32, #tpu.memory_space<vmem>>, vector<1x128xf32>
      %cst_48 = arith.constant 0.000000e+00 : f32
      %75 = vector.broadcast %cst_48 : f32 to vector<1x128xf32>
      %76 = arith.select %2, %75, %74 : vector<1x128xf32>
      %cst_49 = arith.constant dense<0.000000e+00> : vector<128xf32>
      %77 = vector.multi_reduction <add>, %59, %cst_49 [0] : vector<256x128xf32> to vector<128xf32>
      %78 = vector.shape_cast %77 : vector<128xf32> to vector<1x128xf32>
      %79 = arith.addf %73, %78 : vector<1x128xf32>
      %c0_50 = arith.constant 0 : index
      %c0_51 = arith.constant 0 : index
      %80 = vector.load %arg10[%c0_50, %c0_51] : memref<1x128xf32, #tpu.memory_space<vmem>>, vector<1x128xf32>
      tpu.vector_store %arg10[%c0_50, %c0_51], %79 {strides = array<i32>} : memref<1x128xf32, #tpu.memory_space<vmem>>, vector<1x128xf32>,
      %81 = arith.mulf %59, %59 : vector<256x128xf32>
      %cst_52 = arith.constant dense<0.000000e+00> : vector<128xf32>
      %82 = vector.multi_reduction <add>, %81, %cst_52 [0] : vector<256x128xf32> to vector<128xf32>
      %83 = vector.shape_cast %82 : vector<128xf32> to vector<1x128xf32>
      %84 = arith.addf %76, %83 : vector<1x128xf32>
      %c0_53 = arith.constant 0 : index
      %c0_54 = arith.constant 0 : index
      %85 = vector.load %arg11[%c0_53, %c0_54] : memref<1x128xf32, #tpu.memory_space<vmem>>, vector<1x128xf32>
      tpu.vector_store %arg11[%c0_53, %c0_54], %84 {strides = array<i32>} : memref<1x128xf32, #tpu.memory_space<vmem>>, vector<1x128xf32>,
      %c0_55 = arith.constant 0 : index
      %c0_56 = arith.constant 0 : index
      %86 = vector.load %arg12[%c0_55, %c0_56] : memref<1x128xf32, #tpu.memory_space<vmem>>, vector<1x128xf32>
      %cst_57 = arith.constant 0.000000e+00 : f32
      %87 = vector.broadcast %cst_57 : f32 to vector<1x128xf32>
      %88 = arith.select %2, %87, %86 : vector<1x128xf32>
      %c0_58 = arith.constant 0 : index
      %c0_59 = arith.constant 0 : index
      %89 = vector.load %arg13[%c0_58, %c0_59] : memref<1x128xf32, #tpu.memory_space<vmem>>, vector<1x128xf32>
      %cst_60 = arith.constant 0.000000e+00 : f32
      %90 = vector.broadcast %cst_60 : f32 to vector<1x128xf32>
      %91 = arith.select %2, %90, %89 : vector<1x128xf32>
      %cst_61 = arith.constant dense<0.000000e+00> : vector<128xf32>
      %92 = vector.multi_reduction <add>, %64, %cst_61 [0] : vector<256x128xf32> to vector<128xf32>
      %93 = vector.shape_cast %92 : vector<128xf32> to vector<1x128xf32>
      %94 = arith.addf %88, %93 : vector<1x128xf32>
      %c0_62 = arith.constant 0 : index
      %c0_63 = arith.constant 0 : index
      %95 = vector.load %arg12[%c0_62, %c0_63] : memref<1x128xf32, #tpu.memory_space<vmem>>, vector<1x128xf32>
      tpu.vector_store %arg12[%c0_62, %c0_63], %94 {strides = array<i32>} : memref<1x128xf32, #tpu.memory_space<vmem>>, vector<1x128xf32>,
      %96 = arith.mulf %64, %64 : vector<256x128xf32>
      %cst_64 = arith.constant dense<0.000000e+00> : vector<128xf32>
      %97 = vector.multi_reduction <add>, %96, %cst_64 [0] : vector<256x128xf32> to vector<128xf32>
      %98 = vector.shape_cast %97 : vector<128xf32> to vector<1x128xf32>
      %99 = arith.addf %91, %98 : vector<1x128xf32>
      %c0_65 = arith.constant 0 : index
      %c0_66 = arith.constant 0 : index
      %100 = vector.load %arg13[%c0_65, %c0_66] : memref<1x128xf32, #tpu.memory_space<vmem>>, vector<1x128xf32>
      tpu.vector_store %arg13[%c0_65, %c0_66], %99 {strides = array<i32>} : memref<1x128xf32, #tpu.memory_space<vmem>>, vector<1x128xf32>,
    } else {
    }
    %c1_i32 = arith.constant 1 : i32
    %68 = arith.cmpi eq, %arg0, %c1_i32 : i32
    %69 = arith.extui %68 : i1 to i32
    %c0_i32_42 = arith.constant 0 : i32
    %70 = arith.cmpi ne, %69, %c0_i32_42 : i32
    scf.if %70 {
      %c0_43 = arith.constant 0 : index
      %c0_44 = arith.constant 0 : index
      %71 = vector.load %arg10[%c0_43, %c0_44] : memref<1x128xf32, #tpu.memory_space<vmem>>, vector<1x128xf32>
      %cst_45 = arith.constant 0.001953125 : f32
      %72 = vector.broadcast %cst_45 : f32 to vector<1x128xf32>
      %73 = arith.mulf %71, %72 : vector<1x128xf32>
      %c0_46 = arith.constant 0 : index
      %c0_47 = arith.constant 0 : index
      %74 = vector.load %arg11[%c0_46, %c0_47] : memref<1x128xf32, #tpu.memory_space<vmem>>, vector<1x128xf32>
      %cst_48 = arith.constant 0.001953125 : f32
      %75 = vector.broadcast %cst_48 : f32 to vector<1x128xf32>
      %76 = arith.mulf %74, %75 : vector<1x128xf32>
      %77 = arith.mulf %73, %73 : vector<1x128xf32>
      %78 = arith.subf %76, %77 : vector<1x128xf32>
      %cst_49 = arith.constant 0.000000e+00 : f32
      %79 = vector.broadcast %cst_49 : f32 to vector<1x128xf32>
      %80 = arith.maximumf %78, %79 : vector<1x128xf32>
      %81 = vector.broadcast %73 : vector<1x128xf32> to vector<256x128xf32>
      %82 = arith.subf %59, %81 : vector<256x128xf32>
      %cst_50 = arith.constant 9.99999974E-6 : f32
      %83 = vector.broadcast %cst_50 : f32 to vector<1x128xf32>
      %84 = arith.addf %80, %83 : vector<1x128xf32>
      %85 = math.rsqrt %84 : vector<1x128xf32>
      %86 = vector.broadcast %85 : vector<1x128xf32> to vector<256x128xf32>
      %87 = arith.mulf %82, %86 : vector<256x128xf32>
      %c0_51 = arith.constant 0 : index
      %c0_52 = arith.constant 0 : index
      %88 = vector.load %arg7[%c0_51, %c0_52] : memref<2x128xf32, #tpu.memory_space<vmem>>, vector<1x128xf32>
      %89 = vector.broadcast %88 : vector<1x128xf32> to vector<256x128xf32>
      %90 = arith.mulf %87, %89 : vector<256x128xf32>
      %c1_53 = arith.constant 1 : index
      %c0_54 = arith.constant 0 : index
      %91 = vector.load %arg7[%c1_53, %c0_54] : memref<2x128xf32, #tpu.memory_space<vmem>>, vector<1x128xf32>
      %92 = vector.broadcast %91 : vector<1x128xf32> to vector<256x128xf32>
      %93 = arith.addf %90, %92 : vector<256x128xf32>
      %c0_55 = arith.constant 0 : index
      %c0_56 = arith.constant 0 : index
      %94 = vector.load %arg12[%c0_55, %c0_56] : memref<1x128xf32, #tpu.memory_space<vmem>>, vector<1x128xf32>
      %cst_57 = arith.constant 0.001953125 : f32
      %95 = vector.broadcast %cst_57 : f32 to vector<1x128xf32>
      %96 = arith.mulf %94, %95 : vector<1x128xf32>
      %c0_58 = arith.constant 0 : index
      %c0_59 = arith.constant 0 : index
      %97 = vector.load %arg13[%c0_58, %c0_59] : memref<1x128xf32, #tpu.memory_space<vmem>>, vector<1x128xf32>
      %cst_60 = arith.constant 0.001953125 : f32
      %98 = vector.broadcast %cst_60 : f32 to vector<1x128xf32>
      %99 = arith.mulf %97, %98 : vector<1x128xf32>
      %100 = arith.mulf %96, %96 : vector<1x128xf32>
      %101 = arith.subf %99, %100 : vector<1x128xf32>
      %cst_61 = arith.constant 0.000000e+00 : f32
      %102 = vector.broadcast %cst_61 : f32 to vector<1x128xf32>
      %103 = arith.maximumf %101, %102 : vector<1x128xf32>
      %104 = vector.broadcast %96 : vector<1x128xf32> to vector<256x128xf32>
      %105 = arith.subf %64, %104 : vector<256x128xf32>
      %cst_62 = arith.constant 9.99999974E-6 : f32
      %106 = vector.broadcast %cst_62 : f32 to vector<1x128xf32>
      %107 = arith.addf %103, %106 : vector<1x128xf32>
      %108 = math.rsqrt %107 : vector<1x128xf32>
      %109 = vector.broadcast %108 : vector<1x128xf32> to vector<256x128xf32>
      %110 = arith.mulf %105, %109 : vector<256x128xf32>
      %c0_63 = arith.constant 0 : index
      %c0_64 = arith.constant 0 : index
      %111 = vector.load %arg8[%c0_63, %c0_64] : memref<2x128xf32, #tpu.memory_space<vmem>>, vector<1x128xf32>
      %112 = vector.broadcast %111 : vector<1x128xf32> to vector<256x128xf32>
      %113 = arith.mulf %110, %112 : vector<256x128xf32>
      %c1_65 = arith.constant 1 : index
      %c0_66 = arith.constant 0 : index
      %114 = vector.load %arg8[%c1_65, %c0_66] : memref<2x128xf32, #tpu.memory_space<vmem>>, vector<1x128xf32>
      %115 = vector.broadcast %114 : vector<1x128xf32> to vector<256x128xf32>
      %116 = arith.addf %113, %115 : vector<256x128xf32>
      %117 = arith.addf %93, %116 : vector<256x128xf32>
      %cst_67 = arith.constant 0.000000e+00 : f32
      %118 = vector.broadcast %cst_67 : f32 to vector<256x128xf32>
      %119 = arith.maximumf %117, %118 : vector<256x128xf32>
      %120 = vector.shape_cast %119 : vector<256x128xf32> to vector<1x16x16x128xf32>
      %c0_68 = arith.constant 0 : index
      %c0_69 = arith.constant 0 : index
      %c0_70 = arith.constant 0 : index
      %c0_71 = arith.constant 0 : index
      %121 = vector.load %arg9[%c0_68, %c0_69, %c0_70, %c0_71] : memref<1x16x16x128xf32, #tpu.memory_space<vmem>>, vector<1x16x16x128xf32>
      tpu.vector_store %arg9[%c0_68, %c0_69, %c0_70, %c0_71], %120 {strides = array<i32>} : memref<1x16x16x128xf32, #tpu.memory_space<vmem>>, vector<1x16x16x128xf32>,
    } else {
    }
    return
  }
  func.func @transform_0(%arg0: i32, %arg1: i32, %arg2: i32) -> (i32, i32, i32, i32, i32) {
    %c0_i32 = arith.constant 0 : i32
    %c0_i32_0 = arith.constant 0 : i32
    %c0_i32_1 = arith.constant 0 : i32
    %c0_i32_2 = arith.constant 0 : i32
    return %arg1, %arg2, %c0_i32, %c0_i32_0, %c0_i32_1 : i32, i32, i32, i32, i32
  }
  func.func @transform_1(%arg0: i32, %arg1: i32, %arg2: i32) -> (i32, i32, i32, i32) {
    %c0_i32 = arith.constant 0 : i32
    %c0_i32_0 = arith.constant 0 : i32
    %c0_i32_1 = arith.constant 0 : i32
    return %arg1, %arg2, %c0_i32, %c0_i32_0 : i32, i32, i32, i32
  }
  func.func @transform_2(%arg0: i32, %arg1: i32, %arg2: i32) -> (i32, i32, i32) {
    %c0_i32 = arith.constant 0 : i32
    %c0_i32_0 = arith.constant 0 : i32
    %c0_i32_1 = arith.constant 0 : i32
    %c0_i32_2 = arith.constant 0 : i32
    return %c0_i32, %c0_i32_0, %c0_i32_1 : i32, i32, i32
  }
  func.func @transform_3(%arg0: i32, %arg1: i32, %arg2: i32) -> (i32, i32) {
    %c0_i32 = arith.constant 0 : i32
    %c0_i32_0 = arith.constant 0 : i32
    %c0_i32_1 = arith.constant 0 : i32
    return %c0_i32, %c0_i32_0 : i32, i32
  }
  func.func @transform_4(%arg0: i32, %arg1: i32, %arg2: i32) -> (i32, i32) {
    %c0_i32 = arith.constant 0 : i32
    %c0_i32_0 = arith.constant 0 : i32
    %c0_i32_1 = arith.constant 0 : i32
    return %c0_i32, %c0_i32_0 : i32, i32
  }
  func.func @transform_5(%arg0: i32, %arg1: i32, %arg2: i32) -> (i32, i32) {
    %c0_i32 = arith.constant 0 : i32
    %c0_i32_0 = arith.constant 0 : i32
    %c0_i32_1 = arith.constant 0 : i32
    return %c0_i32, %c0_i32_0 : i32, i32
  }
  func.func @transform_6(%arg0: i32, %arg1: i32, %arg2: i32) -> (i32, i32, i32, i32) {
    %0 = arith.muli %arg1, %arg0 : i32
    %1 = arith.muli %arg2, %arg0 : i32
    %c0_i32 = arith.constant 0 : i32
    %c0_i32_0 = arith.constant 0 : i32
    %c0_i32_1 = arith.constant 0 : i32
    return %0, %1, %c0_i32, %c0_i32_0 : i32, i32, i32, i32
  }
}

</mosaic_0001>

<bundles_post_ra>
// kernel: residual_block_forward.2
= control target key start
LH: loop header
LB: loop body
LE: loop exit
PB: predicated region body
PF: predicated region fallthrough
CT: control target
= control target key end

     0   :  { %s7067_s0 = inlined_call_operand.hbm [shape: f32[2,1,18,18,4], index: 0, kind: input, shape index: {}]   ;;  %s7068_s1 = inlined_call_operand.hbm [shape: f32[9,4,128], index: 1, kind: input, shape index: {}]   ;;  %s7069_s2 = inlined_call_operand.hbm [shape: f32[2,128], index: 2, kind: input, shape index: {}]   ;;  %s7070_s3 = inlined_call_operand.hbm [shape: f32[2,16,16,128], index: 3, kind: output, shape index: {}]  }
   0x1   :  { %7152 = sst [smem:[#allocation66_spill]] %s7068_s1 }
   0x2   :  { %7153 = sst [smem:[#allocation67_spill]] %s7069_s2 }
   0x3   :  { %8 = vsyncpa [#allocation5], 0 }
   0x4   :  { %10 = vsyncpa [#allocation5 + $0x1], 0 }
   0x5   :  { %11 = vsyncpa [#allocation8], 0 }
   0x6   :  { %12 = vsyncpa [#allocation6], 0 }
   0x7   :  { %14 = vsyncpa [#allocation6 + $0x1], 0  ;;  %s5235_s12 = smov 0   ;;  %s5237_s13 = smov 0  }
   0x8   :  { %s5239_s14 = smov 0   ;;  %s5241_s15 = smov 0  }
   0x9   :  { %s5243_s16 = smov 0   ;;  %s5245_s17 = smov 0  }
   0xa   :  { %s5247_s18 = smov 0   ;;  %s5249_s19 = smov 0  }
   0xb   :  { %s5251_s20 = smov 0   ;;  %s5253_s21 = smov 0  }
   0xc   :  { %s5255_s22 = smov 0  }
   0xd LB: > { %7154 = sst [smem:[#allocation14_spill]] %s5163_s12  ;;  %s3532_s23 = sadd.s32 4294967295, %s5203_s22   ;;  %s5203_s22 = sphi %s5255_s22, %s20_s22   ;;  %s5199_s21 = sphi %s5253_s21, %s7296_s21   ;;  %s5195_s20 = sphi %s5251_s20, %s7295_s20   ;;  %s5191_s19 = sphi %s5249_s19, %s7287_s19   ;;  %s5187_s18 = sphi %s5247_s18, %s7294_s18   ;;  %s5183_s17 = sphi %s5245_s17, %s7293_s17   ;;  %s5179_s16 = sphi %s5243_s16, %s7292_s16   ;;  %s5175_s15 = sphi %s5241_s15, %s7291_s15   ;;  %s5171_s14 = sphi %s5239_s14, %s7290_s14   ;;  %s5167_s13 = sphi %s5237_s13, %s7289_s13   ;;  %s5163_s12 = sphi %s5235_s12, %s7288_s12  }
   0xe   : > { %7155 = sst [smem:[#allocation15_spill]] %s5199_s21  ;;  %s3533_s24 = sadd.s32 4294967294, %s5203_s22  }
   0xf   : > { %p61_p0 = scmp.ne.s32.totalorder %s5179_s16, %s5175_s15  ;;  %p5291_p1 = scmp.eq.s32.totalorder %s3532_s23, 0 }
  0x10   : > { %p132_p2 = scmp.ne.s32.totalorder %s5171_s14, %s5167_s13  ;;  %p133_p4 = scmp.eq.s32.totalorder %s3532_s23, 3 }
  0x11   : > { %s7156_s25 = scalar_select %p5291_p1, 1, 0 }
  0x12   : > { %p5300_p3 = por %p5291_p1, %p61_p0  ;;  %p138_p5 = scmp.ne.s32.totalorder %s5167_s13, %s5163_s12 }
  0x13   : > { %p139_p6 = scmp.eq.s32.totalorder %s3533_s24, 3  ;;  %p5306_p7 = por %p133_p4, %p132_p2 }
  0x14   : > { %s7157_s27 = scalar_select %p5300_p3, 1, 0 }
  0x15   : > { %s7158_s28 = scalar_select %p5306_p7, 1, 0 }
  0x16   : > { %p3534_p8 = scmp.ge.s32.totalorder %s5203_s22, 1  ;;  %p5311_p9 = por %p139_p6, %p138_p5 }
  0x17   : > { %p146_p10 = scmp.lt.s32.totalorder %s5203_s22, 5  ;;  %s5205_s4 = smov [#allocation7]  }
  0x18   : > { %s7159_s29 = scalar_select %p5311_p9, 1, 0 }
  0x19   : > { %p5316_p11 = pnand %p3534_p8, %p146_p10  ;;  %s158_s5 = sshll.u32 %s5205_s4, 4  ;;  %s159_s5 = int_to_ptr.vmem [resolvable:$true] %s158_s5 }
  0x1a   : > { %7160 = sst [smem:[#allocation16_spill]] %s7159_s29  ;;  %s5206_s7 = smov [#allocation9]  }
  0x1b   : > { %s7161_s30 = scalar_select %p5316_p11, 1, 0 }
  0x1c   : > { %p4872_p12 = pneg %p5316_p11  ;;  %s172_s8 = sshll.u32 %s5206_s7, 4  ;;  %s5328_s8 = int_to_ptr.vmem [resolvable:$true] %s172_s8 }
  0x1d   : > { %s7163_s1 = sld [smem:[#allocation66_spill]] }
  0x1e   : > { %p5324_p13 = pnand %p4872_p12, %p5291_p1 }
  0x20   : > { %p4993_p2 = pneg %p5324_p13 }
  0x23   : > { %s4991_s11 = scalar_lea.hbm %s7163_s1, 576 }
  0x24   : > { %p4992_p0 = scmp.ne.s32.totalorder %s7163_s1, %s4991_s11  ;;  %p4998_p6 = scmp.lt.u32.totalorder %s4991_s11, %s7163_s1 }
  0x26   : > { %p4994_p4 = pnand %p4993_p2, %p4992_p0 }
  0x28   : > { %p4995_p5 = pneg %p4994_p4 }
  0x2a   : > { %p5000_p8 = pnand %p4998_p6, %p4995_p5 }
  0x2c   : > { %5003 = shalt.err (!%p5000_p8)
}
  0x2d   : > { %s5004_s7 = scalar_lea.vmem %s159_s5, 576  ;;  %p5012_p7 = scmp.lt.s32.totalorder %s159_s5, %s159_s5 }
  0x2e   : > { %p5005_p10 = scmp.ne.s32.totalorder %s159_s5, %s5004_s7  ;;  %p5013_p1 = scmp.lt.s32.totalorder %s5004_s7, %s5004_s7 }
  0x30   : > { %p5007_p12 = pnand %p5005_p10, %p4993_p2  ;;  %p5014_p3 = por %p5013_p1, %p5012_p7 }
  0x32   : > { %p5008_p9 = pneg %p5007_p12 }
  0x34   : > { %p5015_p11 = pnand %p5014_p3, %p5008_p9 }
  0x36   : > { %5018 = shalt.err (!%p5015_p11)
}
  0x37   : > { %s5207_s9 = smov 64   ;;  %s5208_s10 = smov 4  }
  0x38   : > { %4875 = dma.hbm_to_vmem [thread:$0]  (!%p5324_p13), %s7163_s1, 576, %s159_s5, [#allocation8], %s5207_s9, %s5207_s9, %s5208_s10  }
  0x39   : > { %s7164_s2 = sld [smem:[#allocation67_spill]] }
  0x3f   : > { %s5019_s4 = scalar_lea.hbm %s7164_s2, 32 }
  0x40   : > { %p5020_p0 = scmp.ne.s32.totalorder %s7164_s2, %s5019_s4  ;;  %p5026_p7 = scmp.lt.u32.totalorder %s5019_s4, %s7164_s2 }
  0x42   : > { %p5022_p1 = pnand %p5020_p0, %p4993_p2 }
  0x44   : > { %p5023_p3 = pneg %p5022_p1 }
  0x46   : > { %p5028_p9 = pnand %p5026_p7, %p5023_p3 }
  0x48   : > { %5031 = shalt.err (!%p5028_p9)
}
  0x49   : > { %s5032_s5 = scalar_lea.vmem %s5328_s8, 32  ;;  %p5040_p6 = scmp.lt.s32.totalorder %s5328_s8, %s5328_s8 }
  0x4a   : > { %p5033_p11 = scmp.ne.s32.totalorder %s5328_s8, %s5032_s5  ;;  %p5041_p8 = scmp.lt.s32.totalorder %s5032_s5, %s5032_s5 }
  0x4c   : > { %p5035_p4 = pnand %p5033_p11, %p4993_p2  ;;  %p5042_p10 = por %p5041_p8, %p5040_p6 }
  0x4e   : > { %p5036_p5 = pneg %p5035_p4 }
  0x50   : > { %p5043_p12 = pnand %p5042_p10, %p5036_p5 }
  0x52   : > { %5046 = shalt.err (!%p5043_p12)
}
  0x53   : > { %4878 = dma.hbm_to_vmem [thread:$0]  (!%p5324_p13), %s7164_s2, 32, %s5328_s8, [#allocation8]  }
  0x54   : > { %s35_s29 = sadd.s32 1, %s5195_s20  ;;  %s39_s9 = sadd.s32 1, %s5199_s21 }
  0x55   : > { %p37_p2 = scmp.ge.s32.totalorder %s35_s29, 2  ;;  %s48_s6 = sadd.s32 1, %s5183_s17 }
  0x56   : > { %p55_p0 = scmp.ne.s32.totalorder %s5183_s17, %s5179_s16  ;;  %p56_p1 = scmp.eq.s32.totalorder %s5203_s22, 0 }
  0x57   : > { %s7298_s29 = smov (%p37_p2, %s35_s29), 0  ;;  %s7300_s9 = smov (!%p37_p2, %s39_s9), %s5199_s21 }
  0x58   : > { %s43_s10 = ssub.s32 %s5195_s20, %s7298_s29  ;;  %p5388_p3 = por %p56_p1, %p55_p0 }
  0x59   : > { %p41_p13 = scmp.ge.s32.totalorder %s7300_s9, 2  ;;  %p46_p7 = scmp.eq.s32.totalorder %s43_s10, 0 }
  0x5a   : > { %s113_s8 = smul.u32 %s5195_s20, %s5199_s21  ;;  %p4889_p9 = scmp.lt.s32.totalorder %s5203_s22, 4 }
  0x5b   : > { %s7302_s9 = smov (%p41_p13, %s7300_s9), 0  ;;  %s183_s24 = sand.u32 1, %s5183_s17  }
  0x5c   : > { %s5398_s15 = scalar_select %p46_p7, %s5183_s17, %s48_s6  }
  0x5d   : > { %s115_s23 = smul.u32 %s7302_s9, %s7298_s29  ;;  %s7166_s21 = sadd.s32 1, %s5171_s14 }
  0x5e   : > { %s4857_s4 = smul.u32 432, %s183_s24  ;;  %p5420_p4 = pnand %p4889_p9, %p5388_p3 }
  0x5f   : > { %s117_s7 = ssub.s32 %s113_s8, %s115_s23  ;;  %s4858_s5 = smul.u32 6912, %s5195_s20 }
  0x60   : > { %p120_p11 = scmp.eq.s32.totalorder %s117_s7, 0  ;;  %s187_s10 = scalar_lea.vmem [#allocation4], %s4857_s4 }
  0x61   : > { %s5407_s1 = scalar_lea.hbm %s7067_s0, %s4858_s5  ;;  %s196_s2 = sshll.u32 %s187_s10, 4  ;;  %s5414_s2 = int_to_ptr.vmem [resolvable:$true] %s196_s2 }
  0x62   : > { %s5412_s6 = scalar_select %p120_p11, %s5171_s14, %s7166_s21  }
  0x63   : > { %s5424_s23 = scalar_lea.sflag [#allocation5], %s183_s24  ;;  %s5047_s7 = scalar_lea.hbm %s5407_s1, 6912 }
  0x64   : > { %p5048_p5 = scmp.ne.s32.totalorder %s5407_s1, %s5047_s7  ;;  %p5049_p6 = pneg %p5420_p4 }
  0x65   : > { %s5052_s11 = scalar_lea.hbm %s7067_s0, 13824  ;;  %p5053_p12 = scmp.lt.u32.totalorder %s5407_s1, %s7067_s0 }
  0x66   : > { %p5050_p8 = pnand %p5049_p6, %p5048_p5  ;;  %p5054_p2 = scmp.lt.u32.totalorder %s5052_s11, %s5047_s7 }
  0x67   : > { %p5056_p1 = scmp.lt.u32.totalorder %s5047_s7, %s5407_s1 }
  0x68   : > { %p5051_p10 = pneg %p5050_p8  ;;  %p5055_p0 = por %p5054_p2, %p5053_p12 }
  0x6a   : > { %p5057_p3 = por %p5056_p1, %p5055_p0 }
  0x6c   : > { %p5058_p13 = pnand %p5057_p3, %p5051_p10 }
  0x6e   : > { %5061 = shalt.err (!%p5058_p13)
}
  0x6f   : > { %s5062_s24 = scalar_lea.vmem %s5414_s2, 6912  ;;  %s5209_s26 = smov [#allocation4]  }
  0x70   : > { %p5063_p7 = scmp.ne.s32.totalorder %s5414_s2, %s5062_s24  ;;  %s5067_s10 = sshll.u32 %s5209_s26, 4  ;;  %s5068_s10 = int_to_ptr.vmem [resolvable:$false] %s5067_s10 }
  0x71   : > { %s5069_s21 = scalar_lea.vmem %s5068_s10, 13824  ;;  %p5070_p5 = scmp.lt.s32.totalorder %s5414_s2, %s5068_s10 }
  0x72   : > { %p5065_p9 = pnand %p5063_p7, %p5049_p6  ;;  %p5071_p8 = scmp.lt.s32.totalorder %s5069_s21, %s5062_s24 }
  0x74   : > { %p5066_p11 = pneg %p5065_p9  ;;  %p5072_p12 = por %p5071_p8, %p5070_p5 }
  0x76   : > { %p5073_p2 = pnand %p5072_p12, %p5066_p11 }
  0x78   : > { %5076 = shalt.err (!%p5073_p2)
}
  0x79   : > { %s5210_s7 = smov 128   ;;  %s5211_s4 = smov 8  }
  0x7a   : > { %4882 = dma.hbm_to_vmem [thread:$0]  (!%p5420_p4), %s5407_s1, 6912, %s5414_s2, %s5424_s23, %s5210_s7, %s5210_s7, %s5211_s4  }
  0x7b   : > { %p7168_p6 = scmp.ne.s32.totalorder %s7161_s30, 0 }
  0x7d   : > { %208 = sbr.rel (%p7168_p6) target bundleno = 806 (0x326), region = 32 }
  0x84   : > { %s210_s11 = sand.u32 1, %s5179_s16   ;;  %p7169_p10 = scmp.ne.s32.totalorder %s7157_s27, 0 }
  0x85   : > { %s4859_s5 = smul.u32 432, %s210_s11  ;;  %s211_s12 = scalar_lea.sflag [#allocation5], %s210_s11 }
  0x87   : > { %s5455_s24 = scalar_lea.vmem [#allocation4], %s4859_s5 }
  0x88   : > { %5150 = dma.done.wait (%p7169_p10), %s211_s12, 6912  }
  0x89   : > { %5152 = vsyncadd (%p7169_p10), %s211_s12, 4294960384  ;;  %p7170_p0 = scmp.ne.s32.totalorder %s7156_s25, 0 }
  0x8b   : > { %5154 = dma.done.wait (%p7170_p0), [#allocation8], 608  }
  0x8c   : > { %5156 = vsyncadd (%p7170_p0), [#allocation8], 4294966688  ;;  %s242_s1 = sand.u32 1, %s5167_s13   ;;  %p248_p4 = scmp.eq.s32.totalorder %s5187_s18, 0  ;;  %vm503_vm0 = vcmask 1043456   ;;  %v5474_v2 = vld [vmem:[%s5455_s24] sm:$0xff] }
  0x8d   : > { %s5469_s2 = sshll.u32 %s242_s1, 8  ;;  %v437_v0 = vld [vmem:[#allocation7 + $0x4] sm:$0xf]  ;;  %v5471_v1 = vld [vmem:[#allocation7 + $0x10] sm:$0xf]  ;;  %vm355_vm1 = vcmask 1046528  }
  0x8e   : > { %4149 = vmatprep.subr.msk.mxu1 %vm503_vm0, %v437_v0  ;;  %4349 = vmatprep.subr.msk.mxu0 %vm503_vm0, %v5471_v1  ;;  %v5480_v3 = vld [vmem:[%s5455_s24 + $0x8] sm:$0xff]  ;;  %v356_v4 = vrot.slane %v5474_v2, 1  ;;  %vm438_vm2 = vcmask 31744   ;;  %v306_v5 = vld [vmem:[#allocation7] sm:$0xf]  ;;  %v5484_v6 = vld [vmem:[%s5455_s24 + $0x18] sm:$0xff] }
  0x8f   : > { %7171 = vst [vmem:[#allocation17_spill] sm:$0xff] %v5484_v6  ;;  %4150 = vmatpush3.msk.msra.mxu1 %vm503_vm0, %v437_v0  ;;  %4350 = vmatpush3.msk.msra.mxu0 %vm503_vm0, %v5471_v1  ;;  %v357_v7 = vrot.slane %v5480_v3, 1  ;;  %v5491_v8 = vld [vmem:[%s5455_s24 + $0x20] sm:$0xff]  ;;  %v361_v9 = vrot.slane %v5484_v6, 1  ;;  %v5495_v11 = vld [vmem:[%s5455_s24 + $0x30] sm:$0xff]  ;;  %v5507_v15 = vld [vmem:[%s5455_s24 + $0x38] sm:$0xff] }
  0x90   : > { %7172 = vst [vmem:[#allocation18_spill] sm:$0xff] %v5491_v8  ;;  %v1977_v10 = vld [vmem:[#allocation7 + $0x14] sm:$0xf]  ;;  %4199 = vmatprep.subr.msk.mxu1 %vm503_vm0, %v306_v5  ;;  %v362_v12 = vrot.slane %v5491_v8, 1  ;;  %v5501_v13 = vld [vmem:[%s5455_s24 + $0x10] sm:$0x3] }
  0x91   : > { %4399 = vmatprep.subr.msk.mxu0 %vm503_vm0, %v1977_v10  ;;  %v5504_v14 = vld [vmem:[%s5455_s24 + $0x28] sm:$0x3]  ;;  %v358_v16 = vsel %vm355_vm1, %v356_v4, %v357_v7  ;;  %v359_v17 = vrot.slane %v5501_v13, 1  ;;  %v5513_v19 = vld [vmem:[%s5455_s24 + $0x40] sm:$0x3]  ;;  %v366_v22 = vrot.slane %v5495_v11, 1 }
  0x92   : > { %v364_v18 = vrot.slane %v5504_v14, 1  ;;  %v5516_v20 = vld [vmem:[%s5455_s24 + $0x48] sm:$0xff]  ;;  %4151 = vmatprep.mubr.msk.f32.mxu1 %vm438_vm2, %v358_v16  ;;  %v363_v21 = vsel %vm355_vm1, %v361_v9, %v362_v12  ;;  %v367_v23 = vrot.slane %v5507_v15, 1  ;;  %v5523_v24 = vld [vmem:[%s5455_s24 + $0x50] sm:$0xff]  ;;  %v5526_v25 = vld [vmem:[%s5455_s24 + $0x58] sm:$0x3] }
  0x93   : > { %4351 = vmatprep.mubr.msk.f32.mxu0 %vm438_vm2, %v363_v21  ;;  %v360_v26 = vsel %vm355_vm1, %v357_v7, %v359_v17  ;;  %v369_v28 = vrot.slane %v5513_v19, 1  ;;  %v371_v29 = vrot.slane %v5516_v20, 1  ;;  %v5534_v30 = vld [vmem:[%s5455_s24 + $0x60] sm:$0xff]  ;;  %v5537_v31 = vld [vmem:[%s5455_s24 + $0x68] sm:$0xff]  ;;  %v372_v33 = vrot.slane %v5523_v24, 1  ;;  %v5563_v40 = vld [vmem:[%s5455_s24 + $0x78] sm:$0xff] }
  0x94   : > { %v365_v27 = vsel %vm355_vm1, %v362_v12, %v364_v18  ;;  %4152 = vmatmul.mubr.msk.f32.vlgmr.msra.gmra.mrb[0].mxu1 %vm438_vm2, %v360_v26  ;;  %v5542_v32 = vsel %vm355_vm1, %v366_v22, %v367_v23  ;;  %v374_v35 = vrot.slane %v5526_v25, 1  ;;  %v376_v37 = vrot.slane %v5534_v30, 1  ;;  %v5560_v39 = vld [vmem:[%s5455_s24 + $0x70] sm:$0x3]  ;;  %v5566_v41 = vld [vmem:[%s5455_s24 + $0x80] sm:$0xff]  ;;  %v5595_v50 = vld [vmem:[%s5455_s24 + $0x98] sm:$0xff] }
  0x95   : > { %4352 = vmatmul.mubr.msk.f32.vlgmr.msra.gmra.mrb[0].mxu0 %vm438_vm2, %v365_v27  ;;  %7173 = vst [vmem:[#allocation19_spill] sm:$0xff] %v5542_v32  ;;  %4200 = vmatpush3.msk.msra.mxu1 %vm503_vm0, %v306_v5  ;;  %v5548_v34 = vsel %vm355_vm1, %v367_v23, %v369_v28  ;;  %v5555_v36 = vsel %vm355_vm1, %v371_v29, %v372_v33  ;;  %v377_v38 = vrot.slane %v5537_v31, 1  ;;  %v5571_v42 = vld [vmem:[#allocation7 + $0x18] sm:$0xf]  ;;  %v379_v44 = vrot.slane %v5560_v39, 1  ;;  %v5592_v49 = vld [vmem:[%s5455_s24 + $0x90] sm:$0xff] }
  0x96   : > { %4400 = vmatpush3.msk.msra.mxu0 %vm503_vm0, %v1977_v10  ;;  %7174 = vst [vmem:[#allocation20_spill] sm:$0xff] %v5548_v34  ;;  %4154 = vmatprep.mubr.msk.f32.mxu1 %vm438_vm2, %v363_v21  ;;  %7175 = vst [vmem:[#allocation21_spill] sm:$0xff] %v5555_v36  ;;  %v5578_v43 = vsel %vm355_vm1, %v372_v33, %v374_v35  ;;  %v381_v46 = vrot.slane %v5563_v40, 1  ;;  %v382_v47 = vrot.slane %v5566_v41, 1  ;;  %v5587_v48 = vld [vmem:[%s5455_s24 + $0x88] sm:$0x3] }
  0x97   : > { %4354 = vmatprep.mubr.msk.f32.mxu0 %vm438_vm2, %v5542_v32  ;;  %7176 = vst [vmem:[#allocation22_spill] sm:$0xff] %v5578_v43  ;;  %v5582_v45 = vsel %vm355_vm1, %v376_v37, %v377_v38  ;;  %4449 = vmatprep.subr.msk.mxu0 %vm503_vm0, %v5571_v42  ;;  %v5606_v51 = vsel %vm355_vm1, %v377_v38, %v379_v44  ;;  %v384_v52 = vrot.slane %v5587_v48, 1  ;;  %v386_v54 = vrot.slane %v5592_v49, 1  ;;  %v5615_v56 = vld [vmem:[%s5455_s24 + $0xa0] sm:$0x3]  ;;  %v5618_v57 = vld [vmem:[%s5455_s24 + $0xa8] sm:$0xff] }
  0x98   : > { %4155 = vmatmul.mubr.msk.f32.gmra.mrb[2].mxu1 %vm438_vm2, %v365_v27  ;;  %7177 = vst [vmem:[#allocation23_spill] sm:$0xff] %v5582_v45  ;;  %7178 = vst [vmem:[#allocation24_spill] sm:$0xff] %v5606_v51  ;;  %v5610_v53 = vsel %vm355_vm1, %v381_v46, %v382_v47  ;;  %v387_v55 = vrot.slane %v5595_v50, 1  ;;  %v5621_v58 = vld [vmem:[%s5455_s24 + $0xb0] sm:$0xff]  ;;  %v389_v60 = vrot.slane %v5615_v56, 1  ;;  %v391_v63 = vrot.slane %v5618_v57, 1 }
  0x99   : > { %4355 = vmatmul.mubr.msk.f32.gmra.mrb[2].mxu0 %vm438_vm2, %v5548_v34  ;;  %4157 = vmatprep.mubr.msk.f32.mxu1 %vm438_vm2, %v5542_v32  ;;  %7179 = vst [vmem:[#allocation25_spill] sm:$0xff] %v5610_v53  ;;  %v5632_v59 = vsel %vm355_vm1, %v382_v47, %v384_v52  ;;  %v5635_v61 = vld [vmem:[#allocation7 + $0x8] sm:$0xf]  ;;  %v392_v0 = vrot.slane %v5621_v58, 1  ;;  %v5648_v5 = vld [vmem:[%s5455_s24 + $0xc0] sm:$0xff]  ;;  %v1030_v26 = vrot.slane %v5484_v6, 2 }
  0x9a   : > { %4357 = vmatprep.mubr.msk.f32.mxu0 %vm438_vm2, %v5555_v36  ;;  %7180 = vst [vmem:[#allocation26_spill] sm:$0xff] %v5632_v59  ;;  %v5638_v62 = vsel %vm355_vm1, %v386_v54, %v387_v55  ;;  %v5643_v4 = vld [vmem:[%s5455_s24 + $0xb8] sm:$0x3]  ;;  %4249 = vmatprep.subr.msk.mxu1 %vm503_vm0, %v5635_v61  ;;  %v5651_v7 = vld [vmem:[%s5455_s24 + $0xc8] sm:$0xff]  ;;  %v5662_v9 = vsel %vm355_vm1, %v387_v55, %v389_v60  ;;  %v396_v16 = vrot.slane %v5648_v5, 1  ;;  %v1031_v27 = vrot.slane %v5491_v8, 2 }
  0x9b   : > { %7181 = vst [vmem:[#allocation27_spill] sm:$0xff] %v5638_v62  ;;  %7182 = vst [vmem:[#allocation28_spill] sm:$0xff] %v5662_v9  ;;  %v394_v10 = vrot.slane %v5643_v4, 1  ;;  %v5666_v12 = vsel %vm355_vm1, %v391_v63, %v392_v0  ;;  %v397_v17 = vrot.slane %v5651_v7, 1  ;;  %v5671_v18 = vld [vmem:[%s5455_s24 + $0xd0] sm:$0x3] }
  0x9c   : > { %4158 = vmatmul.mubr.msk.f32.gmra.mrb[4].mxu1 %vm438_vm2, %v5548_v34  ;;  %7183 = vst [vmem:[#allocation29_spill] sm:$0xff] %v5666_v12  ;;  %v399_v22 = vrot.slane %v5671_v18, 1  ;;  %vm1024_vm3 = vcmask 1045504   ;;  %v5691_v28 = vld [vmem:[%s5455_s24 + $0xd8] sm:$0xff]  ;;  %v5694_v29 = vld [vmem:[%s5455_s24 + $0xe0] sm:$0xff]  ;;  %v1033_v33 = vrot.slane %v5504_v14, 2 }
  0x9d   : > { %4358 = vmatmul.mubr.msk.f32.gmra.mrb[4].mxu0 %vm438_vm2, %v5578_v43  ;;  %4160 = vmatprep.mubr.msk.f32.mxu1 %vm438_vm2, %v5555_v36  ;;  %v5682_v21 = vsel %vm355_vm1, %v392_v0, %v394_v10  ;;  %v5686_v23 = vsel %vm355_vm1, %v396_v16, %v397_v17  ;;  %v5709_v37 = vld [vmem:[%s5455_s24 + $0xe8] sm:$0x3]  ;;  %v5712_v38 = vsel %vm1024_vm3, %v1030_v26, %v1031_v27  ;;  %v401_v14 = vrot.slane %v5691_v28, 1  ;;  %v5717_v46 = vld [vmem:[%s5455_s24 + $0xf0] sm:$0xff]  ;;  %v5720_v47 = vld [vmem:[%s5455_s24 + $0xf8] sm:$0xff]  ;;  %s6612_s25 = scalar_lea.vmem [#allocation10], %s5469_s2 }
  0x9e   : > { %4360 = vmatprep.mubr.msk.f32.mxu0 %vm438_vm2, %v5582_v45  ;;  %7184 = vst [vmem:[#allocation30_spill] sm:$0xff] %v5682_v21  ;;  %7185 = vst [vmem:[#allocation31_spill] sm:$0xff] %v5686_v23  ;;  %v5706_v35 = vsel %vm355_vm1, %v397_v17, %v399_v22  ;;  %v402_v44 = vrot.slane %v5694_v29, 1  ;;  %v1035_v52 = vrot.slane %v5495_v11, 2  ;;  %v1036_v54 = vrot.slane %v5507_v15, 2  ;;  %v5862_v32 = vld [vmem:[%s5455_s24 + $0x150] sm:$0xff] }
  0x9f   : > { %7186 = vst [vmem:[#allocation32_spill] sm:$0xff] %v5706_v35  ;;  %v5729_v55 = vsel %vm1024_vm3, %v1031_v27, %v1033_v33  ;;  %v404_v60 = vrot.slane %v5709_v37, 1  ;;  %v1038_v63 = vrot.slane %v5513_v19, 2  ;;  %v406_v0 = vrot.slane %v5717_v46, 1  ;;  %v5742_v22 = vld [vmem:[%s5455_s24 + $0x100] sm:$0x3] }
  0xa0   : > { %4161 = vmatmul.mubr.msk.f32.gmra.mrb[6].mxu1 %vm438_vm2, %v5578_v43  ;;  %v407_v10 = vrot.slane %v5720_v47, 1  ;;  %v1040_v16 = vrot.slane %v5516_v20, 2  ;;  %v1041_v17 = vrot.slane %v5523_v24, 2  ;;  %v5745_v26 = vsel %vm355_vm1, %v401_v14, %v402_v44  ;;  %v5751_v27 = vld [vmem:[%s5455_s24 + $0x108] sm:$0xff]  ;;  %v5754_v33 = vld [vmem:[%s5455_s24 + $0x110] sm:$0xff]  ;;  %p3841_p1 = scmp.ne.s32.totalorder %s5191_s19, 0 }
  0xa1   : > { %4361 = vmatmul.mubr.msk.f32.gmra.mrb[6].mxu0 %vm438_vm2, %v5606_v51  ;;  %4163 = vmatprep.mubr.msk.f32.mxu1 %vm438_vm2, %v5582_v45  ;;  %7187 = vst [vmem:[#allocation33_spill] sm:$0xff] %v5745_v26  ;;  %v5748_v19 = vsel %vm1024_vm3, %v1035_v52, %v1036_v54  ;;  %v5763_v14 = vsel %vm355_vm1, %v402_v44, %v404_v60  ;;  %v409_v52 = vrot.slane %v5742_v22, 1  ;;  %v5781_v44 = vld [vmem:[%s5455_s24 + $0x118] sm:$0x3]  ;;  %v1045_v60 = vrot.slane %v5534_v30, 2 }
  0xa2   : > { %4363 = vmatprep.mubr.msk.f32.mxu0 %vm438_vm2, %v5610_v53  ;;  %7188 = vst [vmem:[#allocation34_spill] sm:$0xff] %v5763_v14  ;;  %v1056_v34 = vrot.slane %v5595_v50, 2 }
  0xa4   : > { %4164 = vmatmul.mubr.msk.f32.gmra.mrb[8].mxu1 %vm438_vm2, %v5606_v51  ;;  %v5830_v51 = vld [vmem:[%s5455_s24 + $0x140] sm:$0xff] }
  0xa5   : > { %4364 = vmatmul.mubr.msk.f32.gmra.mrb[8].mxu0 %vm438_vm2, %v5632_v59  ;;  %4166 = vmatprep.mubr.msk.f32.mxu1 %vm438_vm2, %v5610_v53 }
  0xa6   : > { %4366 = vmatprep.mubr.msk.f32.mxu0 %vm438_vm2, %v5638_v62 }
  0xa8   : > { %4167 = vmatmul.mubr.msk.f32.gmra.mrb[10].mxu1 %vm438_vm2, %v5632_v59  ;;  %v1048_v59 = vrot.slane %v5560_v39, 2 }
  0xa9   : > { %4367 = vmatmul.mubr.msk.f32.gmra.mrb[10].mxu0 %vm438_vm2, %v5662_v9  ;;  %4169 = vmatprep.mubr.msk.f32.mxu1 %vm438_vm2, %v5638_v62  ;;  %v414_v62 = vrot.slane %v5781_v44, 1 }
  0xaa   : > { %4369 = vmatprep.mubr.msk.f32.mxu0 %vm438_vm2, %v5666_v12 }
  0xac   : > { %4170 = vmatmul.mubr.msk.f32.gmra.mrb[12].mxu1 %vm438_vm2, %v5662_v9  ;;  %v5778_v9 = vsel %vm1024_vm3, %v1040_v16, %v1041_v17  ;;  %v5802_v16 = vsel %vm355_vm1, %v407_v10, %v409_v52  ;;  %v1051_v52 = vrot.slane %v5566_v41, 2 }
  0xad   : > { %4370 = vmatmul.mubr.msk.f32.gmra.mrb[12].mxu0 %vm438_vm2, %v5682_v21  ;;  %4172 = vmatprep.mubr.msk.f32.mxu1 %vm438_vm2, %v5666_v12  ;;  %v5775_v12 = vsel %vm355_vm1, %v406_v0, %v407_v10  ;;  %7190 = vst [vmem:[#allocation36_spill] sm:$0xff] %v5778_v9  ;;  %v5793_v0 = vld [vmem:[%s5455_s24 + $0x128] sm:$0xff]  ;;  %7191 = vst [vmem:[#allocation37_spill] sm:$0xff] %v5802_v16  ;;  %v1050_v10 = vrot.slane %v5563_v40, 2 }
  0xae   : > { %4372 = vmatprep.mubr.msk.f32.mxu0 %vm438_vm2, %v5686_v23  ;;  %7189 = vst [vmem:[#allocation35_spill] sm:$0xff] %v5775_v12  ;;  %v417_v53 = vrot.slane %v5793_v0, 1 }
  0xaf   : > { %v5852_v36 = vsel %vm1024_vm3, %v1050_v10, %v1051_v52 }
  0xb0   : > { %4173 = vmatmul.mubr.msk.f32.gmra.mrb[14].mxu1 %vm438_vm2, %v5682_v21  ;;  %v1043_v21 = vrot.slane %v5526_v25, 2  ;;  %v411_v25 = vrot.slane %v5751_v27, 1  ;;  %7198 = vst [vmem:[#allocation44_spill] sm:$0xff] %v5852_v36 }
  0xb1   : > { %4373 = vmatmul.mubr.msk.f32.gmra.mrb[14].mxu0 %vm438_vm2, %v5706_v35  ;;  %4175 = vmatprep.mubr.msk.f32.mxu1 %vm438_vm2, %v5686_v23  ;;  %v5756_v23 = vld [vmem:[#allocation7 + $0x1c] sm:$0xf] }
  0xb2   : > { %4401 = vmatprep.mubr.msk.f32.mxu0 %vm438_vm2, %v5712_v38 }
  0xb4   : > { %4176 = vmatmul.mubr.msk.f32.gmra.mrb[16].mxu1 %vm438_vm2, %v5706_v35  ;;  %v5772_v35 = vsel %vm1024_vm3, %v1036_v54, %v1038_v63  ;;  %v1046_v54 = vrot.slane %v5537_v31, 2  ;;  %v5790_v63 = vld [vmem:[%s5455_s24 + $0x120] sm:$0xff] }
  0xb5   : > { %4402 = vmatmul.mubr.msk.f32.vlgmr.msra.gmra.mrb[0].mxu0 %vm438_vm2, %v5729_v55  ;;  %4178 = vmatprep.mubr.msk.f32.mxu1 %vm438_vm2, %v5745_v26  ;;  %v5805_v26 = vsel %vm1024_vm3, %v1041_v17, %v1043_v21  ;;  %v5818_v21 = vld [vmem:[%s5455_s24 + $0x130] sm:$0x3] }
  0xb6   : > { %4450 = vmatpush3.msk.msra.mxu0 %vm503_vm0, %v5571_v42  ;;  %4404 = vmatprep.mubr.msk.f32.mxu0 %vm438_vm2, %v5748_v19  ;;  %v412_v42 = vrot.slane %v5754_v33, 1  ;;  %7192 = vst [vmem:[#allocation38_spill] sm:$0xff] %v5805_v26  ;;  %v5824_v39 = vsel %vm1024_vm3, %v1045_v60, %v1046_v54  ;;  %v1053_v60 = vrot.slane %v5587_v48, 2  ;;  %v5846_v43 = vsel %vm1024_vm3, %v1046_v54, %v1048_v59  ;;  %v5865_v59 = vld [vmem:[%s5455_s24 + $0x158] sm:$0xff] }
  0xb7   : > { %4499 = vmatprep.subr.msk.mxu0 %vm503_vm0, %v5756_v23  ;;  %7194 = vst [vmem:[#allocation40_spill] sm:$0xff] %v5824_v39  ;;  %7196 = vst [vmem:[#allocation42_spill] sm:$0xff] %v5846_v43  ;;  %v422_v48 = vrot.slane %v5830_v51, 1 }
  0xb8   : > { %4179 = vmatmul.mubr.msk.f32.gmra.mrb[18].mxu1 %vm438_vm2, %v5763_v14  ;;  %v416_v14 = vrot.slane %v5790_v63, 1  ;;  %v5821_v17 = vsel %vm355_vm1, %v411_v25, %v412_v42  ;;  %v5837_v45 = vsel %vm355_vm1, %v412_v42, %v414_v62  ;;  %v419_v25 = vrot.slane %v5818_v21, 1  ;;  %v5855_v62 = vld [vmem:[%s5455_s24 + $0x148] sm:$0x3] }
  0xb9   : > { %4405 = vmatmul.mubr.msk.f32.gmra.mrb[2].mxu0 %vm438_vm2, %v5772_v35  ;;  %4181 = vmatprep.mubr.msk.f32.mxu1 %vm438_vm2, %v5775_v12  ;;  %7193 = vst [vmem:[#allocation39_spill] sm:$0xff] %v5821_v17  ;;  %v5827_v12 = vld [vmem:[%s5455_s24 + $0x138] sm:$0xff]  ;;  %7195 = vst [vmem:[#allocation41_spill] sm:$0xff] %v5837_v45  ;;  %v5875_v54 = vsel %vm1024_vm3, %v1051_v52, %v1053_v60  ;;  %v424_v10 = vrot.slane %v5855_v62, 1 }
  0xba   : > { %4407 = vmatprep.mubr.msk.f32.mxu0 %vm438_vm2, %v5778_v9  ;;  %v421_v42 = vrot.slane %v5827_v12, 1  ;;  %7200 = vst [vmem:[#allocation46_spill] sm:$0xff] %v5875_v54  ;;  %v5929_v9 = vld [vmem:[%s5455_s24 + $0x178] sm:$0x3] }
  0xbc   : > { %4182 = vmatmul.mubr.msk.f32.gmra.mrb[20].mxu1 %vm438_vm2, %v5802_v16  ;;  %v5849_v16 = vsel %vm355_vm1, %v416_v14, %v417_v53  ;;  %v5872_v14 = vsel %vm355_vm1, %v417_v53, %v419_v25  ;;  %v1060_v53 = vrot.slane %v5618_v57, 2  ;;  %v1061_v25 = vrot.slane %v5621_v58, 2 }
  0xbd   : > { %4408 = vmatmul.mubr.msk.f32.gmra.mrb[4].mxu0 %vm438_vm2, %v5805_v26  ;;  %4184 = vmatprep.mubr.msk.f32.mxu1 %vm438_vm2, %v5821_v17  ;;  %7197 = vst [vmem:[#allocation43_spill] sm:$0xff] %v5849_v16  ;;  %v1055_v17 = vrot.slane %v5592_v49, 2  ;;  %7199 = vst [vmem:[#allocation45_spill] sm:$0xff] %v5872_v14  ;;  %v5888_v52 = vsel %vm355_vm1, %v421_v42, %v422_v48  ;;  %v5907_v26 = vsel %vm355_vm1, %v422_v48, %v424_v10 }
  0xbe   : > { %4410 = vmatprep.mubr.msk.f32.mxu0 %vm438_vm2, %v5824_v39  ;;  %v1058_v39 = vrot.slane %v5615_v56, 2  ;;  %7201 = vst [vmem:[#allocation47_spill] sm:$0xff] %v5888_v52  ;;  %v5894_v56 = vld [vmem:[%s5455_s24 + $0x160] sm:$0x3]  ;;  %7204 = vst [vmem:[#allocation50_spill] sm:$0xff] %v5907_v26  ;;  %v1063_v48 = vrot.slane %v5643_v4, 2 }
  0xbf   : > { %v5891_v60 = vsel %vm1024_vm3, %v1055_v17, %v1056_v34 }
  0xc0   : > { %4185 = vmatmul.mubr.msk.f32.gmra.mrb[22].mxu1 %vm438_vm2, %v5837_v45  ;;  %v426_v45 = vrot.slane %v5862_v32, 1  ;;  %7202 = vst [vmem:[#allocation48_spill] sm:$0xff] %v5891_v60  ;;  %v5910_v42 = vsel %vm1024_vm3, %v1056_v34, %v1058_v39  ;;  %v1065_v39 = vrot.slane %v5648_v5, 2  ;;  %v5943_v4 = vsel %vm1024_vm3, %v1061_v25, %v1063_v48 }
  0xc1   : > { %4411 = vmatmul.mubr.msk.f32.gmra.mrb[6].mxu0 %vm438_vm2, %v5846_v43  ;;  %4187 = vmatprep.mubr.msk.f32.mxu1 %vm438_vm2, %v5849_v16  ;;  %v427_v43 = vrot.slane %v5865_v59, 1  ;;  %v5897_v16 = vld [vmem:[%s5455_s24 + $0x168] sm:$0xff]  ;;  %7205 = vst [vmem:[#allocation51_spill] sm:$0xff] %v5910_v42  ;;  %v1075_v48 = vrot.slane %v5717_v46, 2 }
  0xc2   : > { %4413 = vmatprep.mubr.msk.f32.mxu0 %vm438_vm2, %v5852_v36  ;;  %v5900_v36 = vld [vmem:[%s5455_s24 + $0x170] sm:$0xff]  ;;  %v431_v10 = vrot.slane %v5897_v16, 1 }
  0xc3   : > { %7203 = vst [vmem:[#allocation49_spill] sm:$0xff] %v5900_v36  ;;  %v5917_v17 = vsel %vm355_vm1, %v426_v45, %v427_v43  ;;  %v432_v34 = vrot.slane %v5900_v36, 1 }
  0xc4   : > { %4188 = vmatmul.mubr.msk.f32.gmra.mrb[24].mxu1 %vm438_vm2, %v5872_v14  ;;  %7206 = vst [vmem:[#allocation52_spill] sm:$0xff] %v5917_v17  ;;  %v5920_v14 = vsel %vm1024_vm3, %v1060_v53, %v1061_v25  ;;  %v434_v53 = vrot.slane %v5929_v9, 1 }
  0xc5   : > { %4414 = vmatmul.mubr.msk.f32.gmra.mrb[8].mxu0 %vm438_vm2, %v5875_v54  ;;  %4190 = vmatprep.mubr.msk.f32.mxu1 %vm438_vm2, %v5888_v52  ;;  %7207 = vst [vmem:[#allocation53_spill] sm:$0xff] %v5920_v14  ;;  %v429_v54 = vrot.slane %v5894_v56, 1  ;;  %v1066_v52 = vrot.slane %v5651_v7, 2 }
  0xc6   : > { %4416 = vmatprep.mubr.msk.f32.mxu0 %vm438_vm2, %v5891_v60  ;;  %v1068_v60 = vrot.slane %v5671_v18, 2 }
  0xc7   : > { %v5940_v45 = vsel %vm355_vm1, %v427_v43, %v429_v54  ;;  %v5964_v43 = vsel %vm355_vm1, %v432_v34, %v434_v53  ;;  %v1073_v54 = vrot.slane %v5709_v37, 2 }
  0xc8   : > { %4191 = vmatmul.mubr.msk.f32.gmra.mrb[26].mxu1 %vm438_vm2, %v5907_v26  ;;  %7208 = vst [vmem:[#allocation54_spill] sm:$0xff] %v5940_v45  ;;  %v5948_v26 = vsel %vm355_vm1, %v431_v10, %v432_v34  ;;  %7211 = vst [vmem:[#allocation57_spill] sm:$0xff] %v5964_v43  ;;  %v5967_v18 = vsel %vm1024_vm3, %v1066_v52, %v1068_v60  ;;  %v1076_v10 = vrot.slane %v5720_v47, 2  ;;  %v1080_v60 = vrot.slane %v5751_v27, 2 }
  0xc9   : > { %4417 = vmatmul.mubr.msk.f32.gmra.mrb[10].mxu0 %vm438_vm2, %v5910_v42  ;;  %4193 = vmatprep.mubr.msk.f32.mxu1 %vm438_vm2, %v5917_v17  ;;  %7209 = vst [vmem:[#allocation55_spill] sm:$0xff] %v5948_v26  ;;  %v5951_v42 = vsel %vm1024_vm3, %v1065_v39, %v1066_v52  ;;  %v1070_v17 = vrot.slane %v5691_v28, 2  ;;  %v1078_v52 = vrot.slane %v5742_v22, 2  ;;  %v5992_v39 = vld [vmem:[#allocation7 + $0xc] sm:$0xf] }
  0xca   : > { %4419 = vmatprep.mubr.msk.f32.mxu0 %vm438_vm2, %v5920_v14  ;;  %7210 = vst [vmem:[#allocation56_spill] sm:$0xff] %v5951_v42  ;;  %v1071_v14 = vrot.slane %v5694_v29, 2  ;;  %v5990_v34 = vsel %vm1024_vm3, %v1075_v48, %v1076_v10  ;;  %v1086_v48 = vrot.slane %v5793_v0, 2 }
  0xcb   : > { %v6003_v22 = vsel %vm1024_vm3, %v1076_v10, %v1078_v52  ;;  %v1090_v52 = vrot.slane %v5827_v12, 2 }
  0xcc   : > { %4194 = vmatmul.mubr.msk.f32.gmra.mrb[28].mxu1 %vm438_vm2, %v5940_v45  ;;  %v5971_v25 = vsel %vm1024_vm3, %v1070_v17, %v1071_v14  ;;  %v5984_v37 = vsel %vm1024_vm3, %v1071_v14, %v1073_v54  ;;  %v1081_v17 = vrot.slane %v5754_v33, 2  ;;  %v1083_v14 = vrot.slane %v5781_v44, 2  ;;  %v6067_v45 = vld [vmem:[%s5455_s24 + $0x180] sm:$0xff] }
  0xcd   : > { %4420 = vmatmul.mubr.msk.f32.gmra.mrb[12].mxu0 %vm438_vm2, %v5943_v4  ;;  %4196 = vmatprep.mubr.msk.f32.mxu1 %vm438_vm2, %v5948_v26  ;;  %v1085_v54 = vrot.slane %v5790_v63, 2  ;;  %v1088_v44 = vrot.slane %v5818_v21, 2  ;;  %v1101_v26 = vrot.slane %v5900_v36, 2 }
  0xce   : > { %4422 = vmatprep.mubr.msk.f32.mxu0 %vm438_vm2, %v5951_v42  ;;  %v6009_v53 = vsel %vm1024_vm3, %v1080_v60, %v1081_v17  ;;  %v1091_v60 = vrot.slane %v5830_v51, 2 }
  0xcf   : > { %v6028_v10 = vsel %vm1024_vm3, %v1085_v54, %v1086_v48  ;;  %v6041_v21 = vsel %vm1024_vm3, %v1086_v48, %v1088_v44  ;;  %v1095_v54 = vrot.slane %v5862_v32, 2  ;;  %v1098_v48 = vrot.slane %v5894_v56, 2 }
  0xd0   : > { %4197 = vmatmul.mubr.msk.f32.gmra.mrb[30].mxu1 %vm438_vm2, %v5964_v43  ;;  %v1096_v43 = vrot.slane %v5865_v59, 2 }
  0xd1   : > { %4423 = vmatmul.mubr.msk.f32.gmra.mrb[14].mxu0 %vm438_vm2, %v5967_v18  ;;  %4201 = vmatprep.mubr.msk.f32.mxu1 %vm438_vm2, %v5474_v2 }
  0xd2   : > { %4425 = vmatprep.mubr.msk.f32.mxu0 %vm438_vm2, %v5971_v25  ;;  %v6062_v44 = vsel %vm1024_vm3, %v1095_v54, %v1096_v43  ;;  %v6081_v56 = vsel %vm1024_vm3, %v1096_v43, %v1098_v48  ;;  %v1971_v54 = vrot.slane %v6067_v45, 2 }
  0xd3   : > { %7214 = vst [vmem:[#allocation60_spill] sm:$0xff] %v6062_v44  ;;  %7215 = vst [vmem:[#allocation61_spill] sm:$0xff] %v6081_v56 }
  0xd4   : > { %4202 = vmatmul.mubr.msk.f32.vlgmr.msra.gmra.mrb[0].mxu1 %vm438_vm2, %v5480_v3 }
  0xd5   : > { %4426 = vmatmul.mubr.msk.f32.gmra.mrb[16].mxu0 %vm438_vm2, %v5984_v37  ;;  %4250 = vmatpush3.msk.msra.mxu1 %vm503_vm0, %v5635_v61  ;;  %v6024_v61 = vsel %vm1024_vm3, %v1081_v17, %v1083_v14  ;;  %v1093_v17 = vrot.slane %v5855_v62, 2  ;;  %v6045_v14 = vsel %vm1024_vm3, %v1090_v52, %v1091_v60  ;;  %v1100_v52 = vrot.slane %v5897_v16, 2 }
  0xd6   : > { %4204 = vmatprep.mubr.msk.f32.mxu1 %vm438_vm2, %v5484_v6  ;;  %4428 = vmatprep.mubr.msk.f32.mxu0 %vm438_vm2, %v5990_v34  ;;  %7212 = vst [vmem:[#allocation58_spill] sm:$0xff] %v6045_v14 }
  0xd7   : > { %4299 = vmatprep.subr.msk.mxu1 %vm503_vm0, %v5992_v39  ;;  %v6058_v62 = vsel %vm1024_vm3, %v1091_v60, %v1093_v17  ;;  %v1103_v60 = vrot.slane %v5929_v9, 2  ;;  %v6085_v17 = vsel %vm1024_vm3, %v1100_v52, %v1101_v26  ;;  %v6126_v52 = vld [vmem:[#allocation7 + $0x20] sm:$0xf] }
  0xd8   : > { %4205 = vmatmul.mubr.msk.f32.gmra.mrb[2].mxu1 %vm438_vm2, %v5491_v8  ;;  %7213 = vst [vmem:[#allocation59_spill] sm:$0xff] %v6058_v62  ;;  %v6070_v8 = vld [vmem:[%s5455_s24 + $0x188] sm:$0xff]  ;;  %7216 = vst [vmem:[#allocation62_spill] sm:$0xff] %v6085_v17 }
  0xd9   : > { %4429 = vmatmul.mubr.msk.f32.gmra.mrb[18].mxu0 %vm438_vm2, %v6003_v22  ;;  %4207 = vmatprep.mubr.msk.f32.mxu1 %vm438_vm2, %v5495_v11  ;;  %v1972_v6 = vrot.slane %v6070_v8, 2  ;;  %v6101_v9 = vsel %vm1024_vm3, %v1101_v26, %v1103_v60  ;;  %v1028_v60 = vrot.slane %v5501_v13, 2  ;;  %v7221_v13 = vld [vmem:[#allocation38_spill] sm:$0xff] }
  0xda   : > { %4431 = vmatprep.mubr.msk.f32.mxu0 %vm438_vm2, %v6009_v53  ;;  %7217 = vst [vmem:[#allocation63_spill] sm:$0xff] %v6101_v9 }
  0xdb   : > { %v6105_v48 = vsel %vm1024_vm3, %v1971_v54, %v1972_v6 }
  0xdc   : > { %4208 = vmatmul.mubr.msk.f32.gmra.mrb[4].mxu1 %vm438_vm2, %v5507_v15  ;;  %7218 = vst [vmem:[#allocation64_spill] sm:$0xff] %v6105_v48 }
  0xdd   : > { %4432 = vmatmul.mubr.msk.f32.gmra.mrb[20].mxu0 %vm438_vm2, %v6024_v61  ;;  %4210 = vmatprep.mubr.msk.f32.mxu1 %vm438_vm2, %v5516_v20 }
  0xde   : > { %4434 = vmatprep.mubr.msk.f32.mxu0 %vm438_vm2, %v6028_v10 }
  0xe0   : > { %4211 = vmatmul.mubr.msk.f32.gmra.mrb[6].mxu1 %vm438_vm2, %v5523_v24 }
  0xe1   : > { %4435 = vmatmul.mubr.msk.f32.gmra.mrb[22].mxu0 %vm438_vm2, %v6041_v21  ;;  %4213 = vmatprep.mubr.msk.f32.mxu1 %vm438_vm2, %v5534_v30 }
  0xe2   : > { %4437 = vmatprep.mubr.msk.f32.mxu0 %vm438_vm2, %v6045_v14  ;;  %v6090_v14 = vld [vmem:[%s5455_s24 + $0x190] sm:$0x3] }
  0xe3   : > { %v1974_v43 = vrot.slane %v6090_v14, 2 }
  0xe4   : > { %4214 = vmatmul.mubr.msk.f32.gmra.mrb[8].mxu1 %vm438_vm2, %v5537_v31 }
  0xe5   : > { %4438 = vmatmul.mubr.msk.f32.gmra.mrb[24].mxu0 %vm438_vm2, %v6058_v62  ;;  %4216 = vmatprep.mubr.msk.f32.mxu1 %vm438_vm2, %v5563_v40  ;;  %v6116_v26 = vsel %vm1024_vm3, %v1972_v6, %v1974_v43  ;;  %v1025_v6 = vrot.slane %v5474_v2, 2  ;;  %v7225_v43 = vld [vmem:[#allocation46_spill] sm:$0xff] }
  0xe6   : > { %4440 = vmatprep.mubr.msk.f32.mxu0 %vm438_vm2, %v6062_v44  ;;  %7219 = vst [vmem:[#allocation65_spill] sm:$0xff] %v6116_v26 }
  0xe8   : > { %4217 = vmatmul.mubr.msk.f32.gmra.mrb[10].mxu1 %vm438_vm2, %v5566_v41 }
  0xe9   : > { %4441 = vmatmul.mubr.msk.f32.gmra.mrb[26].mxu0 %vm438_vm2, %v6081_v56  ;;  %4219 = vmatprep.mubr.msk.f32.mxu1 %vm438_vm2, %v5592_v49 }
  0xea   : > { %4443 = vmatprep.mubr.msk.f32.mxu0 %vm438_vm2, %v6085_v17 }
  0xec   : > { %4220 = vmatmul.mubr.msk.f32.gmra.mrb[12].mxu1 %vm438_vm2, %v5595_v50 }
  0xed   : > { %4444 = vmatmul.mubr.msk.f32.gmra.mrb[28].mxu0 %vm438_vm2, %v6101_v9  ;;  %4222 = vmatprep.mubr.msk.f32.mxu1 %vm438_vm2, %v5618_v57 }
  0xee   : > { %4446 = vmatprep.mubr.msk.f32.mxu0 %vm438_vm2, %v6105_v48  ;;  %v7230_v48 = vld [vmem:[#allocation20_spill] sm:$0xff] }
  0xf0   : > { %4223 = vmatmul.mubr.msk.f32.gmra.mrb[14].mxu1 %vm438_vm2, %v5621_v58 }
  0xf1   : > { %4447 = vmatmul.mubr.msk.f32.gmra.mrb[30].mxu0 %vm438_vm2, %v6116_v26  ;;  %4225 = vmatprep.mubr.msk.f32.mxu1 %vm438_vm2, %v5648_v5  ;;  %v7229_v26 = vld [vmem:[#allocation19_spill] sm:$0xff] }
  0xf2   : > { %4451 = vmatprep.mubr.msk.f32.mxu0 %vm438_vm2, %v5495_v11 }
  0xf4   : > { %4226 = vmatmul.mubr.msk.f32.gmra.mrb[16].mxu1 %vm438_vm2, %v5651_v7 }
  0xf5   : > { %4452 = vmatmul.mubr.msk.f32.vlgmr.msra.gmra.mrb[0].mxu0 %vm438_vm2, %v5507_v15  ;;  %4228 = vmatprep.mubr.msk.f32.mxu1 %vm438_vm2, %v5691_v28 }
  0xf6   : > { %4500 = vmatpush3.msk.msra.mxu0 %vm503_vm0, %v5756_v23  ;;  %4454 = vmatprep.mubr.msk.f32.mxu0 %vm438_vm2, %v5516_v20  ;;  %v1026_v23 = vrot.slane %v5480_v3, 2  ;;  %v7220_v3 = vld [vmem:[#allocation36_spill] sm:$0xff] }
  0xf7   : > { %4549 = vmatprep.subr.msk.mxu0 %vm503_vm0, %v6126_v52 }
  0xf8   : > { %4229 = vmatmul.mubr.msk.f32.gmra.mrb[18].mxu1 %vm438_vm2, %v5694_v29  ;;  %v1027_v54 = vsel %vm1024_vm3, %v1025_v6, %v1026_v23  ;;  %v1029_v2 = vsel %vm1024_vm3, %v1026_v23, %v1028_v60  ;;  %v7226_v6 = vld [vmem:[#allocation48_spill] sm:$0xff]  ;;  %v7227_v60 = vld [vmem:[#allocation51_spill] sm:$0xff] }
  0xf9   : > { %4455 = vmatmul.mubr.msk.f32.gmra.mrb[2].mxu0 %vm438_vm2, %v5523_v24  ;;  %4231 = vmatprep.mubr.msk.f32.mxu1 %vm438_vm2, %v5717_v46  ;;  %v6252_v23 = vld [vmem:[%s5455_s24 + $0x198] sm:$0xff] }
  0xfa   : > { %4457 = vmatprep.mubr.msk.f32.mxu0 %vm438_vm2, %v5534_v30 }
  0xfc   : > { %4232 = vmatmul.mubr.msk.f32.gmra.mrb[20].mxu1 %vm438_vm2, %v5720_v47 }
  0xfd   : > { %4458 = vmatmul.mubr.msk.f32.gmra.mrb[4].mxu0 %vm438_vm2, %v5537_v31  ;;  %4234 = vmatprep.mubr.msk.f32.mxu1 %vm438_vm2, %v5751_v27 }
  0xfe   : > { %4460 = vmatprep.mubr.msk.f32.mxu0 %vm438_vm2, %v5563_v40 }
 0x100   : > { %4235 = vmatmul.mubr.msk.f32.gmra.mrb[22].mxu1 %vm438_vm2, %v5754_v33 }
 0x101   : > { %4461 = vmatmul.mubr.msk.f32.gmra.mrb[6].mxu0 %vm438_vm2, %v5566_v41  ;;  %4237 = vmatprep.mubr.msk.f32.mxu1 %vm438_vm2, %v5790_v63 }
 0x102   : > { %4463 = vmatprep.mubr.msk.f32.mxu0 %vm438_vm2, %v5592_v49 }
 0x104   : > { %4238 = vmatmul.mubr.msk.f32.gmra.mrb[24].mxu1 %vm438_vm2, %v5793_v0 }
 0x105   : > { %4464 = vmatmul.mubr.msk.f32.gmra.mrb[8].mxu0 %vm438_vm2, %v5595_v50  ;;  %4240 = vmatprep.mubr.msk.f32.mxu1 %vm438_vm2, %v5827_v12 }
 0x106   : > { %4466 = vmatprep.mubr.msk.f32.mxu0 %vm438_vm2, %v5618_v57 }
 0x108   : > { %4241 = vmatmul.mubr.msk.f32.gmra.mrb[26].mxu1 %vm438_vm2, %v5830_v51 }
 0x109   : > { %4467 = vmatmul.mubr.msk.f32.gmra.mrb[10].mxu0 %vm438_vm2, %v5621_v58  ;;  %4243 = vmatprep.mubr.msk.f32.mxu1 %vm438_vm2, %v5862_v32 }
 0x10a   : > { %4469 = vmatprep.mubr.msk.f32.mxu0 %vm438_vm2, %v5648_v5 }
 0x10c   : > { %4244 = vmatmul.mubr.msk.f32.gmra.mrb[28].mxu1 %vm438_vm2, %v5865_v59 }
 0x10d   : > { %4470 = vmatmul.mubr.msk.f32.gmra.mrb[12].mxu0 %vm438_vm2, %v5651_v7  ;;  %4246 = vmatprep.mubr.msk.f32.mxu1 %vm438_vm2, %v5897_v16 }
 0x10e   : > { %4472 = vmatprep.mubr.msk.f32.mxu0 %vm438_vm2, %v5691_v28 }
 0x110   : > { %4247 = vmatmul.mubr.msk.f32.gmra.mrb[30].mxu1 %vm438_vm2, %v5900_v36 }
 0x111   : > { %4473 = vmatmul.mubr.msk.f32.gmra.mrb[14].mxu0 %vm438_vm2, %v5694_v29  ;;  %4251 = vmatprep.mubr.msk.f32.mxu1 %vm438_vm2, %v1027_v54  ;;  %v7228_v54 = vld [vmem:[#allocation53_spill] sm:$0xff] }
 0x112   : > { %4475 = vmatprep.mubr.msk.f32.mxu0 %vm438_vm2, %v5717_v46 }
 0x114   : > { %4252 = vmatmul.mubr.msk.f32.vlgmr.msra.gmra.mrb[0].mxu1 %vm438_vm2, %v1029_v2  ;;  %v6263_v2 = vld [vmem:[%s5455_s24 + $0x1a0] sm:$0xff] }
 0x115   : > { %4476 = vmatmul.mubr.msk.f32.gmra.mrb[16].mxu0 %vm438_vm2, %v5720_v47  ;;  %4300 = vmatpush3.msk.msra.mxu1 %vm503_vm0, %v5992_v39  ;;  %v7224_v39 = vld [vmem:[#allocation44_spill] sm:$0xff] }
 0x116   : > { %4254 = vmatprep.mubr.msk.f32.mxu1 %vm438_vm2, %v5712_v38  ;;  %4478 = vmatprep.mubr.msk.f32.mxu0 %vm438_vm2, %v5751_v27  ;;  %v7222_v38 = vld [vmem:[#allocation40_spill] sm:$0xff] }
 0x117   : > { %4599 = vmatprep.subr.msk.mxu1 %vm503_vm0, %v5471_v1 }
 0x118   : > { %4255 = vmatmul.mubr.msk.f32.gmra.mrb[2].mxu1 %vm438_vm2, %v5729_v55  ;;  %v7223_v55 = vld [vmem:[#allocation42_spill] sm:$0xff] }
 0x119   : > { %4479 = vmatmul.mubr.msk.f32.gmra.mrb[18].mxu0 %vm438_vm2, %v5754_v33  ;;  %4257 = vmatprep.mubr.msk.f32.mxu1 %vm438_vm2, %v5748_v19 }
 0x11a   : > { %4481 = vmatprep.mubr.msk.f32.mxu0 %vm438_vm2, %v5790_v63 }
 0x11c   : > { %4258 = vmatmul.mubr.msk.f32.gmra.mrb[4].mxu1 %vm438_vm2, %v5772_v35 }
 0x11d   : > { %4482 = vmatmul.mubr.msk.f32.gmra.mrb[20].mxu0 %vm438_vm2, %v5793_v0  ;;  %4260 = vmatprep.mubr.msk.f32.mxu1 %vm438_vm2, %v7220_v3 }
 0x11e   : > { %4484 = vmatprep.mubr.msk.f32.mxu0 %vm438_vm2, %v5827_v12 }
 0x120   : > { %4261 = vmatmul.mubr.msk.f32.gmra.mrb[6].mxu1 %vm438_vm2, %v7221_v13 }
 0x121   : > { %4485 = vmatmul.mubr.msk.f32.gmra.mrb[22].mxu0 %vm438_vm2, %v5830_v51  ;;  %4263 = vmatprep.mubr.msk.f32.mxu1 %vm438_vm2, %v7222_v38 }
 0x122   : > { %4487 = vmatprep.mubr.msk.f32.mxu0 %vm438_vm2, %v5862_v32 }
 0x124   : > { %4264 = vmatmul.mubr.msk.f32.gmra.mrb[8].mxu1 %vm438_vm2, %v7223_v55 }
 0x125   : > { %4488 = vmatmul.mubr.msk.f32.gmra.mrb[24].mxu0 %vm438_vm2, %v5865_v59  ;;  %4266 = vmatprep.mubr.msk.f32.mxu1 %vm438_vm2, %v7224_v39 }
 0x126   : > { %4490 = vmatprep.mubr.msk.f32.mxu0 %vm438_vm2, %v5897_v16 }
 0x128   : > { %4267 = vmatmul.mubr.msk.f32.gmra.mrb[10].mxu1 %vm438_vm2, %v7225_v43 }
 0x129   : > { %4491 = vmatmul.mubr.msk.f32.gmra.mrb[26].mxu0 %vm438_vm2, %v5900_v36  ;;  %4269 = vmatprep.mubr.msk.f32.mxu1 %vm438_vm2, %v7226_v6  ;;  %v7231_v36 = vld [vmem:[#allocation21_spill] sm:$0xff] }
 0x12a   : > { %4493 = vmatprep.mubr.msk.f32.mxu0 %vm438_vm2, %v6067_v45 }
 0x12c   : > { %4270 = vmatmul.mubr.msk.f32.gmra.mrb[12].mxu1 %vm438_vm2, %v7227_v60 }
 0x12d   : > { %4494 = vmatmul.mubr.msk.f32.gmra.mrb[28].mxu0 %vm438_vm2, %v6070_v8  ;;  %4272 = vmatprep.mubr.msk.f32.mxu1 %vm438_vm2, %v7228_v54 }
 0x12e   : > { %4496 = vmatprep.mubr.msk.f32.mxu0 %vm438_vm2, %v6252_v23 }
 0x130   : > { %4273 = vmatmul.mubr.msk.f32.gmra.mrb[14].mxu1 %vm438_vm2, %v5943_v4 }
 0x131   : > { %4497 = vmatmul.mubr.msk.f32.gmra.mrb[30].mxu0 %vm438_vm2, %v6263_v2  ;;  %4275 = vmatprep.mubr.msk.f32.mxu1 %vm438_vm2, %v5951_v42  ;;  %v7232_v42 = vld [vmem:[#allocation22_spill] sm:$0xff] }
 0x132   : > { %4501 = vmatprep.mubr.msk.f32.mxu0 %vm438_vm2, %v7229_v26  ;;  %v7233_v26 = vld [vmem:[#allocation23_spill] sm:$0xff] }
 0x134   : > { %4276 = vmatmul.mubr.msk.f32.gmra.mrb[16].mxu1 %vm438_vm2, %v5967_v18 }
 0x135   : > { %4502 = vmatmul.mubr.msk.f32.vlgmr.msra.gmra.mrb[0].mxu0 %vm438_vm2, %v7230_v48  ;;  %4278 = vmatprep.mubr.msk.f32.mxu1 %vm438_vm2, %v5971_v25  ;;  %v7234_v48 = vld [vmem:[#allocation24_spill] sm:$0xff] }
 0x136   : > { %4550 = vmatpush3.msk.msra.mxu0 %vm503_vm0, %v6126_v52  ;;  %4504 = vmatprep.mubr.msk.f32.mxu0 %vm438_vm2, %v7231_v36  ;;  %v7235_v36 = vld [vmem:[#allocation25_spill] sm:$0xff]  ;;  %v7237_v52 = vld [vmem:[#allocation27_spill] sm:$0xff] }
 0x138   : > { %4279 = vmatmul.mubr.msk.f32.gmra.mrb[18].mxu1 %vm438_vm2, %v5984_v37 }
 0x139   : > { %4505 = vmatmul.mubr.msk.f32.gmra.mrb[2].mxu0 %vm438_vm2, %v7232_v42  ;;  %4281 = vmatprep.mubr.msk.f32.mxu1 %vm438_vm2, %v5990_v34  ;;  %v7236_v42 = vld [vmem:[#allocation26_spill] sm:$0xff] }
 0x13a   : > { %4507 = vmatprep.mubr.msk.f32.mxu0 %vm438_vm2, %v7233_v26  ;;  %v7238_v26 = vld [vmem:[#allocation28_spill] sm:$0xff] }
 0x13c   : > { %4282 = vmatmul.mubr.msk.f32.gmra.mrb[20].mxu1 %vm438_vm2, %v6003_v22 }
 0x13d   : > { %4508 = vmatmul.mubr.msk.f32.gmra.mrb[4].mxu0 %vm438_vm2, %v7234_v48  ;;  %4284 = vmatprep.mubr.msk.f32.mxu1 %vm438_vm2, %v6009_v53  ;;  %v7239_v48 = vld [vmem:[#allocation58_spill] sm:$0xff] }
 0x13e   : > { %4510 = vmatprep.mubr.msk.f32.mxu0 %vm438_vm2, %v7235_v36  ;;  %v7240_v36 = vld [vmem:[#allocation29_spill] sm:$0xff] }
 0x140   : > { %4285 = vmatmul.mubr.msk.f32.gmra.mrb[22].mxu1 %vm438_vm2, %v6024_v61 }
 0x141   : > { %4511 = vmatmul.mubr.msk.f32.gmra.mrb[6].mxu0 %vm438_vm2, %v7236_v42  ;;  %4287 = vmatprep.mubr.msk.f32.mxu1 %vm438_vm2, %v6028_v10  ;;  %v7241_v42 = vld [vmem:[#allocation30_spill] sm:$0xff] }
 0x142   : > { %4513 = vmatprep.mubr.msk.f32.mxu0 %vm438_vm2, %v7237_v52  ;;  %v7242_v52 = vld [vmem:[#allocation31_spill] sm:$0xff] }
 0x144   : > { %4288 = vmatmul.mubr.msk.f32.gmra.mrb[24].mxu1 %vm438_vm2, %v6041_v21 }
 0x145   : > { %4514 = vmatmul.mubr.msk.f32.gmra.mrb[8].mxu0 %vm438_vm2, %v7238_v26  ;;  %4290 = vmatprep.mubr.msk.f32.mxu1 %vm438_vm2, %v7239_v48  ;;  %v7243_v26 = vld [vmem:[#allocation32_spill] sm:$0xff] }
 0x146   : > { %4516 = vmatprep.mubr.msk.f32.mxu0 %vm438_vm2, %v7240_v36  ;;  %v7244_v36 = vld [vmem:[#allocation33_spill] sm:$0xff] }
 0x148   : > { %4291 = vmatmul.mubr.msk.f32.gmra.mrb[26].mxu1 %vm438_vm2, %v6058_v62  ;;  %v6390_v62 = vld [vmem:[%s5455_s24 + $0x1a8] sm:$0x3] }
 0x149   : > { %4517 = vmatmul.mubr.msk.f32.gmra.mrb[10].mxu0 %vm438_vm2, %v7241_v42  ;;  %4293 = vmatprep.mubr.msk.f32.mxu1 %vm438_vm2, %v6062_v44  ;;  %v7245_v42 = vld [vmem:[#allocation34_spill] sm:$0xff]  ;;  %v7246_v44 = vld [vmem:[#allocation17_spill] sm:$0xff] }
 0x14a   : > { %4519 = vmatprep.mubr.msk.f32.mxu0 %vm438_vm2, %v7242_v52  ;;  %v7247_v52 = vld [vmem:[#allocation35_spill] sm:$0xff] }
 0x14c   : > { %4294 = vmatmul.mubr.msk.f32.gmra.mrb[28].mxu1 %vm438_vm2, %v6081_v56  ;;  %v7248_v56 = vld [vmem:[#allocation18_spill] sm:$0xff] }
 0x14d   : > { %4520 = vmatmul.mubr.msk.f32.gmra.mrb[12].mxu0 %vm438_vm2, %v7243_v26  ;;  %4296 = vmatprep.mubr.msk.f32.mxu1 %vm438_vm2, %v6085_v17  ;;  %v7249_v26 = vld [vmem:[#allocation37_spill] sm:$0xff]  ;;  %v7257_v17 = vld [vmem:[#allocation54_spill] sm:$0xff] }
 0x14e   : > { %4522 = vmatprep.mubr.msk.f32.mxu0 %vm438_vm2, %v7244_v36 }
 0x150   : > { %4297 = vmatmul.mubr.msk.f32.gmra.mrb[30].mxu1 %vm438_vm2, %v6101_v9  ;;  %v7250_v9 = vld [vmem:[#allocation39_spill] sm:$0xff] }
 0x151   : > { %4523 = vmatmul.mubr.msk.f32.gmra.mrb[14].mxu0 %vm438_vm2, %v7245_v42  ;;  %4301 = vmatprep.mubr.msk.f32.mxu1 %vm438_vm2, %v7246_v44  ;;  %v7251_v44 = vld [vmem:[#allocation41_spill] sm:$0xff] }
 0x152   : > { %4525 = vmatprep.mubr.msk.f32.mxu0 %vm438_vm2, %v7247_v52 }
 0x154   : > { %4302 = vmatmul.mubr.msk.f32.vlgmr.msra.gmra.mrb[0].mxu1 %vm438_vm2, %v7248_v56  ;;  %v7252_v56 = vld [vmem:[#allocation43_spill] sm:$0xff] }
 0x155   : > { %4526 = vmatmul.mubr.msk.f32.gmra.mrb[16].mxu0 %vm438_vm2, %v7249_v26  ;;  %4600 = vmatpush3.msk.msra.mxu1 %vm503_vm0, %v5471_v1  ;;  %v7253_v1 = vld [vmem:[#allocation45_spill] sm:$0xff] }
 0x156   : > { %4304 = vmatprep.mubr.msk.f32.mxu1 %vm438_vm2, %v5495_v11  ;;  %4528 = vmatprep.mubr.msk.f32.mxu0 %vm438_vm2, %v7250_v9  ;;  %v7254_v11 = vld [vmem:[#allocation47_spill] sm:$0xff] }
 0x158   : > { %4305 = vmatmul.mubr.msk.f32.gmra.mrb[2].mxu1 %vm438_vm2, %v5507_v15  ;;  %v7255_v15 = vld [vmem:[#allocation50_spill] sm:$0xff] }
 0x159   : > { %4529 = vmatmul.mubr.msk.f32.gmra.mrb[18].mxu0 %vm438_vm2, %v7251_v44  ;;  %4307 = vmatprep.mubr.msk.f32.mxu1 %vm438_vm2, %v5516_v20  ;;  %v7256_v20 = vld [vmem:[#allocation52_spill] sm:$0xff] }
 0x15a   : > { %4531 = vmatprep.mubr.msk.f32.mxu0 %vm438_vm2, %v7252_v56 }
 0x15c   : > { %4308 = vmatmul.mubr.msk.f32.gmra.mrb[4].mxu1 %vm438_vm2, %v5523_v24  ;;  %v1700_v24 = vrot.slane %v6067_v45, 1 }
 0x15d   : > { %4532 = vmatmul.mubr.msk.f32.gmra.mrb[20].mxu0 %vm438_vm2, %v7253_v1  ;;  %4310 = vmatprep.mubr.msk.f32.mxu1 %vm438_vm2, %v5534_v30  ;;  %v1701_v30 = vrot.slane %v6070_v8, 1 }
 0x15e   : > { %4534 = vmatprep.mubr.msk.f32.mxu0 %vm438_vm2, %v7254_v11 }
 0x15f   : > { %v6387_v11 = vsel %vm355_vm1, %v1700_v24, %v1701_v30 }
 0x160   : > { %4311 = vmatmul.mubr.msk.f32.gmra.mrb[6].mxu1 %vm438_vm2, %v5537_v31  ;;  %v7258_v31 = vld [vmem:[#allocation55_spill] sm:$0xff] }
 0x161   : > { %4535 = vmatmul.mubr.msk.f32.gmra.mrb[22].mxu0 %vm438_vm2, %v7255_v15  ;;  %4313 = vmatprep.mubr.msk.f32.mxu1 %vm438_vm2, %v5563_v40  ;;  %v1703_v40 = vrot.slane %v6090_v14, 1  ;;  %v2512_v15 = vrot.slane %v6263_v2, 1  ;;  %v2514_v14 = vrot.slane %v6390_v62, 1 }
 0x162   : > { %4537 = vmatprep.mubr.msk.f32.mxu0 %vm438_vm2, %v7256_v20  ;;  %v2511_v20 = vrot.slane %v6252_v23, 1 }
 0x164   : > { %4314 = vmatmul.mubr.msk.f32.gmra.mrb[8].mxu1 %vm438_vm2, %v5566_v41  ;;  %v7259_v41 = vld [vmem:[#allocation57_spill] sm:$0xff]  ;;  %v2513_v24 = vsel %vm355_vm1, %v2511_v20, %v2512_v15 }
 0x165   : > { %4538 = vmatmul.mubr.msk.f32.gmra.mrb[24].mxu0 %vm438_vm2, %v7257_v17  ;;  %4316 = vmatprep.mubr.msk.f32.mxu1 %vm438_vm2, %v5592_v49  ;;  %v6401_v49 = vsel %vm355_vm1, %v1701_v30, %v1703_v40 }
 0x166   : > { %4540 = vmatprep.mubr.msk.f32.mxu0 %vm438_vm2, %v7258_v31 }
 0x168   : > { %4317 = vmatmul.mubr.msk.f32.gmra.mrb[10].mxu1 %vm438_vm2, %v5595_v50  ;;  %v2515_v50 = vsel %vm355_vm1, %v2512_v15, %v2514_v14 }
 0x169   : > { %4541 = vmatmul.mubr.msk.f32.gmra.mrb[26].mxu0 %vm438_vm2, %v7259_v41  ;;  %4319 = vmatprep.mubr.msk.f32.mxu1 %vm438_vm2, %v5618_v57  ;;  %v7260_v57 = vld [vmem:[#allocation56_spill] sm:$0xff] }
 0x16a   : > { %4543 = vmatprep.mubr.msk.f32.mxu0 %vm438_vm2, %v6387_v11 }
 0x16c   : > { %4320 = vmatmul.mubr.msk.f32.gmra.mrb[12].mxu1 %vm438_vm2, %v5621_v58  ;;  %v7264_v58 = vld [vmem:[#allocation60_spill] sm:$0xff] }
 0x16d   : > { %4544 = vmatmul.mubr.msk.f32.gmra.mrb[28].mxu0 %vm438_vm2, %v6401_v49  ;;  %4322 = vmatprep.mubr.msk.f32.mxu1 %vm438_vm2, %v5648_v5  ;;  %v7265_v5 = vld [vmem:[#allocation50_spill] sm:$0xff] }
 0x16e   : > { %4546 = vmatprep.mubr.msk.f32.mxu0 %vm438_vm2, %v2513_v24 }
 0x170   : > { %4323 = vmatmul.mubr.msk.f32.gmra.mrb[14].mxu1 %vm438_vm2, %v5651_v7  ;;  %v7266_v7 = vld [vmem:[#allocation61_spill] sm:$0xff] }
 0x171   : > { %4547 = vmatmul.mubr.msk.f32.gmra.mrb[30].mxu0 %vm438_vm2, %v2515_v50  ;;  %4325 = vmatprep.mubr.msk.f32.mxu1 %vm438_vm2, %v5691_v28  ;;  %v7268_v28 = vld [vmem:[#allocation62_spill] sm:$0xff] }
 0x172   : > { %4551 = vmatprep.mubr.msk.f32.mxu0 %vm438_vm2, %v5748_v19  ;;  %v2785_v19 = vrot.slane %v6390_v62, 2 }
 0x174   : > { %4326 = vmatmul.mubr.msk.f32.gmra.mrb[16].mxu1 %vm438_vm2, %v5694_v29  ;;  %v2782_v29 = vrot.slane %v6252_v23, 2 }
 0x175   : > { %4552 = vmatmul.mubr.msk.f32.vlgmr.msra.gmra.mrb[0].mxu0 %vm438_vm2, %v5772_v35  ;;  %4328 = vmatprep.mubr.msk.f32.mxu1 %vm438_vm2, %v5717_v46  ;;  %v2783_v35 = vrot.slane %v6263_v2, 2  ;;  %v7269_v46 = vld [vmem:[#allocation63_spill] sm:$0xff] }
 0x176   : > { %4554 = vmatprep.mubr.msk.f32.mxu0 %vm438_vm2, %v7220_v3 }
 0x178   : > { %4329 = vmatmul.mubr.msk.f32.gmra.mrb[18].mxu1 %vm438_vm2, %v5720_v47  ;;  %v7270_v47 = vld [vmem:[#allocation64_spill] sm:$0xff] }
 0x179   : > { %4555 = vmatmul.mubr.msk.f32.gmra.mrb[2].mxu0 %vm438_vm2, %v7221_v13  ;;  %4331 = vmatprep.mubr.msk.f32.mxu1 %vm438_vm2, %v5751_v27  ;;  %v2784_v27 = vsel %vm1024_vm3, %v2782_v29, %v2783_v35 }
 0x17a   : > { %4557 = vmatprep.mubr.msk.f32.mxu0 %vm438_vm2, %v7222_v38 }
 0x17c   : > { %4332 = vmatmul.mubr.msk.f32.gmra.mrb[20].mxu1 %vm438_vm2, %v5754_v33  ;;  %v7271_v33 = vld [vmem:[#allocation65_spill] sm:$0xff] }
 0x17d   : > { %4558 = vmatmul.mubr.msk.f32.gmra.mrb[4].mxu0 %vm438_vm2, %v7223_v55  ;;  %4334 = vmatprep.mubr.msk.f32.mxu1 %vm438_vm2, %v5790_v63  ;;  %v2786_v63 = vsel %vm1024_vm3, %v2783_v35, %v2785_v19 }
 0x17e   : > { %4560 = vmatprep.mubr.msk.f32.mxu0 %vm438_vm2, %v7224_v39 }
 0x180   : > { %4335 = vmatmul.mubr.msk.f32.gmra.mrb[22].mxu1 %vm438_vm2, %v5793_v0 }
 0x181   : > { %4561 = vmatmul.mubr.msk.f32.gmra.mrb[6].mxu0 %vm438_vm2, %v7225_v43  ;;  %4337 = vmatprep.mubr.msk.f32.mxu1 %vm438_vm2, %v5827_v12  ;;  %v7267_v12 = vld [vmem:[#allocation52_spill] sm:$0xff] }
 0x182   : > { %4563 = vmatprep.mubr.msk.f32.mxu0 %vm438_vm2, %v7226_v6 }
 0x184   : > { %4338 = vmatmul.mubr.msk.f32.gmra.mrb[24].mxu1 %vm438_vm2, %v5830_v51  ;;  %v7261_v51 = vld [vmem:[#allocation49_spill] sm:$0xff] }
 0x185   : > { %4564 = vmatmul.mubr.msk.f32.gmra.mrb[8].mxu0 %vm438_vm2, %v7227_v60  ;;  %4340 = vmatprep.mubr.msk.f32.mxu1 %vm438_vm2, %v5862_v32  ;;  %v7263_v32 = vld [vmem:[#allocation47_spill] sm:$0xff] }
 0x186   : > { %4566 = vmatprep.mubr.msk.f32.mxu0 %vm438_vm2, %v7228_v54 }
 0x188   : > { %4341 = vmatmul.mubr.msk.f32.gmra.mrb[26].mxu1 %vm438_vm2, %v5865_v59 }
 0x189   : > { %4567 = vmatmul.mubr.msk.f32.gmra.mrb[10].mxu0 %vm438_vm2, %v5943_v4  ;;  %4343 = vmatprep.mubr.msk.f32.mxu1 %vm438_vm2, %v5897_v16 }
 0x18a   : > { %4569 = vmatprep.mubr.msk.f32.mxu0 %vm438_vm2, %v7260_v57 }
 0x18c   : > { %4344 = vmatmul.mubr.msk.f32.gmra.mrb[28].mxu1 %vm438_vm2, %v7261_v51 }
 0x18d   : > { %4570 = vmatmul.mubr.msk.f32.gmra.mrb[12].mxu0 %vm438_vm2, %v5967_v18  ;;  %4346 = vmatprep.mubr.msk.f32.mxu1 %vm438_vm2, %v6067_v45 }
 0x18e   : > { %4572 = vmatprep.mubr.msk.f32.mxu0 %vm438_vm2, %v5971_v25 }
 0x190   : > { %4347 = vmatmul.mubr.msk.f32.gmra.mrb[30].mxu1 %vm438_vm2, %v6070_v8  ;;  %v7262_v8 = vld [vmem:[#allocation59_spill] sm:$0xff] }
 0x191   : > { %4573 = vmatmul.mubr.msk.f32.gmra.mrb[14].mxu0 %vm438_vm2, %v5984_v37  ;;  %4375 = vmatprep.mubr.msk.f32.mxu1 %vm438_vm2, %v7244_v36 }
 0x192   : > { %4575 = vmatprep.mubr.msk.f32.mxu0 %vm438_vm2, %v5990_v34 }
 0x194   : > { %4376 = vmatmul.mubr.msk.f32.vlgmr.msra.gmra.mrb[16].mxu1 %vm438_vm2, %v7245_v42 }
 0x195   : > { %4576 = vmatmul.mubr.msk.f32.gmra.mrb[16].mxu0 %vm438_vm2, %v6003_v22  ;;  %4378 = vmatprep.mubr.msk.f32.mxu1 %vm438_vm2, %v7247_v52 }
 0x196   : > { %4578 = vmatprep.mubr.msk.f32.mxu0 %vm438_vm2, %v6009_v53 }
 0x198   : > { %4379 = vmatmul.mubr.msk.f32.gmra.mrb[18].mxu1 %vm438_vm2, %v7249_v26 }
 0x199   : > { %4579 = vmatmul.mubr.msk.f32.gmra.mrb[18].mxu0 %vm438_vm2, %v6024_v61  ;;  %4381 = vmatprep.mubr.msk.f32.mxu1 %vm438_vm2, %v7250_v9 }
 0x19a   : > { %4581 = vmatprep.mubr.msk.f32.mxu0 %vm438_vm2, %v6028_v10 }
 0x19c   : > { %4382 = vmatmul.mubr.msk.f32.gmra.mrb[20].mxu1 %vm438_vm2, %v7251_v44 }
 0x19d   : > { %4582 = vmatmul.mubr.msk.f32.gmra.mrb[20].mxu0 %vm438_vm2, %v6041_v21  ;;  %4384 = vmatprep.mubr.msk.f32.mxu1 %vm438_vm2, %v7252_v56 }
 0x19e   : > { %4584 = vmatprep.mubr.msk.f32.mxu0 %vm438_vm2, %v7239_v48 }
 0x1a0   : > { %4385 = vmatmul.mubr.msk.f32.gmra.mrb[22].mxu1 %vm438_vm2, %v7253_v1 }
 0x1a1   : > { %4585 = vmatmul.mubr.msk.f32.gmra.mrb[22].mxu0 %vm438_vm2, %v7262_v8  ;;  %4387 = vmatprep.mubr.msk.f32.mxu1 %vm438_vm2, %v7263_v32 }
 0x1a2   : > { %4587 = vmatprep.mubr.msk.f32.mxu0 %vm438_vm2, %v7264_v58 }
 0x1a4   : > { %4388 = vmatmul.mubr.msk.f32.gmra.mrb[24].mxu1 %vm438_vm2, %v7265_v5 }
 0x1a5   : > { %4588 = vmatmul.mubr.msk.f32.gmra.mrb[24].mxu0 %vm438_vm2, %v7266_v7  ;;  %4390 = vmatprep.mubr.msk.f32.mxu1 %vm438_vm2, %v7267_v12 }
 0x1a6   : > { %4590 = vmatprep.mubr.msk.f32.mxu0 %vm438_vm2, %v7268_v28 }
 0x1a8   : > { %4391 = vmatmul.mubr.msk.f32.gmra.mrb[26].mxu1 %vm438_vm2, %v7257_v17 }
 0x1a9   : > { %4591 = vmatmul.mubr.msk.f32.gmra.mrb[26].mxu0 %vm438_vm2, %v7269_v46  ;;  %4393 = vmatprep.mubr.msk.f32.mxu1 %vm438_vm2, %v7258_v31 }
 0x1aa   : > { %4593 = vmatprep.mubr.msk.f32.mxu0 %vm438_vm2, %v7270_v47 }
 0x1ac   : > { %4394 = vmatmul.mubr.msk.f32.gmra.mrb[28].mxu1 %vm438_vm2, %v7259_v41 }
 0x1ad   : > { %4594 = vmatmul.mubr.msk.f32.gmra.mrb[28].mxu0 %vm438_vm2, %v7271_v33  ;;  %4396 = vmatprep.mubr.msk.f32.mxu1 %vm438_vm2, %v6387_v11 }
 0x1ae   : > { %4596 = vmatprep.mubr.msk.f32.mxu0 %vm438_vm2, %v2784_v27 }
 0x1b0   : > { %4397 = vmatmul.mubr.msk.f32.gmra.mrb[30].mxu1 %vm438_vm2, %v6401_v49 }
 0x1b1   : > { %4597 = vmatmul.mubr.msk.f32.gmra.mrb[30].mxu0 %vm438_vm2, %v2786_v63 }
 0x227   : > { %v4303_v0 = vpop.f32.mrb[0].mxu1 }
 0x228   : > { %v1508_v16 = vpop.f32.mrb[1].mxu1 }
 0x22b   : > { %v4306_v59 = vpop.f32.mrb[2].mxu1 }
 0x22c   : > { %v1518_v45 = vpop.f32.mrb[3].mxu1 }
 0x22f   : > { %v4309_v4 = vpop.f32.mrb[4].mxu1 }
 0x230   : > { %v1528_v18 = vpop.f32.mrb[5].mxu1 }
 0x233   : > { %v4312_v25 = vpop.f32.mrb[6].mxu1 }
 0x234   : > { %v1538_v37 = vpop.f32.mrb[7].mxu1 }
 0x237   : > { %v4315_v34 = vpop.f32.mrb[8].mxu1 }
 0x238   : > { %v1548_v22 = vpop.f32.mrb[9].mxu1 }
 0x23b   : > { %v4318_v53 = vpop.f32.mrb[10].mxu1 }
 0x23c   : > { %v1558_v61 = vpop.f32.mrb[11].mxu1 }
 0x23f   : > { %v4321_v10 = vpop.f32.mrb[12].mxu1 }
 0x240   : > { %v1568_v21 = vpop.f32.mrb[13].mxu1 }
 0x243   : > { %v4324_v62 = vpop.f32.mrb[14].mxu1 }
 0x244   : > { %v1578_v17 = vpop.f32.mrb[15].mxu1 }
 0x248   : > { %v4553_v9 = vpop.f32.mrb[0].mxu0 }
 0x249   : > { %v6547_v3 = vadd.f32 %v4553_v9, %v4303_v0  ;;  %v2862_v13 = vpop.f32.mrb[1].mxu0 }
 0x24a   : > { %v6549_v38 = vadd.f32 %v2862_v13, %v1508_v16 }
 0x24c   : > { %v4556_v55 = vpop.f32.mrb[2].mxu0 }
 0x24d   : > { %v6551_v39 = vadd.f32 %v4556_v55, %v4306_v59  ;;  %v2872_v43 = vpop.f32.mrb[3].mxu0 }
 0x24e   : > { %v6553_v6 = vadd.f32 %v2872_v43, %v1518_v45 }
 0x250   : > { %v4559_v23 = vpop.f32.mrb[4].mxu0 }
 0x251   : > { %v6555_v60 = vadd.f32 %v4559_v23, %v4309_v4  ;;  %v2882_v54 = vpop.f32.mrb[5].mxu0 }
 0x252   : > { %v6557_v2 = vadd.f32 %v2882_v54, %v1528_v18 }
 0x254   : > { %v4562_v48 = vpop.f32.mrb[6].mxu0 }
 0x255   : > { %v6559_v36 = vadd.f32 %v4562_v48, %v4312_v25  ;;  %v2892_v42 = vpop.f32.mrb[7].mxu0 }
 0x256   : > { %v6561_v52 = vadd.f32 %v2892_v42, %v1538_v37 }
 0x258   : > { %v4565_v26 = vpop.f32.mrb[8].mxu0 }
 0x259   : > { %v6563_v44 = vadd.f32 %v4565_v26, %v4315_v34  ;;  %v2902_v56 = vpop.f32.mrb[9].mxu0 }
 0x25a   : > { %v6565_v1 = vadd.f32 %v2902_v56, %v1548_v22 }
 0x25c   : > { %v4568_v11 = vpop.f32.mrb[10].mxu0 }
 0x25d   : > { %v6567_v15 = vadd.f32 %v4568_v11, %v4318_v53  ;;  %v2912_v20 = vpop.f32.mrb[11].mxu0 }
 0x25e   : > { %v6569_v30 = vadd.f32 %v2912_v20, %v1558_v61 }
 0x260   : > { %v4571_v31 = vpop.f32.mrb[12].mxu0 }
 0x261   : > { %v6571_v40 = vadd.f32 %v4571_v31, %v4321_v10  ;;  %v2922_v41 = vpop.f32.mrb[13].mxu0 }
 0x262   : > { %v6573_v49 = vadd.f32 %v2922_v41, %v1568_v21 }
 0x264   : > { %v4574_v14 = vpop.f32.mrb[14].mxu0 }
 0x265   : > { %v6575_v24 = vadd.f32 %v4574_v14, %v4324_v62  ;;  %v2932_v50 = vpop.f32.mrb[15].mxu0 }
 0x266   : > { %v6577_v57 = vadd.f32 %v2932_v50, %v1578_v17 }
 0x267   : > { %v4377_v51 = vpop.f32.mrb[16].mxu1 }
 0x268   : > { %v4577_v8 = vpop.f32.mrb[16].mxu0  ;;  %v1860_v58 = vpop.f32.mrb[17].mxu1 }
 0x269   : > { %v6579_v32 = vadd.f32 %v4577_v8, %v4377_v51  ;;  %v2942_v5 = vpop.f32.mrb[17].mxu0  ;;  %v3064_v51 = vadd.f32 (!%p3841_p1), %v6549_v38, %v6547_v3 }
 0x26a   : > { %v6581_v7 = vadd.f32 %v2942_v5, %v1860_v58 }
 0x26b   : > { %v4380_v12 = vpop.f32.mrb[18].mxu1  ;;  %v3065_v8 = vadd.f32 (!%p3841_p1), %v6553_v6, %v3064_v51 }
 0x26c   : > { %v4580_v28 = vpop.f32.mrb[18].mxu0  ;;  %v1870_v35 = vpop.f32.mrb[19].mxu1 }
 0x26d   : > { %v6583_v29 = vadd.f32 %v4580_v28, %v4380_v12  ;;  %v2952_v46 = vpop.f32.mrb[19].mxu0  ;;  %v3066_v58 = vadd.f32 (!%p3841_p1), %v6551_v39, %v3065_v8  ;;  %v3103_v12 = vmul.f32 (!%p3841_p1), %v6549_v38, %v6549_v38  ;;  %v3104_v28 = vmul.f32 (!%p3841_p1), %v6547_v3, %v6547_v3 }
 0x26e   : > { %v6585_v47 = vadd.f32 %v2952_v46, %v1870_v35  ;;  %v3105_v46 = vmul.f32 (!%p3841_p1), %v6553_v6, %v6553_v6  ;;  %v3114_v8 = vmul.f32 (!%p3841_p1), %v6567_v15, %v6567_v15 }
 0x26f   : > { %v4383_v19 = vpop.f32.mrb[20].mxu1  ;;  %v3067_v5 = vadd.f32 (!%p3841_p1), %v6557_v2, %v3066_v58 }
 0x270   : > { %v4583_v27 = vpop.f32.mrb[20].mxu0  ;;  %v1880_v63 = vpop.f32.mrb[21].mxu1 }
 0x271   : > { %v6587_v33 = vadd.f32 %v4583_v27, %v4383_v19  ;;  %v2962_v0 = vpop.f32.mrb[21].mxu0  ;;  %v3068_v35 = vadd.f32 (!%p3841_p1), %v6555_v60, %v3067_v5  ;;  %v3106_v27 = vmul.f32 (!%p3841_p1), %v6551_v39, %v6551_v39 }
 0x272   : > { %v6589_v16 = vadd.f32 %v2962_v0, %v1880_v63  ;;  %v3135_v63 = vadd.f32 (!%p3841_p1), %v3104_v28, %v3103_v12  ;;  %v3115_v12 = vmul.f32 (!%p3841_p1), %v6573_v49, %v6573_v49 }
 0x273   : > { %v4386_v59 = vpop.f32.mrb[22].mxu1  ;;  %v3069_v19 = vadd.f32 (!%p3841_p1), %v6561_v52, %v3068_v35 }
 0x274   : > { %v4586_v45 = vpop.f32.mrb[22].mxu0  ;;  %v1890_v18 = vpop.f32.mrb[23].mxu1 }
 0x275   : > { %v6591_v4 = vadd.f32 %v4586_v45, %v4386_v59  ;;  %v2972_v25 = vpop.f32.mrb[23].mxu0  ;;  %v3070_v0 = vadd.f32 (!%p3841_p1), %v6559_v36, %v3069_v19  ;;  %v3107_v59 = vmul.f32 (!%p3841_p1), %v6557_v2, %v6557_v2  ;;  %v3136_v45 = vadd.f32 (!%p3841_p1), %v3135_v63, %v3105_v46 }
 0x276   : > { %v6593_v37 = vadd.f32 %v2972_v25, %v1890_v18  ;;  %v3108_v25 = vmul.f32 (!%p3841_p1), %v6555_v60, %v6555_v60  ;;  %v3116_v46 = vmul.f32 (!%p3841_p1), %v6571_v40, %v6571_v40  ;;  %v3117_v63 = vmul.f32 (!%p3841_p1), %v6577_v57, %v6577_v57 }
 0x277   : > { %v4389_v34 = vpop.f32.mrb[24].mxu1  ;;  %v3071_v18 = vadd.f32 (!%p3841_p1), %v6565_v1, %v3070_v0 }
 0x278   : > { %v4589_v22 = vpop.f32.mrb[24].mxu0  ;;  %v1900_v61 = vpop.f32.mrb[25].mxu1 }
 0x279   : > { %v6595_v53 = vadd.f32 %v4589_v22, %v4389_v34  ;;  %v2982_v10 = vpop.f32.mrb[25].mxu0  ;;  %v3137_v34 = vadd.f32 (!%p3841_p1), %v3136_v45, %v3106_v27  ;;  %v3072_v22 = vadd.f32 (!%p3841_p1), %v6563_v44, %v3071_v18  ;;  %v3118_v45 = vmul.f32 (!%p3841_p1), %v6575_v24, %v6575_v24 }
 0x27a   : > { %v6597_v21 = vadd.f32 %v2982_v10, %v1900_v61  ;;  %v3109_v61 = vmul.f32 (!%p3841_p1), %v6561_v52, %v6561_v52 }
 0x27b   : > { %v4392_v62 = vpop.f32.mrb[26].mxu1  ;;  %v3138_v10 = vadd.f32 (!%p3841_p1), %v3137_v34, %v3107_v59  ;;  %v3119_v34 = vmul.f32 (!%p3841_p1), %v6581_v7, %v6581_v7 }
 0x27c   : > { %v4592_v17 = vpop.f32.mrb[26].mxu0  ;;  %v1910_v13 = vpop.f32.mrb[27].mxu1 }
 0x27d   : > { %v6599_v9 = vadd.f32 %v4592_v17, %v4392_v62  ;;  %v2992_v55 = vpop.f32.mrb[27].mxu0  ;;  %v3073_v62 = vadd.f32 (!%p3841_p1), %v6569_v30, %v3072_v22  ;;  %v3110_v17 = vmul.f32 (!%p3841_p1), %v6559_v36, %v6559_v36 }
 0x27e   : > { %v6601_v43 = vadd.f32 %v2992_v55, %v1910_v13  ;;  %v3139_v13 = vadd.f32 (!%p3841_p1), %v3138_v10, %v3108_v25  ;;  %v3120_v10 = vmul.f32 (!%p3841_p1), %v6579_v32, %v6579_v32 }
 0x27f   : > { %v4395_v23 = vpop.f32.mrb[28].mxu1  ;;  %v3074_v55 = vadd.f32 (!%p3841_p1), %v6567_v15, %v3073_v62 }
 0x280   : > { %v4595_v54 = vpop.f32.mrb[28].mxu0  ;;  %v1920_v42 = vpop.f32.mrb[29].mxu1  ;;  %3056 = sbr.rel (%p3841_p1) target bundleno = 710 (0x2c6), region = 48 }
 0x281   : > { %v6603_v48 = vadd.f32 %v4595_v54, %v4395_v23  ;;  %v3002_v26 = vpop.f32.mrb[29].mxu0  ;;  %v3111_v23 = vmul.f32 (!%p3841_p1), %v6565_v1, %v6565_v1  ;;  %v3140_v54 = vadd.f32 (!%p3841_p1), %v3139_v13, %v3109_v61  ;;  %v3121_v13 = vmul.f32 (!%p3841_p1), %v6585_v47, %v6585_v47 }
 0x282   : > { %v6605_v56 = vadd.f32 %v3002_v26, %v1920_v42  ;;  %v3075_v42 = vadd.f32 (!%p3841_p1), %v6573_v49, %v3074_v55  ;;  %v3112_v26 = vmul.f32 (!%p3841_p1), %v6563_v44, %v6563_v44 }
 0x283   : > { %v4398_v11 = vpop.f32.mrb[30].mxu1 }
 0x284   : > { %v4598_v20 = vpop.f32.mrb[30].mxu0  ;;  %v1930_v41 = vpop.f32.mrb[31].mxu1 }
 0x285   : > { %v6607_v31 = vadd.f32 %v4598_v20, %v4398_v11  ;;  %v3012_v14 = vpop.f32.mrb[31].mxu0  ;;  %v3141_v11 = vadd.f32 (!%p3841_p1), %v3140_v54, %v3110_v17  ;;  %v3076_v20 = vadd.f32 (!%p3841_p1), %v6571_v40, %v3075_v42  ;;  %v3122_v54 = vmul.f32 (!%p3841_p1), %v6583_v29, %v6583_v29 }
 0x286   : > { %v6609_v50 = vadd.f32 %v3012_v14, %v1930_v41  ;;  %v3113_v41 = vmul.f32 (!%p3841_p1), %v6569_v30, %v6569_v30 }
 0x287   : > { %v3142_v14 = vadd.f32 %v3141_v11, %v3111_v23  ;;  %v3077_v51 = vadd.f32 %v6577_v57, %v3076_v20  ;;  %v3123_v11 = vmul.f32 %v6589_v16, %v6589_v16  ;;  %s3058_s27 = scalar_select %p248_p4, 1, 0 }
 0x289   : > { %v3143_v58 = vadd.f32 %v3142_v14, %v3112_v26  ;;  %v3078_v5 = vadd.f32 %v6575_v24, %v3077_v51  ;;  %v3124_v14 = vmul.f32 %v6587_v33, %v6587_v33 }
 0x28b   : > { %v3144_v28 = vadd.f32 %v3143_v58, %v3113_v41  ;;  %v3079_v35 = vadd.f32 %v6581_v7, %v3078_v5  ;;  %v3125_v58 = vmul.f32 %v6593_v37, %v6593_v37 }
 0x28d   : > { %v3145_v19 = vadd.f32 %v3144_v28, %v3114_v8  ;;  %v3080_v27 = vadd.f32 %v6579_v32, %v3079_v35  ;;  %v3126_v28 = vmul.f32 %v6591_v4, %v6591_v4 }
 0x28f   : > { %v3146_v0 = vadd.f32 %v3145_v19, %v3115_v12  ;;  %v3081_v59 = vadd.f32 %v6585_v47, %v3080_v27  ;;  %v3127_v19 = vmul.f32 %v6597_v21, %v6597_v21 }
 0x291   : > { %v3147_v18 = vadd.f32 %v3146_v0, %v3116_v46  ;;  %v3082_v25 = vadd.f32 %v6583_v29, %v3081_v59  ;;  %v3128_v0 = vmul.f32 %v6595_v53, %v6595_v53 }
 0x293   : > { %v3148_v22 = vadd.f32 %v3147_v18, %v3117_v63  ;;  %v3083_v61 = vadd.f32 %v6589_v16, %v3082_v25  ;;  %v3129_v18 = vmul.f32 %v6601_v43, %v6601_v43 }
 0x295   : > { %v3149_v62 = vadd.f32 %v3148_v22, %v3118_v45  ;;  %v3084_v17 = vadd.f32 %v6587_v33, %v3083_v61  ;;  %v3130_v22 = vmul.f32 %v6599_v9, %v6599_v9 }
 0x297   : > { %v3150_v55 = vadd.f32 %v3149_v62, %v3119_v34  ;;  %v3085_v23 = vadd.f32 %v6593_v37, %v3084_v17  ;;  %v3131_v62 = vmul.f32 %v6605_v56, %v6605_v56 }
 0x299   : > { %v3151_v42 = vadd.f32 %v3150_v55, %v3120_v10  ;;  %v3086_v26 = vadd.f32 %v6591_v4, %v3085_v23  ;;  %v3132_v55 = vmul.f32 %v6603_v48, %v6603_v48 }
 0x29b   : > { %v3152_v20 = vadd.f32 %v3151_v42, %v3121_v13  ;;  %v3087_v41 = vadd.f32 %v6597_v21, %v3086_v26  ;;  %v3133_v42 = vmul.f32 %v6609_v50, %v6609_v50 }
 0x29d   : > { %v3153_v51 = vadd.f32 %v3152_v20, %v3122_v54  ;;  %v3088_v8 = vadd.f32 %v6595_v53, %v3087_v41  ;;  %v3134_v41 = vmul.f32 %v6607_v31, %v6607_v31 }
 0x29f   : > { %v3154_v5 = vadd.f32 %v3153_v51, %v3123_v11  ;;  %v3089_v12 = vadd.f32 %v6601_v43, %v3088_v8  ;;  %v3059_v11 = vstv %s3058_s27  ;;  %v3057_v51 = vld [vmem:[#allocation2] sm:$0x1] }
 0x2a0   : > { %vm6713_vm4 = vcmp.eq.s32.totalorder %v3059_v11, 1 }
 0x2a1   : > { %v3155_v35 = vadd.f32 %v3154_v5, %v3124_v14  ;;  %v3090_v46 = vadd.f32 %v6599_v9, %v3089_v12 }
 0x2a3   : > { %v3156_v27 = vadd.f32 %v3155_v35, %v3125_v58  ;;  %v3091_v63 = vadd.f32 %v6605_v56, %v3090_v46  ;;  %v3061_v35 = vsel %vm6713_vm4, 0.0, %v3057_v51 }
 0x2a5   : > { %v3157_v59 = vadd.f32 %v3156_v27, %v3126_v28  ;;  %v3092_v45 = vadd.f32 %v6603_v48, %v3091_v63 }
 0x2a7   : > { %v3158_v25 = vadd.f32 %v3157_v59, %v3127_v19  ;;  %v3093_v34 = vadd.f32 %v6609_v50, %v3092_v45  ;;  %v3062_v59 = vld [vmem:[#allocation3] sm:$0x1] }
 0x2a9   : > { %v3159_v61 = vadd.f32 %v3158_v25, %v3128_v0  ;;  %v3094_v10 = vadd.f32 %v6607_v31, %v3093_v34  ;;  %v3063_v25 = vsel %vm6713_vm4, 0.0, %v3062_v59 }
 0x2ab   : > { %v3160_v17 = vadd.f32 %v3159_v61, %v3129_v18  ;;  %v3095_v13 = vrot.slane %v3094_v10, 4 }
 0x2ad   : > { %v3161_v23 = vadd.f32 %v3160_v17, %v3130_v22  ;;  %v3096_v54 = vadd.f32 %v3095_v13, %v3094_v10 }
 0x2af   : > { %v3162_v26 = vadd.f32 %v3161_v23, %v3131_v62  ;;  %v3097_v20 = vrot.slane %v3096_v54, 2 }
 0x2b1   : > { %v3163_v14 = vadd.f32 %v3162_v26, %v3132_v55  ;;  %v3098_v58 = vadd.f32 %v3097_v20, %v3096_v54 }
 0x2b3   : > { %v3164_v5 = vadd.f32 %v3163_v14, %v3133_v42  ;;  %v3099_v12 = vrot.slane %v3098_v58, 1 }
 0x2b5   : > { %v3165_v28 = vadd.f32 %v3164_v5, %v3134_v41  ;;  %v3100_v46 = vadd.f32 %v3099_v12, %v3098_v58 }
 0x2b7   : > { %v3166_v19 = vrot.slane %v3165_v28, 4  ;;  %v3101_v27 = vadd.f32 %v3100_v46, %v3061_v35 }
 0x2b9   : > { %v3167_v63 = vadd.f32 %v3166_v19, %v3165_v28  ;;  %3102 = vst [vmem:[#allocation2] sm:$0x1] %v3101_v27 }
 0x2bb   : > { %v3168_v0 = vrot.slane %v3167_v63, 2 }
 0x2bd   : > { %v3169_v45 = vadd.f32 %v3168_v0, %v3167_v63 }
 0x2bf   : > { %v3170_v18 = vrot.slane %v3169_v45, 1 }
 0x2c1   : > { %v3171_v34 = vadd.f32 %v3170_v18, %v3169_v45 }
 0x2c3   : > { %v3172_v22 = vadd.f32 %v3171_v34, %v3063_v25 }
 0x2c5   : > { %3173 = vst [vmem:[#allocation3] sm:$0x1] %v3172_v22 }
 0x2c6 PF: > { %p3842_p3 = scmp.ne.s32.totalorder %s5191_s19, 1 }
 0x2c7   : > { %v3178_v61 = vld [vmem:[#allocation2] sm:$0x1] (!%p3842_p3)  ;;  %v3186_v62 = vlaneseq (!%p3842_p3) }
 0x2c8   : > { %3177 = sbr.rel (%p3842_p3) target bundleno = 779 (0x30b), region = 52  ;;  %v3179_v17 = vmul.f32 (!%p3842_p3), 0.001953125, %v3178_v61 }
 0x2c9   : > { %v3187_v23 = vshrl.u32 (!%p3842_p3), %v3186_v62, 7  ;;  %v6782_v62 = vld [vmem:[#allocation9] ss:$0 sm:$0xff] (!%p3842_p3) }
 0x2ca   : > { %v3182_v55 = vmul.f32 (!%p3842_p3), %v3179_v17, %v3179_v17 }
 0x2cb   : > { %v3188_v26 = vsub.s32 (!%p3842_p3), 0, %v3187_v23 }
 0x2cc   : > { %v3180_v10 = vld [vmem:[#allocation3] sm:$0x1] (!%p3842_p3) }
 0x2cd   : > { %v3181_v13 = vmul.f32 (!%p3842_p3), 0.001953125, %v3180_v10  ;;  %v6722_v20 = vrot.slane (!%p3842_p3), %v3179_v17, %v3188_v26 }
 0x2cf   : > { %v3183_v54 = vsub.f32 %v3181_v13, %v3182_v55  ;;  %v3191_v41 = vsub.f32 %v6549_v38, %v6722_v20  ;;  %v3192_v14 = vsub.f32 %v6547_v3, %v6722_v20  ;;  %v3193_v51 = vsub.f32 %v6553_v6, %v6722_v20 }
 0x2d0   : > { %v3194_v8 = vsub.f32 %v6551_v39, %v6722_v20  ;;  %v3195_v58 = vsub.f32 %v6557_v2, %v6722_v20  ;;  %v3196_v5 = vsub.f32 %v6555_v60, %v6722_v20  ;;  %v3197_v12 = vsub.f32 %v6561_v52, %v6722_v20 }
 0x2d1   : > { %v3184_v42 = vmax.f32 %v3183_v54, 0.0  ;;  %v3198_v38 = vsub.f32 %v6559_v36, %v6722_v20  ;;  %v3199_v3 = vsub.f32 %v6565_v1, %v6722_v20  ;;  %v3200_v6 = vsub.f32 %v6563_v44, %v6722_v20 }
 0x2d2   : > { %v3201_v39 = vsub.f32 %v6569_v30, %v6722_v20  ;;  %v3202_v2 = vsub.f32 %v6567_v15, %v6722_v20  ;;  %v3203_v60 = vsub.f32 %v6573_v49, %v6722_v20  ;;  %v3204_v52 = vsub.f32 %v6571_v40, %v6722_v20 }
 0x2d3   : > { %v3223_v11 = vadd.f32 1e-05, %v3184_v42  ;;  %v3205_v36 = vsub.f32 %v6577_v57, %v6722_v20  ;;  %v3206_v28 = vsub.f32 %v6575_v24, %v6722_v20  ;;  %v3207_v35 = vsub.f32 %v6581_v7, %v6722_v20 }
 0x2d4   : > { %v3208_v46 = vsub.f32 %v6579_v32, %v6722_v20  ;;  %v3209_v19 = vsub.f32 %v6585_v47, %v6722_v20  ;;  %v3210_v27 = vsub.f32 %v6583_v29, %v6722_v20  ;;  %v3211_v63 = vsub.f32 %v6589_v16, %v6722_v20 }
 0x2d5   : > { %4989 = vrsqrt.f32 %v3223_v11  ;;  %v3212_v59 = vsub.f32 %v6587_v33, %v6722_v20  ;;  %v3213_v45 = vsub.f32 %v6593_v37, %v6722_v20  ;;  %v3214_v18 = vsub.f32 %v6591_v4, %v6722_v20 }
 0x2df   : > { %v4990_v0 = vpop.eup %4989 }
 0x2e0   : > { %v6774_v34 = vrot.slane %v4990_v0, %v3188_v26  ;;  %v6796_v0 = vld [vmem:[#allocation9 + $0x1] ss:$0 sm:$0xff] }
 0x2e2   : > { %v3231_v54 = vmul.f32 %v6774_v34, %v3191_v41  ;;  %v3232_v42 = vmul.f32 %v6774_v34, %v3192_v14  ;;  %v3233_v26 = vmul.f32 %v6774_v34, %v3193_v51  ;;  %v3234_v11 = vmul.f32 %v6774_v34, %v3194_v8 }
 0x2e3   : > { %v3235_v17 = vmul.f32 %v6774_v34, %v3195_v58  ;;  %v3236_v13 = vmul.f32 %v6774_v34, %v3196_v5  ;;  %v3237_v10 = vmul.f32 %v6774_v34, %v3197_v12  ;;  %v3238_v55 = vmul.f32 %v6774_v34, %v3198_v38 }
 0x2e4   : > { %v3268_v23 = vmul.f32 %v6782_v62, %v3231_v54  ;;  %v3269_v41 = vmul.f32 %v6782_v62, %v3232_v42  ;;  %v3270_v14 = vmul.f32 %v6782_v62, %v3233_v26  ;;  %v3271_v51 = vmul.f32 %v6782_v62, %v3234_v11 }
 0x2e5   : > { %v3272_v8 = vmul.f32 %v6782_v62, %v3235_v17  ;;  %v3273_v61 = vmul.f32 %v6782_v62, %v3236_v13  ;;  %v3274_v58 = vmul.f32 %v6782_v62, %v3237_v10  ;;  %v3275_v5 = vmul.f32 %v6782_v62, %v3238_v55 }
 0x2e6   : > { %v3305_v12 = vadd.f32 %v6796_v0, %v3268_v23  ;;  %v3306_v38 = vadd.f32 %v6796_v0, %v3269_v41  ;;  %v3307_v54 = vadd.f32 %v6796_v0, %v3270_v14  ;;  %v3308_v42 = vadd.f32 %v6796_v0, %v3271_v51 }
 0x2e7   : > { %v3309_v17 = vadd.f32 %v6796_v0, %v3272_v8  ;;  %v3310_v13 = vadd.f32 %v6796_v0, %v3273_v61  ;;  %v3311_v10 = vadd.f32 %v6796_v0, %v3274_v58  ;;  %v3312_v55 = vadd.f32 %v6796_v0, %v3275_v5 }
 0x2e8   : > { %v3337_v26 = vmax.f32 %v3305_v12, 0.0  ;;  %v3338_v23 = vmax.f32 %v3306_v38, 0.0  ;;  %v3339_v11 = vmax.f32 %v3307_v54, 0.0  ;;  %v3340_v41 = vmax.f32 %v3308_v42, 0.0 }
 0x2e9   : > { %v3341_v14 = vmax.f32 %v3309_v17, 0.0  ;;  %v3342_v22 = vmax.f32 %v3310_v13, 0.0  ;;  %v3343_v51 = vmax.f32 %v3311_v10, 0.0  ;;  %v3344_v25 = vmax.f32 %v3312_v55, 0.0 }
 0x2ea   : > { %3369 = vst [vmem:[%s6612_s25] sm:$0xff] %v3337_v26  ;;  %3370 = vst [vmem:[%s6612_s25 + $0x8] sm:$0xff] %v3338_v23  ;;  %v3239_v61 = vmul.f32 %v6774_v34, %v3199_v3  ;;  %v3240_v8 = vmul.f32 %v6774_v34, %v3200_v6  ;;  %v3241_v58 = vmul.f32 %v6774_v34, %v3201_v39 }
 0x2eb   : > { %3371 = vst [vmem:[%s6612_s25 + $0x10] sm:$0xff] %v3339_v11  ;;  %3372 = vst [vmem:[%s6612_s25 + $0x18] sm:$0xff] %v3340_v41  ;;  %v3242_v5 = vmul.f32 %v6774_v34, %v3202_v2  ;;  %v3243_v44 = vmul.f32 %v6774_v34, %v3203_v60  ;;  %v3244_v1 = vmul.f32 %v6774_v34, %v3204_v52 }
 0x2ec   : > { %3373 = vst [vmem:[%s6612_s25 + $0x20] sm:$0xff] %v3341_v14  ;;  %3374 = vst [vmem:[%s6612_s25 + $0x28] sm:$0xff] %v3342_v22  ;;  %v3245_v15 = vmul.f32 %v6774_v34, %v3205_v36  ;;  %v3246_v30 = vmul.f32 %v6774_v34, %v3206_v28  ;;  %v3276_v3 = vmul.f32 %v6782_v62, %v3239_v61 }
 0x2ed   : > { %3375 = vst [vmem:[%s6612_s25 + $0x30] sm:$0xff] %v3343_v51  ;;  %3376 = vst [vmem:[%s6612_s25 + $0x38] sm:$0xff] %v3344_v25  ;;  %v3277_v49 = vmul.f32 %v6782_v62, %v3240_v8  ;;  %v3278_v6 = vmul.f32 %v6782_v62, %v3241_v58  ;;  %v3279_v40 = vmul.f32 %v6782_v62, %v3242_v5 }
 0x2ee   : > { %v3280_v39 = vmul.f32 %v6782_v62, %v3243_v44  ;;  %v3281_v2 = vmul.f32 %v6782_v62, %v3244_v1  ;;  %v3282_v57 = vmul.f32 %v6782_v62, %v3245_v15  ;;  %v3283_v60 = vmul.f32 %v6782_v62, %v3246_v30 }
 0x2ef   : > { %v3313_v24 = vadd.f32 %v6796_v0, %v3276_v3  ;;  %v3314_v52 = vadd.f32 %v6796_v0, %v3277_v49  ;;  %v3315_v36 = vadd.f32 %v6796_v0, %v3278_v6  ;;  %v3316_v28 = vadd.f32 %v6796_v0, %v3279_v40 }
 0x2f0   : > { %v3317_v25 = vadd.f32 %v6796_v0, %v3280_v39  ;;  %v3318_v22 = vadd.f32 %v6796_v0, %v3281_v2  ;;  %v3319_v12 = vadd.f32 %v6796_v0, %v3282_v57  ;;  %v3320_v38 = vadd.f32 %v6796_v0, %v3283_v60 }
 0x2f1   : > { %v3345_v54 = vmax.f32 %v3313_v24, 0.0  ;;  %v3346_v42 = vmax.f32 %v3314_v52, 0.0  ;;  %v3347_v17 = vmax.f32 %v3315_v36, 0.0  ;;  %v3348_v13 = vmax.f32 %v3316_v28, 0.0 }
 0x2f2   : > { %v3349_v10 = vmax.f32 %v3317_v25, 0.0  ;;  %v3350_v55 = vmax.f32 %v3318_v22, 0.0  ;;  %v3351_v26 = vmax.f32 %v3319_v12, 0.0  ;;  %v3352_v23 = vmax.f32 %v3320_v38, 0.0 }
 0x2f3   : > { %3377 = vst [vmem:[%s6612_s25 + $0x40] sm:$0xff] %v3345_v54  ;;  %3378 = vst [vmem:[%s6612_s25 + $0x48] sm:$0xff] %v3346_v42  ;;  %v3247_v11 = vmul.f32 %v6774_v34, %v3207_v35  ;;  %v3248_v41 = vmul.f32 %v6774_v34, %v3208_v46  ;;  %v3249_v14 = vmul.f32 %v6774_v34, %v3209_v19 }
 0x2f4   : > { %3379 = vst [vmem:[%s6612_s25 + $0x50] sm:$0xff] %v3347_v17  ;;  %3380 = vst [vmem:[%s6612_s25 + $0x58] sm:$0xff] %v3348_v13  ;;  %v3250_v51 = vmul.f32 %v6774_v34, %v3210_v27  ;;  %v3251_v32 = vmul.f32 %v6774_v34, %v3211_v63  ;;  %v3252_v7 = vmul.f32 %v6774_v34, %v3212_v59 }
 0x2f5   : > { %3381 = vst [vmem:[%s6612_s25 + $0x60] sm:$0xff] %v3349_v10  ;;  %3382 = vst [vmem:[%s6612_s25 + $0x68] sm:$0xff] %v3350_v55  ;;  %v3253_v29 = vmul.f32 %v6774_v34, %v3213_v45  ;;  %v3254_v47 = vmul.f32 %v6774_v34, %v3214_v18  ;;  %v3284_v35 = vmul.f32 %v6782_v62, %v3247_v11 }
 0x2f6   : > { %3383 = vst [vmem:[%s6612_s25 + $0x70] sm:$0xff] %v3351_v26  ;;  %3384 = vst [vmem:[%s6612_s25 + $0x78] sm:$0xff] %v3352_v23  ;;  %v3285_v16 = vmul.f32 %v6782_v62, %v3248_v41  ;;  %v3286_v46 = vmul.f32 %v6782_v62, %v3249_v14  ;;  %v3287_v33 = vmul.f32 %v6782_v62, %v3250_v51 }
 0x2f7   : > { %v3288_v19 = vmul.f32 %v6782_v62, %v3251_v32  ;;  %v3289_v27 = vmul.f32 %v6782_v62, %v3252_v7  ;;  %v3290_v37 = vmul.f32 %v6782_v62, %v3253_v29  ;;  %v3291_v63 = vmul.f32 %v6782_v62, %v3254_v47 }
 0x2f8   : > { %v3321_v4 = vadd.f32 %v6796_v0, %v3284_v35  ;;  %v3322_v59 = vadd.f32 %v6796_v0, %v3285_v16  ;;  %v3323_v45 = vadd.f32 %v6796_v0, %v3286_v46  ;;  %v3324_v18 = vadd.f32 %v6796_v0, %v3287_v33 }
 0x2f9   : > { %v3325_v61 = vadd.f32 %v6796_v0, %v3288_v19  ;;  %v3326_v8 = vadd.f32 %v6796_v0, %v3289_v27  ;;  %v3327_v58 = vadd.f32 %v6796_v0, %v3290_v37  ;;  %v3328_v5 = vadd.f32 %v6796_v0, %v3291_v63 }
 0x2fa   : > { %v3353_v44 = vmax.f32 %v3321_v4, 0.0  ;;  %v3354_v1 = vmax.f32 %v3322_v59, 0.0  ;;  %v3355_v15 = vmax.f32 %v3323_v45, 0.0  ;;  %v3356_v30 = vmax.f32 %v3324_v18, 0.0 }
 0x2fb   : > { %v3357_v3 = vmax.f32 %v3325_v61, 0.0  ;;  %v3358_v49 = vmax.f32 %v3326_v8, 0.0  ;;  %v3359_v6 = vmax.f32 %v3327_v58, 0.0  ;;  %v3360_v40 = vmax.f32 %v3328_v5, 0.0 }
 0x2fc   : > { %3385 = vst [vmem:[%s6612_s25 + $0x80] sm:$0xff] %v3353_v44  ;;  %3386 = vst [vmem:[%s6612_s25 + $0x88] sm:$0xff] %v3354_v1  ;;  %v7274_v39 = vsub.f32 %v6597_v21, %v6722_v20  ;;  %v7275_v57 = vsub.f32 %v6595_v53, %v6722_v20  ;;  %v7276_v24 = vsub.f32 %v6601_v43, %v6722_v20 }
 0x2fd   : > { %3387 = vst [vmem:[%s6612_s25 + $0x90] sm:$0xff] %v3355_v15  ;;  %3388 = vst [vmem:[%s6612_s25 + $0x98] sm:$0xff] %v3356_v30  ;;  %v7277_v36 = vsub.f32 %v6599_v9, %v6722_v20  ;;  %v7278_v21 = vsub.f32 %v6605_v56, %v6722_v20  ;;  %v7279_v25 = vsub.f32 %v6603_v48, %v6722_v20 }
 0x2fe   : > { %v3255_v2 = vmul.f32 %v6774_v34, %v7274_v39  ;;  %v3256_v60 = vmul.f32 %v6774_v34, %v7275_v57  ;;  %v3257_v52 = vmul.f32 %v6774_v34, %v7276_v24  ;;  %3389 = vst [vmem:[%s6612_s25 + $0xa0] sm:$0xff] %v3357_v3  ;;  %3390 = vst [vmem:[%s6612_s25 + $0xa8] sm:$0xff] %v3358_v49 }
 0x2ff   : > { %v3258_v28 = vmul.f32 %v6774_v34, %v7277_v36  ;;  %3391 = vst [vmem:[%s6612_s25 + $0xb0] sm:$0xff] %v3359_v6  ;;  %3392 = vst [vmem:[%s6612_s25 + $0xb8] sm:$0xff] %v3360_v40  ;;  %v3259_v53 = vmul.f32 %v6774_v34, %v7278_v21  ;;  %v3260_v43 = vmul.f32 %v6774_v34, %v7279_v25 }
 0x300   : > { %v7280_v22 = vsub.f32 %v6609_v50, %v6722_v20  ;;  %v7281_v12 = vsub.f32 %v6607_v31, %v6722_v20  ;;  %v3292_v54 = vmul.f32 %v6782_v62, %v3255_v2  ;;  %v3293_v56 = vmul.f32 %v6782_v62, %v3256_v60 }
 0x301   : > { %v3294_v42 = vmul.f32 %v6782_v62, %v3257_v52  ;;  %v3295_v48 = vmul.f32 %v6782_v62, %v3258_v28  ;;  %v3296_v17 = vmul.f32 %v6782_v62, %v3259_v53  ;;  %v3297_v13 = vmul.f32 %v6782_v62, %v3260_v43 }
 0x302   : > { %v3261_v9 = vmul.f32 %v6774_v34, %v7280_v22  ;;  %v3262_v38 = vmul.f32 %v6774_v34, %v7281_v12  ;;  %v3329_v31 = vadd.f32 %v6796_v0, %v3292_v54  ;;  %v3330_v20 = vadd.f32 %v6796_v0, %v3293_v56 }
 0x303   : > { %v3331_v34 = vadd.f32 %v6796_v0, %v3294_v42  ;;  %v3332_v55 = vadd.f32 %v6796_v0, %v3295_v48  ;;  %v3333_v26 = vadd.f32 %v6796_v0, %v3296_v17  ;;  %v3334_v23 = vadd.f32 %v6796_v0, %v3297_v13 }
 0x304   : > { %v3298_v50 = vmul.f32 %v6782_v62, %v3261_v9  ;;  %v3299_v10 = vmul.f32 %v6782_v62, %v3262_v38  ;;  %v3361_v41 = vmax.f32 %v3329_v31, 0.0  ;;  %v3362_v14 = vmax.f32 %v3330_v20, 0.0 }
 0x305   : > { %v3363_v51 = vmax.f32 %v3331_v34, 0.0  ;;  %v3364_v32 = vmax.f32 %v3332_v55, 0.0  ;;  %v3365_v7 = vmax.f32 %v3333_v26, 0.0  ;;  %v3366_v29 = vmax.f32 %v3334_v23, 0.0 }
 0x306   : > { %v3335_v62 = vadd.f32 %v6796_v0, %v3298_v50  ;;  %v3336_v11 = vadd.f32 %v6796_v0, %v3299_v10  ;;  %3393 = vst [vmem:[%s6612_s25 + $0xc0] sm:$0xff] %v3361_v41  ;;  %3394 = vst [vmem:[%s6612_s25 + $0xc8] sm:$0xff] %v3362_v14 }
 0x307   : > { %3395 = vst [vmem:[%s6612_s25 + $0xd0] sm:$0xff] %v3363_v51  ;;  %3396 = vst [vmem:[%s6612_s25 + $0xd8] sm:$0xff] %v3364_v32 }
 0x308   : > { %v3367_v47 = vmax.f32 %v3335_v62, 0.0  ;;  %v3368_v35 = vmax.f32 %v3336_v11, 0.0  ;;  %3397 = vst [vmem:[%s6612_s25 + $0xe0] sm:$0xff] %v3365_v7  ;;  %3398 = vst [vmem:[%s6612_s25 + $0xe8] sm:$0xff] %v3366_v29 }
 0x30a   : > { %3399 = vst [vmem:[%s6612_s25 + $0xf0] sm:$0xff] %v3367_v47  ;;  %3400 = vst [vmem:[%s6612_s25 + $0xf8] sm:$0xff] %v3368_v35 }
 0x30b PF: > { %s3409_s30 = smul.u32 %s5187_s18, %s5191_s19  ;;  %s3420_s8 = sshll.u32 %s6612_s25, 4  ;;  %s6997_s8 = int_to_ptr.vmem [resolvable:$true] %s3420_s8 }
 0x30c   : > { %s7006_s7 = scalar_lea.sflag [#allocation6], %s242_s1  ;;  %s5077_s4 = scalar_lea.vmem %s6997_s8, 4096 }
 0x30d   : > { %s3851_s23 = sshll.u32 %s3409_s30, 12  ;;  %p5078_p13 = scmp.ne.s32.totalorder %s6997_s8, %s5077_s4 }
 0x30e   : > { %s7002_s21 = scalar_lea.hbm %s7070_s3, %s3851_s23  ;;  %p7282_p7 = scmp.ne.s32.totalorder %s7158_s28, 0 }
 0x30f   : > { %s5212_s18 = smov [#allocation10]  }
 0x310   : > { %p5079_p9 = pnand %p5078_p13, %p7282_p7  ;;  %s5081_s19 = sshll.u32 %s5212_s18, 4  ;;  %s5082_s19 = int_to_ptr.vmem [resolvable:$false] %s5081_s19 }
 0x311   : > { %s5083_s11 = scalar_lea.vmem %s5082_s19, 8192  ;;  %p5084_p5 = scmp.lt.s32.totalorder %s6997_s8, %s5082_s19 }
 0x312   : > { %p5080_p11 = pneg %p5079_p9  ;;  %p5085_p8 = scmp.lt.s32.totalorder %s5083_s11, %s5077_s4 }
 0x314   : > { %p5086_p12 = por %p5085_p8, %p5084_p5 }
 0x316   : > { %p5087_p2 = pnand %p5086_p12, %p5080_p11 }
 0x318   : > { %5090 = shalt.err (!%p5087_p2)
}
 0x319   : > { %s5091_s5 = scalar_lea.hbm %s7002_s21, 4096  ;;  %s5095_s1 = scalar_lea.hbm %s7070_s3, 8192 }
 0x31a   : > { %p5092_p6 = scmp.ne.s32.totalorder %s7002_s21, %s5091_s5  ;;  %p5096_p4 = scmp.lt.u32.totalorder %s7002_s21, %s7070_s3 }
 0x31b   : > { %p5097_p1 = scmp.lt.u32.totalorder %s5095_s1, %s5091_s5  ;;  %p5099_p13 = scmp.lt.u32.totalorder %s5091_s5, %s7002_s21 }
 0x31c   : > { %p5093_p10 = pnand %p5092_p6, %p7282_p7 }
 0x31d   : > { %p5098_p3 = por %p5097_p1, %p5096_p4 }
 0x31e   : > { %p5094_p0 = pneg %p5093_p10 }
 0x31f   : > { %p5100_p9 = por %p5099_p13, %p5098_p3 }
 0x321   : > { %p5101_p11 = pnand %p5100_p9, %p5094_p0 }
 0x323   : > { %5104 = shalt.err (!%p5101_p11)
}
 0x324   : > { %s5213_s27 = smov 128   ;;  %s5214_s30 = smov 8  }
 0x325   : > { %4870 = dma.vmem_to_hbm [thread:$0]  (%p7282_p7), %s6997_s8, 4096, %s7002_s21, %s7006_s7, %s5213_s27, %s5213_s27, %s5214_s30  }
 0x326 PF: > { %s7283_s23 = sld [smem:[#allocation14_spill]]  ;;  %s7284_s26 = sld [smem:[#allocation16_spill]] }
 0x327   : > { %p4892_p5 = scmp.ge.s32.totalorder %s5203_s22, 2 }
 0x32c   : > { %s3435_s10 = sand.u32 1, %s7283_s23   ;;  %p7285_p8 = scmp.ne.s32.totalorder %s7284_s26, 0 }
 0x32d   : > { %s3436_s4 = scalar_lea.sflag [#allocation6], %s3435_s10 }
 0x32e   : > { %p4884_p12 = pnand %p4892_p5, %p7285_p8 }
 0x330   : > { %5158 = dma.done.wait (!%p4884_p12), %s3436_s4, 4096  }
 0x331   : > { %5160 = vsyncadd (!%p4884_p12), %s3436_s4, 4294963200  ;;  %s20_s22 = sadd.s32 1, %s5203_s22   ;;  %s7286_s28 = smov %s5398_s15 }
 0x332   : > { %p17_p2 = scmp.ge.s32.totalorder %s20_s22, 6   ;;  %s7287_s19 = sld [smem:[#allocation15_spill]] }
 0x333   : > { %s7288_s12 = smov %s5167_s13  ;;  %s7289_s13 = smov %s5171_s14 }
 0x334   : > { %s7290_s14 = smov %s5412_s6  ;;  %s7291_s15 = smov %s5179_s16 }
 0x335   : > { %s7292_s16 = smov %s5183_s17  ;;  %s7293_s17 = smov %s7286_s28 }
 0x336   : > { %s7294_s18 = smov %s5195_s20  ;;  %s7295_s20 = smov %s7298_s29 }
 0x337   : > { %s7296_s21 = smov %s7302_s9  ;;  %19 = sbr.rel (!%p17_p2) target bundleno = 13 (0xd), region = 101 }
 0x33e   :  { %3441 = vsyncpa [#allocation5], 1 }
 0x33f   :  { %3443 = vsyncpa [#allocation5 + $0x1], 1 }
 0x340   :  { %3444 = vsyncpa [#allocation8], 1 }
 0x341   :  { %3445 = vsyncpa [#allocation6], 1 }
 0x342   :  { %3447 = vsyncpa [#allocation6 + $0x1], 1 }

// kernel: residual_block_forward.3
= control target key start
LH: loop header
LB: loop body
LE: loop exit
PB: predicated region body
PF: predicated region fallthrough
CT: control target
= control target key end

     0   :  { %s8950_s0 = inlined_call_operand.hbm [shape: f32[2,1,18,18,128], index: 0, kind: input, shape index: {}]   ;;  %s8951_s1 = inlined_call_operand.hbm [shape: f32[2,16,16,4], index: 1, kind: input, shape index: {}]   ;;  %s8952_s2 = inlined_call_operand.hbm [shape: f32[9,128,128], index: 2, kind: input, shape index: {}]   ;;  %s8953_s3 = inlined_call_operand.hbm [shape: f32[4,128], index: 3, kind: input, shape index: {}]   ;;  %s8954_s4 = inlined_call_operand.hbm [shape: f32[2,128], index: 4, kind: input, shape index: {}]   ;;  %s8955_s5 = inlined_call_operand.hbm [shape: f32[2,128], index: 5, kind: input, shape index: {}]   ;;  %s8956_s6 = inlined_call_operand.hbm [shape: f32[2,16,16,128], index: 6, kind: output, shape index: {}]  }
   0x1   :  { %9077 = sst [smem:[#allocation71_spill]] %s8950_s0 }
   0x2   :  { %9078 = sst [smem:[#allocation72_spill]] %s8952_s2 }
   0x3   :  { %9079 = sst [smem:[#allocation73_spill]] %s8953_s3 }
   0x4   :  { %9080 = sst [smem:[#allocation74_spill]] %s8954_s4 }
   0x5   :  { %9081 = sst [smem:[#allocation75_spill]] %s8955_s5 }
   0x6   :  { %9082 = sst [smem:[#allocation76_spill]] %s8956_s6 }
   0x7   :  { %11 = vsyncpa [#allocation7], 0 }
   0x8   :  { %13 = vsyncpa [#allocation7 + $0x1], 0 }
   0x9   :  { %14 = vsyncpa [#allocation10], 0 }
   0xa   :  { %16 = vsyncpa [#allocation10 + $0x1], 0 }
   0xb   :  { %17 = vsyncpa [#allocation13], 0 }
   0xc   :  { %18 = vsyncpa [#allocation16], 0 }
   0xd   :  { %19 = vsyncpa [#allocation8], 0 }
   0xe   :  { %21 = vsyncpa [#allocation8 + $0x1], 0  ;;  %s6748_s21 = smov 0   ;;  %s6750_s22 = smov 0  }
   0xf   :  { %s6752_s23 = smov 0   ;;  %s6754_s24 = smov 0  }
  0x10   :  { %s6756_s25 = smov 0   ;;  %s6758_s26 = smov 0  }
  0x11   :  { %s6760_s27 = smov 0   ;;  %s6762_s28 = smov 0  }
  0x12   :  { %s6764_s29 = smov 0   ;;  %s6766_s30 = smov 0  }
  0x13   :  { %s6768_s7 = smov 0  }
  0x14 LB: > { %9083 = sst [smem:[#allocation24_spill]] %s6660_s21  ;;  %s6802_s8 = sadd.s32 4294967295, %s6700_s7   ;;  %s6700_s7 = sphi %s6768_s7, %s27_s7   ;;  %s6696_s30 = sphi %s6766_s30, %s9371_s30   ;;  %s6692_s29 = sphi %s6764_s29, %s9370_s29   ;;  %s6688_s28 = sphi %s6762_s28, %s9369_s28   ;;  %s6684_s27 = sphi %s6760_s27, %s9368_s27   ;;  %s6680_s26 = sphi %s6758_s26, %s9367_s26   ;;  %s6676_s25 = sphi %s6756_s25, %s9366_s25   ;;  %s6672_s24 = sphi %s6754_s24, %s9365_s24   ;;  %s6668_s23 = sphi %s6752_s23, %s9364_s23   ;;  %s6664_s22 = sphi %s6750_s22, %s9363_s22   ;;  %s6660_s21 = sphi %s6748_s21, %s9361_s21  }
  0x15   : > { %9084 = sst [smem:[#allocation25_spill]] %s6664_s22  ;;  %s4356_s9 = sadd.s32 4294967294, %s6700_s7  }
  0x16   : > { %9085 = sst [smem:[#allocation26_spill]] %s6684_s27  ;;  %p68_p0 = scmp.ne.s32.totalorder %s6676_s25, %s6672_s24 }
  0x17   : > { %9086 = sst [smem:[#allocation27_spill]] %s6688_s28  ;;  %p8960_p1 = scmp.eq.s32.totalorder %s6802_s8, 0 }
  0x18   : > { %p209_p2 = scmp.ne.s32.totalorder %s6668_s23, %s6664_s22  ;;  %p210_p4 = scmp.eq.s32.totalorder %s6802_s8, 3 }
  0x19   : > { %p6812_p3 = por %p8960_p1, %p68_p0  ;;  %p215_p5 = scmp.ne.s32.totalorder %s6664_s22, %s6660_s21 }
  0x1a   : > { %p216_p6 = scmp.eq.s32.totalorder %s4356_s9, 3  ;;  %p6819_p7 = por %p210_p4, %p209_p2 }
  0x1b   : > { %s9087_s11 = scalar_select %p6812_p3, 1, 0 }
  0x1c   : > { %s9088_s12 = scalar_select %p6819_p7, 1, 0 }
  0x1d   : > { %p4357_p8 = scmp.ge.s32.totalorder %s6700_s7, 1  ;;  %p6824_p9 = por %p216_p6, %p215_p5 }
  0x1e   : > { %9089 = sst [smem:[#allocation28_spill]] %s9088_s12  ;;  %p223_p10 = scmp.lt.s32.totalorder %s6700_s7, 5 }
  0x1f   : > { %s9090_s13 = scalar_select %p6824_p9, 1, 0 }
  0x20   : > { %p6829_p11 = pnand %p4357_p8, %p223_p10  ;;  %s6702_s15 = smov [#allocation11]  }
  0x21   : > { %9091 = sst [smem:[#allocation29_spill]] %s9090_s13  ;;  %s235_s16 = sshll.u32 %s6702_s15, 4  ;;  %s6833_s16 = int_to_ptr.vmem [resolvable:$true] %s235_s16 }
  0x22   : > { %s9092_s14 = scalar_select %p6829_p11, 1, 0 }
  0x23   : > { %p6226_p12 = pneg %p6829_p11  ;;  %s6703_s18 = smov [#allocation12]  }
  0x24   : > { %s249_s19 = sshll.u32 %s6703_s18, 4  ;;  %s6704_s20 = smov [#allocation14]   ;;  %s6843_s19 = int_to_ptr.vmem [resolvable:$true] %s249_s19 }
  0x25   : > { %p6839_p13 = pnand %p6226_p12, %p8960_p1  ;;  %s6845_s24 = sshll.u32 %s6704_s20, 4  ;;  %s261_s24 = int_to_ptr.vmem [resolvable:$true] %s6845_s24 }
  0x26   : > { %s9094_s2 = sld [smem:[#allocation72_spill]] }
  0x27   : > { %p6855_p2 = pneg %p6839_p13 }
  0x2c   : > { %s6390_s15 = scalar_lea.hbm %s9094_s2, 18432 }
  0x2d   : > { %p6391_p0 = scmp.ne.s32.totalorder %s9094_s2, %s6390_s15  ;;  %p6397_p6 = scmp.lt.u32.totalorder %s6390_s15, %s9094_s2 }
  0x2f   : > { %p6393_p4 = pnand %p6855_p2, %p6391_p0 }
  0x31   : > { %p6394_p5 = pneg %p6393_p4 }
  0x33   : > { %p6399_p8 = pnand %p6397_p6, %p6394_p5 }
  0x35   : > { %6402 = shalt.err (!%p6399_p8)
}
  0x36   : > { %s6403_s21 = scalar_lea.vmem %s6833_s16, 18432  ;;  %p6411_p9 = scmp.lt.s32.totalorder %s6833_s16, %s6833_s16 }
  0x37   : > { %p6404_p10 = scmp.ne.s32.totalorder %s6833_s16, %s6403_s21  ;;  %p6412_p7 = scmp.lt.s32.totalorder %s6403_s21, %s6403_s21 }
  0x39   : > { %p6406_p12 = pnand %p6404_p10, %p6855_p2  ;;  %p6413_p0 = por %p6412_p7, %p6411_p9 }
  0x3b   : > { %p6407_p1 = pneg %p6406_p12 }
  0x3d   : > { %p6414_p4 = pnand %p6413_p0, %p6407_p1 }
  0x3f   : > { %6417 = shalt.err (!%p6414_p4)
}
  0x40   : > { %s8968_s10 = smov 128   ;;  %s8970_s13 = smov 8  }
  0x41   : > { %6229 = dma.hbm_to_vmem [thread:$0]  (!%p6839_p13), %s9094_s2, 18432, %s6833_s16, [#allocation10], %s8968_s10, %s8968_s10, %s8970_s13  }
  0x42   : > { %s9096_s3 = sld [smem:[#allocation73_spill]] }
  0x48   : > { %s6418_s21 = scalar_lea.hbm %s9096_s3, 64 }
  0x49   : > { %p6419_p1 = scmp.ne.s32.totalorder %s9096_s3, %s6418_s21  ;;  %p6425_p5 = scmp.lt.u32.totalorder %s6418_s21, %s9096_s3 }
  0x4b   : > { %p6421_p7 = pnand %p6419_p1, %p6855_p2 }
  0x4d   : > { %p6422_p9 = pneg %p6421_p7 }
  0x4f   : > { %p6427_p6 = pnand %p6425_p5, %p6422_p9 }
  0x51   : > { %6430 = shalt.err (!%p6427_p6)
}
  0x52   : > { %s6431_s16 = scalar_lea.vmem %s6843_s19, 64  ;;  %p6439_p0 = scmp.lt.s32.totalorder %s6843_s19, %s6843_s19 }
  0x53   : > { %p6432_p8 = scmp.ne.s32.totalorder %s6843_s19, %s6431_s16  ;;  %p6440_p4 = scmp.lt.s32.totalorder %s6431_s16, %s6431_s16 }
  0x55   : > { %p6434_p10 = pnand %p6432_p8, %p6855_p2  ;;  %p6441_p1 = por %p6440_p4, %p6439_p0 }
  0x57   : > { %p6435_p12 = pneg %p6434_p10 }
  0x59   : > { %p6442_p7 = pnand %p6441_p1, %p6435_p12 }
  0x5b   : > { %6445 = shalt.err (!%p6442_p7)
}
  0x5c   : > { %6232 = dma.hbm_to_vmem [thread:$0]  (!%p6839_p13), %s9096_s3, 64, %s6843_s19, [#allocation13]  }
  0x5d   : > { %s9097_s4 = sld [smem:[#allocation74_spill]] }
  0x63   : > { %s6446_s9 = scalar_lea.hbm %s9097_s4, 32 }
  0x64   : > { %p6447_p9 = scmp.ne.s32.totalorder %s9097_s4, %s6446_s9  ;;  %p6453_p8 = scmp.lt.u32.totalorder %s6446_s9, %s9097_s4 }
  0x66   : > { %p6449_p5 = pnand %p6447_p9, %p6855_p2 }
  0x68   : > { %p6450_p6 = pneg %p6449_p5 }
  0x6a   : > { %p6455_p10 = pnand %p6453_p8, %p6450_p6 }
  0x6c   : > { %6458 = shalt.err (!%p6455_p10)
}
  0x6d   : > { %s6459_s16 = scalar_lea.vmem %s261_s24, 32  ;;  %p6467_p1 = scmp.lt.s32.totalorder %s261_s24, %s261_s24 }
  0x6e   : > { %p6460_p12 = scmp.ne.s32.totalorder %s261_s24, %s6459_s16  ;;  %p6468_p7 = scmp.lt.s32.totalorder %s6459_s16, %s6459_s16 }
  0x70   : > { %p6462_p0 = pnand %p6460_p12, %p6855_p2  ;;  %p6469_p3 = por %p6468_p7, %p6467_p1 }
  0x72   : > { %p6463_p4 = pneg %p6462_p0 }
  0x74   : > { %p6470_p11 = pnand %p6469_p3, %p6463_p4 }
  0x76   : > { %6473 = shalt.err (!%p6470_p11)
}
  0x77   : > { %6235 = dma.hbm_to_vmem [thread:$0]  (!%p6839_p13), %s9097_s4, 32, %s261_s24, [#allocation13]  }
  0x78   : > { %s6707_s27 = smov [#allocation15]   ;;  %s9098_s5 = sld [smem:[#allocation75_spill]] }
  0x79   : > { %s271_s28 = sshll.u32 %s6707_s27, 4  ;;  %s272_s28 = int_to_ptr.vmem [resolvable:$true] %s271_s28 }
  0x7e   : > { %s6474_s15 = scalar_lea.hbm %s9098_s5, 32 }
  0x7f   : > { %p6475_p9 = scmp.ne.s32.totalorder %s9098_s5, %s6474_s15  ;;  %p6481_p5 = scmp.lt.u32.totalorder %s6474_s15, %s9098_s5 }
  0x81   : > { %p6477_p3 = pnand %p6475_p9, %p6855_p2 }
  0x83   : > { %p6478_p11 = pneg %p6477_p3 }
  0x85   : > { %p6483_p6 = pnand %p6481_p5, %p6478_p11 }
  0x87   : > { %6486 = shalt.err (!%p6483_p6)
}
  0x88   : > { %s6487_s24 = scalar_lea.vmem %s272_s28, 32  ;;  %p6495_p0 = scmp.lt.s32.totalorder %s272_s28, %s272_s28 }
  0x89   : > { %p6488_p8 = scmp.ne.s32.totalorder %s272_s28, %s6487_s24  ;;  %p6496_p4 = scmp.lt.s32.totalorder %s6487_s24, %s6487_s24 }
  0x8b   : > { %p6490_p10 = pnand %p6488_p8, %p6855_p2  ;;  %p6497_p1 = por %p6496_p4, %p6495_p0 }
  0x8d   : > { %p6491_p12 = pneg %p6490_p10 }
  0x8f   : > { %p6498_p7 = pnand %p6497_p1, %p6491_p12 }
  0x91   : > { %6501 = shalt.err (!%p6498_p7)
}
  0x92   : > { %6238 = dma.hbm_to_vmem [thread:$0]  (!%p6839_p13), %s9098_s5, 32, %s272_s28, [#allocation16]  }
  0x93   : > { %s42_s6 = sadd.s32 1, %s6692_s29  ;;  %s46_s27 = sadd.s32 1, %s6696_s30 }
  0x94   : > { %p44_p2 = scmp.ge.s32.totalorder %s42_s6, 2  ;;  %s55_s17 = sadd.s32 1, %s6680_s26 }
  0x95   : > { %p62_p9 = scmp.ne.s32.totalorder %s6680_s26, %s6676_s25  ;;  %p63_p3 = scmp.eq.s32.totalorder %s6700_s7, 0 }
  0x96   : > { %s9373_s6 = smov (%p44_p2, %s42_s6), 0  ;;  %s9375_s27 = smov (!%p44_p2, %s46_s27), %s6696_s30 }
  0x97   : > { %s50_s12 = ssub.s32 %s6692_s29, %s9373_s6  ;;  %p6950_p11 = por %p63_p3, %p62_p9 }
  0x98   : > { %p48_p13 = scmp.ge.s32.totalorder %s9375_s27, 2  ;;  %p53_p5 = scmp.eq.s32.totalorder %s50_s12, 0 }
  0x99   : > { %s190_s28 = smul.u32 %s6692_s29, %s6696_s30  ;;  %p6254_p6 = scmp.lt.s32.totalorder %s6700_s7, 4 }
  0x9a   : > { %s9377_s27 = smov (%p48_p13, %s9375_s27), 0  ;;  %s6965_s20 = sand.u32 1, %s6680_s26  }
  0x9b   : > { %s6960_s15 = scalar_select %p53_p5, %s6680_s26, %s55_s17  }
  0x9c   : > { %s192_s18 = smul.u32 %s9377_s27, %s9373_s6  ;;  %s9100_s0 = sld [smem:[#allocation71_spill]] }
  0x9d   : > { %s6201_s21 = smul.u32 432, %s6965_s20  ;;  %s9101_s13 = sadd.s32 1, %s6668_s23 }
  0x9e   : > { %s194_s16 = ssub.s32 %s190_s28, %s192_s18  ;;  %s6202_s24 = smul.u32 6912, %s6692_s29 }
  0x9f   : > { %p197_p8 = scmp.eq.s32.totalorder %s194_s16, 0  ;;  %s286_s17 = scalar_lea.vmem [#allocation6], %s6201_s21 }
  0xa0   : > { %s295_s10 = sshll.u32 %s286_s17, 4  ;;  %p6985_p10 = pnand %p6254_p6, %p6950_p11  ;;  %s6979_s10 = int_to_ptr.vmem [resolvable:$true] %s295_s10 }
  0xa1   : > { %s6977_s2 = scalar_select %p197_p8, %s6668_s23, %s9101_s13  }
  0xa2   : > { %s6972_s12 = scalar_lea.hbm %s9100_s0, %s6202_s24  ;;  %s4364_s16 = sshll.u32 %s6965_s20, 8 }
  0xa3   : > { %s283_s24 = scalar_lea.sflag [#allocation7], %s6965_s20  ;;  %s6502_s19 = scalar_lea.hbm %s6972_s12, 6912 }
  0xa4   : > { %p6503_p12 = scmp.ne.s32.totalorder %s6972_s12, %s6502_s19  ;;  %p6504_p0 = pneg %p6985_p10 }
  0xa5   : > { %s6507_s21 = scalar_lea.hbm %s9100_s0, 13824  ;;  %p6508_p7 = scmp.lt.u32.totalorder %s6972_s12, %s9100_s0 }
  0xa6   : > { %p6505_p4 = pnand %p6504_p0, %p6503_p12  ;;  %p6509_p2 = scmp.lt.u32.totalorder %s6507_s21, %s6502_s19 }
  0xa7   : > { %p6511_p3 = scmp.lt.u32.totalorder %s6502_s19, %s6972_s12 }
  0xa8   : > { %p6506_p1 = pneg %p6505_p4  ;;  %p6510_p9 = por %p6509_p2, %p6508_p7 }
  0xaa   : > { %p6512_p11 = por %p6511_p3, %p6510_p9 }
  0xac   : > { %p6513_p13 = pnand %p6512_p11, %p6506_p1 }
  0xae   : > { %6516 = shalt.err (!%p6513_p13)
}
  0xaf   : > { %s6517_s18 = scalar_lea.vmem %s6979_s10, 6912  ;;  %s6708_s13 = smov [#allocation6]  }
  0xb0   : > { %p6518_p5 = scmp.ne.s32.totalorder %s6979_s10, %s6517_s18  ;;  %s6522_s9 = sshll.u32 %s6708_s13, 4  ;;  %s6523_s9 = int_to_ptr.vmem [resolvable:$false] %s6522_s9 }
  0xb1   : > { %s6524_s22 = scalar_lea.vmem %s6523_s9, 13824  ;;  %p6525_p12 = scmp.lt.s32.totalorder %s6979_s10, %s6523_s9 }
  0xb2   : > { %p6520_p6 = pnand %p6518_p5, %p6504_p0  ;;  %p6526_p4 = scmp.lt.s32.totalorder %s6524_s22, %s6517_s18 }
  0xb4   : > { %p6521_p8 = pneg %p6520_p6  ;;  %p6527_p7 = por %p6526_p4, %p6525_p12 }
  0xb6   : > { %p6528_p2 = pnand %p6527_p7, %p6521_p8 }
  0xb8   : > { %6531 = shalt.err (!%p6528_p2)
}
  0xb9   : > { %s9103_s19 = smov 8   ;;  %s9104_s21 = smov 128  }
  0xba   : > { %6242 = dma.hbm_to_vmem [thread:$0]  (!%p6985_p10), %s6972_s12, 6912, %s6979_s10, %s283_s24, %s9104_s21, %s9104_s21, %s9103_s19  }
  0xbb   : > { %s4419_s17 = sshll.u32 %s6692_s29, 12  ;;  %s309_s22 = scalar_lea.vmem [#allocation9], %s4364_s16 }
  0xbc   : > { %s7026_s9 = scalar_lea.hbm %s8951_s1, %s4419_s17  ;;  %s319_s0 = sshll.u32 %s309_s22, 4  ;;  %s7030_s0 = int_to_ptr.vmem [resolvable:$true] %s319_s0 }
  0xbd   : > { %s9105_s3 = sand.u32 1, %s6700_s7   ;;  %s6532_s5 = scalar_lea.hbm %s7026_s9, 4096 }
  0xbe   : > { %s7034_s4 = scalar_lea.sflag [#allocation10], %s9105_s3  ;;  %p6533_p1 = scmp.ne.s32.totalorder %s7026_s9, %s6532_s5 }
  0xbf   : > { %s6537_s20 = scalar_lea.hbm %s8951_s1, 8192  ;;  %p6538_p11 = scmp.lt.u32.totalorder %s7026_s9, %s8951_s1 }
  0xc0   : > { %p6535_p9 = pnand %p6533_p1, %p6504_p0  ;;  %p6539_p13 = scmp.lt.u32.totalorder %s6537_s20, %s6532_s5 }
  0xc1   : > { %p6541_p6 = scmp.lt.u32.totalorder %s6532_s5, %s7026_s9 }
  0xc2   : > { %p6536_p3 = pneg %p6535_p9  ;;  %p6540_p5 = por %p6539_p13, %p6538_p11 }
  0xc4   : > { %p6542_p8 = por %p6541_p6, %p6540_p5 }
  0xc6   : > { %p6543_p12 = pnand %p6542_p8, %p6536_p3 }
  0xc8   : > { %6546 = shalt.err (!%p6543_p12)
}
  0xc9   : > { %s6547_s3 = scalar_lea.vmem %s7030_s0, 4096  ;;  %s6709_s16 = smov [#allocation9]  }
  0xca   : > { %p6548_p4 = scmp.ne.s32.totalorder %s7030_s0, %s6547_s3  ;;  %s6552_s13 = sshll.u32 %s6709_s16, 4  ;;  %s6553_s13 = int_to_ptr.vmem [resolvable:$false] %s6552_s13 }
  0xcb   : > { %s6554_s18 = scalar_lea.vmem %s6553_s13, 8192  ;;  %p6555_p1 = scmp.lt.s32.totalorder %s7030_s0, %s6553_s13 }
  0xcc   : > { %p6550_p7 = pnand %p6548_p4, %p6504_p0  ;;  %p6556_p9 = scmp.lt.s32.totalorder %s6554_s18, %s6547_s3 }
  0xce   : > { %p6551_p2 = pneg %p6550_p7  ;;  %p6557_p11 = por %p6556_p9, %p6555_p1 }
  0xd0   : > { %p6558_p13 = pnand %p6557_p11, %p6551_p2 }
  0xd2   : > { %6561 = shalt.err (!%p6558_p13)
}
  0xd3   : > { %6245 = dma.hbm_to_vmem [thread:$0]  (!%p6985_p10), %s7026_s9, 4096, %s7030_s0, %s7034_s4, %s9104_s21, %s9104_s21, %s9103_s19  }
  0xd4   : > { %p9106_p0 = scmp.ne.s32.totalorder %s9092_s14, 0 }
  0xd6   : > { %331 = sbr.rel (%p9106_p0) target bundleno = 1042 (0x412), region = 44 }
  0xdd   : > { %s333_s5 = sand.u32 1, %s6676_s25   ;;  %p9107_p3 = scmp.ne.s32.totalorder %s9087_s11, 0 }
  0xde   : > { %s6203_s22 = smul.u32 432, %s333_s5  ;;  %s334_s10 = scalar_lea.sflag [#allocation7], %s333_s5 }
  0xe0   : > { %s7066_s12 = scalar_lea.vmem [#allocation6], %s6203_s22 }
  0xe1   : > { %6635 = dma.done.wait (%p9107_p3), %s334_s10, 6912  }
  0xe2   : > { %6637 = vsyncadd (%p9107_p3), %s334_s10, 4294960384  ;;  %s342_s28 = sand.u32 1, %s6802_s8   ;;  %s4368_s20 = sshll.u32 %s333_s5, 8 }
  0xe3   : > { %s343_s0 = scalar_lea.sflag [#allocation10], %s342_s28  ;;  %s7073_s4 = scalar_lea.vmem [#allocation9], %s4368_s20 }
  0xe4   : > { %6639 = dma.done.wait (%p9107_p3), %s343_s0, 4096  }
  0xe5   : > { %6641 = vsyncadd (%p9107_p3), %s343_s0, 4294963200  ;;  %p9108_p10 = scmp.eq.s32.totalorder %s6802_s8, 0 }
  0xe7   : > { %6643 = dma.done.wait (%p9108_p10), [#allocation10], 18432   ;;  %p9109_p5 = pmov %p9108_p10 }
  0xe9   : > { %6645 = vsyncadd (%p9109_p5), [#allocation10], 4294948864  ;;  %p9110_p6 = pmov %p9109_p5 }
  0xea   : > { %p9111_p8 = pmov %p9109_p5 }
  0xeb   : > { %6647 = dma.done.wait (%p9110_p6), [#allocation13], 96  }
  0xec   : > { %6649 = vsyncadd (%p9111_p8), [#allocation13], 4294967200  ;;  %p9112_p12 = pmov %p9109_p5 }
  0xed   : > { %p9113_p4 = pmov %p9109_p5 }
  0xee   : > { %6651 = dma.done.wait (%p9112_p12), [#allocation16], 32  }
  0xef   : > { %6653 = vsyncadd (%p9113_p4), [#allocation16], 4294967264  ;;  %s9114_s11 = sld [smem:[#allocation25_spill]]  ;;  %s9115_s14 = sld [smem:[#allocation26_spill]]  ;;  %v636_v0 = vld [vmem:[#allocation11 + $0x80] sm:$0xff]  ;;  %v637_v1 = vld [vmem:[#allocation11 + $0x88] sm:$0xff] }
  0xf0   : > { %v1774_v2 = vld [vmem:[#allocation11 + $0x200] sm:$0xff]  ;;  %v5657_v3 = vpack.c.bf16 %v637_v1, %v636_v0  ;;  %v1775_v4 = vld [vmem:[#allocation11 + $0x208] sm:$0xff]  ;;  %v638_v5 = vld [vmem:[#allocation11 + $0x90] sm:$0xff]  ;;  %vm522_vm0 = vcmask 1046528   ;;  %vm1102_vm1 = vcmask 1045504   ;;  %vm3297_vm2 = vcmask 1043456  }
  0xf1   : > { %v639_v6 = vld [vmem:[#allocation11 + $0x98] sm:$0xff]  ;;  %v5785_v7 = vpack.c.bf16 %v1775_v4, %v1774_v2  ;;  %v1776_v9 = vld [vmem:[#allocation11 + $0x210] sm:$0xff]  ;;  %v640_v11 = vld [vmem:[#allocation11 + $0xa0] sm:$0xff]  ;;  %vm3200_vm3 = vcmask 31744   ;;  %s9236_s9 = sld [smem:[#allocation27_spill]] }
  0xf2   : > { %v5661_v8 = vpack.c.bf16 %v639_v6, %v638_v5  ;;  %v1777_v10 = vld [vmem:[#allocation11 + $0x218] sm:$0xff]  ;;  %5658 = vmatprep.subr.bf16.mxu1 %v5657_v3  ;;  %v641_v13 = vld [vmem:[#allocation11 + $0xa8] sm:$0xff]  ;;  %v1778_v14 = vld [vmem:[#allocation11 + $0x220] sm:$0xff] }
  0xf3   : > { %v5789_v12 = vpack.c.bf16 %v1777_v10, %v1776_v9  ;;  %v1779_v15 = vld [vmem:[#allocation11 + $0x228] sm:$0xff]  ;;  %5786 = vmatprep.subr.bf16.mxu0 %v5785_v7  ;;  %5660 = vmatpush3.bf16.msra.mxu1 %v5657_v3  ;;  %v5665_v16 = vpack.c.bf16 %v641_v13, %v640_v11  ;;  %v642_v18 = vld [vmem:[#allocation11 + $0xb0] sm:$0xff]  ;;  %v643_v19 = vld [vmem:[#allocation11 + $0xb8] sm:$0xff] }
  0xf4   : > { %5788 = vmatpush3.bf16.msra.mxu0 %v5785_v7  ;;  %5662 = vmatprep.subr.bf16.mxu1 %v5661_v8  ;;  %v5793_v17 = vpack.c.bf16 %v1779_v15, %v1778_v14  ;;  %v1780_v20 = vld [vmem:[#allocation11 + $0x230] sm:$0xff]  ;;  %v1781_v21 = vld [vmem:[#allocation11 + $0x238] sm:$0xff]  ;;  %v5669_v22 = vpack.c.bf16 %v643_v19, %v642_v18  ;;  %v644_v23 = vld [vmem:[#allocation11 + $0xc0] sm:$0xff] }
  0xf5   : > { %s393_s19 = sand.u32 1, %s9114_s11   ;;  %p400_p7 = scmp.eq.s32.totalorder %s9115_s14, 0  ;;  %5790 = vmatprep.subr.bf16.mxu0 %v5789_v12  ;;  %v645_v24 = vld [vmem:[#allocation11 + $0xc8] sm:$0xff]  ;;  %v5797_v25 = vpack.c.bf16 %v1781_v21, %v1780_v20  ;;  %v1782_v26 = vld [vmem:[#allocation11 + $0x240] sm:$0xff]  ;;  %v646_v38 = vld [vmem:[#allocation11 + $0xd0] sm:$0xff] }
  0xf6   : > { %s7095_s21 = sshll.u32 %s393_s19, 8  ;;  %v1783_v27 = vld [vmem:[#allocation11 + $0x248] sm:$0xff]  ;;  %v7098_v28 = vld [vmem:[%s7066_s12] sm:$0xff]  ;;  %v5673_v36 = vpack.c.bf16 %v645_v24, %v644_v23  ;;  %v647_v39 = vld [vmem:[#allocation11 + $0xd8] sm:$0xff] }
  0xf7   : > { %5664 = vmatpush3.bf16.msra.mxu1 %v5661_v8  ;;  %v7101_v29 = vld [vmem:[%s7066_s12 + $0x8] sm:$0xff]  ;;  %v523_v30 = vrot.slane %v7098_v28, 1  ;;  %v7105_v31 = vld [vmem:[%s7066_s12 + $0x18] sm:$0xff]  ;;  %v7108_v32 = vld [vmem:[%s7066_s12 + $0x20] sm:$0xff]  ;;  %v5801_v37 = vpack.c.bf16 %v1783_v27, %v1782_v26  ;;  %v5677_v44 = vpack.c.bf16 %v647_v39, %v646_v38  ;;  %s8125_s8 = scalar_lea.vmem [#allocation17], %s7095_s21  ;;  %p4408_p2 = scmp.ne.s32.totalorder %s9236_s9, 0 }
  0xf8   : > { %5792 = vmatpush3.bf16.msra.mxu0 %v5789_v12  ;;  %5666 = vmatprep.subr.bf16.mxu1 %v5665_v16  ;;  %v524_v33 = vrot.slane %v7101_v29, 1  ;;  %v528_v34 = vrot.slane %v7105_v31, 1  ;;  %v529_v35 = vrot.slane %v7108_v32, 1  ;;  %v1784_v42 = vld [vmem:[#allocation11 + $0x250] sm:$0xff]  ;;  %v1785_v43 = vld [vmem:[#allocation11 + $0x258] sm:$0xff]  ;;  %v648_v46 = vld [vmem:[#allocation11 + $0xe0] sm:$0xff] }
  0xf9   : > { %5794 = vmatprep.subr.bf16.mxu0 %v5793_v17  ;;  %v5805_v45 = vpack.c.bf16 %v1785_v43, %v1784_v42  ;;  %v649_v47 = vld [vmem:[#allocation11 + $0xe8] sm:$0xff]  ;;  %v1786_v48 = vld [vmem:[#allocation11 + $0x260] sm:$0xff]  ;;  %v650_v52 = vld [vmem:[#allocation11 + $0xf0] sm:$0xff] }
  0xfa   : > { %v525_v40 = vsel %vm522_vm0, %v523_v30, %v524_v33  ;;  %v7119_v41 = vsel %vm522_vm0, %v528_v34, %v529_v35  ;;  %v1787_v49 = vld [vmem:[#allocation11 + $0x268] sm:$0xff]  ;;  %v5681_v50 = vpack.c.bf16 %v649_v47, %v648_v46  ;;  %v651_v53 = vld [vmem:[#allocation11 + $0xf8] sm:$0xff]  ;;  %v1788_v54 = vld [vmem:[#allocation11 + $0x270] sm:$0xff] }
  0xfb   : > { %5668 = vmatpush3.bf16.msra.mxu1 %v5665_v16  ;;  %4919 = vmatprep.mubr.f32.mxu1 %v525_v40  ;;  %v5809_v51 = vpack.c.bf16 %v1787_v49, %v1786_v48  ;;  %v1789_v55 = vld [vmem:[#allocation11 + $0x278] sm:$0xff]  ;;  %v5685_v56 = vpack.c.bf16 %v651_v53, %v650_v52  ;;  %v7123_v57 = vld [vmem:[%s7066_s12 + $0x10] sm:$0x3]  ;;  %v459_v61 = vld [vmem:[#allocation11 + $0x8] sm:$0xff] }
  0xfc   : > { %5796 = vmatpush3.bf16.msra.mxu0 %v5793_v17  ;;  %5670 = vmatprep.subr.bf16.mxu1 %v5669_v22  ;;  %9116 = vst [vmem:[#allocation30_spill] sm:$0xff] %v7123_v57  ;;  %v5813_v58 = vpack.c.bf16 %v1789_v55, %v1788_v54  ;;  %v7126_v59 = vld [vmem:[%s7066_s12 + $0x28] sm:$0x3]  ;;  %v458_v60 = vld [vmem:[#allocation11] sm:$0xff]  ;;  %v526_v0 = vrot.slane %v7123_v57, 1  ;;  %v7133_v2 = vld [vmem:[%s7066_s12 + $0x38] sm:$0xff] }
  0xfd   : > { %5798 = vmatprep.subr.bf16.mxu0 %v5797_v25  ;;  %5239 = vmatprep.mubr.f32.mxu0 %v7119_v41  ;;  %v2055_v62 = vld [vmem:[#allocation11 + $0x280] sm:$0xff]  ;;  %v2056_v63 = vld [vmem:[#allocation11 + $0x288] sm:$0xff]  ;;  %v531_v3 = vrot.slane %v7126_v59, 1  ;;  %v5689_v4 = vpack.c.bf16 %v459_v61, %v458_v60  ;;  %v534_v9 = vrot.slane %v7133_v2, 1  ;;  %v2057_v11 = vld [vmem:[#allocation11 + $0x290] sm:$0xff] }
  0xfe   : > { %v7130_v1 = vld [vmem:[%s7066_s12 + $0x30] sm:$0xff]  ;;  %v5817_v5 = vpack.c.bf16 %v2056_v63, %v2055_v62  ;;  %v7137_v6 = vld [vmem:[%s7066_s12 + $0x40] sm:$0x3]  ;;  %v7140_v7 = vld [vmem:[%s7066_s12 + $0x48] sm:$0xff]  ;;  %v527_v13 = vsel %vm522_vm0, %v524_v33, %v526_v0 }
  0xff   : > { %5672 = vmatpush3.bf16.msra.mxu1 %v5669_v22  ;;  %v533_v8 = vrot.slane %v7130_v1, 1  ;;  %v7145_v10 = vld [vmem:[%s7066_s12 + $0x50] sm:$0xff]  ;;  %v2058_v12 = vld [vmem:[#allocation11 + $0x298] sm:$0xff]  ;;  %v532_v16 = vsel %vm522_vm0, %v529_v35, %v531_v3  ;;  %v536_v17 = vrot.slane %v7137_v6, 1  ;;  %v538_v18 = vrot.slane %v7140_v7, 1  ;;  %v7160_v22 = vld [vmem:[%s7066_s12 + $0x60] sm:$0xff] }
 0x100   : > { %5800 = vmatpush3.bf16.msra.mxu0 %v5797_v25  ;;  %5674 = vmatprep.subr.bf16.mxu1 %v5673_v36  ;;  %v460_v14 = vld [vmem:[#allocation11 + $0x10] sm:$0xff]  ;;  %v461_v15 = vld [vmem:[#allocation11 + $0x18] sm:$0xff]  ;;  %v539_v19 = vrot.slane %v7145_v10, 1  ;;  %v5821_v21 = vpack.c.bf16 %v2058_v12, %v2057_v11  ;;  %v2059_v26 = vld [vmem:[#allocation11 + $0x2a0] sm:$0xff] }
 0x101   : > { %5802 = vmatprep.subr.bf16.mxu0 %v5801_v37  ;;  %v7157_v20 = vld [vmem:[%s7066_s12 + $0x58] sm:$0x3]  ;;  %v7163_v23 = vsel %vm522_vm0, %v533_v8, %v534_v9  ;;  %v5693_v24 = vpack.c.bf16 %v461_v15, %v460_v14  ;;  %v7166_v25 = vld [vmem:[%s7066_s12 + $0x68] sm:$0xff]  ;;  %v462_v30 = vld [vmem:[#allocation11 + $0x20] sm:$0xff]  ;;  %v7170_v34 = vsel %vm522_vm0, %v534_v9, %v536_v17 }
 0x102   : > { %9117 = vst [vmem:[#allocation31_spill] sm:$0xff] %v7163_v23  ;;  %v2060_v27 = vld [vmem:[#allocation11 + $0x2a8] sm:$0xff]  ;;  %9118 = vst [vmem:[#allocation32_spill] sm:$0xff] %v7170_v34  ;;  %v541_v35 = vrot.slane %v7157_v20, 1  ;;  %v544_v38 = vrot.slane %v7166_v25, 1  ;;  %v7186_v42 = vld [vmem:[%s7066_s12 + $0x80] sm:$0xff] }
 0x103   : > { %5676 = vmatpush3.bf16.msra.mxu1 %v5673_v36  ;;  %v463_v33 = vld [vmem:[#allocation11 + $0x28] sm:$0xff]  ;;  %v7175_v36 = vsel %vm522_vm0, %v538_v18, %v539_v19  ;;  %v7180_v39 = vld [vmem:[%s7066_s12 + $0x70] sm:$0x3]  ;;  %v465_v47 = vld [vmem:[#allocation11 + $0x38] sm:$0xff]  ;;  %v549_v52 = vrot.slane %v7186_v42, 1 }
 0x104   : > { %5804 = vmatpush3.bf16.msra.mxu0 %v5801_v37  ;;  %5678 = vmatprep.subr.bf16.mxu1 %v5677_v44  ;;  %9119 = vst [vmem:[#allocation33_spill] sm:$0xff] %v7175_v36  ;;  %v543_v37 = vrot.slane %v7160_v22, 1  ;;  %v7183_v40 = vld [vmem:[%s7066_s12 + $0x78] sm:$0xff]  ;;  %v5697_v43 = vpack.c.bf16 %v463_v33, %v462_v30  ;;  %v464_v46 = vld [vmem:[#allocation11 + $0x30] sm:$0xff]  ;;  %v7192_v48 = vsel %vm522_vm0, %v539_v19, %v541_v35  ;;  %v546_v49 = vrot.slane %v7180_v39, 1  ;;  %v2063_v60 = vld [vmem:[#allocation11 + $0x2c0] sm:$0xff] }
 0x105   : > { %5806 = vmatprep.subr.bf16.mxu0 %v5805_v45  ;;  %9120 = vst [vmem:[#allocation34_spill] sm:$0xff] %v7192_v48  ;;  %v7201_v53 = vld [vmem:[%s7066_s12 + $0x88] sm:$0x3]  ;;  %v7204_v54 = vld [vmem:[%s7066_s12 + $0x90] sm:$0xff]  ;;  %v7223_v9 = vld [vmem:[%s7066_s12 + $0xa0] sm:$0x3] }
 0x106   : > { %v2064_v61 = vld [vmem:[#allocation11 + $0x2c8] sm:$0xff]  ;;  %v466_v62 = vld [vmem:[#allocation11 + $0x40] sm:$0xff]  ;;  %v7214_v0 = vsel %vm522_vm0, %v544_v38, %v546_v49  ;;  %v551_v3 = vrot.slane %v7201_v53, 1  ;;  %v2065_v15 = vld [vmem:[#allocation11 + $0x2d0] sm:$0xff] }
 0x107   : > { %5680 = vmatpush3.bf16.msra.mxu1 %v5677_v44  ;;  %v2061_v44 = vld [vmem:[#allocation11 + $0x2b0] sm:$0xff]  ;;  %v467_v63 = vld [vmem:[#allocation11 + $0x48] sm:$0xff]  ;;  %9122 = vst [vmem:[#allocation36_spill] sm:$0xff] %v7214_v0  ;;  %v5833_v12 = vpack.c.bf16 %v2064_v61, %v2063_v60  ;;  %v469_v18 = vld [vmem:[#allocation11 + $0x58] sm:$0xff] }
 0x108   : > { %5808 = vmatpush3.bf16.msra.mxu0 %v5805_v45  ;;  %5682 = vmatprep.subr.bf16.mxu1 %v5681_v50  ;;  %v2062_v45 = vld [vmem:[#allocation11 + $0x2b8] sm:$0xff]  ;;  %v5705_v14 = vpack.c.bf16 %v467_v63, %v466_v62  ;;  %v468_v17 = vld [vmem:[#allocation11 + $0x50] sm:$0xff]  ;;  %v7236_v19 = vsel %vm522_vm0, %v549_v52, %v551_v3 }
 0x109   : > { %5810 = vmatprep.subr.bf16.mxu0 %v5809_v51  ;;  %v5829_v55 = vpack.c.bf16 %v2062_v45, %v2061_v44  ;;  %v7226_v11 = vld [vmem:[%s7066_s12 + $0xa8] sm:$0xff]  ;;  %9124 = vst [vmem:[#allocation38_spill] sm:$0xff] %v7236_v19  ;;  %v7245_v30 = vld [vmem:[%s7066_s12 + $0xb8] sm:$0x3]  ;;  %v7248_v33 = vld [vmem:[%s7066_s12 + $0xc0] sm:$0xff] }
 0x10a   : > { %v470_v44 = vld [vmem:[#allocation11 + $0x60] sm:$0xff]  ;;  %v471_v45 = vld [vmem:[#allocation11 + $0x68] sm:$0xff]  ;;  %v2069_v63 = vld [vmem:[#allocation11 + $0x2f0] sm:$0xff] }
 0x10b   : > { %5684 = vmatpush3.bf16.msra.mxu1 %v5681_v50  ;;  %v7196_v50 = vsel %vm522_vm0, %v543_v37, %v544_v38  ;;  %v7252_v37 = vld [vmem:[%s7066_s12 + $0xc8] sm:$0xff]  ;;  %v5709_v38 = vpack.c.bf16 %v469_v18, %v468_v17  ;;  %v7274_v61 = vld [vmem:[%s7066_s12 + $0xe0] sm:$0xff]  ;;  %v5713_v62 = vpack.c.bf16 %v471_v45, %v470_v44  ;;  %v7449_v57 = vld [vmem:[%s7066_s12 + $0x190] sm:$0x3] }
 0x10c   : > { %5812 = vmatpush3.bf16.msra.mxu0 %v5809_v51  ;;  %5686 = vmatprep.subr.bf16.mxu1 %v5685_v56  ;;  %9121 = vst [vmem:[#allocation35_spill] sm:$0xff] %v7196_v50  ;;  %v548_v51 = vrot.slane %v7183_v40, 1  ;;  %v2070_v3 = vld [vmem:[#allocation11 + $0x2f8] sm:$0xff]  ;;  %v569_v17 = vrot.slane %v7274_v61, 1  ;;  %v1216_v44 = vld [vmem:[#allocation11 + $0x100] sm:$0xff]  ;;  %v1217_v45 = vld [vmem:[#allocation11 + $0x108] sm:$0xff] }
 0x10d   : > { %5814 = vmatprep.subr.bf16.mxu0 %v5813_v58  ;;  %v7289_v18 = vld [vmem:[%s7066_s12 + $0xe8] sm:$0x3]  ;;  %9147 = vst [vmem:[#allocation61_spill] sm:$0xff] %v7449_v57 }
 0x10f   : > { %5688 = vmatpush3.bf16.msra.mxu1 %v5685_v56  ;;  %v7208_v56 = vld [vmem:[%s7066_s12 + $0x98] sm:$0xff] }
 0x110   : > { %5816 = vmatpush3.bf16.msra.mxu0 %v5813_v58  ;;  %5690 = vmatprep.subr.bf16.mxu1 %v5689_v4  ;;  %v5701_v58 = vpack.c.bf16 %v465_v47, %v464_v46  ;;  %v554_v8 = vrot.slane %v7208_v56, 1  ;;  %v561_v47 = vrot.slane %v7245_v30, 1 }
 0x111   : > { %5818 = vmatprep.subr.bf16.mxu0 %v5817_v5 }
 0x112   : > { %4920 = vmatmul.mubr.f32.vlgmr.msra.gmra.mrb[0].mxu1 %v527_v13  ;;  %v7230_v13 = vld [vmem:[%s7066_s12 + $0xb0] sm:$0xff] }
 0x113   : > { %5240 = vmatmul.mubr.f32.vlgmr.msra.gmra.mrb[0].mxu0 %v532_v16  ;;  %5692 = vmatpush3.bf16.msra.mxu1 %v5689_v4  ;;  %v7218_v4 = vsel %vm522_vm0, %v548_v51, %v549_v52  ;;  %v563_v51 = vrot.slane %v7248_v33, 1  ;;  %v564_v52 = vrot.slane %v7252_v37, 1 }
 0x114   : > { %5820 = vmatpush3.bf16.msra.mxu0 %v5817_v5  ;;  %4922 = vmatprep.mubr.f32.mxu1 %v7119_v41  ;;  %v5825_v41 = vpack.c.bf16 %v2060_v27, %v2059_v26  ;;  %9123 = vst [vmem:[#allocation37_spill] sm:$0xff] %v7218_v4  ;;  %v553_v5 = vrot.slane %v7204_v54, 1  ;;  %v558_v26 = vrot.slane %v7226_v11, 1  ;;  %v559_v27 = vrot.slane %v7230_v13, 1 }
 0x115   : > { %5242 = vmatprep.mubr.f32.mxu0 %v7163_v23  ;;  %5822 = vmatprep.subr.bf16.mxu0 %v5821_v21 }
 0x116   : > { %4923 = vmatmul.mubr.f32.gmra.mrb[2].mxu1 %v532_v16  ;;  %5694 = vmatprep.subr.bf16.mxu1 %v5693_v24  ;;  %v2066_v16 = vld [vmem:[#allocation11 + $0x2d8] sm:$0xff]  ;;  %v7262_v49 = vsel %vm522_vm0, %v558_v26, %v559_v27  ;;  %v5845_v26 = vpack.c.bf16 %v2070_v3, %v2069_v63 }
 0x117   : > { %5243 = vmatmul.mubr.f32.gmra.mrb[2].mxu0 %v7170_v34  ;;  %4925 = vmatprep.mubr.f32.mxu1 %v7163_v23  ;;  %v5837_v35 = vpack.c.bf16 %v2066_v16, %v2065_v15  ;;  %9127 = vst [vmem:[#allocation41_spill] sm:$0xff] %v7262_v49  ;;  %v7284_v15 = vsel %vm522_vm0, %v563_v51, %v564_v52 }
 0x118   : > { %5245 = vmatprep.mubr.f32.mxu0 %v7175_v36  ;;  %5824 = vmatpush3.bf16.msra.mxu0 %v5821_v21  ;;  %v556_v21 = vrot.slane %v7223_v9, 1  ;;  %9129 = vst [vmem:[#allocation43_spill] sm:$0xff] %v7284_v15 }
 0x119   : > { %5696 = vmatpush3.bf16.msra.mxu1 %v5693_v24  ;;  %5826 = vmatprep.subr.bf16.mxu0 %v5825_v41  ;;  %v7240_v24 = vsel %vm522_vm0, %v553_v5, %v554_v8  ;;  %v472_v5 = vld [vmem:[#allocation11 + $0x70] sm:$0xff] }
 0x11a   : > { %4926 = vmatmul.mubr.f32.gmra.mrb[4].mxu1 %v7170_v34  ;;  %5698 = vmatprep.subr.bf16.mxu1 %v5697_v43  ;;  %9125 = vst [vmem:[#allocation39_spill] sm:$0xff] %v7240_v24  ;;  %v7258_v46 = vsel %vm522_vm0, %v554_v8, %v556_v21  ;;  %v473_v8 = vld [vmem:[#allocation11 + $0x78] sm:$0xff]  ;;  %v7292_v21 = vld [vmem:[%s7066_s12 + $0xf0] sm:$0xff] }
 0x11b   : > { %5246 = vmatmul.mubr.f32.gmra.mrb[4].mxu0 %v7192_v48  ;;  %4928 = vmatprep.mubr.f32.mxu1 %v7175_v36  ;;  %9126 = vst [vmem:[#allocation40_spill] sm:$0xff] %v7258_v46  ;;  %v573_v63 = vrot.slane %v7292_v21, 1  ;;  %v7427_v36 = vld [vmem:[%s7066_s12 + $0x178] sm:$0x3]  ;;  %v7434_v34 = vld [vmem:[%s7066_s12 + $0x188] sm:$0xff] }
 0x11c   : > { %5248 = vmatprep.mubr.f32.mxu0 %v7196_v50  ;;  %5828 = vmatpush3.bf16.msra.mxu0 %v5825_v41  ;;  %v2067_v41 = vld [vmem:[#allocation11 + $0x2e0] sm:$0xff]  ;;  %9142 = vst [vmem:[#allocation56_spill] sm:$0xff] %v7427_v36  ;;  %9144 = vst [vmem:[#allocation58_spill] sm:$0xff] %v7434_v34  ;;  %v1767_v23 = vrot.slane %v7434_v34, 1  ;;  %v1109_v34 = vrot.slane %v7108_v32, 2 }
 0x11d   : > { %5700 = vmatpush3.bf16.msra.mxu1 %v5697_v43  ;;  %5830 = vmatprep.subr.bf16.mxu0 %v5829_v55  ;;  %v2068_v43 = vld [vmem:[#allocation11 + $0x2e8] sm:$0xff] }
 0x11e   : > { %4929 = vmatmul.mubr.f32.gmra.mrb[6].mxu1 %v7192_v48  ;;  %5702 = vmatprep.subr.bf16.mxu1 %v5701_v58  ;;  %v5841_v60 = vpack.c.bf16 %v2068_v43, %v2067_v41  ;;  %v2329_v41 = vld [vmem:[#allocation11 + $0x300] sm:$0xff]  ;;  %v2330_v43 = vld [vmem:[#allocation11 + $0x308] sm:$0xff] }
 0x11f   : > { %5249 = vmatmul.mubr.f32.gmra.mrb[6].mxu0 %v7214_v0  ;;  %4931 = vmatprep.mubr.f32.mxu1 %v7196_v50 }
 0x120   : > { %5251 = vmatprep.mubr.f32.mxu0 %v7218_v4  ;;  %5832 = vmatpush3.bf16.msra.mxu0 %v5829_v55  ;;  %v7267_v55 = vld [vmem:[%s7066_s12 + $0xd0] sm:$0x3] }
 0x121   : > { %5704 = vmatpush3.bf16.msra.mxu1 %v5701_v58  ;;  %5834 = vmatprep.subr.bf16.mxu0 %v5833_v12  ;;  %v7270_v58 = vld [vmem:[%s7066_s12 + $0xd8] sm:$0xff] }
 0x122   : > { %4932 = vmatmul.mubr.f32.gmra.mrb[8].mxu1 %v7214_v0  ;;  %5706 = vmatprep.subr.bf16.mxu1 %v5705_v14  ;;  %v568_v16 = vrot.slane %v7270_v58, 1  ;;  %v7405_v0 = vld [vmem:[%s7066_s12 + $0x160] sm:$0x3] }
 0x123   : > { %5252 = vmatmul.mubr.f32.gmra.mrb[8].mxu0 %v7236_v19  ;;  %4934 = vmatprep.mubr.f32.mxu1 %v7218_v4 }
 0x124   : > { %5254 = vmatprep.mubr.f32.mxu0 %v7240_v24  ;;  %5836 = vmatpush3.bf16.msra.mxu0 %v5833_v12  ;;  %v7280_v12 = vsel %vm522_vm0, %v559_v27, %v561_v47  ;;  %v7296_v27 = vld [vmem:[%s7066_s12 + $0xf8] sm:$0xff]  ;;  %v571_v47 = vrot.slane %v7289_v18, 1  ;;  %v7306_v51 = vsel %vm522_vm0, %v568_v16, %v569_v17 }
 0x125   : > { %5708 = vmatpush3.bf16.msra.mxu1 %v5705_v14  ;;  %5838 = vmatprep.subr.bf16.mxu0 %v5837_v35  ;;  %9128 = vst [vmem:[#allocation42_spill] sm:$0xff] %v7280_v12  ;;  %v566_v14 = vrot.slane %v7267_v55, 1  ;;  %9131 = vst [vmem:[#allocation45_spill] sm:$0xff] %v7306_v51  ;;  %v574_v3 = vrot.slane %v7296_v27, 1 }
 0x126   : > { %4935 = vmatmul.mubr.f32.gmra.mrb[10].mxu1 %v7236_v19  ;;  %5710 = vmatprep.subr.bf16.mxu1 %v5709_v38 }
 0x127   : > { %5255 = vmatmul.mubr.f32.gmra.mrb[10].mxu0 %v7258_v46  ;;  %4937 = vmatprep.mubr.f32.mxu1 %v7240_v24  ;;  %v7383_v24 = vld [vmem:[%s7066_s12 + $0x148] sm:$0x3] }
 0x128   : > { %5257 = vmatprep.mubr.f32.mxu0 %v7262_v49  ;;  %5840 = vmatpush3.bf16.msra.mxu0 %v5837_v35  ;;  %v5717_v35 = vpack.c.bf16 %v473_v8, %v472_v5  ;;  %v7311_v5 = vld [vmem:[%s7066_s12 + $0x100] sm:$0x3]  ;;  %v7313_v8 = vpack.c.bf16 %v2330_v43, %v2329_v41  ;;  %v7332_v41 = vsel %vm522_vm0, %v573_v63, %v574_v3 }
 0x129   : > { %5712 = vmatpush3.bf16.msra.mxu1 %v5709_v38  ;;  %5842 = vmatprep.subr.bf16.mxu0 %v5841_v60  ;;  %v7302_v38 = vsel %vm522_vm0, %v564_v52, %v566_v14  ;;  %v7317_v52 = vld [vmem:[%s7066_s12 + $0x108] sm:$0xff]  ;;  %v7320_v14 = vld [vmem:[%s7066_s12 + $0x110] sm:$0xff]  ;;  %v576_v16 = vrot.slane %v7311_v5, 1  ;;  %9133 = vst [vmem:[#allocation47_spill] sm:$0xff] %v7332_v41 }
 0x12a   : > { %4938 = vmatmul.mubr.f32.gmra.mrb[12].mxu1 %v7258_v46  ;;  %5714 = vmatprep.subr.bf16.mxu1 %v5713_v62  ;;  %9130 = vst [vmem:[#allocation44_spill] sm:$0xff] %v7302_v38  ;;  %v578_v43 = vrot.slane %v7317_v52, 1 }
 0x12b   : > { %5258 = vmatmul.mubr.f32.gmra.mrb[12].mxu0 %v7280_v12  ;;  %4940 = vmatprep.mubr.f32.mxu1 %v7262_v49 }
 0x12c   : > { %5260 = vmatprep.mubr.f32.mxu0 %v7284_v15  ;;  %5844 = vmatpush3.bf16.msra.mxu0 %v5841_v60  ;;  %v7322_v60 = vpack.c.bf16 %v1217_v45, %v1216_v44  ;;  %v579_v44 = vrot.slane %v7320_v14, 1  ;;  %v7337_v45 = vld [vmem:[%s7066_s12 + $0x118] sm:$0x3] }
 0x12d   : > { %5716 = vmatpush3.bf16.msra.mxu1 %v5713_v62  ;;  %5846 = vmatprep.subr.bf16.mxu0 %v5845_v26  ;;  %v7328_v62 = vsel %vm522_vm0, %v569_v17, %v571_v47  ;;  %v7342_v17 = vld [vmem:[%s7066_s12 + $0x120] sm:$0xff]  ;;  %v581_v47 = vrot.slane %v7337_v45, 1 }
 0x12e   : > { %4941 = vmatmul.mubr.f32.gmra.mrb[14].mxu1 %v7280_v12  ;;  %5718 = vmatprep.subr.bf16.mxu1 %v5717_v35  ;;  %9132 = vst [vmem:[#allocation46_spill] sm:$0xff] %v7328_v62  ;;  %v7356_v63 = vsel %vm522_vm0, %v578_v43, %v579_v44  ;;  %v7361_v12 = vld [vmem:[%s7066_s12 + $0x130] sm:$0x3] }
 0x12f   : > { %5261 = vmatmul.mubr.f32.gmra.mrb[14].mxu0 %v7302_v38  ;;  %4943 = vmatprep.mubr.f32.mxu1 %v7284_v15  ;;  %9135 = vst [vmem:[#allocation49_spill] sm:$0xff] %v7356_v63  ;;  %v586_v43 = vrot.slane %v7361_v12, 1 }
 0x130   : > { %5263 = vmatprep.mubr.f32.mxu0 %v7306_v51  ;;  %5848 = vmatpush3.bf16.msra.mxu0 %v5845_v26  ;;  %v7345_v26 = vld [vmem:[%s7066_s12 + $0x128] sm:$0xff] }
 0x131   : > { %5720 = vmatpush3.bf16.msra.mxu1 %v5717_v35  ;;  %5850 = vmatprep.subr.bf16.mxu0 %v7313_v8  ;;  %v7352_v35 = vsel %vm522_vm0, %v574_v3, %v576_v16  ;;  %v584_v15 = vrot.slane %v7345_v26, 1  ;;  %v7368_v3 = vld [vmem:[%s7066_s12 + $0x140] sm:$0xff]  ;;  %v7374_v16 = vsel %vm522_vm0, %v579_v44, %v581_v47  ;;  %v7390_v44 = vld [vmem:[%s7066_s12 + $0x158] sm:$0xff]  ;;  %v591_v47 = vrot.slane %v7383_v24, 1 }
 0x132   : > { %4944 = vmatmul.mubr.f32.gmra.mrb[16].mxu1 %v7302_v38  ;;  %5722 = vmatprep.subr.bf16.mxu1 %v7322_v60  ;;  %9134 = vst [vmem:[#allocation48_spill] sm:$0xff] %v7352_v35  ;;  %v583_v38 = vrot.slane %v7342_v17, 1  ;;  %9136 = vst [vmem:[#allocation50_spill] sm:$0xff] %v7374_v16  ;;  %v589_v46 = vrot.slane %v7368_v3, 1  ;;  %v594_v4 = vrot.slane %v7390_v44, 1 }
 0x133   : > { %5264 = vmatmul.mubr.f32.gmra.mrb[16].mxu0 %v7328_v62  ;;  %4946 = vmatprep.mubr.f32.mxu1 %v7306_v51  ;;  %v7365_v51 = vld [vmem:[%s7066_s12 + $0x138] sm:$0xff] }
 0x134   : > { %5266 = vmatprep.mubr.f32.mxu0 %v7332_v41  ;;  %v7378_v49 = vsel %vm522_vm0, %v583_v38, %v584_v15  ;;  %v7396_v38 = vsel %vm522_vm0, %v584_v15, %v586_v43  ;;  %v7412_v15 = vld [vmem:[%s7066_s12 + $0x170] sm:$0xff]  ;;  %v596_v43 = vrot.slane %v7405_v0, 1 }
 0x135   : > { %9137 = vst [vmem:[#allocation51_spill] sm:$0xff] %v7378_v49  ;;  %9138 = vst [vmem:[#allocation52_spill] sm:$0xff] %v7396_v38  ;;  %v599_v48 = vrot.slane %v7412_v15, 1 }
 0x136   : > { %4947 = vmatmul.mubr.f32.gmra.mrb[18].mxu1 %v7328_v62  ;;  %v588_v62 = vrot.slane %v7365_v51, 1 }
 0x137   : > { %5267 = vmatmul.mubr.f32.gmra.mrb[18].mxu0 %v7352_v35  ;;  %4949 = vmatprep.mubr.f32.mxu1 %v7332_v41  ;;  %v7387_v41 = vld [vmem:[%s7066_s12 + $0x150] sm:$0xff] }
 0x138   : > { %5269 = vmatprep.mubr.f32.mxu0 %v7356_v63  ;;  %v7400_v19 = vsel %vm522_vm0, %v588_v62, %v589_v46  ;;  %v7418_v62 = vsel %vm522_vm0, %v589_v46, %v591_v47  ;;  %v7440_v46 = vsel %vm522_vm0, %v594_v4, %v596_v43 }
 0x139   : > { %9139 = vst [vmem:[#allocation53_spill] sm:$0xff] %v7400_v19  ;;  %9140 = vst [vmem:[#allocation54_spill] sm:$0xff] %v7418_v62 }
 0x13a   : > { %4950 = vmatmul.mubr.f32.gmra.mrb[20].mxu1 %v7352_v35  ;;  %v593_v35 = vrot.slane %v7387_v41, 1  ;;  %9145 = vst [vmem:[#allocation59_spill] sm:$0xff] %v7440_v46 }
 0x13b   : > { %5270 = vmatmul.mubr.f32.gmra.mrb[20].mxu0 %v7374_v16  ;;  %4952 = vmatprep.mubr.f32.mxu1 %v7356_v63  ;;  %v7409_v63 = vld [vmem:[%s7066_s12 + $0x168] sm:$0xff] }
 0x13c   : > { %5272 = vmatprep.mubr.f32.mxu0 %v7378_v49  ;;  %v7422_v50 = vsel %vm522_vm0, %v593_v35, %v594_v4  ;;  %v601_v35 = vrot.slane %v7427_v36, 1  ;;  %v2334_v36 = vld [vmem:[#allocation11 + $0x328] sm:$0xff] }
 0x13d   : > { %9141 = vst [vmem:[#allocation55_spill] sm:$0xff] %v7422_v50 }
 0x13e   : > { %4953 = vmatmul.mubr.f32.gmra.mrb[22].mxu1 %v7374_v16  ;;  %v598_v16 = vrot.slane %v7409_v63, 1  ;;  %v7456_v4 = vsel %vm522_vm0, %v599_v48, %v601_v35  ;;  %v1113_v35 = vrot.slane %v7130_v1, 2 }
 0x13f   : > { %5273 = vmatmul.mubr.f32.gmra.mrb[22].mxu0 %v7396_v38  ;;  %4955 = vmatprep.mubr.f32.mxu1 %v7378_v49  ;;  %v7431_v49 = vld [vmem:[%s7066_s12 + $0x180] sm:$0xff]  ;;  %9148 = vst [vmem:[#allocation62_spill] sm:$0xff] %v7456_v4 }
 0x140   : > { %5275 = vmatprep.mubr.f32.mxu0 %v7400_v19  ;;  %9143 = vst [vmem:[#allocation57_spill] sm:$0xff] %v7431_v49  ;;  %v7444_v47 = vsel %vm522_vm0, %v598_v16, %v599_v48  ;;  %v1769_v16 = vrot.slane %v7449_v57, 1  ;;  %v2332_v57 = vld [vmem:[#allocation11 + $0x318] sm:$0xff] }
 0x141   : > { %9146 = vst [vmem:[#allocation60_spill] sm:$0xff] %v7444_v47 }
 0x142   : > { %4956 = vmatmul.mubr.f32.gmra.mrb[24].mxu1 %v7396_v38  ;;  %v1766_v38 = vrot.slane %v7431_v49, 1  ;;  %v7470_v48 = vsel %vm522_vm0, %v1767_v23, %v1769_v16  ;;  %v1118_v16 = vrot.slane %v7140_v7, 2  ;;  %v2333_v49 = vld [vmem:[#allocation11 + $0x320] sm:$0xff] }
 0x143   : > { %5276 = vmatmul.mubr.f32.gmra.mrb[24].mxu0 %v7418_v62  ;;  %4958 = vmatprep.mubr.f32.mxu1 %v7400_v19  ;;  %v1108_v19 = vrot.slane %v7105_v31, 2  ;;  %9150 = vst [vmem:[#allocation64_spill] sm:$0xff] %v7470_v48 }
 0x144   : > { %5278 = vmatprep.mubr.f32.mxu0 %v7422_v50  ;;  %v7460_v43 = vsel %vm522_vm0, %v1766_v38, %v1767_v23 }
 0x145   : > { %9149 = vst [vmem:[#allocation63_spill] sm:$0xff] %v7460_v43  ;;  %v7473_v38 = vsel %vm1102_vm1, %v1108_v19, %v1109_v34  ;;  %v1116_v19 = vrot.slane %v7137_v6, 2 }
 0x146   : > { %4959 = vmatmul.mubr.f32.gmra.mrb[26].mxu1 %v7418_v62  ;;  %v2331_v62 = vld [vmem:[#allocation11 + $0x310] sm:$0xff] }
 0x147   : > { %5279 = vmatmul.mubr.f32.gmra.mrb[26].mxu0 %v7440_v46  ;;  %4961 = vmatprep.mubr.f32.mxu1 %v7422_v50  ;;  %v1111_v50 = vrot.slane %v7126_v59, 2  ;;  %v1218_v59 = vld [vmem:[#allocation11 + $0x110] sm:$0xff] }
 0x148   : > { %5281 = vmatprep.mubr.f32.mxu0 %v7444_v47 }
 0x149   : > { %v7482_v23 = vsel %vm1102_vm1, %v1109_v34, %v1111_v50  ;;  %v1220_v34 = vld [vmem:[#allocation11 + $0x120] sm:$0xff]  ;;  %v1221_v50 = vld [vmem:[#allocation11 + $0x128] sm:$0xff] }
 0x14a   : > { %4962 = vmatmul.mubr.f32.gmra.mrb[28].mxu1 %v7440_v46  ;;  %v1114_v46 = vrot.slane %v7133_v2, 2 }
 0x14b   : > { %5282 = vmatmul.mubr.f32.gmra.mrb[28].mxu0 %v7456_v4  ;;  %4964 = vmatprep.mubr.f32.mxu1 %v7444_v47  ;;  %v5853_v47 = vpack.c.bf16 %v2332_v57, %v2331_v62  ;;  %v1123_v62 = vrot.slane %v7160_v22, 2 }
 0x14c   : > { %5284 = vmatprep.mubr.f32.mxu0 %v7460_v43  ;;  %v1219_v43 = vld [vmem:[#allocation11 + $0x118] sm:$0xff]  ;;  %v7496_v57 = vsel %vm1102_vm1, %v1114_v46, %v1116_v19  ;;  %v1129_v19 = vrot.slane %v7186_v42, 2 }
 0x14e   : > { %4965 = vmatmul.mubr.f32.gmra.mrb[30].mxu1 %v7456_v4  ;;  %v1119_v4 = vrot.slane %v7145_v10, 2 }
 0x14f   : > { %5285 = vmatmul.mubr.f32.gmra.mrb[30].mxu0 %v7470_v48  ;;  %4999 = vmatprep.mubr.f32.mxu1 %v7098_v28  ;;  %v7489_v48 = vsel %vm1102_vm1, %v1113_v35, %v1114_v46  ;;  %v5725_v28 = vpack.c.bf16 %v1219_v43, %v1218_v59  ;;  %v5857_v43 = vpack.c.bf16 %v2334_v36, %v2333_v49  ;;  %v2336_v46 = vld [vmem:[#allocation11 + $0x338] sm:$0xff]  ;;  %v1126_v36 = vrot.slane %v7180_v39, 2  ;;  %v1224_v39 = vld [vmem:[#allocation11 + $0x140] sm:$0xff] }
 0x150   : > { %5319 = vmatprep.mubr.f32.mxu0 %v7473_v38  ;;  %v7501_v6 = vsel %vm1102_vm1, %v1118_v16, %v1119_v4  ;;  %v1223_v35 = vld [vmem:[#allocation11 + $0x138] sm:$0xff]  ;;  %v1128_v49 = vrot.slane %v7183_v40, 2 }
 0x152   : > { %5000 = vmatmul.mubr.f32.vlgmr.msra.gmra.mrb[0].mxu1 %v7101_v29  ;;  %v1121_v29 = vrot.slane %v7157_v20, 2  ;;  %v1222_v20 = vld [vmem:[#allocation11 + $0x130] sm:$0xff] }
 0x153   : > { %5320 = vmatmul.mubr.f32.vlgmr.msra.gmra.mrb[0].mxu0 %v7482_v23  ;;  %5724 = vmatpush3.bf16.msra.mxu1 %v7322_v60  ;;  %v1124_v60 = vrot.slane %v7166_v25, 2 }
 0x154   : > { %5852 = vmatpush3.bf16.msra.mxu0 %v7313_v8  ;;  %5002 = vmatprep.mubr.f32.mxu1 %v7105_v31  ;;  %v5729_v31 = vpack.c.bf16 %v1221_v50, %v1220_v34  ;;  %v2335_v8 = vld [vmem:[#allocation11 + $0x330] sm:$0xff]  ;;  %v7510_v59 = vsel %vm1102_vm1, %v1119_v4, %v1121_v29  ;;  %v5733_v34 = vpack.c.bf16 %v1223_v35, %v1222_v20  ;;  %v2337_v50 = vld [vmem:[#allocation11 + $0x340] sm:$0xff]  ;;  %v2338_v4 = vld [vmem:[#allocation11 + $0x348] sm:$0xff]  ;;  %v1131_v29 = vrot.slane %v7201_v53, 2 }
 0x155   : > { %5322 = vmatprep.mubr.f32.mxu0 %v7489_v48  ;;  %5854 = vmatprep.subr.bf16.mxu0 %v5853_v47  ;;  %v5861_v16 = vpack.c.bf16 %v2336_v46, %v2335_v8  ;;  %v1134_v8 = vrot.slane %v7208_v56, 2  ;;  %v2339_v20 = vld [vmem:[#allocation11 + $0x350] sm:$0xff]  ;;  %v1136_v35 = vrot.slane %v7223_v9, 2  ;;  %v1228_v9 = vld [vmem:[#allocation11 + $0x160] sm:$0xff] }
 0x156   : > { %5003 = vmatmul.mubr.f32.gmra.mrb[2].mxu1 %v7108_v32  ;;  %5726 = vmatprep.subr.bf16.mxu1 %v5725_v28  ;;  %v7514_v32 = vsel %vm1102_vm1, %v1123_v62, %v1124_v60  ;;  %v1133_v62 = vrot.slane %v7204_v54, 2  ;;  %v1226_v53 = vld [vmem:[#allocation11 + $0x150] sm:$0xff] }
 0x157   : > { %5323 = vmatmul.mubr.f32.gmra.mrb[2].mxu0 %v7496_v57  ;;  %5005 = vmatprep.mubr.f32.mxu1 %v7130_v1 }
 0x158   : > { %5325 = vmatprep.mubr.f32.mxu0 %v7501_v6  ;;  %5856 = vmatpush3.bf16.msra.mxu0 %v5853_v47  ;;  %v1225_v47 = vld [vmem:[#allocation11 + $0x148] sm:$0xff] }
 0x159   : > { %5728 = vmatpush3.bf16.msra.mxu1 %v5725_v28  ;;  %5858 = vmatprep.subr.bf16.mxu0 %v5857_v43  ;;  %v7523_v28 = vsel %vm1102_vm1, %v1124_v60, %v1126_v36  ;;  %v5737_v46 = vpack.c.bf16 %v1225_v47, %v1224_v39  ;;  %v2340_v60 = vld [vmem:[#allocation11 + $0x358] sm:$0xff]  ;;  %v1138_v36 = vrot.slane %v7226_v11, 2  ;;  %v2341_v39 = vld [vmem:[#allocation11 + $0x360] sm:$0xff]  ;;  %v7549_v47 = vsel %vm1102_vm1, %v1134_v8, %v1136_v35 }
 0x15a   : > { %5006 = vmatmul.mubr.f32.gmra.mrb[4].mxu1 %v7133_v2  ;;  %5730 = vmatprep.subr.bf16.mxu1 %v5729_v31  ;;  %v7527_v2 = vsel %vm1102_vm1, %v1128_v49, %v1129_v19  ;;  %v1139_v49 = vrot.slane %v7230_v13, 2 }
 0x15b   : > { %5326 = vmatmul.mubr.f32.gmra.mrb[4].mxu0 %v7510_v59  ;;  %5008 = vmatprep.mubr.f32.mxu1 %v7140_v7  ;;  %v5865_v7 = vpack.c.bf16 %v2338_v4, %v2337_v50  ;;  %v5869_v50 = vpack.c.bf16 %v2340_v60, %v2339_v20  ;;  %v1144_v20 = vrot.slane %v7252_v37, 2 }
 0x15c   : > { %5328 = vmatprep.mubr.f32.mxu0 %v7514_v32  ;;  %5860 = vmatpush3.bf16.msra.mxu0 %v5857_v43  ;;  %v1227_v43 = vld [vmem:[#allocation11 + $0x158] sm:$0xff] }
 0x15d   : > { %5732 = vmatpush3.bf16.msra.mxu1 %v5729_v31  ;;  %5862 = vmatprep.subr.bf16.mxu0 %v5861_v16  ;;  %v7536_v31 = vsel %vm1102_vm1, %v1129_v19, %v1131_v29  ;;  %v5741_v4 = vpack.c.bf16 %v1227_v43, %v1226_v53  ;;  %v2342_v19 = vld [vmem:[#allocation11 + $0x368] sm:$0xff]  ;;  %v7553_v29 = vsel %vm1102_vm1, %v1138_v36, %v1139_v49  ;;  %v2343_v43 = vld [vmem:[#allocation11 + $0x370] sm:$0xff] }
 0x15e   : > { %5009 = vmatmul.mubr.f32.gmra.mrb[6].mxu1 %v7145_v10  ;;  %5734 = vmatprep.subr.bf16.mxu1 %v5733_v34  ;;  %v7540_v10 = vsel %vm1102_vm1, %v1133_v62, %v1134_v8  ;;  %9151 = vst [vmem:[#allocation65_spill] sm:$0xff] %v7553_v29  ;;  %v1143_v62 = vrot.slane %v7248_v33, 2  ;;  %v5873_v60 = vpack.c.bf16 %v2342_v19, %v2341_v39  ;;  %v2344_v8 = vld [vmem:[#allocation11 + $0x378] sm:$0xff]  ;;  %v1148_v39 = vrot.slane %v7270_v58, 2 }
 0x15f   : > { %5329 = vmatmul.mubr.f32.gmra.mrb[6].mxu0 %v7523_v28  ;;  %5011 = vmatprep.mubr.f32.mxu1 %v7160_v22  ;;  %v1149_v19 = vrot.slane %v7274_v61, 2 }
 0x160   : > { %5331 = vmatprep.mubr.f32.mxu0 %v7527_v2  ;;  %5864 = vmatpush3.bf16.msra.mxu0 %v5861_v16  ;;  %v1229_v16 = vld [vmem:[#allocation11 + $0x168] sm:$0xff]  ;;  %v7566_v36 = vsel %vm1102_vm1, %v1143_v62, %v1144_v20 }
 0x161   : > { %5736 = vmatpush3.bf16.msra.mxu1 %v5733_v34  ;;  %5866 = vmatprep.subr.bf16.mxu0 %v5865_v7  ;;  %v1141_v34 = vrot.slane %v7245_v30, 2  ;;  %v5745_v53 = vpack.c.bf16 %v1229_v16, %v1228_v9  ;;  %v1230_v30 = vld [vmem:[#allocation11 + $0x170] sm:$0xff]  ;;  %v5877_v9 = vpack.c.bf16 %v2344_v8, %v2343_v43  ;;  %v7579_v62 = vsel %vm1102_vm1, %v1148_v39, %v1149_v19 }
 0x162   : > { %5012 = vmatmul.mubr.f32.gmra.mrb[8].mxu1 %v7166_v25  ;;  %5738 = vmatprep.subr.bf16.mxu1 %v5737_v46  ;;  %v1153_v43 = vrot.slane %v7292_v21, 2  ;;  %v1154_v8 = vrot.slane %v7296_v27, 2 }
 0x163   : > { %5332 = vmatmul.mubr.f32.gmra.mrb[8].mxu0 %v7536_v31  ;;  %5014 = vmatprep.mubr.f32.mxu1 %v7183_v40  ;;  %v7562_v35 = vsel %vm1102_vm1, %v1139_v49, %v1141_v34  ;;  %v2614_v49 = vld [vmem:[#allocation11 + $0x388] sm:$0xff] }
 0x164   : > { %5334 = vmatprep.mubr.f32.mxu0 %v7540_v10  ;;  %5868 = vmatpush3.bf16.msra.mxu0 %v5865_v7  ;;  %v1231_v7 = vld [vmem:[#allocation11 + $0x178] sm:$0xff] }
 0x165   : > { %5740 = vmatpush3.bf16.msra.mxu1 %v5737_v46  ;;  %5870 = vmatprep.subr.bf16.mxu0 %v5869_v50  ;;  %v1146_v46 = vrot.slane %v7267_v55, 2  ;;  %v5749_v16 = vpack.c.bf16 %v1231_v7, %v1230_v30  ;;  %v1490_v55 = vld [vmem:[#allocation11 + $0x180] sm:$0xff] }
 0x166   : > { %5015 = vmatmul.mubr.f32.gmra.mrb[10].mxu1 %v7186_v42  ;;  %5742 = vmatprep.subr.bf16.mxu1 %v5741_v4 }
 0x167   : > { %5335 = vmatmul.mubr.f32.gmra.mrb[10].mxu0 %v7549_v47  ;;  %5017 = vmatprep.mubr.f32.mxu1 %v7204_v54  ;;  %v7575_v34 = vsel %vm1102_vm1, %v1144_v20, %v1146_v46  ;;  %v1156_v20 = vrot.slane %v7311_v5, 2  ;;  %v1161_v46 = vrot.slane %v7337_v45, 2  ;;  %v1166_v45 = vrot.slane %v7361_v12, 2 }
 0x168   : > { %5337 = vmatprep.mubr.f32.mxu0 %v7553_v29  ;;  %5872 = vmatpush3.bf16.msra.mxu0 %v5869_v50  ;;  %v2613_v29 = vld [vmem:[#allocation11 + $0x380] sm:$0xff]  ;;  %v1491_v50 = vld [vmem:[#allocation11 + $0x188] sm:$0xff]  ;;  %v1171_v12 = vrot.slane %v7383_v24, 2  ;;  %v1176_v24 = vrot.slane %v7405_v0, 2  ;;  %v9157_v0 = vld [vmem:[#allocation56_spill] sm:$0xff] }
 0x169   : > { %5744 = vmatpush3.bf16.msra.mxu1 %v5741_v4  ;;  %5874 = vmatprep.subr.bf16.mxu0 %v5873_v60  ;;  %v1151_v4 = vrot.slane %v7289_v18, 2  ;;  %v7583_v30 = vpack.c.bf16 %v2614_v49, %v2613_v29  ;;  %v7586_v7 = vpack.c.bf16 %v1491_v50, %v1490_v55  ;;  %v7596_v29 = vsel %vm1102_vm1, %v1153_v43, %v1154_v8 }
 0x16a   : > { %5018 = vmatmul.mubr.f32.gmra.mrb[12].mxu1 %v7208_v56  ;;  %5746 = vmatprep.subr.bf16.mxu1 %v5745_v53  ;;  %v7607_v5 = vsel %vm1102_vm1, %v1154_v8, %v1156_v20  ;;  %v1168_v55 = vrot.slane %v7365_v51, 2  ;;  %v1169_v50 = vrot.slane %v7368_v3, 2  ;;  %v1173_v8 = vrot.slane %v7387_v41, 2 }
 0x16b   : > { %5338 = vmatmul.mubr.f32.gmra.mrb[12].mxu0 %v7562_v35  ;;  %5020 = vmatprep.mubr.f32.mxu1 %v7226_v11  ;;  %v7592_v18 = vsel %vm1102_vm1, %v1149_v19, %v1151_v4  ;;  %v1163_v19 = vrot.slane %v7342_v17, 2  ;;  %v1174_v20 = vrot.slane %v7390_v44, 2 }
 0x16c   : > { %5340 = vmatprep.mubr.f32.mxu0 %v7566_v36  ;;  %5876 = vmatpush3.bf16.msra.mxu0 %v5873_v60  ;;  %v1158_v60 = vrot.slane %v7317_v52, 2  ;;  %v7637_v43 = vsel %vm1102_vm1, %v1168_v55, %v1169_v50 }
 0x16d   : > { %5748 = vmatpush3.bf16.msra.mxu1 %v5745_v53  ;;  %5878 = vmatprep.subr.bf16.mxu0 %v5877_v9  ;;  %v1159_v53 = vrot.slane %v7320_v14, 2  ;;  %9153 = vst [vmem:[#allocation67_spill] sm:$0xff] %v7637_v43 }
 0x16e   : > { %5021 = vmatmul.mubr.f32.gmra.mrb[14].mxu1 %v7230_v13  ;;  %5750 = vmatprep.subr.bf16.mxu1 %v5749_v16 }
 0x16f   : > { %5341 = vmatmul.mubr.f32.gmra.mrb[14].mxu0 %v7575_v34  ;;  %5023 = vmatprep.mubr.f32.mxu1 %v7248_v33  ;;  %v7611_v39 = vsel %vm1102_vm1, %v1158_v60, %v1159_v53  ;;  %v7646_v60 = vsel %vm1102_vm1, %v1169_v50, %v1171_v12  ;;  %v9158_v50 = vld [vmem:[#allocation57_spill] sm:$0xff] }
 0x170   : > { %5343 = vmatprep.mubr.f32.mxu0 %v7579_v62  ;;  %5880 = vmatpush3.bf16.msra.mxu0 %v5877_v9  ;;  %v1164_v9 = vrot.slane %v7345_v26, 2  ;;  %9154 = vst [vmem:[#allocation68_spill] sm:$0xff] %v7646_v60  ;;  %v2047_v12 = vrot.slane %v9158_v50, 2 }
 0x171   : > { %5752 = vmatpush3.bf16.msra.mxu1 %v5749_v16  ;;  %5882 = vmatprep.subr.bf16.mxu0 %v7583_v30  ;;  %v7620_v16 = vsel %vm1102_vm1, %v1159_v53, %v1161_v46  ;;  %v7650_v53 = vsel %vm1102_vm1, %v1173_v8, %v1174_v20  ;;  %v1178_v46 = vrot.slane %v7409_v63, 2  ;;  %v9159_v8 = vld [vmem:[#allocation58_spill] sm:$0xff] }
 0x172   : > { %5024 = vmatmul.mubr.f32.gmra.mrb[16].mxu1 %v7252_v37  ;;  %5754 = vmatprep.subr.bf16.mxu1 %v7586_v7  ;;  %v7624_v49 = vsel %vm1102_vm1, %v1163_v19, %v1164_v9  ;;  %v7633_v4 = vsel %vm1102_vm1, %v1164_v9, %v1166_v45  ;;  %9155 = vst [vmem:[#allocation69_spill] sm:$0xff] %v7650_v53  ;;  %v1179_v19 = vrot.slane %v7412_v15, 2  ;;  %v1181_v45 = vrot.slane %v9157_v0, 2 }
 0x173   : > { %5344 = vmatmul.mubr.f32.gmra.mrb[16].mxu0 %v7592_v18  ;;  %5026 = vmatprep.mubr.f32.mxu1 %v7270_v58  ;;  %9152 = vst [vmem:[#allocation66_spill] sm:$0xff] %v7633_v4  ;;  %v7659_v9 = vsel %vm1102_vm1, %v1174_v20, %v1176_v24  ;;  %v9161_v24 = vld [vmem:[#allocation61_spill] sm:$0xff] }
 0x174   : > { %5346 = vmatprep.mubr.f32.mxu0 %v7596_v29  ;;  %9156 = vst [vmem:[#allocation70_spill] sm:$0xff] %v7659_v9  ;;  %v7663_v55 = vsel %vm1102_vm1, %v1178_v46, %v1179_v19  ;;  %v7672_v20 = vsel %vm1102_vm1, %v1179_v19, %v1181_v45  ;;  %v2050_v0 = vrot.slane %v9161_v24, 2  ;;  %v2616_v45 = vld [vmem:[#allocation11 + $0x398] sm:$0xff] }
 0x175   : > { %9160 = vst [vmem:[#allocation56_spill] sm:$0xff] %v7672_v20  ;;  %v1493_v24 = vld [vmem:[#allocation11 + $0x198] sm:$0xff] }
 0x176   : > { %5027 = vmatmul.mubr.f32.gmra.mrb[18].mxu1 %v7274_v61 }
 0x177   : > { %5347 = vmatmul.mubr.f32.gmra.mrb[18].mxu0 %v7607_v5  ;;  %5029 = vmatprep.mubr.f32.mxu1 %v7292_v21 }
 0x178   : > { %5349 = vmatprep.mubr.f32.mxu0 %v7611_v39 }
 0x17a   : > { %5030 = vmatmul.mubr.f32.gmra.mrb[20].mxu1 %v7296_v27 }
 0x17b   : > { %5350 = vmatmul.mubr.f32.gmra.mrb[20].mxu0 %v7620_v16  ;;  %5032 = vmatprep.mubr.f32.mxu1 %v7317_v52 }
 0x17c   : > { %5352 = vmatprep.mubr.f32.mxu0 %v7624_v49 }
 0x17e   : > { %5033 = vmatmul.mubr.f32.gmra.mrb[22].mxu1 %v7320_v14 }
 0x17f   : > { %5353 = vmatmul.mubr.f32.gmra.mrb[22].mxu0 %v7633_v4  ;;  %5035 = vmatprep.mubr.f32.mxu1 %v7342_v17 }
 0x180   : > { %5355 = vmatprep.mubr.f32.mxu0 %v7637_v43  ;;  %v2048_v43 = vrot.slane %v9159_v8, 2  ;;  %v9163_v8 = vld [vmem:[#allocation30_spill] sm:$0xff] }
 0x182   : > { %5036 = vmatmul.mubr.f32.gmra.mrb[24].mxu1 %v7345_v26  ;;  %v7678_v50 = vsel %vm1102_vm1, %v2047_v12, %v2048_v43  ;;  %v7686_v19 = vsel %vm1102_vm1, %v2048_v43, %v2050_v0  ;;  %v2617_v0 = vld [vmem:[#allocation11 + $0x3a0] sm:$0xff] }
 0x183   : > { %5356 = vmatmul.mubr.f32.gmra.mrb[24].mxu0 %v7646_v60  ;;  %5038 = vmatprep.mubr.f32.mxu1 %v7365_v51  ;;  %v6357_v60 = vld [vmem:[%s7066_s12 + $0x8] sm:$0xff]  ;;  %9162 = vst [vmem:[#allocation61_spill] sm:$0xff] %v7678_v50  ;;  %9164 = vst [vmem:[#allocation30_spill] sm:$0xff] %v7686_v19 }
 0x184   : > { %5358 = vmatprep.mubr.f32.mxu0 %v7650_v53  ;;  %v6356_v53 = vld [vmem:[%s7066_s12] sm:$0xff]  ;;  %v1104_v4 = vrot.slane %v6357_v60, 2 }
 0x185   : > { %v1103_v46 = vrot.slane %v6356_v53, 2  ;;  %v2615_v60 = vld [vmem:[#allocation11 + $0x390] sm:$0xff] }
 0x186   : > { %5039 = vmatmul.mubr.f32.gmra.mrb[26].mxu1 %v7368_v3 }
 0x187   : > { %5359 = vmatmul.mubr.f32.gmra.mrb[26].mxu0 %v7659_v9  ;;  %5041 = vmatprep.mubr.f32.mxu1 %v7387_v41  ;;  %v1106_v9 = vrot.slane %v9163_v8, 2  ;;  %v1105_v53 = vsel %vm1102_vm1, %v1103_v46, %v1104_v4  ;;  %v1492_v8 = vld [vmem:[#allocation11 + $0x190] sm:$0xff]  ;;  %v7694_v46 = vld [vmem:[%s7066_s12 + $0x38] sm:$0xff] }
 0x188   : > { %5361 = vmatprep.mubr.f32.mxu0 %v7663_v55  ;;  %v5757_v43 = vpack.c.bf16 %v1493_v24, %v1492_v8  ;;  %v1498_v8 = vld [vmem:[#allocation11 + $0x1c0] sm:$0xff]  ;;  %v1499_v24 = vld [vmem:[#allocation11 + $0x1c8] sm:$0xff] }
 0x189   : > { %v1107_v12 = vsel %vm1102_vm1, %v1104_v4, %v1106_v9  ;;  %v7701_v4 = vld [vmem:[%s7066_s12 + $0x48] sm:$0xff] }
 0x18a   : > { %5042 = vmatmul.mubr.f32.gmra.mrb[28].mxu1 %v7390_v44 }
 0x18b   : > { %5362 = vmatmul.mubr.f32.gmra.mrb[28].mxu0 %v7672_v20  ;;  %5044 = vmatprep.mubr.f32.mxu1 %v7409_v63  ;;  %v2618_v20 = vld [vmem:[#allocation11 + $0x3a8] sm:$0xff] }
 0x18c   : > { %5364 = vmatprep.mubr.f32.mxu0 %v7678_v50  ;;  %v5885_v50 = vpack.c.bf16 %v2616_v45, %v2615_v60  ;;  %v2619_v60 = vld [vmem:[#allocation11 + $0x3b0] sm:$0xff]  ;;  %v2620_v45 = vld [vmem:[#allocation11 + $0x3b8] sm:$0xff] }
 0x18e   : > { %5045 = vmatmul.mubr.f32.gmra.mrb[30].mxu1 %v7412_v15 }
 0x18f   : > { %5365 = vmatmul.mubr.f32.gmra.mrb[30].mxu0 %v7686_v19  ;;  %5079 = vmatprep.mubr.f32.mxu1 %v1105_v53  ;;  %v1494_v53 = vld [vmem:[#allocation11 + $0x1a0] sm:$0xff]  ;;  %v1495_v19 = vld [vmem:[#allocation11 + $0x1a8] sm:$0xff] }
 0x190   : > { %5399 = vmatprep.mubr.f32.mxu0 %v7130_v1  ;;  %v5889_v1 = vpack.c.bf16 %v2618_v20, %v2617_v0  ;;  %v5761_v9 = vpack.c.bf16 %v1495_v19, %v1494_v53  ;;  %v2621_v20 = vld [vmem:[#allocation11 + $0x3c0] sm:$0xff]  ;;  %v2622_v19 = vld [vmem:[#allocation11 + $0x3c8] sm:$0xff]  ;;  %v2624_v0 = vld [vmem:[#allocation11 + $0x3d8] sm:$0xff] }
 0x191   : > { %v1501_v53 = vld [vmem:[#allocation11 + $0x1d8] sm:$0xff] }
 0x192   : > { %5080 = vmatmul.mubr.f32.vlgmr.msra.gmra.mrb[0].mxu1 %v1107_v12  ;;  %v7706_v12 = vld [vmem:[%s7066_s12 + $0x50] sm:$0xff] }
 0x193   : > { %5400 = vmatmul.mubr.f32.vlgmr.msra.gmra.mrb[0].mxu0 %v7694_v46  ;;  %5756 = vmatpush3.bf16.msra.mxu1 %v7586_v7  ;;  %v5893_v7 = vpack.c.bf16 %v2620_v45, %v2619_v60  ;;  %v2626_v60 = vld [vmem:[#allocation11 + $0x3e8] sm:$0xff] }
 0x194   : > { %5884 = vmatpush3.bf16.msra.mxu0 %v7583_v30  ;;  %5082 = vmatprep.mubr.f32.mxu1 %v7473_v38  ;;  %v1496_v30 = vld [vmem:[#allocation11 + $0x1b0] sm:$0xff]  ;;  %v1497_v38 = vld [vmem:[#allocation11 + $0x1b8] sm:$0xff]  ;;  %v1503_v45 = vld [vmem:[#allocation11 + $0x1e8] sm:$0xff] }
 0x195   : > { %5402 = vmatprep.mubr.f32.mxu0 %v7701_v4  ;;  %5886 = vmatprep.subr.bf16.mxu0 %v5885_v50 }
 0x196   : > { %5083 = vmatmul.mubr.f32.gmra.mrb[2].mxu1 %v7482_v23  ;;  %5758 = vmatprep.subr.bf16.mxu1 %v5757_v43  ;;  %v5765_v23 = vpack.c.bf16 %v1497_v38, %v1496_v30  ;;  %v2627_v38 = vld [vmem:[#allocation11 + $0x3f0] sm:$0xff] }
 0x197   : > { %5403 = vmatmul.mubr.f32.gmra.mrb[2].mxu0 %v7706_v12  ;;  %5085 = vmatprep.mubr.f32.mxu1 %v7489_v48 }
 0x198   : > { %5405 = vmatprep.mubr.f32.mxu0 %v7160_v22  ;;  %5888 = vmatpush3.bf16.msra.mxu0 %v5885_v50  ;;  %v5897_v22 = vpack.c.bf16 %v2622_v19, %v2621_v20  ;;  %v5769_v50 = vpack.c.bf16 %v1499_v24, %v1498_v8  ;;  %v2894_v19 = vld [vmem:[#allocation11 + $0x400] sm:$0xff]  ;;  %v2895_v8 = vld [vmem:[#allocation11 + $0x408] sm:$0xff] }
 0x199   : > { %5760 = vmatpush3.bf16.msra.mxu1 %v5757_v43  ;;  %5890 = vmatprep.subr.bf16.mxu0 %v5889_v1  ;;  %v2623_v43 = vld [vmem:[#allocation11 + $0x3d0] sm:$0xff]  ;;  %v9165_v24 = vld [vmem:[#allocation65_spill] sm:$0xff] }
 0x19a   : > { %5086 = vmatmul.mubr.f32.gmra.mrb[4].mxu1 %v7496_v57  ;;  %5762 = vmatprep.subr.bf16.mxu1 %v5761_v9 }
 0x19b   : > { %5406 = vmatmul.mubr.f32.gmra.mrb[4].mxu0 %v7166_v25  ;;  %5088 = vmatprep.mubr.f32.mxu1 %v7501_v6  ;;  %v1500_v25 = vld [vmem:[#allocation11 + $0x1d0] sm:$0xff] }
 0x19c   : > { %5408 = vmatprep.mubr.f32.mxu0 %v7183_v40  ;;  %5892 = vmatpush3.bf16.msra.mxu0 %v5889_v1  ;;  %v5901_v40 = vpack.c.bf16 %v2624_v0, %v2623_v43  ;;  %v5773_v1 = vpack.c.bf16 %v1501_v53, %v1500_v25  ;;  %v6362_v43 = vld [vmem:[%s7066_s12 + $0x20] sm:$0xff]  ;;  %v2899_v25 = vld [vmem:[#allocation11 + $0x428] sm:$0xff]  ;;  %v9175_v53 = vld [vmem:[#allocation32_spill] sm:$0xff] }
 0x19d   : > { %5764 = vmatpush3.bf16.msra.mxu1 %v5761_v9  ;;  %5894 = vmatprep.subr.bf16.mxu0 %v5893_v7  ;;  %v2625_v9 = vld [vmem:[#allocation11 + $0x3e0] sm:$0xff] }
 0x19e   : > { %5089 = vmatmul.mubr.f32.gmra.mrb[6].mxu1 %v7510_v59  ;;  %5766 = vmatprep.subr.bf16.mxu1 %v5765_v23  ;;  %v2898_v0 = vld [vmem:[#allocation11 + $0x420] sm:$0xff] }
 0x19f   : > { %5409 = vmatmul.mubr.f32.gmra.mrb[6].mxu0 %v7186_v42  ;;  %5091 = vmatprep.mubr.f32.mxu1 %v7514_v32  ;;  %v1502_v42 = vld [vmem:[#allocation11 + $0x1e0] sm:$0xff] }
 0x1a0   : > { %5411 = vmatprep.mubr.f32.mxu0 %v7204_v54  ;;  %5896 = vmatpush3.bf16.msra.mxu0 %v5893_v7  ;;  %v5905_v54 = vpack.c.bf16 %v2626_v60, %v2625_v9  ;;  %v5777_v30 = vpack.c.bf16 %v1503_v45, %v1502_v42  ;;  %v2628_v7 = vld [vmem:[#allocation11 + $0x3f8] sm:$0xff]  ;;  %v5921_v9 = vpack.c.bf16 %v2899_v25, %v2898_v0  ;;  %v2900_v60 = vld [vmem:[#allocation11 + $0x430] sm:$0xff]  ;;  %v9177_v45 = vld [vmem:[#allocation34_spill] sm:$0xff] }
 0x1a1   : > { %5768 = vmatpush3.bf16.msra.mxu1 %v5765_v23  ;;  %5898 = vmatprep.subr.bf16.mxu0 %v5897_v22  ;;  %v1505_v23 = vld [vmem:[#allocation11 + $0x1f8] sm:$0xff] }
 0x1a2   : > { %5092 = vmatmul.mubr.f32.gmra.mrb[8].mxu1 %v7523_v28  ;;  %5770 = vmatprep.subr.bf16.mxu1 %v5769_v50  ;;  %v2901_v42 = vld [vmem:[#allocation11 + $0x438] sm:$0xff] }
 0x1a3   : > { %5412 = vmatmul.mubr.f32.gmra.mrb[8].mxu0 %v7208_v56  ;;  %5094 = vmatprep.mubr.f32.mxu1 %v7527_v2  ;;  %v1504_v56 = vld [vmem:[#allocation11 + $0x1f0] sm:$0xff]  ;;  %v6369_v25 = vld [vmem:[%s7066_s12 + $0x98] sm:$0xff] }
 0x1a4   : > { %5414 = vmatprep.mubr.f32.mxu0 %v7226_v11  ;;  %5900 = vmatpush3.bf16.msra.mxu0 %v5897_v22  ;;  %v5909_v11 = vpack.c.bf16 %v2628_v7, %v2627_v38  ;;  %v5781_v20 = vpack.c.bf16 %v1505_v23, %v1504_v56  ;;  %v9174_v22 = vld [vmem:[#allocation31_spill] sm:$0xff]  ;;  %v2902_v38 = vld [vmem:[#allocation11 + $0x440] sm:$0xff]  ;;  %v2903_v7 = vld [vmem:[#allocation11 + $0x448] sm:$0xff] }
 0x1a5   : > { %5772 = vmatpush3.bf16.msra.mxu1 %v5769_v50  ;;  %5902 = vmatprep.subr.bf16.mxu0 %v5901_v40  ;;  %v9179_v56 = vld [vmem:[#allocation36_spill] sm:$0xff]  ;;  %v9180_v23 = vld [vmem:[#allocation37_spill] sm:$0xff] }
 0x1a6   : > { %5095 = vmatmul.mubr.f32.gmra.mrb[10].mxu1 %v7536_v31  ;;  %5774 = vmatprep.subr.bf16.mxu1 %v5773_v1 }
 0x1a7   : > { %5415 = vmatmul.mubr.f32.gmra.mrb[10].mxu0 %v7230_v13  ;;  %5097 = vmatprep.mubr.f32.mxu1 %v7540_v10  ;;  %v5913_v13 = vpack.c.bf16 %v2895_v8, %v2894_v19  ;;  %v2905_v19 = vld [vmem:[#allocation11 + $0x458] sm:$0xff]  ;;  %v9181_v8 = vld [vmem:[#allocation38_spill] sm:$0xff] }
 0x1a8   : > { %5417 = vmatprep.mubr.f32.mxu0 %v7248_v33  ;;  %5904 = vmatpush3.bf16.msra.mxu0 %v5901_v40  ;;  %v3199_v33 = vld [vmem:[#allocation12] sm:$0xf] }
 0x1a9   : > { %5776 = vmatpush3.bf16.msra.mxu1 %v5773_v1  ;;  %5906 = vmatprep.subr.bf16.mxu0 %v5905_v54  ;;  %v6363_v40 = vld [vmem:[%s7066_s12 + $0x30] sm:$0xff] }
 0x1aa   : > { %5098 = vmatmul.mubr.f32.gmra.mrb[12].mxu1 %v7549_v47  ;;  %5778 = vmatprep.subr.bf16.mxu1 %v5777_v30  ;;  %v9176_v1 = vld [vmem:[#allocation33_spill] sm:$0xff] }
 0x1ab   : > { %5418 = vmatmul.mubr.f32.gmra.mrb[12].mxu0 %v7252_v37  ;;  %5100 = vmatprep.mubr.f32.mxu1 %v9165_v24  ;;  %v9166_v37 = vld [vmem:[#allocation66_spill] sm:$0xff] }
 0x1ac   : > { %5420 = vmatprep.mubr.f32.mxu0 %v7270_v58  ;;  %5908 = vmatpush3.bf16.msra.mxu0 %v5905_v54  ;;  %v9167_v58 = vld [vmem:[#allocation67_spill] sm:$0xff] }
 0x1ad   : > { %5780 = vmatpush3.bf16.msra.mxu1 %v5777_v30  ;;  %5910 = vmatprep.subr.bf16.mxu0 %v5909_v11  ;;  %v9178_v54 = vld [vmem:[#allocation35_spill] sm:$0xff]  ;;  %v5925_v30 = vpack.c.bf16 %v2901_v42, %v2900_v60 }
 0x1ae   : > { %5101 = vmatmul.mubr.f32.gmra.mrb[14].mxu1 %v7562_v35  ;;  %5782 = vmatprep.subr.bf16.mxu1 %v5781_v20  ;;  %v9186_v60 = vld [vmem:[#allocation43_spill] sm:$0xff] }
 0x1af   : > { %5421 = vmatmul.mubr.f32.gmra.mrb[14].mxu0 %v7274_v61  ;;  %5103 = vmatprep.mubr.f32.mxu1 %v7566_v36  ;;  %v9168_v61 = vld [vmem:[#allocation68_spill] sm:$0xff] }
 0x1b0   : > { %5423 = vmatprep.mubr.f32.mxu0 %v7292_v21  ;;  %5912 = vmatpush3.bf16.msra.mxu0 %v5909_v11  ;;  %v9169_v21 = vld [vmem:[#allocation69_spill] sm:$0xff]  ;;  %v6365_v11 = vld [vmem:[%s7066_s12 + $0x68] sm:$0xff] }
 0x1b1   : > { %5784 = vmatpush3.bf16.msra.mxu1 %v5781_v20  ;;  %5914 = vmatprep.subr.bf16.mxu0 %v5913_v13  ;;  %v2904_v20 = vld [vmem:[#allocation11 + $0x450] sm:$0xff] }
 0x1b2   : > { %5104 = vmatmul.mubr.f32.gmra.mrb[16].mxu1 %v7575_v34  ;;  %5607 = vmatprep.subr.msk.mxu1 %vm3297_vm2, %v3199_v33 }
 0x1b3   : > { %5424 = vmatmul.mubr.f32.gmra.mrb[16].mxu0 %v7296_v27  ;;  %5106 = vmatprep.mubr.f32.mxu1 %v7579_v62  ;;  %v9170_v27 = vld [vmem:[#allocation57_spill] sm:$0xff] }
 0x1b4   : > { %5426 = vmatprep.mubr.f32.mxu0 %v7317_v52  ;;  %v9171_v52 = vld [vmem:[#allocation70_spill] sm:$0xff] }
 0x1b6   : > { %5107 = vmatmul.mubr.f32.gmra.mrb[18].mxu1 %v7592_v18 }
 0x1b7   : > { %5427 = vmatmul.mubr.f32.gmra.mrb[18].mxu0 %v7320_v14  ;;  %5109 = vmatprep.mubr.f32.mxu1 %v7596_v29  ;;  %v9172_v14 = vld [vmem:[#allocation58_spill] sm:$0xff] }
 0x1b8   : > { %5429 = vmatprep.mubr.f32.mxu0 %v7342_v17  ;;  %v9173_v17 = vld [vmem:[#allocation56_spill] sm:$0xff] }
 0x1ba   : > { %5110 = vmatmul.mubr.f32.gmra.mrb[20].mxu1 %v7607_v5 }
 0x1bb   : > { %5430 = vmatmul.mubr.f32.gmra.mrb[20].mxu0 %v7345_v26  ;;  %5112 = vmatprep.mubr.f32.mxu1 %v7611_v39  ;;  %v2896_v26 = vld [vmem:[#allocation11 + $0x410] sm:$0xff] }
 0x1bc   : > { %5432 = vmatprep.mubr.f32.mxu0 %v7365_v51  ;;  %v7761_v51 = vld [vmem:[%s7066_s12 + $0x198] sm:$0xff] }
 0x1be   : > { %5113 = vmatmul.mubr.f32.gmra.mrb[22].mxu1 %v7620_v16 }
 0x1bf   : > { %5433 = vmatmul.mubr.f32.gmra.mrb[22].mxu0 %v7368_v3  ;;  %5115 = vmatprep.mubr.f32.mxu1 %v7624_v49  ;;  %v2897_v3 = vld [vmem:[#allocation11 + $0x418] sm:$0xff] }
 0x1c0   : > { %5435 = vmatprep.mubr.f32.mxu0 %v7387_v41  ;;  %v7768_v41 = vld [vmem:[%s7066_s12 + $0x1a0] sm:$0xff]  ;;  %v5917_v50 = vpack.c.bf16 %v2897_v3, %v2896_v26 }
 0x1c1   : > { %v6367_v26 = vld [vmem:[%s7066_s12 + $0x80] sm:$0xff] }
 0x1c2   : > { %5116 = vmatmul.mubr.f32.gmra.mrb[24].mxu1 %v9166_v37  ;;  %v2906_v3 = vld [vmem:[#allocation11 + $0x460] sm:$0xff] }
 0x1c3   : > { %5436 = vmatmul.mubr.f32.gmra.mrb[24].mxu0 %v7390_v44  ;;  %5118 = vmatprep.mubr.f32.mxu1 %v9167_v58  ;;  %v6361_v44 = vld [vmem:[%s7066_s12 + $0x18] sm:$0xff] }
 0x1c4   : > { %5438 = vmatprep.mubr.f32.mxu0 %v7409_v63 }
 0x1c6   : > { %5119 = vmatmul.mubr.f32.gmra.mrb[26].mxu1 %v9168_v61 }
 0x1c7   : > { %5439 = vmatmul.mubr.f32.gmra.mrb[26].mxu0 %v7412_v15  ;;  %5121 = vmatprep.mubr.f32.mxu1 %v9169_v21 }
 0x1c8   : > { %5441 = vmatprep.mubr.f32.mxu0 %v9170_v27 }
 0x1ca   : > { %5122 = vmatmul.mubr.f32.gmra.mrb[28].mxu1 %v9171_v52 }
 0x1cb   : > { %5442 = vmatmul.mubr.f32.gmra.mrb[28].mxu0 %v9172_v14  ;;  %5124 = vmatprep.mubr.f32.mxu1 %v7663_v55 }
 0x1cc   : > { %5444 = vmatprep.mubr.f32.mxu0 %v7761_v51 }
 0x1ce   : > { %5125 = vmatmul.mubr.f32.gmra.mrb[30].mxu1 %v9173_v17 }
 0x1cf   : > { %5445 = vmatmul.mubr.f32.gmra.mrb[30].mxu0 %v7768_v41  ;;  %5159 = vmatprep.mubr.f32.mxu1 %v6361_v44  ;;  %v2907_v44 = vld [vmem:[#allocation11 + $0x468] sm:$0xff] }
 0x1d0   : > { %5479 = vmatprep.mubr.f32.mxu0 %v9174_v22  ;;  %v9183_v22 = vld [vmem:[#allocation40_spill] sm:$0xff]  ;;  %v5937_v0 = vpack.c.bf16 %v2907_v44, %v2906_v3  ;;  %v6380_v44 = vld [vmem:[%s7066_s12 + $0x120] sm:$0xff] }
 0x1d1   : > { %v9195_v3 = vld [vmem:[#allocation52_spill] sm:$0xff] }
 0x1d2   : > { %5160 = vmatmul.mubr.f32.vlgmr.msra.gmra.mrb[0].mxu1 %v6362_v43  ;;  %v9184_v43 = vld [vmem:[#allocation41_spill] sm:$0xff] }
 0x1d3   : > { %5480 = vmatmul.mubr.f32.vlgmr.msra.gmra.mrb[0].mxu0 %v9175_v53  ;;  %5608 = vmatpush3.msk.msra.mxu1 %vm3297_vm2, %v3199_v33  ;;  %v5933_v33 = vpack.c.bf16 %v2905_v19, %v2904_v20  ;;  %v2908_v53 = vld [vmem:[#allocation11 + $0x470] sm:$0xff]  ;;  %v9192_v19 = vld [vmem:[#allocation49_spill] sm:$0xff] }
 0x1d4   : > { %5916 = vmatpush3.bf16.msra.mxu0 %v5913_v13  ;;  %5162 = vmatprep.mubr.f32.mxu1 %v6363_v40  ;;  %v9182_v13 = vld [vmem:[#allocation39_spill] sm:$0xff]  ;;  %v2909_v40 = vld [vmem:[#allocation11 + $0x478] sm:$0xff] }
 0x1d5   : > { %5482 = vmatprep.mubr.f32.mxu0 %v9176_v1  ;;  %5918 = vmatprep.subr.bf16.mxu0 %v5917_v50  ;;  %v9185_v1 = vld [vmem:[#allocation42_spill] sm:$0xff]  ;;  %v5941_v42 = vpack.c.bf16 %v2909_v40, %v2908_v53  ;;  %v6376_v20 = vld [vmem:[%s7066_s12 + $0xf0] sm:$0xff]  ;;  %v6383_v53 = vld [vmem:[%s7066_s12 + $0x140] sm:$0xff] }
 0x1d6   : > { %5163 = vmatmul.mubr.f32.gmra.mrb[2].mxu1 %v7694_v46  ;;  %v6364_v46 = vld [vmem:[%s7066_s12 + $0x60] sm:$0xff] }
 0x1d7   : > { %5483 = vmatmul.mubr.f32.gmra.mrb[2].mxu0 %v9177_v45  ;;  %5165 = vmatprep.mubr.f32.mxu1 %v7701_v4  ;;  %v5929_v4 = vpack.c.bf16 %v2903_v7, %v2902_v38  ;;  %v6371_v45 = vld [vmem:[%s7066_s12 + $0xb0] sm:$0xff]  ;;  %v6373_v7 = vld [vmem:[%s7066_s12 + $0xc8] sm:$0xff] }
 0x1d8   : > { %5485 = vmatprep.mubr.f32.mxu0 %v9178_v54  ;;  %5920 = vmatpush3.bf16.msra.mxu0 %v5917_v50  ;;  %v6368_v50 = vld [vmem:[%s7066_s12 + $0x90] sm:$0xff]  ;;  %v9187_v54 = vld [vmem:[#allocation44_spill] sm:$0xff] }
 0x1d9   : > { %5922 = vmatprep.subr.bf16.mxu0 %v5921_v9  ;;  %v9188_v38 = vld [vmem:[#allocation45_spill] sm:$0xff]  ;;  %v9199_v40 = vld [vmem:[#allocation59_spill] sm:$0xff] }
 0x1da   : > { %5166 = vmatmul.mubr.f32.gmra.mrb[4].mxu1 %v7706_v12  ;;  %v6366_v12 = vld [vmem:[%s7066_s12 + $0x78] sm:$0xff] }
 0x1db   : > { %5486 = vmatmul.mubr.f32.gmra.mrb[4].mxu0 %v9179_v56  ;;  %5168 = vmatprep.mubr.f32.mxu1 %v6364_v46  ;;  %v9189_v56 = vld [vmem:[#allocation46_spill] sm:$0xff] }
 0x1dc   : > { %5488 = vmatprep.mubr.f32.mxu0 %v9180_v23  ;;  %5924 = vmatpush3.bf16.msra.mxu0 %v5921_v9  ;;  %v6370_v9 = vld [vmem:[%s7066_s12 + $0xa8] sm:$0xff]  ;;  %v6374_v46 = vld [vmem:[%s7066_s12 + $0xd8] sm:$0xff]  ;;  %v9190_v23 = vld [vmem:[#allocation47_spill] sm:$0xff] }
 0x1dd   : > { %5926 = vmatprep.subr.bf16.mxu0 %v5925_v30 }
 0x1de   : > { %5169 = vmatmul.mubr.f32.gmra.mrb[6].mxu1 %v6365_v11  ;;  %v9191_v11 = vld [vmem:[#allocation48_spill] sm:$0xff] }
 0x1df   : > { %5489 = vmatmul.mubr.f32.gmra.mrb[6].mxu0 %v9181_v8  ;;  %5171 = vmatprep.mubr.f32.mxu1 %v6366_v12  ;;  %v6377_v8 = vld [vmem:[%s7066_s12 + $0xf8] sm:$0xff] }
 0x1e0   : > { %5491 = vmatprep.mubr.f32.mxu0 %v9182_v13  ;;  %5928 = vmatpush3.bf16.msra.mxu0 %v5925_v30  ;;  %v6372_v30 = vld [vmem:[%s7066_s12 + $0xc0] sm:$0xff]  ;;  %v9193_v12 = vld [vmem:[#allocation50_spill] sm:$0xff] }
 0x1e1   : > { %5930 = vmatprep.subr.bf16.mxu0 %v5929_v4  ;;  %v6378_v13 = vld [vmem:[%s7066_s12 + $0x108] sm:$0xff] }
 0x1e2   : > { %5172 = vmatmul.mubr.f32.gmra.mrb[8].mxu1 %v6367_v26  ;;  %v6379_v26 = vld [vmem:[%s7066_s12 + $0x110] sm:$0xff] }
 0x1e3   : > { %5492 = vmatmul.mubr.f32.gmra.mrb[8].mxu0 %v9183_v22  ;;  %5174 = vmatprep.mubr.f32.mxu1 %v6368_v50  ;;  %v9196_v22 = vld [vmem:[#allocation53_spill] sm:$0xff]  ;;  %v6381_v50 = vld [vmem:[%s7066_s12 + $0x128] sm:$0xff] }
 0x1e4   : > { %5494 = vmatprep.mubr.f32.mxu0 %v9184_v43  ;;  %5932 = vmatpush3.bf16.msra.mxu0 %v5929_v4  ;;  %v6375_v4 = vld [vmem:[%s7066_s12 + $0xe0] sm:$0xff]  ;;  %v9197_v43 = vld [vmem:[#allocation54_spill] sm:$0xff] }
 0x1e5   : > { %5934 = vmatprep.subr.bf16.mxu0 %v5933_v33 }
 0x1e6   : > { %5175 = vmatmul.mubr.f32.gmra.mrb[10].mxu1 %v6369_v25  ;;  %v9198_v25 = vld [vmem:[#allocation55_spill] sm:$0xff] }
 0x1e7   : > { %5495 = vmatmul.mubr.f32.gmra.mrb[10].mxu0 %v9185_v1  ;;  %5177 = vmatprep.mubr.f32.mxu1 %v6370_v9  ;;  %v6384_v1 = vld [vmem:[%s7066_s12 + $0x150] sm:$0xff]  ;;  %v9200_v9 = vld [vmem:[#allocation60_spill] sm:$0xff] }
 0x1e8   : > { %5497 = vmatprep.mubr.f32.mxu0 %v9186_v60  ;;  %5936 = vmatpush3.bf16.msra.mxu0 %v5933_v33  ;;  %v9194_v33 = vld [vmem:[#allocation51_spill] sm:$0xff]  ;;  %v2605_v60 = vrot.slane %v7761_v51, 1 }
 0x1e9   : > { %5938 = vmatprep.subr.bf16.mxu0 %v5937_v0 }
 0x1ea   : > { %5178 = vmatmul.mubr.f32.gmra.mrb[12].mxu1 %v6371_v45  ;;  %v7830_v45 = vld [vmem:[%s7066_s12 + $0x1a8] sm:$0x3] }
 0x1eb   : > { %5498 = vmatmul.mubr.f32.gmra.mrb[12].mxu0 %v9187_v54  ;;  %5180 = vmatprep.mubr.f32.mxu1 %v6372_v30  ;;  %v6385_v54 = vld [vmem:[%s7066_s12 + $0x158] sm:$0xff] }
 0x1ec   : > { %5500 = vmatprep.mubr.f32.mxu0 %v9188_v38  ;;  %5940 = vmatpush3.bf16.msra.mxu0 %v5937_v0  ;;  %v6382_v0 = vld [vmem:[%s7066_s12 + $0x138] sm:$0xff]  ;;  %v9202_v38 = vld [vmem:[#allocation63_spill] sm:$0xff] }
 0x1ed   : > { %5942 = vmatprep.subr.bf16.mxu0 %v5941_v42  ;;  %v9201_v30 = vld [vmem:[#allocation62_spill] sm:$0xff] }
 0x1ee   : > { %5181 = vmatmul.mubr.f32.gmra.mrb[14].mxu1 %v6373_v7  ;;  %v2608_v7 = vrot.slane %v7830_v45, 1 }
 0x1ef   : > { %5501 = vmatmul.mubr.f32.gmra.mrb[14].mxu0 %v9189_v56  ;;  %5183 = vmatprep.mubr.f32.mxu1 %v6374_v46  ;;  %v9203_v46 = vld [vmem:[#allocation64_spill] sm:$0xff] }
 0x1f0   : > { %5503 = vmatprep.mubr.f32.mxu0 %v9190_v23  ;;  %5944 = vmatpush3.bf16.msra.mxu0 %v5941_v42  ;;  %v2606_v42 = vrot.slane %v7768_v41, 1 }
 0x1f2   : > { %5184 = vmatmul.mubr.f32.gmra.mrb[16].mxu1 %v6375_v4  ;;  %v2607_v56 = vsel %vm522_vm0, %v2605_v60, %v2606_v42  ;;  %v2609_v23 = vsel %vm522_vm0, %v2606_v42, %v2608_v7  ;;  %v3167_v4 = vld [vmem:[%s7073_s4] sm:$0xff] }
 0x1f3   : > { %5504 = vmatmul.mubr.f32.gmra.mrb[16].mxu0 %v9191_v11  ;;  %5186 = vmatprep.mubr.f32.mxu1 %v6376_v20  ;;  %v3173_v11 = vld [vmem:[%s7073_s4 + $0x30] sm:$0xff]  ;;  %v2887_v20 = vrot.slane %v7768_v41, 2 }
 0x1f4   : > { %5506 = vmatprep.mubr.f32.mxu0 %v9192_v19  ;;  %v9204_v19 = vld [vmem:[#allocation61_spill] sm:$0xff] }
 0x1f6   : > { %5187 = vmatmul.mubr.f32.gmra.mrb[18].mxu1 %v6377_v8  ;;  %v3197_v8 = vld [vmem:[%s7073_s4 + $0xf0] sm:$0xff] }
 0x1f7   : > { %5507 = vmatmul.mubr.f32.gmra.mrb[18].mxu0 %v9193_v12  ;;  %5189 = vmatprep.mubr.f32.mxu1 %v6378_v13 }
 0x1f8   : > { %5509 = vmatprep.mubr.f32.mxu0 %v9194_v33 }
 0x1fa   : > { %5190 = vmatmul.mubr.f32.gmra.mrb[20].mxu1 %v6379_v26 }
 0x1fb   : > { %5510 = vmatmul.mubr.f32.gmra.mrb[20].mxu0 %v9195_v3  ;;  %5192 = vmatprep.mubr.f32.mxu1 %v6380_v44 }
 0x1fc   : > { %5512 = vmatprep.mubr.f32.mxu0 %v9196_v22 }
 0x1fe   : > { %5193 = vmatmul.mubr.f32.gmra.mrb[22].mxu1 %v6381_v50 }
 0x1ff   : > { %5513 = vmatmul.mubr.f32.gmra.mrb[22].mxu0 %v9197_v43  ;;  %5195 = vmatprep.mubr.f32.mxu1 %v6382_v0 }
 0x200   : > { %5515 = vmatprep.mubr.f32.mxu0 %v9198_v25 }
 0x202   : > { %5196 = vmatmul.mubr.f32.gmra.mrb[24].mxu1 %v6383_v53 }
 0x203   : > { %5516 = vmatmul.mubr.f32.gmra.mrb[24].mxu0 %v9199_v40  ;;  %5198 = vmatprep.mubr.f32.mxu1 %v6384_v1 }
 0x204   : > { %5518 = vmatprep.mubr.f32.mxu0 %v9200_v9 }
 0x206   : > { %5199 = vmatmul.mubr.f32.gmra.mrb[26].mxu1 %v6385_v54 }
 0x207   : > { %5519 = vmatmul.mubr.f32.gmra.mrb[26].mxu0 %v9201_v30  ;;  %5201 = vmatprep.mubr.f32.mxu1 %v7409_v63  ;;  %v3168_v63 = vld [vmem:[%s7073_s4 + $0x8] sm:$0xff] }
 0x208   : > { %5521 = vmatprep.mubr.f32.mxu0 %v9202_v38 }
 0x20a   : > { %5202 = vmatmul.mubr.f32.gmra.mrb[28].mxu1 %v7412_v15  ;;  %v3169_v15 = vld [vmem:[%s7073_s4 + $0x10] sm:$0xff] }
 0x20b   : > { %5522 = vmatmul.mubr.f32.gmra.mrb[28].mxu0 %v9203_v46  ;;  %5204 = vmatprep.mubr.f32.mxu1 %v9170_v27  ;;  %v3170_v27 = vld [vmem:[%s7073_s4 + $0x18] sm:$0xff] }
 0x20c   : > { %5524 = vmatprep.mubr.f32.mxu0 %v2607_v56 }
 0x20e   : > { %5205 = vmatmul.mubr.f32.gmra.mrb[30].mxu1 %v9172_v14  ;;  %v3171_v14 = vld [vmem:[%s7073_s4 + $0x20] sm:$0xff] }
 0x20f   : > { %5525 = vmatmul.mubr.f32.gmra.mrb[30].mxu0 %v2609_v23  ;;  %5609 = vmatprep.mubr.msk.f32.mxu1 %vm3200_vm3, %v3167_v4 }
 0x210   : > { %5559 = vmatprep.mubr.f32.mxu0 %v7489_v48  ;;  %v3172_v48 = vld [vmem:[%s7073_s4 + $0x28] sm:$0xff] }
 0x212   : > { %5610 = vmatmul.mubr.msk.f32.vlgmr.msra.gmra.mrb[32].mxu1 %vm3200_vm3, %v3168_v63 }
 0x213   : > { %5560 = vmatmul.mubr.f32.vlgmr.msra.gmra.mrb[0].mxu0 %v7496_v57  ;;  %5612 = vmatprep.mubr.msk.f32.mxu1 %vm3200_vm3, %v3169_v15  ;;  %v3174_v57 = vld [vmem:[%s7073_s4 + $0x38] sm:$0xff] }
 0x214   : > { %5562 = vmatprep.mubr.f32.mxu0 %v7501_v6  ;;  %v3175_v6 = vld [vmem:[%s7073_s4 + $0x40] sm:$0xff] }
 0x216   : > { %5613 = vmatmul.mubr.msk.f32.gmra.mrb[34].mxu1 %vm3200_vm3, %v3170_v27 }
 0x217   : > { %5563 = vmatmul.mubr.f32.gmra.mrb[2].mxu0 %v7510_v59  ;;  %5615 = vmatprep.mubr.msk.f32.mxu1 %vm3200_vm3, %v3171_v14  ;;  %v3176_v59 = vld [vmem:[%s7073_s4 + $0x48] sm:$0xff] }
 0x218   : > { %5565 = vmatprep.mubr.f32.mxu0 %v7514_v32  ;;  %v3177_v32 = vld [vmem:[%s7073_s4 + $0x50] sm:$0xff] }
 0x21a   : > { %5616 = vmatmul.mubr.msk.f32.gmra.mrb[36].mxu1 %vm3200_vm3, %v3172_v48 }
 0x21b   : > { %5566 = vmatmul.mubr.f32.gmra.mrb[4].mxu0 %v7523_v28  ;;  %5618 = vmatprep.mubr.msk.f32.mxu1 %vm3200_vm3, %v3173_v11  ;;  %v3178_v28 = vld [vmem:[%s7073_s4 + $0x58] sm:$0xff] }
 0x21c   : > { %5568 = vmatprep.mubr.f32.mxu0 %v7527_v2  ;;  %v3179_v2 = vld [vmem:[%s7073_s4 + $0x60] sm:$0xff] }
 0x21e   : > { %5619 = vmatmul.mubr.msk.f32.gmra.mrb[38].mxu1 %vm3200_vm3, %v3174_v57 }
 0x21f   : > { %5569 = vmatmul.mubr.f32.gmra.mrb[6].mxu0 %v7536_v31  ;;  %5621 = vmatprep.mubr.msk.f32.mxu1 %vm3200_vm3, %v3175_v6  ;;  %v3180_v31 = vld [vmem:[%s7073_s4 + $0x68] sm:$0xff] }
 0x220   : > { %5571 = vmatprep.mubr.f32.mxu0 %v7540_v10  ;;  %v3181_v10 = vld [vmem:[%s7073_s4 + $0x70] sm:$0xff] }
 0x222   : > { %5622 = vmatmul.mubr.msk.f32.gmra.mrb[40].mxu1 %vm3200_vm3, %v3176_v59 }
 0x223   : > { %5572 = vmatmul.mubr.f32.gmra.mrb[8].mxu0 %v7549_v47  ;;  %5624 = vmatprep.mubr.msk.f32.mxu1 %vm3200_vm3, %v3177_v32  ;;  %v3182_v47 = vld [vmem:[%s7073_s4 + $0x78] sm:$0xff] }
 0x224   : > { %5574 = vmatprep.mubr.f32.mxu0 %v9165_v24  ;;  %v3183_v24 = vld [vmem:[%s7073_s4 + $0x80] sm:$0xff] }
 0x226   : > { %5625 = vmatmul.mubr.msk.f32.gmra.mrb[42].mxu1 %vm3200_vm3, %v3178_v28 }
 0x227   : > { %5575 = vmatmul.mubr.f32.gmra.mrb[10].mxu0 %v7562_v35  ;;  %5627 = vmatprep.mubr.msk.f32.mxu1 %vm3200_vm3, %v3179_v2  ;;  %v3184_v35 = vld [vmem:[%s7073_s4 + $0x88] sm:$0xff] }
 0x228   : > { %5577 = vmatprep.mubr.f32.mxu0 %v7566_v36  ;;  %v3185_v36 = vld [vmem:[%s7073_s4 + $0x90] sm:$0xff] }
 0x22a   : > { %5628 = vmatmul.mubr.msk.f32.gmra.mrb[44].mxu1 %vm3200_vm3, %v3180_v31 }
 0x22b   : > { %5578 = vmatmul.mubr.f32.gmra.mrb[12].mxu0 %v7575_v34  ;;  %5630 = vmatprep.mubr.msk.f32.mxu1 %vm3200_vm3, %v3181_v10  ;;  %v3186_v34 = vld [vmem:[%s7073_s4 + $0x98] sm:$0xff] }
 0x22c   : > { %5580 = vmatprep.mubr.f32.mxu0 %v7579_v62  ;;  %v3187_v62 = vld [vmem:[%s7073_s4 + $0xa0] sm:$0xff] }
 0x22e   : > { %5631 = vmatmul.mubr.msk.f32.gmra.mrb[46].mxu1 %vm3200_vm3, %v3182_v47 }
 0x22f   : > { %5581 = vmatmul.mubr.f32.gmra.mrb[14].mxu0 %v7592_v18  ;;  %5633 = vmatprep.mubr.msk.f32.mxu1 %vm3200_vm3, %v3183_v24  ;;  %v3188_v18 = vld [vmem:[%s7073_s4 + $0xa8] sm:$0xff] }
 0x230   : > { %5583 = vmatprep.mubr.f32.mxu0 %v7596_v29  ;;  %v3189_v29 = vld [vmem:[%s7073_s4 + $0xb0] sm:$0xff] }
 0x232   : > { %5634 = vmatmul.mubr.msk.f32.gmra.mrb[48].mxu1 %vm3200_vm3, %v3184_v35 }
 0x233   : > { %5584 = vmatmul.mubr.f32.gmra.mrb[16].mxu0 %v7607_v5  ;;  %5636 = vmatprep.mubr.msk.f32.mxu1 %vm3200_vm3, %v3185_v36  ;;  %v3190_v5 = vld [vmem:[%s7073_s4 + $0xb8] sm:$0xff] }
 0x234   : > { %5586 = vmatprep.mubr.f32.mxu0 %v7611_v39  ;;  %v3191_v39 = vld [vmem:[%s7073_s4 + $0xc0] sm:$0xff] }
 0x236   : > { %5637 = vmatmul.mubr.msk.f32.gmra.mrb[50].mxu1 %vm3200_vm3, %v3186_v34 }
 0x237   : > { %5587 = vmatmul.mubr.f32.gmra.mrb[18].mxu0 %v7620_v16  ;;  %5639 = vmatprep.mubr.msk.f32.mxu1 %vm3200_vm3, %v3187_v62  ;;  %v3192_v16 = vld [vmem:[%s7073_s4 + $0xc8] sm:$0xff] }
 0x238   : > { %5589 = vmatprep.mubr.f32.mxu0 %v7624_v49  ;;  %v3193_v49 = vld [vmem:[%s7073_s4 + $0xd0] sm:$0xff] }
 0x23a   : > { %5640 = vmatmul.mubr.msk.f32.gmra.mrb[52].mxu1 %vm3200_vm3, %v3188_v18 }
 0x23b   : > { %5590 = vmatmul.mubr.f32.gmra.mrb[20].mxu0 %v9166_v37  ;;  %5642 = vmatprep.mubr.msk.f32.mxu1 %vm3200_vm3, %v3189_v29  ;;  %v3194_v37 = vld [vmem:[%s7073_s4 + $0xd8] sm:$0xff] }
 0x23c   : > { %5592 = vmatprep.mubr.f32.mxu0 %v9167_v58  ;;  %v3195_v58 = vld [vmem:[%s7073_s4 + $0xe0] sm:$0xff] }
 0x23e   : > { %5643 = vmatmul.mubr.msk.f32.gmra.mrb[54].mxu1 %vm3200_vm3, %v3190_v5 }
 0x23f   : > { %5593 = vmatmul.mubr.f32.gmra.mrb[22].mxu0 %v9168_v61  ;;  %5645 = vmatprep.mubr.msk.f32.mxu1 %vm3200_vm3, %v3191_v39  ;;  %v2886_v61 = vrot.slane %v7761_v51, 2  ;;  %v3198_v51 = vld [vmem:[%s7073_s4 + $0xf8] sm:$0xff] }
 0x240   : > { %5595 = vmatprep.mubr.f32.mxu0 %v9169_v21  ;;  %v3196_v21 = vld [vmem:[%s7073_s4 + $0xe8] sm:$0xff] }
 0x241   : > { %v2888_v12 = vsel %vm1102_vm1, %v2886_v61, %v2887_v20 }
 0x242   : > { %5646 = vmatmul.mubr.msk.f32.gmra.mrb[56].mxu1 %vm3200_vm3, %v3192_v16 }
 0x243   : > { %5596 = vmatmul.mubr.f32.gmra.mrb[24].mxu0 %v9171_v52  ;;  %5648 = vmatprep.mubr.msk.f32.mxu1 %vm3200_vm3, %v3193_v49  ;;  %v2889_v52 = vrot.slane %v7830_v45, 2 }
 0x244   : > { %5598 = vmatprep.mubr.f32.mxu0 %v7663_v55  ;;  %v9205_v55 = vld [vmem:[#allocation30_spill] sm:$0xff] }
 0x245   : > { %v2890_v41 = vsel %vm1102_vm1, %v2887_v20, %v2889_v52 }
 0x246   : > { %5649 = vmatmul.mubr.msk.f32.gmra.mrb[58].mxu1 %vm3200_vm3, %v3194_v37 }
 0x247   : > { %5599 = vmatmul.mubr.f32.gmra.mrb[26].mxu0 %v9173_v17  ;;  %5651 = vmatprep.mubr.msk.f32.mxu1 %vm3200_vm3, %v3195_v58 }
 0x248   : > { %5601 = vmatprep.mubr.f32.mxu0 %v9204_v19 }
 0x24a   : > { %5652 = vmatmul.mubr.msk.f32.gmra.mrb[60].mxu1 %vm3200_vm3, %v3196_v21 }
 0x24b   : > { %5602 = vmatmul.mubr.f32.gmra.mrb[28].mxu0 %v9205_v55  ;;  %5654 = vmatprep.mubr.msk.f32.mxu1 %vm3200_vm3, %v3197_v8 }
 0x24c   : > { %5604 = vmatprep.mubr.f32.mxu0 %v2888_v12 }
 0x24e   : > { %5655 = vmatmul.mubr.msk.f32.gmra.mrb[62].mxu1 %vm3200_vm3, %v3198_v51 }
 0x24f   : > { %5605 = vmatmul.mubr.f32.gmra.mrb[30].mxu0 %v2890_v41 }
 0x2a5   : > { %v5161_v17 = vpop.f32.mrb[0].mxu1 }
 0x2a6   : > { %v1572_v13 = vpop.f32.mrb[1].mxu1 }
 0x2a9   : > { %v5164_v33 = vpop.f32.mrb[2].mxu1 }
 0x2aa   : > { %v1582_v26 = vpop.f32.mrb[3].mxu1 }
 0x2ad   : > { %v5167_v3 = vpop.f32.mrb[4].mxu1 }
 0x2ae   : > { %v1592_v44 = vpop.f32.mrb[5].mxu1 }
 0x2b1   : > { %v5170_v22 = vpop.f32.mrb[6].mxu1 }
 0x2b2   : > { %v1602_v50 = vpop.f32.mrb[7].mxu1 }
 0x2b5   : > { %v5173_v43 = vpop.f32.mrb[8].mxu1 }
 0x2b6   : > { %v1612_v0 = vpop.f32.mrb[9].mxu1 }
 0x2b9   : > { %v5176_v25 = vpop.f32.mrb[10].mxu1 }
 0x2ba   : > { %v1622_v53 = vpop.f32.mrb[11].mxu1 }
 0x2bd   : > { %v5179_v40 = vpop.f32.mrb[12].mxu1 }
 0x2be   : > { %v1632_v1 = vpop.f32.mrb[13].mxu1 }
 0x2c1   : > { %v7942_v9 = vpop.f32.mrb[14].mxu1 }
 0x2c2   : > { %v7944_v60 = vpop.f32.mrb[15].mxu1 }
 0x2c5   : > { %v7946_v42 = vpop.f32.mrb[16].mxu1 }
 0x2c6   : > { %v7948_v45 = vpop.f32.mrb[17].mxu1 }
 0x2c9   : > { %v7950_v54 = vpop.f32.mrb[18].mxu1 }
 0x2ca   : > { %v7952_v30 = vpop.f32.mrb[19].mxu1 }
 0x2cd   : > { %v7954_v38 = vpop.f32.mrb[20].mxu1 }
 0x2ce   : > { %v7956_v7 = vpop.f32.mrb[21].mxu1 }
 0x2d1   : > { %v7958_v56 = vpop.f32.mrb[22].mxu1 }
 0x2d2   : > { %v7960_v46 = vpop.f32.mrb[23].mxu1 }
 0x2d5   : > { %v7962_v23 = vpop.f32.mrb[24].mxu1 }
 0x2d6   : > { %v7964_v4 = vpop.f32.mrb[25].mxu1 }
 0x2d9   : > { %v7966_v63 = vpop.f32.mrb[26].mxu1 }
 0x2da   : > { %v7968_v15 = vpop.f32.mrb[27].mxu1 }
 0x2dd   : > { %v7970_v27 = vpop.f32.mrb[28].mxu1 }
 0x2de   : > { %v7972_v14 = vpop.f32.mrb[29].mxu1 }
 0x2e1   : > { %v7974_v48 = vpop.f32.mrb[30].mxu1 }
 0x2e2   : > { %v7976_v11 = vpop.f32.mrb[31].mxu1 }
 0x2e5   : > { %v7978_v57 = vpop.f32.mrb[32].mxu1 }
 0x2e6   : > { %v5561_v6 = vpop.f32.mrb[0].mxu0  ;;  %v7980_v59 = vpop.f32.mrb[33].mxu1 }
 0x2e7   : > { %v7982_v32 = vadd.f32 %v5561_v6, %v5161_v17  ;;  %v2976_v28 = vpop.f32.mrb[1].mxu0 }
 0x2e8   : > { %v7984_v2 = vadd.f32 %v2976_v28, %v1572_v13 }
 0x2e9   : > { %9206 = vst [vmem:[#allocation65_spill] sm:$0xff] %v7982_v32  ;;  %v7986_v31 = vpop.f32.mrb[34].mxu1 }
 0x2ea   : > { %9207 = vst [vmem:[#allocation66_spill] sm:$0xff] %v7984_v2  ;;  %v5564_v10 = vpop.f32.mrb[2].mxu0  ;;  %v7988_v47 = vpop.f32.mrb[35].mxu1 }
 0x2eb   : > { %v7990_v24 = vadd.f32 %v5564_v10, %v5164_v33  ;;  %v2986_v35 = vpop.f32.mrb[3].mxu0 }
 0x2ec   : > { %v7992_v36 = vadd.f32 %v2986_v35, %v1582_v26 }
 0x2ed   : > { %9208 = vst [vmem:[#allocation67_spill] sm:$0xff] %v7990_v24  ;;  %v7994_v34 = vpop.f32.mrb[36].mxu1 }
 0x2ee   : > { %9209 = vst [vmem:[#allocation68_spill] sm:$0xff] %v7992_v36  ;;  %v5567_v62 = vpop.f32.mrb[4].mxu0  ;;  %v7996_v18 = vpop.f32.mrb[37].mxu1 }
 0x2ef   : > { %v7998_v29 = vadd.f32 %v5567_v62, %v5167_v3  ;;  %v2996_v5 = vpop.f32.mrb[5].mxu0 }
 0x2f0   : > { %v8000_v39 = vadd.f32 %v2996_v5, %v1592_v44 }
 0x2f1   : > { %v8002_v16 = vpop.f32.mrb[38].mxu1 }
 0x2f2   : > { %v5570_v49 = vpop.f32.mrb[6].mxu0  ;;  %v8004_v37 = vpop.f32.mrb[39].mxu1 }
 0x2f3   : > { %v8006_v58 = vadd.f32 %v5570_v49, %v5170_v22  ;;  %v3006_v61 = vpop.f32.mrb[7].mxu0 }
 0x2f4   : > { %v8008_v20 = vadd.f32 %v3006_v61, %v1602_v50 }
 0x2f5   : > { %9210 = vst [vmem:[#allocation69_spill] sm:$0xff] %v8006_v58  ;;  %v8010_v21 = vpop.f32.mrb[40].mxu1 }
 0x2f6   : > { %v5573_v19 = vpop.f32.mrb[8].mxu0  ;;  %v8012_v52 = vpop.f32.mrb[41].mxu1 }
 0x2f7   : > { %v8014_v8 = vadd.f32 %v5573_v19, %v5173_v43  ;;  %v3016_v12 = vpop.f32.mrb[9].mxu0 }
 0x2f8   : > { %v8016_v55 = vadd.f32 %v3016_v12, %v1612_v0 }
 0x2f9   : > { %9211 = vst [vmem:[#allocation57_spill] sm:$0xff] %v8014_v8  ;;  %v8018_v51 = vpop.f32.mrb[42].mxu1 }
 0x2fa   : > { %9212 = vst [vmem:[#allocation70_spill] sm:$0xff] %v8016_v55  ;;  %v5576_v41 = vpop.f32.mrb[10].mxu0  ;;  %v8020_v17 = vpop.f32.mrb[43].mxu1 }
 0x2fb   : > { %v8022_v13 = vadd.f32 %v5576_v41, %v5176_v25  ;;  %v3026_v33 = vpop.f32.mrb[11].mxu0 }
 0x2fc   : > { %v8024_v26 = vadd.f32 %v3026_v33, %v1622_v53 }
 0x2fd   : > { %v8026_v3 = vpop.f32.mrb[44].mxu1 }
 0x2fe   : > { %9213 = vst [vmem:[#allocation58_spill] sm:$0xff] %v8024_v26  ;;  %v5579_v44 = vpop.f32.mrb[12].mxu0  ;;  %v8028_v22 = vpop.f32.mrb[45].mxu1 }
 0x2ff   : > { %v8030_v50 = vadd.f32 %v5579_v44, %v5179_v40  ;;  %v3036_v43 = vpop.f32.mrb[13].mxu0 }
 0x300   : > { %v8032_v0 = vadd.f32 %v3036_v43, %v1632_v1 }
 0x301   : > { %v8034_v6 = vpop.f32.mrb[46].mxu1 }
 0x302   : > { %v5582_v28 = vpop.f32.mrb[14].mxu0  ;;  %v8036_v10 = vpop.f32.mrb[47].mxu1 }
 0x303   : > { %v8039_v25 = vadd.f32 %v5582_v28, %v7942_v9  ;;  %v3046_v53 = vpop.f32.mrb[15].mxu0 }
 0x304   : > { %v8042_v35 = vadd.f32 %v3046_v53, %v7944_v60 }
 0x305   : > { %v8044_v62 = vpop.f32.mrb[48].mxu1 }
 0x306   : > { %v5585_v5 = vpop.f32.mrb[16].mxu0  ;;  %v8046_v40 = vpop.f32.mrb[49].mxu1 }
 0x307   : > { %v8049_v1 = vadd.f32 %v5585_v5, %v7946_v42  ;;  %v3056_v49 = vpop.f32.mrb[17].mxu0 }
 0x308   : > { %v8052_v61 = vadd.f32 %v3056_v49, %v7948_v45 }
 0x309   : > { %v8054_v19 = vpop.f32.mrb[50].mxu1 }
 0x30a   : > { %v5588_v9 = vpop.f32.mrb[18].mxu0  ;;  %v8056_v12 = vpop.f32.mrb[51].mxu1 }
 0x30b   : > { %v8059_v60 = vadd.f32 %v5588_v9, %v7950_v54  ;;  %v3066_v41 = vpop.f32.mrb[19].mxu0 }
 0x30c   : > { %v8062_v33 = vadd.f32 %v3066_v41, %v7952_v30 }
 0x30d   : > { %v8064_v44 = vpop.f32.mrb[52].mxu1 }
 0x30e   : > { %9214 = vst [vmem:[#allocation56_spill] sm:$0xff] %v8064_v44  ;;  %v5591_v42 = vpop.f32.mrb[20].mxu0  ;;  %v8066_v43 = vpop.f32.mrb[53].mxu1 }
 0x30f   : > { %v8069_v45 = vadd.f32 %v5591_v42, %v7954_v38  ;;  %v3076_v28 = vpop.f32.mrb[21].mxu0 }
 0x310   : > { %v8072_v53 = vadd.f32 %v3076_v28, %v7956_v7 }
 0x311   : > { %9215 = vst [vmem:[#allocation31_spill] sm:$0xff] %v8069_v45  ;;  %v8074_v5 = vpop.f32.mrb[54].mxu1 }
 0x312   : > { %9216 = vst [vmem:[#allocation32_spill] sm:$0xff] %v8074_v5  ;;  %v5594_v54 = vpop.f32.mrb[22].mxu0  ;;  %v8076_v49 = vpop.f32.mrb[55].mxu1 }
 0x313   : > { %9217 = vst [vmem:[#allocation33_spill] sm:$0xff] %v8076_v49  ;;  %v8079_v30 = vadd.f32 %v5594_v54, %v7958_v56  ;;  %v3086_v9 = vpop.f32.mrb[23].mxu0 }
 0x314   : > { %v8082_v41 = vadd.f32 %v3086_v9, %v7960_v46 }
 0x315   : > { %9218 = vst [vmem:[#allocation34_spill] sm:$0xff] %v8079_v30  ;;  %v8084_v44 = vpop.f32.mrb[56].mxu1 }
 0x316   : > { %9219 = vst [vmem:[#allocation35_spill] sm:$0xff] %v8082_v41  ;;  %9220 = vst [vmem:[#allocation36_spill] sm:$0xff] %v8084_v44  ;;  %v5597_v38 = vpop.f32.mrb[24].mxu0  ;;  %v8086_v42 = vpop.f32.mrb[57].mxu1 }
 0x317   : > { %9221 = vst [vmem:[#allocation37_spill] sm:$0xff] %v8086_v42  ;;  %v8089_v7 = vadd.f32 %v5597_v38, %v7962_v23  ;;  %v3096_v28 = vpop.f32.mrb[25].mxu0 }
 0x318   : > { %v8092_v5 = vadd.f32 %v3096_v28, %v7964_v4 }
 0x319   : > { %9222 = vst [vmem:[#allocation38_spill] sm:$0xff] %v8089_v7  ;;  %v8094_v49 = vpop.f32.mrb[58].mxu1 }
 0x31a   : > { %9223 = vst [vmem:[#allocation39_spill] sm:$0xff] %v8092_v5  ;;  %9224 = vst [vmem:[#allocation40_spill] sm:$0xff] %v8094_v49  ;;  %v5600_v56 = vpop.f32.mrb[26].mxu0  ;;  %v8096_v54 = vpop.f32.mrb[59].mxu1 }
 0x31b   : > { %9225 = vst [vmem:[#allocation41_spill] sm:$0xff] %v8096_v54  ;;  %v8099_v46 = vadd.f32 %v5600_v56, %v7966_v63  ;;  %v3106_v9 = vpop.f32.mrb[27].mxu0 }
 0x31c   : > { %v8102_v44 = vadd.f32 %v3106_v9, %v7968_v15 }
 0x31d   : > { %9226 = vst [vmem:[#allocation42_spill] sm:$0xff] %v8099_v46  ;;  %v8104_v42 = vpop.f32.mrb[60].mxu1 }
 0x31e   : > { %9227 = vst [vmem:[#allocation43_spill] sm:$0xff] %v8102_v44  ;;  %9228 = vst [vmem:[#allocation44_spill] sm:$0xff] %v8104_v42  ;;  %v5603_v23 = vpop.f32.mrb[28].mxu0  ;;  %v8106_v38 = vpop.f32.mrb[61].mxu1 }
 0x31f   : > { %9229 = vst [vmem:[#allocation45_spill] sm:$0xff] %v8106_v38  ;;  %v8109_v4 = vadd.f32 %v5603_v23, %v7970_v27  ;;  %v3116_v28 = vpop.f32.mrb[29].mxu0  ;;  %v3537_v27 = vadd.f32 (!%p4408_p2), %v7984_v2, %v7982_v32 }
 0x320   : > { %v8112_v49 = vadd.f32 %v3116_v28, %v7972_v14  ;;  %3529 = sbr.rel (%p4408_p2) target bundleno = 896 (0x380), region = 72 }
 0x321   : > { %9230 = vst [vmem:[#allocation46_spill] sm:$0xff] %v8109_v4  ;;  %v8114_v54 = vpop.f32.mrb[62].mxu1  ;;  %v3538_v14 = vadd.f32 (!%p4408_p2), %v7992_v36, %v3537_v27  ;;  %v3579_v27 = vmul.f32 (!%p4408_p2), %v7990_v24, %v7990_v24 }
 0x322   : > { %9231 = vst [vmem:[#allocation47_spill] sm:$0xff] %v8112_v49  ;;  %9232 = vst [vmem:[#allocation48_spill] sm:$0xff] %v8114_v54  ;;  %v5606_v63 = vpop.f32.mrb[30].mxu0  ;;  %v8116_v56 = vpop.f32.mrb[63].mxu1 }
 0x323   : > { %9233 = vst [vmem:[#allocation49_spill] sm:$0xff] %v8116_v56  ;;  %v8119_v15 = vadd.f32 %v5606_v63, %v7974_v48  ;;  %v3126_v9 = vpop.f32.mrb[31].mxu0  ;;  %v3539_v23 = vadd.f32 (!%p4408_p2), %v7990_v24, %v3538_v14  ;;  %v3576_v48 = vmul.f32 (!%p4408_p2), %v7984_v2, %v7984_v2  ;;  %v3651_v14 = vadd.f32 (!%p4408_p2), %v7978_v57, %v7980_v59 }
 0x324   : > { %v8122_v42 = vadd.f32 %v3126_v9, %v7976_v11  ;;  %v3577_v11 = vmul.f32 (!%p4408_p2), %v7982_v32, %v7982_v32  ;;  %v3578_v9 = vmul.f32 (!%p4408_p2), %v7992_v36, %v7992_v36  ;;  %v3580_v2 = vmul.f32 (!%p4408_p2), %v8000_v39, %v8000_v39 }
 0x325   : > { %9234 = vst [vmem:[#allocation50_spill] sm:$0xff] %v8119_v15  ;;  %v3540_v28 = vadd.f32 (!%p4408_p2), %v8000_v39, %v3539_v23 }
 0x326   : > { %9235 = vst [vmem:[#allocation51_spill] sm:$0xff] %v8122_v42  ;;  %v3608_v56 = vadd.f32 (!%p4408_p2), %v3577_v11, %v3576_v48  ;;  %v3582_v11 = vmul.f32 (!%p4408_p2), %v8008_v20, %v8008_v20 }
 0x327   : > { %v3541_v63 = vadd.f32 %v7998_v29, %v3540_v28  ;;  %v3652_v28 = vadd.f32 %v3651_v14, %v7988_v47  ;;  %s3531_s17 = scalar_select %p400_p7, 1, 0 }
 0x328   : > { %v3609_v32 = vadd.f32 %v3608_v56, %v3578_v9  ;;  %v3583_v9 = vmul.f32 %v8006_v58, %v8006_v58 }
 0x329   : > { %v3542_v54 = vadd.f32 %v8008_v20, %v3541_v63  ;;  %v3581_v63 = vmul.f32 %v7998_v29, %v7998_v29  ;;  %v3653_v24 = vadd.f32 %v7986_v31, %v3652_v28  ;;  %v3690_v28 = vmul.f32 %v7980_v59, %v7980_v59 }
 0x32a   : > { %v3610_v36 = vadd.f32 %v3609_v32, %v3579_v27 }
 0x32b   : > { %v3543_v23 = vadd.f32 %v8006_v58, %v3542_v54  ;;  %v3654_v15 = vadd.f32 %v3653_v24, %v7996_v18 }
 0x32c   : > { %v3611_v54 = vadd.f32 %v3610_v36, %v3580_v2  ;;  %v3691_v2 = vmul.f32 %v7978_v57, %v7978_v57 }
 0x32d   : > { %v3544_v38 = vadd.f32 %v8016_v55, %v3543_v23  ;;  %v3584_v23 = vmul.f32 %v8016_v55, %v8016_v55  ;;  %v3655_v32 = vadd.f32 %v7994_v34, %v3654_v15  ;;  %v3692_v15 = vmul.f32 %v7988_v47, %v7988_v47 }
 0x32e   : > { %v3612_v14 = vadd.f32 %v3611_v54, %v3581_v63  ;;  %v3585_v63 = vmul.f32 %v8014_v8, %v8014_v8  ;;  %v3722_v55 = vadd.f32 %v3691_v2, %v3690_v28  ;;  %v3695_v2 = vmul.f32 %v7994_v34, %v7994_v34 }
 0x32f   : > { %v3545_v48 = vadd.f32 %v8014_v8, %v3544_v38  ;;  %v3656_v24 = vadd.f32 %v3655_v32, %v8004_v37  ;;  %v3693_v32 = vmul.f32 %v7986_v31, %v7986_v31 }
 0x330   : > { %v3613_v38 = vadd.f32 %v3612_v14, %v3582_v11  ;;  %v3586_v11 = vmul.f32 %v8024_v26, %v8024_v26  ;;  %v3723_v58 = vadd.f32 %v3722_v55, %v3692_v15  ;;  %v3696_v15 = vmul.f32 %v8004_v37, %v8004_v37 }
 0x331   : > { %v3546_v56 = vadd.f32 %v8024_v26, %v3545_v48  ;;  %v3657_v54 = vadd.f32 %v8002_v16, %v3656_v24  ;;  %v3694_v26 = vmul.f32 %v7996_v18, %v7996_v18  ;;  %v3588_v24 = vmul.f32 %v8032_v0, %v8032_v0 }
 0x332   : > { %v3614_v48 = vadd.f32 %v3613_v38, %v3583_v9 }
 0x333   : > { %v3547_v27 = vadd.f32 %v8022_v13, %v3546_v56  ;;  %v3658_v9 = vadd.f32 %v3657_v54, %v8012_v52  ;;  %v3589_v54 = vmul.f32 %v8030_v50, %v8030_v50 }
 0x334   : > { %v3615_v14 = vadd.f32 %v3614_v48, %v3584_v23  ;;  %v3724_v48 = vadd.f32 %v3723_v58, %v3693_v32  ;;  %v3697_v32 = vmul.f32 %v8002_v16, %v8002_v16 }
 0x335   : > { %v3548_v36 = vadd.f32 %v8032_v0, %v3547_v27  ;;  %v3587_v27 = vmul.f32 %v8022_v13, %v8022_v13  ;;  %v3659_v23 = vadd.f32 %v8010_v21, %v3658_v9  ;;  %v3590_v9 = vmul.f32 %v8042_v35, %v8042_v35 }
 0x336   : > { %v3616_v8 = vadd.f32 %v3615_v14, %v3585_v63  ;;  %v3725_v14 = vadd.f32 %v3724_v48, %v3694_v26 }
 0x337   : > { %v3549_v56 = vadd.f32 %v8030_v50, %v3548_v36  ;;  %v3660_v63 = vadd.f32 %v3659_v23, %v8020_v17  ;;  %v3591_v23 = vmul.f32 %v8039_v25, %v8039_v25 }
 0x338   : > { %v3617_v28 = vadd.f32 %v3616_v8, %v3586_v11 }
 0x339   : > { %v3550_v38 = vadd.f32 %v8042_v35, %v3549_v56  ;;  %v3661_v8 = vadd.f32 %v8018_v51, %v3660_v63  ;;  %v3592_v63 = vmul.f32 %v8052_v61, %v8052_v61 }
 0x33a   : > { %v3618_v55 = vadd.f32 %v3617_v28, %v3587_v27  ;;  %v3698_v28 = vmul.f32 %v8012_v52, %v8012_v52 }
 0x33b   : > { %v3551_v36 = vadd.f32 %v8039_v25, %v3550_v38  ;;  %v3726_v38 = vadd.f32 %v3725_v14, %v3695_v2  ;;  %v3662_v27 = vadd.f32 %v3661_v8, %v8028_v22  ;;  %v3593_v8 = vmul.f32 %v8049_v1, %v8049_v1 }
 0x33c   : > { %v3619_v58 = vadd.f32 %v3618_v55, %v3588_v24  ;;  %v3699_v55 = vmul.f32 %v8010_v21, %v8010_v21 }
 0x33d   : > { %v3552_v56 = vadd.f32 %v8052_v61, %v3551_v36  ;;  %v3727_v48 = vadd.f32 %v3726_v38, %v3696_v15  ;;  %v3663_v24 = vadd.f32 %v8026_v3, %v3662_v27  ;;  %v3594_v27 = vmul.f32 %v8062_v33, %v8062_v33 }
 0x33e   : > { %v3620_v26 = vadd.f32 %v3619_v58, %v3589_v54  ;;  %v3700_v58 = vmul.f32 %v8020_v17, %v8020_v17 }
 0x33f   : > { %v3553_v11 = vadd.f32 %v8049_v1, %v3552_v56  ;;  %v3728_v14 = vadd.f32 %v3727_v48, %v3697_v32  ;;  %v3664_v54 = vadd.f32 %v3663_v24, %v8036_v10  ;;  %v3595_v24 = vmul.f32 %v8059_v60, %v8059_v60 }
 0x340   : > { %v3621_v2 = vadd.f32 %v3620_v26, %v3590_v9  ;;  %v3701_v26 = vmul.f32 %v8018_v51, %v8018_v51 }
 0x341   : > { %v3554_v36 = vadd.f32 %v8062_v33, %v3553_v11  ;;  %v3729_v38 = vadd.f32 %v3728_v14, %v3698_v28  ;;  %v3665_v9 = vadd.f32 %v8034_v6, %v3664_v54  ;;  %v3596_v54 = vmul.f32 %v8072_v53, %v8072_v53 }
 0x342   : > { %v3622_v15 = vadd.f32 %v3621_v2, %v3591_v23  ;;  %v3702_v2 = vmul.f32 %v8028_v22, %v8028_v22 }
 0x343   : > { %v3555_v56 = vadd.f32 %v8059_v60, %v3554_v36  ;;  %v3730_v48 = vadd.f32 %v3729_v38, %v3699_v55  ;;  %v3666_v23 = vadd.f32 %v3665_v9, %v8046_v40  ;;  %v3597_v9 = vmul.f32 %v8069_v45, %v8069_v45 }
 0x344   : > { %v3623_v32 = vadd.f32 %v3622_v15, %v3592_v63  ;;  %v3703_v15 = vmul.f32 %v8026_v3, %v8026_v3 }
 0x345   : > { %v3556_v11 = vadd.f32 %v8072_v53, %v3555_v56  ;;  %v3731_v14 = vadd.f32 %v3730_v48, %v3700_v58  ;;  %v3667_v63 = vadd.f32 %v8044_v62, %v3666_v23  ;;  %v3598_v23 = vmul.f32 %v8082_v41, %v8082_v41 }
 0x346   : > { %v3624_v28 = vadd.f32 %v3623_v32, %v3593_v8  ;;  %v3704_v32 = vmul.f32 %v8036_v10, %v8036_v10 }
 0x347   : > { %v3557_v36 = vadd.f32 %v8069_v45, %v3556_v11  ;;  %v3732_v38 = vadd.f32 %v3731_v14, %v3701_v26  ;;  %v3668_v8 = vadd.f32 %v3667_v63, %v8056_v12  ;;  %v3599_v63 = vmul.f32 %v8079_v30, %v8079_v30 }
 0x348   : > { %v3625_v55 = vadd.f32 %v3624_v28, %v3594_v27  ;;  %v3705_v28 = vmul.f32 %v8034_v6, %v8034_v6  ;;  %v3532_v45 = vstv %s3531_s17 }
 0x349   : > { %v3558_v56 = vadd.f32 %v8082_v41, %v3557_v36  ;;  %v3733_v48 = vadd.f32 %v3732_v38, %v3702_v2  ;;  %v3669_v27 = vadd.f32 %v8054_v19, %v3668_v8  ;;  %v3600_v8 = vmul.f32 %v8092_v5, %v8092_v5 }
 0x34a   : > { %v3626_v58 = vadd.f32 %v3625_v55, %v3595_v24  ;;  %v3706_v55 = vmul.f32 %v8046_v40, %v8046_v40  ;;  %vm8305_vm4 = vcmp.eq.s32.totalorder %v3532_v45, 1 }
 0x34b   : > { %v3559_v11 = vadd.f32 %v8079_v30, %v3558_v56  ;;  %v3734_v14 = vadd.f32 %v3733_v48, %v3703_v15  ;;  %v3670_v24 = vadd.f32 %v3669_v27, %v8066_v43  ;;  %v3707_v48 = vmul.f32 %v8044_v62, %v8044_v62 }
 0x34c   : > { %v3627_v26 = vadd.f32 %v3626_v58, %v3596_v54  ;;  %v9237_v54 = vld [vmem:[#allocation56_spill] sm:$0xff]  ;;  %v3601_v27 = vmul.f32 %v8089_v7, %v8089_v7 }
 0x34d   : > { %v3560_v36 = vadd.f32 %v8092_v5, %v3559_v11  ;;  %v3735_v38 = vadd.f32 %v3734_v14, %v3704_v32  ;;  %v3708_v14 = vmul.f32 %v8056_v12, %v8056_v12 }
 0x34e   : > { %v3628_v2 = vadd.f32 %v3627_v26, %v3597_v9  ;;  %v9238_v9 = vld [vmem:[#allocation33_spill] sm:$0xff] }
 0x34f   : > { %v3561_v56 = vadd.f32 %v8089_v7, %v3560_v36  ;;  %v3671_v36 = vadd.f32 %v9237_v54, %v3670_v24  ;;  %v3736_v30 = vadd.f32 %v3735_v38, %v3705_v28  ;;  %v3709_v7 = vmul.f32 %v8054_v19, %v8054_v19 }
 0x350   : > { %v3629_v15 = vadd.f32 %v3628_v2, %v3598_v23  ;;  %v3602_v23 = vmul.f32 %v8102_v44, %v8102_v44  ;;  %v3712_v41 = vmul.f32 %v9238_v9, %v9238_v9 }
 0x351   : > { %v3562_v11 = vadd.f32 %v8102_v44, %v3561_v56  ;;  %v3672_v56 = vadd.f32 %v3671_v36, %v9238_v9  ;;  %v3737_v24 = vadd.f32 %v3736_v30, %v3706_v55  ;;  %v3710_v55 = vmul.f32 %v8066_v43, %v8066_v43 }
 0x352   : > { %v3630_v32 = vadd.f32 %v3629_v15, %v3599_v63  ;;  %v9241_v63 = vld [vmem:[#allocation37_spill] sm:$0xff] }
 0x353   : > { %v3563_v58 = vadd.f32 %v8099_v46, %v3562_v11  ;;  %v9240_v11 = vld [vmem:[#allocation32_spill] sm:$0xff]  ;;  %v3738_v36 = vadd.f32 %v3737_v24, %v3707_v48  ;;  %v9243_v48 = vld [vmem:[#allocation50_spill] sm:$0xff] }
 0x354   : > { %v3673_v2 = vadd.f32 %v9240_v11, %v3672_v56  ;;  %v3631_v38 = vadd.f32 %v3630_v32, %v3600_v8  ;;  %v3604_v8 = vmul.f32 %v8112_v49, %v8112_v49  ;;  %v9242_v56 = vld [vmem:[#allocation36_spill] sm:$0xff] }
 0x355   : > { %v3564_v26 = vadd.f32 %v8112_v49, %v3563_v58  ;;  %v3603_v58 = vmul.f32 %v8099_v46, %v8099_v46  ;;  %v3739_v44 = vadd.f32 %v3738_v36, %v3708_v14 }
 0x356   : > { %v3674_v15 = vadd.f32 %v3673_v2, %v9241_v63  ;;  %v3632_v30 = vadd.f32 %v3631_v38, %v3601_v27  ;;  %v3711_v2 = vmul.f32 %v9237_v54, %v9237_v54  ;;  %v3605_v27 = vmul.f32 %v8109_v4, %v8109_v4 }
 0x357   : > { %v3565_v28 = vadd.f32 %v8109_v4, %v3564_v26  ;;  %v3740_v46 = vadd.f32 %v3739_v44, %v3709_v7  ;;  %v3713_v44 = vmul.f32 %v9240_v11, %v9240_v11 }
 0x358   : > { %v3675_v26 = vadd.f32 %v9242_v56, %v3674_v15  ;;  %v3633_v24 = vadd.f32 %v3632_v30, %v3602_v23  ;;  %v9245_v23 = vld [vmem:[#allocation40_spill] sm:$0xff] }
 0x359   : > { %v3566_v5 = vadd.f32 %v8122_v42, %v3565_v28  ;;  %v9244_v28 = vld [vmem:[#allocation41_spill] sm:$0xff]  ;;  %v3741_v49 = vadd.f32 %v3740_v46, %v3710_v55  ;;  %v3714_v46 = vmul.f32 %v9241_v63, %v9241_v63 }
 0x35a   : > { %v3676_v38 = vadd.f32 %v3675_v26, %v9244_v28  ;;  %v3634_v36 = vadd.f32 %v3633_v24, %v3603_v58  ;;  %v3607_v26 = vmul.f32 %v9243_v48, %v9243_v48  ;;  %v9246_v58 = vld [vmem:[#allocation45_spill] sm:$0xff] }
 0x35b   : > { %v3567_v32 = vadd.f32 %v9243_v48, %v3566_v5  ;;  %v3606_v5 = vmul.f32 %v8122_v42, %v8122_v42  ;;  %v3742_v7 = vadd.f32 %v3741_v49, %v3711_v2  ;;  %v3715_v48 = vmul.f32 %v9242_v56, %v9242_v56 }
 0x35c   : > { %v3677_v15 = vadd.f32 %v9245_v23, %v3676_v38  ;;  %v3635_v54 = vadd.f32 %v3634_v36, %v3604_v8  ;;  %v9249_v8 = vld [vmem:[#allocation44_spill] sm:$0xff] }
 0x35d   : > { %v3568_v14 = vrot.slane %v3567_v32, 4  ;;  %v3743_v55 = vadd.f32 %v3742_v7, %v3712_v41  ;;  %v3530_v38 = vld [vmem:[#allocation2] sm:$0x1]  ;;  %v3716_v41 = vmul.f32 %v9244_v28, %v9244_v28 }
 0x35e   : > { %v3678_v24 = vadd.f32 %v3677_v15, %v9246_v58  ;;  %v3636_v9 = vadd.f32 %v3635_v54, %v3605_v27  ;;  %v3534_v63 = vsel %vm8305_vm4, 0.0, %v3530_v38  ;;  %v9251_v54 = vld [vmem:[#allocation48_spill] sm:$0xff] }
 0x35f   : > { %v3569_v30 = vadd.f32 %v3568_v14, %v3567_v32  ;;  %v3744_v2 = vadd.f32 %v3743_v55, %v3713_v44  ;;  %v9250_v14 = vld [vmem:[#allocation49_spill] sm:$0xff] }
 0x360   : > { %v3679_v32 = vadd.f32 %v9249_v8, %v3678_v24  ;;  %v3637_v49 = vadd.f32 %v3636_v9, %v3606_v5  ;;  %v3717_v5 = vmul.f32 %v9245_v23, %v9245_v23  ;;  %v3720_v23 = vmul.f32 %v9250_v14, %v9250_v14 }
 0x361   : > { %v3570_v4 = vrot.slane %v3569_v30, 2  ;;  %v3745_v45 = vadd.f32 %v3744_v2, %v3714_v46 }
 0x362   : > { %v3680_v36 = vadd.f32 %v3679_v32, %v9250_v14  ;;  %v3638_v15 = vadd.f32 %v3637_v49, %v3607_v26  ;;  %v3718_v26 = vmul.f32 %v9246_v58, %v9246_v58  ;;  %v3719_v32 = vmul.f32 %v9249_v8, %v9249_v8  ;;  %v3535_v49 = vld [vmem:[#allocation3] sm:$0x1] }
 0x363   : > { %v3571_v11 = vadd.f32 %v3570_v4, %v3569_v30  ;;  %v3746_v56 = vadd.f32 %v3745_v45, %v3715_v48  ;;  %v3721_v58 = vmul.f32 %v9251_v54, %v9251_v54  ;;  %v3536_v45 = vsel %vm8305_vm4, 0.0, %v3535_v49 }
 0x364   : > { %v3681_v7 = vadd.f32 %v9251_v54, %v3680_v36  ;;  %v3639_v4 = vrot.slane %v3638_v15, 4  ;;  %v3647_v36 = vld [vmem:[#allocation4] sm:$0x1]  ;;  %v3649_v54 = vld [vmem:[#allocation5] sm:$0x1] }
 0x365   : > { %v3572_v27 = vrot.slane %v3571_v11, 1  ;;  %v3747_v55 = vadd.f32 %v3746_v56, %v3716_v41 }
 0x366   : > { %v3682_v30 = vrot.slane %v3681_v7, 4  ;;  %v3640_v9 = vadd.f32 %v3639_v4, %v3638_v15 }
 0x367   : > { %v3573_v24 = vadd.f32 %v3572_v27, %v3571_v11  ;;  %v3748_v38 = vadd.f32 %v3747_v55, %v3717_v5 }
 0x368   : > { %v3683_v28 = vadd.f32 %v3682_v30, %v3681_v7  ;;  %v3641_v46 = vrot.slane %v3640_v9, 2  ;;  %v3648_v7 = vsel %vm8305_vm4, 0.0, %v3647_v36 }
 0x369   : > { %v3574_v44 = vadd.f32 %v3573_v24, %v3534_v63  ;;  %v3749_v48 = vadd.f32 %v3748_v38, %v3718_v26 }
 0x36a   : > { %v3684_v11 = vrot.slane %v3683_v28, 2  ;;  %v3642_v2 = vadd.f32 %v3641_v46, %v3640_v9 }
 0x36b   : > { %3575 = vst [vmem:[#allocation2] sm:$0x1] %v3574_v44  ;;  %v3750_v41 = vadd.f32 %v3749_v48, %v3719_v32 }
 0x36c   : > { %v3685_v27 = vadd.f32 %v3684_v11, %v3683_v28  ;;  %v3643_v15 = vrot.slane %v3642_v2, 1  ;;  %v3650_v28 = vsel %vm8305_vm4, 0.0, %v3649_v54 }
 0x36d   : > { %v3751_v24 = vadd.f32 %v3750_v41, %v3720_v23 }
 0x36e   : > { %v3686_v63 = vrot.slane %v3685_v27, 1  ;;  %v3644_v8 = vadd.f32 %v3643_v15, %v3642_v2 }
 0x36f   : > { %v3752_v14 = vadd.f32 %v3751_v24, %v3721_v58 }
 0x370   : > { %v3687_v4 = vadd.f32 %v3686_v63, %v3685_v27  ;;  %v3645_v5 = vadd.f32 %v3644_v8, %v3536_v45 }
 0x371   : > { %v3753_v30 = vrot.slane %v3752_v14, 4 }
 0x372   : > { %v3688_v56 = vadd.f32 %v3687_v4, %v3648_v7  ;;  %3646 = vst [vmem:[#allocation3] sm:$0x1] %v3645_v5 }
 0x373   : > { %v3754_v44 = vadd.f32 %v3753_v30, %v3752_v14 }
 0x374   : > { %3689 = vst [vmem:[#allocation4] sm:$0x1] %v3688_v56 }
 0x375   : > { %v3755_v9 = vrot.slane %v3754_v44, 2 }
 0x377   : > { %v3756_v26 = vadd.f32 %v3755_v9, %v3754_v44 }
 0x379   : > { %v3757_v55 = vrot.slane %v3756_v26, 1 }
 0x37b   : > { %v3758_v46 = vadd.f32 %v3757_v55, %v3756_v26 }
 0x37d   : > { %v3759_v32 = vadd.f32 %v3758_v46, %v3650_v28 }
 0x37f   : > { %3760 = vst [vmem:[#allocation5] sm:$0x1] %v3759_v32 }
 0x380 PF: > { %s9252_s3 = sld [smem:[#allocation27_spill]] }
 0x386   : > { %p4409_p1 = scmp.ne.s32.totalorder %s9252_s3, 1 }
 0x387   : > { %v3765_v38 = vld [vmem:[#allocation2] sm:$0x1] (!%p4409_p1)  ;;  %v3767_v11 = vld [vmem:[#allocation3] sm:$0x1] (!%p4409_p1)  ;;  %v3773_v49 = vlaneseq (!%p4409_p1)  ;;  %v3924_v48 = vld [vmem:[#allocation4] sm:$0x1] (!%p4409_p1) }
 0x388   : > { %3764 = sbr.rel (%p4409_p1) target bundleno = 1013 (0x3f5), region = 76  ;;  %v3766_v2 = vmul.f32 (!%p4409_p1), 0.001953125, %v3765_v38  ;;  %v3768_v23 = vmul.f32 (!%p4409_p1), 0.001953125, %v3767_v11  ;;  %v3925_v27 = vmul.f32 (!%p4409_p1), 0.001953125, %v3924_v48  ;;  %v3926_v15 = vld [vmem:[#allocation5] sm:$0x1] (!%p4409_p1) }
 0x389   : > { %v3774_v36 = vshrl.u32 (!%p4409_p1), %v3773_v49, 7  ;;  %v3927_v41 = vmul.f32 (!%p4409_p1), 0.001953125, %v3926_v15  ;;  %v9253_v5 = vld [vmem:[#allocation66_spill] sm:$0xff] (!%p4409_p1)  ;;  %v9254_v44 = vld [vmem:[#allocation65_spill] sm:$0xff] (!%p4409_p1)  ;;  %v9255_v55 = vld [vmem:[#allocation68_spill] sm:$0xff] (!%p4409_p1) }
 0x38a   : > { %v3769_v58 = vmul.f32 (!%p4409_p1), %v3766_v2, %v3766_v2  ;;  %v3928_v45 = vmul.f32 (!%p4409_p1), %v3925_v27, %v3925_v27  ;;  %v9256_v38 = vld [vmem:[#allocation67_spill] sm:$0xff] (!%p4409_p1)  ;;  %v8454_v26 = vld [vmem:[#allocation14] ss:$0 sm:$0xff] (!%p4409_p1) }
 0x38b   : > { %v8335_v42 = vsub.s32 (!%p4409_p1), 0, %v3774_v36 }
 0x38c   : > { %v3770_v63 = vsub.f32 (!%p4409_p1), %v3768_v23, %v3769_v58  ;;  %v3929_v7 = vsub.f32 (!%p4409_p1), %v3927_v41, %v3928_v45  ;;  %v9257_v58 = vld [vmem:[#allocation69_spill] sm:$0xff] (!%p4409_p1)  ;;  %v9261_v41 = vld [vmem:[#allocation31_spill] sm:$0xff] (!%p4409_p1)  ;;  %v9262_v45 = vld [vmem:[#allocation56_spill] sm:$0xff] (!%p4409_p1) }
 0x38d   : > { %v8338_v8 = vrot.slane (!%p4409_p1), %v3766_v2, %v8335_v42  ;;  %v8341_v24 = vrot.slane (!%p4409_p1), %v3925_v27, %v8335_v42  ;;  %v8480_v2 = vld [vmem:[#allocation14 + $0x1] ss:$0 sm:$0xff] (!%p4409_p1) }
 0x38e   : > { %v3771_v4 = vmax.f32 (!%p4409_p1), %v3770_v63, 0.0  ;;  %v3930_v56 = vmax.f32 (!%p4409_p1), %v3929_v7, 0.0  ;;  %v9258_v63 = vld [vmem:[#allocation70_spill] sm:$0xff] (!%p4409_p1) }
 0x38f   : > { %v3781_v11 = vsub.f32 %v9256_v38, %v8338_v8  ;;  %v9260_v38 = vld [vmem:[#allocation58_spill] sm:$0xff]  ;;  %v9278_v36 = vsub.f32 %v9255_v55, %v8338_v8  ;;  %v9280_v15 = vsub.f32 %v7978_v57, %v8341_v24 }
 0x390   : > { %v3810_v54 = vadd.f32 1e-05, %v3771_v4  ;;  %v3969_v32 = vadd.f32 1e-05, %v3930_v56  ;;  %v9259_v56 = vld [vmem:[#allocation57_spill] sm:$0xff] }
 0x392   : > { %6386 = vrsqrt.f32 %v3810_v54  ;;  %v9276_v54 = vsub.f32 %v9253_v5, %v8338_v8  ;;  %v9279_v5 = vsub.f32 %v7980_v59, %v8341_v24  ;;  %v8499_v59 = vld [vmem:[#allocation15 + $0x1] ss:$0 sm:$0xff] }
 0x393   : > { %6388 = vrsqrt.f32 %v3969_v32  ;;  %v8469_v32 = vld [vmem:[#allocation15] ss:$0 sm:$0xff] }
 0x39c   : > { %v6387_v49 = vpop.eup %6386 }
 0x39d   : > { %v6389_v48 = vpop.eup %6388  ;;  %v8446_v9 = vrot.slane %v6387_v49, %v8335_v42 }
 0x39e   : > { %v8457_v30 = vrot.slane %v6389_v48, %v8335_v42  ;;  %v9277_v42 = vsub.f32 %v9254_v44, %v8338_v8 }
 0x39f   : > { %v3818_v14 = vmul.f32 %v8446_v9, %v9276_v54  ;;  %v3820_v27 = vmul.f32 %v8446_v9, %v9278_v36  ;;  %v3821_v49 = vmul.f32 %v8446_v9, %v3781_v11  ;;  %v9282_v11 = vsub.f32 %v7986_v31, %v8341_v24 }
 0x3a0   : > { %v3819_v48 = vmul.f32 %v8446_v9, %v9277_v42  ;;  %v3977_v54 = vmul.f32 %v8457_v30, %v9279_v5  ;;  %v3978_v44 = vmul.f32 %v8457_v30, %v9280_v15  ;;  %v9281_v42 = vsub.f32 %v7988_v47, %v8341_v24 }
 0x3a1   : > { %v3980_v36 = vmul.f32 %v8457_v30, %v9282_v11  ;;  %v3855_v28 = vmul.f32 %v8454_v26, %v3818_v14  ;;  %v3857_v57 = vmul.f32 %v8454_v26, %v3820_v27  ;;  %v3858_v15 = vmul.f32 %v8454_v26, %v3821_v49 }
 0x3a2   : > { %v3979_v55 = vmul.f32 %v8457_v30, %v9281_v42  ;;  %v3856_v5 = vmul.f32 %v8454_v26, %v3819_v48  ;;  %v4014_v46 = vmul.f32 %v8469_v32, %v3977_v54  ;;  %v4015_v47 = vmul.f32 %v8469_v32, %v3978_v44 }
 0x3a3   : > { %v4017_v31 = vmul.f32 %v8469_v32, %v3980_v36  ;;  %v3892_v11 = vadd.f32 %v8480_v2, %v3855_v28  ;;  %v3894_v23 = vadd.f32 %v8480_v2, %v3857_v57  ;;  %v3895_v48 = vadd.f32 %v8480_v2, %v3858_v15 }
 0x3a4   : > { %v4016_v42 = vmul.f32 %v8469_v32, %v3979_v55  ;;  %v3893_v14 = vadd.f32 %v8480_v2, %v3856_v5  ;;  %v4051_v27 = vadd.f32 %v8499_v59, %v4014_v46  ;;  %v4052_v49 = vadd.f32 %v8499_v59, %v4015_v47 }
 0x3a5   : > { %v4054_v44 = vadd.f32 %v8499_v59, %v4017_v31  ;;  %v9283_v55 = vsub.f32 %v8000_v39, %v8338_v8  ;;  %v9284_v28 = vsub.f32 %v7996_v18, %v8341_v24  ;;  %v9285_v57 = vsub.f32 %v7998_v29, %v8338_v8 }
 0x3a6   : > { %v4053_v54 = vadd.f32 %v8499_v59, %v4016_v42  ;;  %v9286_v15 = vsub.f32 %v7994_v34, %v8341_v24  ;;  %v4083_v42 = vadd.f32 %v4051_v27, %v3892_v11  ;;  %v4084_v39 = vadd.f32 %v4052_v49, %v3893_v14 }
 0x3a7   : > { %v3822_v36 = vmul.f32 %v8446_v9, %v9283_v55  ;;  %v3981_v5 = vmul.f32 %v8457_v30, %v9284_v28  ;;  %v3823_v46 = vmul.f32 %v8446_v9, %v9285_v57  ;;  %v4086_v55 = vadd.f32 %v4054_v44, %v3895_v48 }
 0x3a8   : > { %v3982_v47 = vmul.f32 %v8457_v30, %v9286_v15  ;;  %v4085_v31 = vadd.f32 %v4053_v54, %v3894_v23  ;;  %v4115_v4 = vmax.f32 %v4083_v42, 0.0  ;;  %v4116_v34 = vmax.f32 %v4084_v39, 0.0 }
 0x3a9   : > { %v3859_v18 = vmul.f32 %v8454_v26, %v3822_v36  ;;  %v4018_v28 = vmul.f32 %v8469_v32, %v3981_v5  ;;  %v3860_v29 = vmul.f32 %v8454_v26, %v3823_v46  ;;  %v4118_v15 = vmax.f32 %v4086_v55, 0.0 }
 0x3aa   : > { %v4019_v57 = vmul.f32 %v8469_v32, %v3982_v47  ;;  %v4117_v7 = vmax.f32 %v4085_v31, 0.0  ;;  %4147 = vst [vmem:[%s8125_s8] sm:$0xff] %v4115_v4  ;;  %4148 = vst [vmem:[%s8125_s8 + $0x8] sm:$0xff] %v4116_v34  ;;  %v9287_v27 = vsub.f32 %v8008_v20, %v8338_v8  ;;  %v9288_v54 = vsub.f32 %v8004_v37, %v8341_v24 }
 0x3ab   : > { %v3896_v11 = vadd.f32 %v8480_v2, %v3859_v18  ;;  %v4055_v14 = vadd.f32 %v8499_v59, %v4018_v28  ;;  %v3897_v23 = vadd.f32 %v8480_v2, %v3860_v29  ;;  %4150 = vst [vmem:[%s8125_s8 + $0x18] sm:$0xff] %v4118_v15  ;;  %v9289_v36 = vsub.f32 %v9257_v58, %v8338_v8 }
 0x3ac   : > { %v4056_v48 = vadd.f32 %v8499_v59, %v4019_v57  ;;  %4149 = vst [vmem:[%s8125_s8 + $0x10] sm:$0xff] %v4117_v7  ;;  %v3824_v49 = vmul.f32 %v8446_v9, %v9287_v27  ;;  %v3983_v44 = vmul.f32 %v8457_v30, %v9288_v54  ;;  %v9290_v4 = vsub.f32 %v8002_v16, %v8341_v24 }
 0x3ad   : > { %v3825_v5 = vmul.f32 %v8446_v9, %v9289_v36  ;;  %v4087_v46 = vadd.f32 %v4055_v14, %v3896_v11  ;;  %v9291_v47 = vsub.f32 %v9258_v63, %v8338_v8  ;;  %v9292_v42 = vsub.f32 %v8012_v52, %v8341_v24 }
 0x3ae   : > { %v3984_v7 = vmul.f32 %v8457_v30, %v9290_v4  ;;  %v4088_v20 = vadd.f32 %v4056_v48, %v3897_v23  ;;  %v3861_v39 = vmul.f32 %v8454_v26, %v3824_v49  ;;  %v4020_v16 = vmul.f32 %v8469_v32, %v3983_v44 }
 0x3af   : > { %v3826_v37 = vmul.f32 %v8446_v9, %v9291_v47  ;;  %v3985_v58 = vmul.f32 %v8457_v30, %v9292_v42  ;;  %v3862_v31 = vmul.f32 %v8454_v26, %v3825_v5  ;;  %v4119_v18 = vmax.f32 %v4087_v46, 0.0 }
 0x3b0   : > { %v4021_v55 = vmul.f32 %v8469_v32, %v3984_v7  ;;  %v4120_v28 = vmax.f32 %v4088_v20, 0.0  ;;  %v3898_v57 = vadd.f32 %v8480_v2, %v3861_v39  ;;  %v4057_v52 = vadd.f32 %v8499_v59, %v4020_v16 }
 0x3b1   : > { %v3863_v63 = vmul.f32 %v8454_v26, %v3826_v37  ;;  %v4022_v29 = vmul.f32 %v8469_v32, %v3985_v58  ;;  %v3899_v34 = vadd.f32 %v8480_v2, %v3862_v31  ;;  %4151 = vst [vmem:[%s8125_s8 + $0x20] sm:$0xff] %v4119_v18  ;;  %v9293_v23 = vsub.f32 %v9259_v56, %v8338_v8 }
 0x3b2   : > { %v4058_v15 = vadd.f32 %v8499_v59, %v4021_v55  ;;  %4152 = vst [vmem:[%s8125_s8 + $0x28] sm:$0xff] %v4120_v28  ;;  %v9294_v27 = vsub.f32 %v8010_v21, %v8341_v24  ;;  %v4089_v54 = vadd.f32 %v4057_v52, %v3898_v57  ;;  %v9295_v36 = vsub.f32 %v9260_v38, %v8338_v8 }
 0x3b3   : > { %v3900_v11 = vadd.f32 %v8480_v2, %v3863_v63  ;;  %v4059_v14 = vadd.f32 %v8499_v59, %v4022_v29  ;;  %v3827_v48 = vmul.f32 %v8446_v9, %v9293_v23  ;;  %v9296_v4 = vsub.f32 %v8020_v17, %v8341_v24 }
 0x3b4   : > { %v3986_v49 = vmul.f32 %v8457_v30, %v9294_v27  ;;  %v4090_v44 = vadd.f32 %v4058_v15, %v3899_v34  ;;  %v3828_v5 = vmul.f32 %v8446_v9, %v9295_v36  ;;  %v9297_v20 = vsub.f32 %v8022_v13, %v8338_v8 }
 0x3b5   : > { %v3987_v56 = vmul.f32 %v8457_v30, %v9296_v4  ;;  %v4091_v7 = vadd.f32 %v4059_v14, %v3900_v11  ;;  %v3864_v46 = vmul.f32 %v8454_v26, %v3827_v48  ;;  %v4121_v38 = vmax.f32 %v4089_v54, 0.0 }
 0x3b6   : > { %v4023_v21 = vmul.f32 %v8469_v32, %v3986_v49  ;;  %v3829_v47 = vmul.f32 %v8446_v9, %v9297_v20  ;;  %v4122_v37 = vmax.f32 %v4090_v44, 0.0  ;;  %v3865_v42 = vmul.f32 %v8454_v26, %v3828_v5 }
 0x3b7   : > { %v4024_v58 = vmul.f32 %v8469_v32, %v3987_v56  ;;  %v4123_v17 = vmax.f32 %v4091_v7, 0.0  ;;  %v3901_v39 = vadd.f32 %v8480_v2, %v3864_v46  ;;  %4153 = vst [vmem:[%s8125_s8 + $0x30] sm:$0xff] %v4121_v38  ;;  %v9298_v18 = vsub.f32 %v8018_v51, %v8341_v24 }
 0x3b8   : > { %v4060_v16 = vadd.f32 %v8499_v59, %v4023_v21  ;;  %v3866_v31 = vmul.f32 %v8454_v26, %v3829_v47  ;;  %4154 = vst [vmem:[%s8125_s8 + $0x38] sm:$0xff] %v4122_v37  ;;  %v3902_v13 = vadd.f32 %v8480_v2, %v3865_v42  ;;  %v9299_v63 = vsub.f32 %v8032_v0, %v8338_v8 }
 0x3b9   : > { %v4061_v55 = vadd.f32 %v8499_v59, %v4024_v58  ;;  %v3988_v28 = vmul.f32 %v8457_v30, %v9298_v18  ;;  %4155 = vst [vmem:[%s8125_s8 + $0x40] sm:$0xff] %v4123_v17  ;;  %v9300_v34 = vsub.f32 %v8028_v22, %v8341_v24  ;;  %v9301_v51 = vsub.f32 %v8030_v50, %v8338_v8 }
 0x3ba   : > { %v3830_v29 = vmul.f32 %v8446_v9, %v9299_v63  ;;  %v4092_v57 = vadd.f32 %v4060_v16, %v3901_v39  ;;  %v3903_v52 = vadd.f32 %v8480_v2, %v3866_v31  ;;  %v9302_v48 = vsub.f32 %v8026_v3, %v8341_v24 }
 0x3bb   : > { %v3989_v15 = vmul.f32 %v8457_v30, %v9300_v34  ;;  %v3831_v11 = vmul.f32 %v8446_v9, %v9301_v51  ;;  %v4093_v14 = vadd.f32 %v4061_v55, %v3902_v13  ;;  %v4025_v0 = vmul.f32 %v8469_v32, %v3988_v28 }
 0x3bc   : > { %v3867_v23 = vmul.f32 %v8454_v26, %v3830_v29  ;;  %v3990_v27 = vmul.f32 %v8457_v30, %v9302_v48  ;;  %v4124_v49 = vmax.f32 %v4092_v57, 0.0  ;;  %v9303_v50 = vsub.f32 %v8042_v35, %v8338_v8 }
 0x3bd   : > { %v4026_v22 = vmul.f32 %v8469_v32, %v3989_v15  ;;  %v3868_v54 = vmul.f32 %v8454_v26, %v3831_v11  ;;  %v4125_v36 = vmax.f32 %v4093_v14, 0.0  ;;  %v4062_v5 = vadd.f32 %v8499_v59, %v4025_v0 }
 0x3be   : > { %v3832_v44 = vmul.f32 %v8446_v9, %v9303_v50  ;;  %v3904_v4 = vadd.f32 %v8480_v2, %v3867_v23  ;;  %v4027_v56 = vmul.f32 %v8469_v32, %v3990_v27  ;;  %4156 = vst [vmem:[%s8125_s8 + $0x48] sm:$0xff] %v4124_v49  ;;  %v9304_v21 = vsub.f32 %v8036_v10, %v8341_v24 }
 0x3bf   : > { %v4063_v3 = vadd.f32 %v8499_v59, %v4026_v22  ;;  %v3905_v7 = vadd.f32 %v8480_v2, %v3868_v54  ;;  %4157 = vst [vmem:[%s8125_s8 + $0x50] sm:$0xff] %v4125_v36  ;;  %v4094_v20 = vadd.f32 %v4062_v5, %v3903_v52  ;;  %v9305_v38 = vsub.f32 %v8039_v25, %v8338_v8 }
 0x3c0   : > { %v3869_v46 = vmul.f32 %v8454_v26, %v3832_v44  ;;  %v3991_v35 = vmul.f32 %v8457_v30, %v9304_v21  ;;  %v4064_v47 = vadd.f32 %v8499_v59, %v4027_v56  ;;  %v9306_v42 = vsub.f32 %v8034_v6, %v8341_v24 }
 0x3c1   : > { %v3833_v37 = vmul.f32 %v8446_v9, %v9305_v38  ;;  %v4095_v17 = vadd.f32 %v4063_v3, %v3904_v4  ;;  %v9307_v16 = vsub.f32 %v8052_v61, %v8338_v8  ;;  %v4126_v13 = vmax.f32 %v4094_v20, 0.0 }
 0x3c2   : > { %v3992_v58 = vmul.f32 %v8457_v30, %v9306_v42  ;;  %v3906_v10 = vadd.f32 %v8480_v2, %v3869_v46  ;;  %v4028_v39 = vmul.f32 %v8469_v32, %v3991_v35  ;;  %v4096_v25 = vadd.f32 %v4064_v47, %v3905_v7 }
 0x3c3   : > { %v3834_v31 = vmul.f32 %v8446_v9, %v9307_v16  ;;  %v3870_v55 = vmul.f32 %v8454_v26, %v3833_v37  ;;  %v4127_v18 = vmax.f32 %v4095_v17, 0.0  ;;  %v9308_v29 = vsub.f32 %v8046_v40, %v8341_v24  ;;  %4158 = vst [vmem:[%s8125_s8 + $0x58] sm:$0xff] %v4126_v13 }
 0x3c4   : > { %v4029_v6 = vmul.f32 %v8469_v32, %v3992_v58  ;;  %v4065_v28 = vadd.f32 %v8499_v59, %v4028_v39  ;;  %v4128_v61 = vmax.f32 %v4096_v25, 0.0  ;;  %v9309_v15 = vsub.f32 %v8049_v1, %v8338_v8 }
 0x3c5   : > { %v3871_v63 = vmul.f32 %v8454_v26, %v3834_v31  ;;  %v3993_v57 = vmul.f32 %v8457_v30, %v9308_v29  ;;  %v3907_v52 = vadd.f32 %v8480_v2, %v3870_v55  ;;  %4159 = vst [vmem:[%s8125_s8 + $0x60] sm:$0xff] %v4127_v18  ;;  %v9310_v0 = vsub.f32 %v8044_v62, %v8341_v24  ;;  %v9319_v18 = vld [vmem:[#allocation35_spill] sm:$0xff] }
 0x3c6   : > { %v4066_v34 = vadd.f32 %v8499_v59, %v4029_v6  ;;  %v3835_v51 = vmul.f32 %v8446_v9, %v9309_v15  ;;  %v4097_v11 = vadd.f32 %v4065_v28, %v3906_v10  ;;  %4160 = vst [vmem:[%s8125_s8 + $0x68] sm:$0xff] %v4128_v61  ;;  %v9311_v1 = vsub.f32 %v8062_v33, %v8338_v8  ;;  %v9321_v15 = vld [vmem:[#allocation33_spill] sm:$0xff] }
 0x3c7   : > { %v3908_v14 = vadd.f32 %v8480_v2, %v3871_v63  ;;  %v4030_v40 = vmul.f32 %v8469_v32, %v3993_v57  ;;  %v3994_v23 = vmul.f32 %v8457_v30, %v9310_v0  ;;  %v9312_v22 = vsub.f32 %v8056_v12, %v8341_v24  ;;  %v9323_v0 = vld [vmem:[#allocation34_spill] sm:$0xff] }
 0x3c8   : > { %v4098_v48 = vadd.f32 %v4066_v34, %v3907_v52  ;;  %v3872_v27 = vmul.f32 %v8454_v26, %v3835_v51  ;;  %v3836_v49 = vmul.f32 %v8446_v9, %v9311_v1  ;;  %v4129_v50 = vmax.f32 %v4097_v11, 0.0 }
 0x3c9   : > { %v3995_v54 = vmul.f32 %v8457_v30, %v9312_v22  ;;  %v4067_v62 = vadd.f32 %v8499_v59, %v4030_v40  ;;  %v4031_v44 = vmul.f32 %v8469_v32, %v3994_v23  ;;  %v9313_v36 = vsub.f32 %v8059_v60, %v8338_v8 }
 0x3ca   : > { %v4130_v4 = vmax.f32 %v4098_v48, 0.0  ;;  %v3909_v33 = vadd.f32 %v8480_v2, %v3872_v27  ;;  %v3873_v56 = vmul.f32 %v8454_v26, %v3836_v49  ;;  %4161 = vst [vmem:[%s8125_s8 + $0x70] sm:$0xff] %v4129_v50  ;;  %v9314_v21 = vsub.f32 %v8054_v19, %v8341_v24  ;;  %v9325_v27 = vld [vmem:[#allocation32_spill] sm:$0xff] }
 0x3cb   : > { %v3837_v5 = vmul.f32 %v8446_v9, %v9313_v36  ;;  %v4032_v3 = vmul.f32 %v8469_v32, %v3995_v54  ;;  %v4099_v12 = vadd.f32 %v4067_v62, %v3908_v14  ;;  %v4068_v7 = vadd.f32 %v8499_v59, %v4031_v44 }
 0x3cc   : > { %v3996_v60 = vmul.f32 %v8457_v30, %v9314_v21  ;;  %4162 = vst [vmem:[%s8125_s8 + $0x78] sm:$0xff] %v4130_v4  ;;  %v3910_v35 = vadd.f32 %v8480_v2, %v3873_v56  ;;  %v9315_v47 = vsub.f32 %v8072_v53, %v8338_v8  ;;  %v9316_v37 = vsub.f32 %v8066_v43, %v8341_v24  ;;  %v9327_v4 = vld [vmem:[#allocation39_spill] sm:$0xff] }
 0x3cd   : > { %v3874_v46 = vmul.f32 %v8454_v26, %v3837_v5  ;;  %v4069_v20 = vadd.f32 %v8499_v59, %v4032_v3  ;;  %v4131_v58 = vmax.f32 %v4099_v12, 0.0  ;;  %v4100_v17 = vadd.f32 %v4068_v7, %v3909_v33  ;;  %v9329_v7 = vld [vmem:[#allocation37_spill] sm:$0xff] }
 0x3ce   : > { %v3838_v38 = vmul.f32 %v8446_v9, %v9315_v47  ;;  %v3997_v42 = vmul.f32 %v8457_v30, %v9316_v37  ;;  %v4033_v10 = vmul.f32 %v8469_v32, %v3996_v60  ;;  %v9317_v53 = vsub.f32 %v9261_v41, %v8338_v8  ;;  %v9331_v60 = vld [vmem:[#allocation38_spill] sm:$0xff] }
 0x3cf   : > { %v3911_v19 = vadd.f32 %v8480_v2, %v3874_v46  ;;  %v4101_v39 = vadd.f32 %v4069_v20, %v3910_v35  ;;  %4163 = vst [vmem:[%s8125_s8 + $0x80] sm:$0xff] %v4131_v58  ;;  %v4132_v13 = vmax.f32 %v4100_v17, 0.0  ;;  %v9318_v55 = vsub.f32 %v9262_v45, %v8341_v24 }
 0x3d0   : > { %v3875_v16 = vmul.f32 %v8454_v26, %v3838_v38  ;;  %v4034_v31 = vmul.f32 %v8469_v32, %v3997_v42  ;;  %v3839_v43 = vmul.f32 %v8446_v9, %v9317_v53  ;;  %v4070_v25 = vadd.f32 %v8499_v59, %v4033_v10  ;;  %v9333_v42 = vld [vmem:[#allocation36_spill] sm:$0xff] }
 0x3d1   : > { %v3998_v6 = vmul.f32 %v8457_v30, %v9318_v55  ;;  %v9320_v28 = vsub.f32 %v9319_v18, %v8338_v8  ;;  %v4133_v29 = vmax.f32 %v4101_v39, 0.0  ;;  %4164 = vst [vmem:[%s8125_s8 + $0x88] sm:$0xff] %v4132_v13  ;;  %v9322_v51 = vsub.f32 %v9321_v15, %v8341_v24  ;;  %v9335_v13 = vld [vmem:[#allocation43_spill] sm:$0xff] }
 0x3d2   : > { %v3912_v41 = vadd.f32 %v8480_v2, %v3875_v16  ;;  %v4071_v57 = vadd.f32 %v8499_v59, %v4034_v31  ;;  %v3876_v61 = vmul.f32 %v8454_v26, %v3839_v43  ;;  %v4102_v52 = vadd.f32 %v4070_v25, %v3911_v19 }
 0x3d3   : > { %v3840_v63 = vmul.f32 %v8446_v9, %v9320_v28  ;;  %v4035_v34 = vmul.f32 %v8469_v32, %v3998_v6  ;;  %v3999_v11 = vmul.f32 %v8457_v30, %v9322_v51  ;;  %4165 = vst [vmem:[%s8125_s8 + $0x90] sm:$0xff] %v4133_v29  ;;  %v9324_v23 = vsub.f32 %v9323_v0, %v8338_v8 }
 0x3d4   : > { %v4103_v14 = vadd.f32 %v4071_v57, %v3912_v41  ;;  %v3913_v40 = vadd.f32 %v8480_v2, %v3876_v61  ;;  %v9326_v1 = vsub.f32 %v9325_v27, %v8341_v24  ;;  %v4134_v22 = vmax.f32 %v4102_v52, 0.0 }
 0x3d5   : > { %v3877_v45 = vmul.f32 %v8454_v26, %v3840_v63  ;;  %v3841_v48 = vmul.f32 %v8446_v9, %v9324_v23  ;;  %v4072_v54 = vadd.f32 %v8499_v59, %v4035_v34  ;;  %v4036_v62 = vmul.f32 %v8469_v32, %v3999_v11  ;;  %v9337_v63 = vld [vmem:[#allocation41_spill] sm:$0xff]  ;;  %v9339_v34 = vld [vmem:[#allocation42_spill] sm:$0xff]  ;;  %v9343_v23 = vld [vmem:[#allocation47_spill] sm:$0xff] }
 0x3d6   : > { %v4000_v49 = vmul.f32 %v8457_v30, %v9326_v1  ;;  %v4135_v44 = vmax.f32 %v4103_v14, 0.0  ;;  %v9328_v33 = vsub.f32 %v9327_v4, %v8338_v8  ;;  %4166 = vst [vmem:[%s8125_s8 + $0x98] sm:$0xff] %v4134_v22  ;;  %v9330_v46 = vsub.f32 %v9329_v7, %v8341_v24  ;;  %v9341_v14 = vld [vmem:[#allocation40_spill] sm:$0xff] }
 0x3d7   : > { %v3914_v50 = vadd.f32 %v8480_v2, %v3877_v45  ;;  %v3878_v36 = vmul.f32 %v8454_v26, %v3841_v48  ;;  %v4104_v3 = vadd.f32 %v4072_v54, %v3913_v40  ;;  %v4073_v12 = vadd.f32 %v8499_v59, %v4036_v62  ;;  %v9345_v54 = vld [vmem:[#allocation45_spill] sm:$0xff] }
 0x3d8   : > { %v4037_v5 = vmul.f32 %v8469_v32, %v4000_v49  ;;  %v3842_v56 = vmul.f32 %v8446_v9, %v9328_v33  ;;  %v4001_v21 = vmul.f32 %v8457_v30, %v9330_v46  ;;  %v9332_v35 = vsub.f32 %v9331_v60, %v8338_v8  ;;  %4167 = vst [vmem:[%s8125_s8 + $0xa0] sm:$0xff] %v4135_v44  ;;  %v9347_v60 = vld [vmem:[#allocation44_spill] sm:$0xff] }
 0x3d9   : > { %v3915_v47 = vadd.f32 %v8480_v2, %v3878_v36  ;;  %v9334_v58 = vsub.f32 %v9333_v42, %v8341_v24  ;;  %v4136_v19 = vmax.f32 %v4104_v3, 0.0  ;;  %v4105_v10 = vadd.f32 %v4073_v12, %v3914_v50  ;;  %v9346_v3 = vld [vmem:[#allocation46_spill] sm:$0xff]  ;;  %v9349_v42 = vld [vmem:[#allocation49_spill] sm:$0xff] }
 0x3da   : > { %v3843_v20 = vmul.f32 %v8446_v9, %v9332_v35  ;;  %v4074_v38 = vadd.f32 %v8499_v59, %v4037_v5  ;;  %v3879_v37 = vmul.f32 %v8454_v26, %v3842_v56  ;;  %v4038_v39 = vmul.f32 %v8469_v32, %v4001_v21 }
 0x3db   : > { %v4002_v17 = vmul.f32 %v8457_v30, %v9334_v58  ;;  %v9336_v25 = vsub.f32 %v9335_v13, %v8338_v8  ;;  %4168 = vst [vmem:[%s8125_s8 + $0xa8] sm:$0xff] %v4136_v19  ;;  %v4137_v6 = vmax.f32 %v4105_v10, 0.0  ;;  %v9338_v29 = vsub.f32 %v9337_v63, %v8341_v24 }
 0x3dc   : > { %v3880_v16 = vmul.f32 %v8454_v26, %v3843_v20  ;;  %v4106_v31 = vadd.f32 %v4074_v38, %v3915_v47  ;;  %v3916_v53 = vadd.f32 %v8480_v2, %v3879_v37  ;;  %v4075_v18 = vadd.f32 %v8499_v59, %v4038_v39  ;;  %v9348_v38 = vld [vmem:[#allocation51_spill] sm:$0xff]  ;;  %v9350_v39 = vld [vmem:[#allocation50_spill] sm:$0xff] }
 0x3dd   : > { %v4039_v43 = vmul.f32 %v8469_v32, %v4002_v17  ;;  %v3844_v55 = vmul.f32 %v8446_v9, %v9336_v25  ;;  %v4003_v41 = vmul.f32 %v8457_v30, %v9338_v29  ;;  %v9340_v45 = vsub.f32 %v9339_v34, %v8338_v8  ;;  %4169 = vst [vmem:[%s8125_s8 + $0xb0] sm:$0xff] %v4137_v6 }
 0x3de   : > { %v3917_v28 = vadd.f32 %v8480_v2, %v3880_v16  ;;  %v4138_v57 = vmax.f32 %v4106_v31, 0.0  ;;  %v4107_v51 = vadd.f32 %v4075_v18, %v3916_v53  ;;  %v9342_v40 = vsub.f32 %v9341_v14, %v8341_v24  ;;  %v9351_v18 = vld [vmem:[#allocation48_spill] sm:$0xff] }
 0x3df   : > { %v4076_v61 = vadd.f32 %v8499_v59, %v4039_v43  ;;  %v3881_v52 = vmul.f32 %v8454_v26, %v3844_v55  ;;  %v3845_v15 = vmul.f32 %v8446_v9, %v9340_v45  ;;  %v4040_v11 = vmul.f32 %v8469_v32, %v4003_v41 }
 0x3e0   : > { %v4004_v0 = vmul.f32 %v8457_v30, %v9342_v40  ;;  %v9344_v48 = vsub.f32 %v9343_v23, %v8338_v8  ;;  %4170 = vst [vmem:[%s8125_s8 + $0xb8] sm:$0xff] %v4138_v57  ;;  %v3965_v50 = vsub.f32 %v9345_v54, %v8341_v24  ;;  %v4139_v62 = vmax.f32 %v4107_v51, 0.0 }
 0x3e1   : > { %v4108_v1 = vadd.f32 %v4076_v61, %v3917_v28  ;;  %v3918_v49 = vadd.f32 %v8480_v2, %v3881_v52  ;;  %v3882_v22 = vmul.f32 %v8454_v26, %v3845_v15  ;;  %v4077_v44 = vadd.f32 %v8499_v59, %v4040_v11 }
 0x3e2   : > { %v3846_v27 = vmul.f32 %v8446_v9, %v9344_v48  ;;  %v4041_v36 = vmul.f32 %v8469_v32, %v4004_v0  ;;  %v4005_v56 = vmul.f32 %v8457_v30, %v3965_v50  ;;  %v3807_v12 = vsub.f32 %v9346_v3, %v8338_v8  ;;  %4171 = vst [vmem:[%s8125_s8 + $0xc0] sm:$0xff] %v4139_v62 }
 0x3e3   : > { %v4140_v4 = vmax.f32 %v4108_v1, 0.0  ;;  %v3919_v33 = vadd.f32 %v8480_v2, %v3882_v22  ;;  %v4109_v7 = vadd.f32 %v4077_v44, %v3918_v49  ;;  %v3966_v35 = vsub.f32 %v9347_v60, %v8341_v24 }
 0x3e4   : > { %v3883_v5 = vmul.f32 %v8454_v26, %v3846_v27  ;;  %v4078_v46 = vadd.f32 %v8499_v59, %v4041_v36  ;;  %v4042_v20 = vmul.f32 %v8469_v32, %v4005_v56  ;;  %v3847_v47 = vmul.f32 %v8446_v9, %v3807_v12 }
 0x3e5   : > { %4172 = vst [vmem:[%s8125_s8 + $0xc8] sm:$0xff] %v4140_v4  ;;  %v3808_v37 = vsub.f32 %v9348_v38, %v8338_v8  ;;  %v3967_v58 = vsub.f32 %v9349_v42, %v8341_v24  ;;  %v4141_v17 = vmax.f32 %v4109_v7, 0.0  ;;  %v4006_v10 = vmul.f32 %v8457_v30, %v3966_v35 }
 0x3e6   : > { %v3920_v21 = vadd.f32 %v8480_v2, %v3883_v5  ;;  %v4110_v19 = vadd.f32 %v4078_v46, %v3919_v33  ;;  %v3809_v16 = vsub.f32 %v9350_v39, %v8338_v8  ;;  %v4079_v31 = vadd.f32 %v8499_v59, %v4042_v20 }
 0x3e7   : > { %v3884_v53 = vmul.f32 %v8454_v26, %v3847_v47  ;;  %v3848_v43 = vmul.f32 %v8446_v9, %v3808_v37  ;;  %v4007_v13 = vmul.f32 %v8457_v30, %v3967_v58  ;;  %4173 = vst [vmem:[%s8125_s8 + $0xd0] sm:$0xff] %v4141_v17  ;;  %v4043_v55 = vmul.f32 %v8469_v32, %v4006_v10 }
 0x3e8   : > { %v4142_v25 = vmax.f32 %v4110_v19, 0.0  ;;  %v3849_v6 = vmul.f32 %v8446_v9, %v3809_v16  ;;  %v3968_v28 = vsub.f32 %v9351_v18, %v8341_v24  ;;  %v4111_v63 = vadd.f32 %v4079_v31, %v3920_v21 }
 0x3e9   : > { %v3921_v8 = vadd.f32 %v8480_v2, %v3884_v53  ;;  %v3885_v29 = vmul.f32 %v8454_v26, %v3848_v43  ;;  %v4044_v41 = vmul.f32 %v8469_v32, %v4007_v13  ;;  %v4080_v57 = vadd.f32 %v8499_v59, %v4043_v55 }
 0x3ea   : > { %4174 = vst [vmem:[%s8125_s8 + $0xd8] sm:$0xff] %v4142_v25  ;;  %v3886_v61 = vmul.f32 %v8454_v26, %v3849_v6  ;;  %v4008_v9 = vmul.f32 %v8457_v30, %v3968_v28  ;;  %v4143_v52 = vmax.f32 %v4111_v63, 0.0 }
 0x3eb   : > { %v3922_v24 = vadd.f32 %v8480_v2, %v3885_v29  ;;  %v4081_v34 = vadd.f32 %v8499_v59, %v4044_v41  ;;  %v4112_v45 = vadd.f32 %v4080_v57, %v3921_v8 }
 0x3ec   : > { %v3923_v15 = vadd.f32 %v8480_v2, %v3886_v61  ;;  %v4045_v51 = vmul.f32 %v8469_v32, %v4008_v9  ;;  %4175 = vst [vmem:[%s8125_s8 + $0xe0] sm:$0xff] %v4143_v52 }
 0x3ed   : > { %v4113_v11 = vadd.f32 %v4081_v34, %v3922_v24  ;;  %v4144_v14 = vmax.f32 %v4112_v45, 0.0 }
 0x3ee   : > { %v4082_v40 = vadd.f32 %v8499_v59, %v4045_v51 }
 0x3ef   : > { %v4145_v0 = vmax.f32 %v4113_v11, 0.0  ;;  %4176 = vst [vmem:[%s8125_s8 + $0xe8] sm:$0xff] %v4144_v14 }
 0x3f0   : > { %v4114_v26 = vadd.f32 %v4082_v40, %v3923_v15 }
 0x3f1   : > { %4177 = vst [vmem:[%s8125_s8 + $0xf0] sm:$0xff] %v4145_v0 }
 0x3f2   : > { %v4146_v30 = vmax.f32 %v4114_v26, 0.0 }
 0x3f4   : > { %4178 = vst [vmem:[%s8125_s8 + $0xf8] sm:$0xff] %v4146_v30 }
 0x3f5 PF: > { %s9352_s16 = sld [smem:[#allocation27_spill]]  ;;  %s9353_s13 = sld [smem:[#allocation26_spill]] }
 0x3f6   : > { %s9355_s5 = sld [smem:[#allocation28_spill]]  ;;  %s4198_s10 = sshll.u32 %s8125_s8, 4  ;;  %s8880_s10 = int_to_ptr.vmem [resolvable:$true] %s4198_s10 }
 0x3f7   : > { %s9356_s0 = sld [smem:[#allocation76_spill]]  ;;  %s8889_s11 = scalar_lea.sflag [#allocation8], %s393_s19 }
 0x3f8   : > { %s6562_s14 = scalar_lea.vmem %s8880_s10, 4096  ;;  %s6710_s21 = smov [#allocation17]  }
 0x3f9   : > { %p6563_p9 = scmp.ne.s32.totalorder %s8880_s10, %s6562_s14  ;;  %s6566_s8 = sshll.u32 %s6710_s21, 4  ;;  %s6567_s8 = int_to_ptr.vmem [resolvable:$false] %s6566_s8 }
 0x3fa   : > { %s6568_s9 = scalar_lea.vmem %s6567_s8, 8192  ;;  %p6569_p3 = scmp.lt.s32.totalorder %s8880_s10, %s6567_s8 }
 0x3fb   : > { %s4187_s22 = smul.u32 %s9353_s13, %s9352_s16  ;;  %p6570_p10 = scmp.lt.s32.totalorder %s6568_s9, %s6562_s14 }
 0x3fc   : > { %p9357_p11 = scmp.ne.s32.totalorder %s9355_s5, 0 }
 0x3fd   : > { %s4421_s12 = sshll.u32 %s4187_s22, 12  ;;  %p6571_p5 = por %p6570_p10, %p6569_p3 }
 0x3fe   : > { %s8885_s4 = scalar_lea.hbm %s9356_s0, %s4421_s12  ;;  %p6564_p13 = pnand %p6563_p9, %p9357_p11 }
 0x400   : > { %p6565_p0 = pneg %p6564_p13 }
 0x402   : > { %p6572_p6 = pnand %p6571_p5, %p6565_p0 }
 0x404   : > { %6575 = shalt.err (!%p6572_p6)
}
 0x405   : > { %s6576_s19 = scalar_lea.hbm %s8885_s4, 4096  ;;  %s6580_s3 = scalar_lea.hbm %s9356_s0, 8192 }
 0x406   : > { %p6577_p8 = scmp.ne.s32.totalorder %s8885_s4, %s6576_s19  ;;  %p6581_p7 = scmp.lt.u32.totalorder %s8885_s4, %s9356_s0 }
 0x407   : > { %p6582_p2 = scmp.lt.u32.totalorder %s6580_s3, %s6576_s19  ;;  %p6584_p9 = scmp.lt.u32.totalorder %s6576_s19, %s8885_s4 }
 0x408   : > { %p6578_p12 = pnand %p6577_p8, %p9357_p11 }
 0x409   : > { %p6583_p1 = por %p6582_p2, %p6581_p7 }
 0x40a   : > { %p6579_p4 = pneg %p6578_p12 }
 0x40b   : > { %p6585_p13 = por %p6584_p9, %p6583_p1 }
 0x40d   : > { %p6586_p0 = pnand %p6585_p13, %p6579_p4 }
 0x40f   : > { %6589 = shalt.err (!%p6586_p0)
}
 0x410   : > { %s6711_s18 = smov 128   ;;  %s6712_s22 = smov 8  }
 0x411   : > { %6224 = dma.vmem_to_hbm [thread:$0]  (%p9357_p11), %s8880_s10, 4096, %s8885_s4, %s8889_s11, %s6711_s18, %s6711_s18, %s6712_s22  }
 0x412 PF: > { %s9358_s12 = sld [smem:[#allocation24_spill]]  ;;  %s9359_s28 = sld [smem:[#allocation29_spill]] }
 0x413   : > { %p6259_p3 = scmp.ge.s32.totalorder %s6700_s7, 2 }
 0x418   : > { %s4213_s20 = sand.u32 1, %s9358_s12   ;;  %p9360_p10 = scmp.ne.s32.totalorder %s9359_s28, 0 }
 0x419   : > { %s4214_s14 = scalar_lea.sflag [#allocation8], %s4213_s20 }
 0x41a   : > { %p6247_p5 = pnand %p6259_p3, %p9360_p10 }
 0x41c   : > { %6655 = dma.done.wait (!%p6247_p5), %s4214_s14, 4096  }
 0x41d   : > { %6657 = vsyncadd (!%p6247_p5), %s4214_s14, 4294963200  ;;  %s27_s7 = sadd.s32 1, %s6700_s7   ;;  %s9361_s21 = sld [smem:[#allocation25_spill]] }
 0x41e   : > { %p24_p6 = scmp.ge.s32.totalorder %s27_s7, 6   ;;  %s9362_s5 = smov %s9377_s27 }
 0x41f   : > { %s9363_s22 = smov %s6668_s23  ;;  %s9364_s23 = smov %s6977_s2 }
 0x420   : > { %s9365_s24 = smov %s6676_s25  ;;  %s9366_s25 = smov %s6680_s26 }
 0x421   : > { %s9367_s26 = smov %s6960_s15  ;;  %s9368_s27 = smov %s6692_s29 }
 0x422   : > { %s9369_s28 = smov %s6696_s30  ;;  %s9370_s29 = smov %s9373_s6 }
 0x423   : > { %s9371_s30 = smov %s9362_s5  ;;  %26 = sbr.rel (!%p24_p6) target bundleno = 20 (0x14), region = 134 }
 0x42a   :  { %4219 = vsyncpa [#allocation7], 1 }
 0x42b   :  { %4221 = vsyncpa [#allocation7 + $0x1], 1 }
 0x42c   :  { %4222 = vsyncpa [#allocation10], 1 }
 0x42d   :  { %4224 = vsyncpa [#allocation10 + $0x1], 1 }
 0x42e   :  { %4225 = vsyncpa [#allocation13], 1 }
 0x42f   :  { %4226 = vsyncpa [#allocation16], 1 }
 0x430   :  { %4227 = vsyncpa [#allocation8], 1 }
 0x431   :  { %4229 = vsyncpa [#allocation8 + $0x1], 1 }

</bundles_post_ra>
